<compile_context>
chip_gen: v5e
topology: v5e:2x2
jax: 0.10.0
libtpu: 0.0.40
codegen_flags: <defaults>
</compile_context>

<pallas_src>
import functools

import jax
import jax.numpy as jnp
from jax.experimental import pallas as pl
from jax.experimental.pallas import tpu as pltpu


# ----------------------------- Pallas kernels --------------------------------

def _conv_taps(s_ref, w_ref, ws, mf, cout):
    """4x4 / stride-2 conv as 4 tap matmuls on the space-to-depth input.

    s_ref block: (1, mf + ws + 1, 4*C_in)  -- frame rows + zero halo.
    w_ref block: (4, 4*C_in, C_out)        -- tap t = 2a + b.
    Tap t reads frame rows shifted by a*ws + b (static offsets).
    """
    y = jnp.zeros((mf, cout), jnp.float32)
    for t in range(4):
        off = (t // 2) * ws + (t % 2)                  # python int -> static
        x_t = s_ref[0, pl.ds(off, mf), :]              # (mf, 4*C_in) bf16
        y = y + jnp.dot(x_t, w_ref[t], preferred_element_type=jnp.float32)
    return y


def _conv_bias_lrelu_kernel(s_ref, w_ref, b_ref, o_ref, *, ws, mf):
    """Layer 1: im2col-free conv (4 tap matmuls) + bias + LeakyReLU(0.2)."""
    y = _conv_taps(s_ref, w_ref, ws, mf, o_ref.shape[-1]) + b_ref[...]
    o_ref[0] = jnp.where(y > 0, y, 0.2 * y).astype(o_ref.dtype)


def _conv_bn_lrelu_kernel(s_ref, w_ref, g_ref, beta_ref, mask_ref, o_ref,
                          s_sum, sq_sum, *, ws, mf, m_valid, eps):
    """Layers 2-4: conv + BatchNorm(batch stats) + LeakyReLU in one launch.

    grid = (2, N): pass 0 accumulates per-channel sums (masked to the valid
    conv outputs) into VMEM scratch; pass 1 recomputes the conv for each image
    and applies BN + LeakyReLU.  Both axes are "arbitrary" (stats accumulate
    across steps).
    """
    p = pl.program_id(0)        # pass: 0 = stats, 1 = apply
    n = pl.program_id(1)        # image

    @pl.when(jnp.logical_and(p == 0, n == 0))
    def _init():
        s_sum[...] = jnp.zeros_like(s_sum)
        sq_sum[...] = jnp.zeros_like(sq_sum)

    y = _conv_taps(s_ref, w_ref, ws, mf, o_ref.shape[-1])   # (mf, C_out) f32

    @pl.when(p == 0)
    def _stats():
        ym = y * mask_ref[...]                               # zero invalid rows
        s_sum[...] += jnp.sum(ym, axis=0, keepdims=True)
        sq_sum[...] += jnp.sum(ym * y, axis=0, keepdims=True)

    @pl.when(p == 1)
    def _apply():
        inv_m = 1.0 / m_valid
        mean = s_sum[...] * inv_m
        var = jnp.maximum(sq_sum[...] * inv_m - mean * mean, 0.0)   # biased var
        scale = g_ref[...] * jax.lax.rsqrt(var + eps)
        shift = beta_ref[...] - mean * scale
        z = y * scale + shift
        o_ref[0] = jnp.where(z > 0, z, 0.2 * z).astype(o_ref.dtype)


# ----------------------------- JAX glue --------------------------------------

def _space_to_depth(x_nhwc):
    """pad(1) + 2x2 space-to-depth + flatten (+ zero halo rows per image).

    Returns (s, hs, ws): s is (N, hs*ws + ws + 1, 4*C) bf16.  Row i*ws + j
    holds the 2x2 block of the padded input at super-pixel (i, j), channel
    order ((p*2 + q)*C + c).  A 4x4/stride-2/pad-1 conv becomes a 2x2 stride-1
    conv over super-pixels -> 4 in-kernel tap matmuls, no patch matrix in HBM.
    """
    n, h, w, c = x_nhwc.shape
    xp = jnp.pad(x_nhwc.astype(jnp.bfloat16), ((0, 0), (1, 1), (1, 1), (0, 0)))
    hs, ws = (h + 2) // 2, (w + 2) // 2
    s = xp.reshape(n, hs, 2, ws, 2, c)
    s = jnp.transpose(s, (0, 1, 3, 2, 4, 5)).reshape(n, hs * ws, 4 * c)
    s = jnp.pad(s, ((0, 0), (0, ws + 1), (0, 0)))   # halo: tap loads stay in-range
    return s, hs, ws


def _pack_taps(w_oihw):
    """OIHW 4x4 conv weight -> (4, 4*C_in, C_out) bf16 tap weights."""
    co, ci, _, _ = w_oihw.shape
    taps = []
    for a in range(2):
        for b in range(2):
            wt = w_oihw[:, :, 2 * a:2 * a + 2, 2 * b:2 * b + 2]   # (co, ci, p, q)
            taps.append(jnp.transpose(wt, (2, 3, 1, 0)).reshape(4 * ci, co))
    return jnp.stack(taps, 0).astype(jnp.bfloat16)


def _valid_mask(hs, ws):
    """(hs*ws, 1) f32: 1 on frame rows that are real conv outputs."""
    idx = jnp.arange(hs * ws)
    valid = ((idx // ws) < hs - 1) & ((idx % ws) < ws - 1)
    return valid.astype(jnp.float32).reshape(hs * ws, 1)


def _conv_layer(x_nhwc, wk, *, bias=None, gamma=None, beta=None,
                out_dtype=jnp.bfloat16, eps=1e-5):
    """One conv(4,2,1) layer: +bias+LReLU (layer 1) or +BN+LReLU (layers 2-4)."""
    n, h, w, cin = x_nhwc.shape
    cout = wk.shape[0]
    s, hs, ws = _space_to_depth(x_nhwc)
    mf = hs * ws                      # frame rows per image (valid = (hs-1)*(ws-1))
    rows = s.shape[1]                 # mf + halo
    k4 = 4 * cin
    wp = _pack_taps(wk)

    if gamma is None:
        out = pl.pallas_call(
            functools.partial(_conv_bias_lrelu_kernel, ws=ws, mf=mf),
            out_shape=jax.ShapeDtypeStruct((n, mf, cout), out_dtype),
            grid=(n,),
            in_specs=[pl.BlockSpec((1, rows, k4), lambda i: (i, 0, 0)),
                      pl.BlockSpec((4, k4, cout), lambda i: (0, 0, 0)),
                      pl.BlockSpec((1, cout), lambda i: (0, 0))],
            out_specs=pl.BlockSpec((1, mf, cout), lambda i: (i, 0, 0)),
            compiler_params=pltpu.CompilerParams(
                dimension_semantics=("parallel",)),      # >=2 programs at N>=2
        )(s, wp, bias.reshape(1, cout).astype(jnp.float32))
    else:
        mask = _valid_mask(hs, ws)
        m_valid = float(n * (hs - 1) * (ws - 1))
        # Output index map: all pass-0 steps alias block 0 (never written back
        # before pass 1 touches it), pass-1 steps write block n -> every output
        # block is visited consecutively and only real data reaches HBM.
        out = pl.pallas_call(
            functools.partial(_conv_bn_lrelu_kernel, ws=ws, mf=mf,
                              m_valid=m_valid, eps=eps),
            out_shape=jax.ShapeDtypeStruct((n, mf, cout), out_dtype),
            grid=(2, n),
            in_specs=[pl.BlockSpec((1, rows, k4), lambda p, i: (i, 0, 0)),
                      pl.BlockSpec((4, k4, cout), lambda p, i: (0, 0, 0)),
                      pl.BlockSpec((1, cout), lambda p, i: (0, 0)),
                      pl.BlockSpec((1, cout), lambda p, i: (0, 0)),
                      pl.BlockSpec((mf, 1), lambda p, i: (0, 0))],
            out_specs=pl.BlockSpec((1, mf, cout), lambda p, i: (p * i, 0, 0)),
            scratch_shapes=[pltpu.VMEM((1, cout), jnp.float32),
                            pltpu.VMEM((1, cout), jnp.float32)],
            compiler_params=pltpu.CompilerParams(
                dimension_semantics=("arbitrary", "arbitrary")),
        )(s, wp, gamma.reshape(1, cout).astype(jnp.float32),
          beta.reshape(1, cout).astype(jnp.float32), mask)

    # Drop the frame's last row/col (positions that are not real conv outputs).
    return out.reshape(n, hs, ws, cout)[:, :hs - 1, :ws - 1, :]


def _head_sigmoid(x_nhwc, w5, b5):
    # Final 4x4 / stride-1 / pad-0 conv yields one scalar per image; a
    # 2-element result is not worth a Pallas launch -> plain jnp dot + sigmoid.
    n, h, w, c = x_nhwc.shape
    xf = x_nhwc.astype(jnp.float32).reshape(n, h * w * c)
    wv = jnp.transpose(w5, (2, 3, 1, 0)).reshape(h * w * c, 1).astype(jnp.float32)
    y = jax.nn.sigmoid(xf @ wv + b5.astype(jnp.float32).reshape(1, 1))
    return y.reshape(n)                                  # always (N,)


# ----------------------------- model ------------------------------------------

def init_params(key, num_channel=3, ndf=16):
    ks = jax.random.split(key, 5)
    std = 0.02
    return {
        "w1": std * jax.random.normal(ks[0], (ndf, num_channel, 4, 4), jnp.float32),
        "b1": jnp.zeros((ndf,), jnp.float32),
        "w2": std * jax.random.normal(ks[1], (ndf * 2, ndf, 4, 4), jnp.float32),
        "g2": jnp.ones((ndf * 2,), jnp.float32),
        "be2": jnp.zeros((ndf * 2,), jnp.float32),
        "w3": std * jax.random.normal(ks[2], (ndf * 4, ndf * 2, 4, 4), jnp.float32),
        "g3": jnp.ones((ndf * 4,), jnp.float32),
        "be3": jnp.zeros((ndf * 4,), jnp.float32),
        "w4": std * jax.random.normal(ks[3], (ndf * 8, ndf * 4, 4, 4), jnp.float32),
        "g4": jnp.ones((ndf * 8,), jnp.float32),
        "be4": jnp.zeros((ndf * 8,), jnp.float32),
        "w5": std * jax.random.normal(ks[4], (1, ndf * 8, 4, 4), jnp.float32),
        "b5": jnp.zeros((1,), jnp.float32),
    }


def discriminator_forward(params, x_nchw):
    x = jnp.transpose(x_nchw, (0, 2, 3, 1))              # NCHW -> NHWC
    x = _conv_layer(x, params["w1"], bias=params["b1"])
    x = _conv_layer(x, params["w2"], gamma=params["g2"], beta=params["be2"])
    x = _conv_layer(x, params["w3"], gamma=params["g3"], beta=params["be3"])
    x = _conv_layer(x, params["w4"], gamma=params["g4"], beta=params["be4"],
                    out_dtype=jnp.float32)
    return _head_sigmoid(x, params["w5"], params["b5"])


# ----------------------------- pure-JAX reference -----------------------------

def _ref_forward(params, x_nchw, eps=1e-5):
    def conv(x, w, b, stride, pad):
        y = jax.lax.conv_general_dilated(
            x, w, (stride, stride), [(pad, pad), (pad, pad)],
            dimension_numbers=("NCHW", "OIHW", "NCHW"))
        if b is not None:
            y = y + b.reshape(1, -1, 1, 1)
        return y

    def bn(x, g, b):
        m = jnp.mean(x, axis=(0, 2, 3), keepdims=True)
        v = jnp.var(x, axis=(0, 2, 3), keepdims=True)
        return ((x - m) * jax.lax.rsqrt(v + eps) * g.reshape(1, -1, 1, 1)
                + b.reshape(1, -1, 1, 1))

    lrelu = lambda t: jnp.where(t > 0, t, 0.2 * t)
    x = lrelu(conv(x_nchw, params["w1"], params["b1"], 2, 1))
    x = lrelu(bn(conv(x, params["w2"], None, 2, 1), params["g2"], params["be2"]))
    x = lrelu(bn(conv(x, params["w3"], None, 2, 1), params["g3"], params["be3"]))
    x = lrelu(bn(conv(x, params["w4"], None, 2, 1), params["g4"], params["be4"]))
    x = jax.nn.sigmoid(conv(x, params["w5"], params["b5"], 1, 0))
    return x.reshape(x.shape[0])


# ----------------------------- main --------------------------------------------

if __name__ == "__main__":
    key = jax.random.PRNGKey(0)
    pkey, xkey = jax.random.split(key)

    # 3-channel 64x64 images (64 is required by the final 4x4/s1/p0 conv), ndf=16.
    params = init_params(pkey, num_channel=3, ndf=16)
    x = jax.random.normal(xkey, (2, 3, 64, 64), jnp.float32)

    fwd = jax.jit(discriminator_forward)
    out = jax.block_until_ready(fwd(params, x))
    ref = jax.block_until_ready(_ref_forward(params, x))

    assert out.shape == (2,), out.shape
    # bf16 matmul operands / bf16 inter-layer activations (f32 accumulation)
    # vs. the all-f32 reference -> a couple percent tolerance.
    assert jnp.allclose(out, ref, rtol=2e-2, atol=2e-2), (out, ref)
    print("KERNEL_OK")
</pallas_src>

<mosaic_0001>
module attributes {stable_mosaic.version = 11 : i64} {
  func.func @_conv_bias_lrelu_kernel(%arg0: i32, %arg1: memref<1x1123x12xbf16, #tpu.memory_space<vmem>>, %arg2: memref<4x12x16xbf16, #tpu.memory_space<vmem>>, %arg3: memref<1x16xf32, #tpu.memory_space<vmem>>, %arg4: memref<1x1089x16xbf16, #tpu.memory_space<vmem>>) attributes {dimension_semantics = [#tpu.dimension_semantics<parallel>], iteration_bounds = array<i64: 2>, scalar_prefetch = 0 : i64, scratch_operands = 0 : i64, tpu.core_type = #tpu.core_type<tc>, window_params = [{transform_indices = @transform_0, window_bounds = array<i64: 1, 1123, 12>}, {pipeline_mode = #tpu.pipeline_mode<synchronous>, transform_indices = @transform_1, window_bounds = array<i64: 4, 12, 16>}, {pipeline_mode = #tpu.pipeline_mode<synchronous>, transform_indices = @transform_2, window_bounds = array<i64: 1, 16>}, {transform_indices = @transform_3, window_bounds = array<i64: 1, 1089, 16>}]} {
    %cst = arith.constant 0.000000e+00 : f32
    %0 = vector.broadcast %cst : f32 to vector<1089x16xf32>
    %c0 = arith.constant 0 : index
    %c0_0 = arith.constant 0 : index
    %c0_1 = arith.constant 0 : index
    %1 = vector.load %arg1[%c0, %c0_0, %c0_1] : memref<1x1123x12xbf16, #tpu.memory_space<vmem>>, vector<1x1089x12xbf16>
    %2 = vector.shape_cast %1 : vector<1x1089x12xbf16> to vector<1089x12xbf16>
    %c0_2 = arith.constant 0 : index
    %c0_3 = arith.constant 0 : index
    %c0_4 = arith.constant 0 : index
    %3 = vector.load %arg2[%c0_2, %c0_3, %c0_4] : memref<4x12x16xbf16, #tpu.memory_space<vmem>>, vector<1x12x16xbf16>
    %4 = vector.shape_cast %3 : vector<1x12x16xbf16> to vector<12x16xbf16>
    %cst_5 = arith.constant dense<0.000000e+00> : vector<1089x16xf32>
    %5 = tpu.matmul %2, %4, %cst_5 {dimension_numbers = #tpu.dot_dimension_numbers<[1], [0], [0], [1], [0, 0, 1, 1], [], []>} : vector<1089x12xbf16>, vector<12x16xbf16>, vector<1089x16xf32> -> vector<1089x16xf32>
    %6 = arith.addf %0, %5 : vector<1089x16xf32>
    %c0_6 = arith.constant 0 : index
    %c1 = arith.constant 1 : index
    %c0_7 = arith.constant 0 : index
    %7 = vector.load %arg1[%c0_6, %c1, %c0_7] : memref<1x1123x12xbf16, #tpu.memory_space<vmem>>, vector<1x1089x12xbf16>
    %8 = vector.shape_cast %7 : vector<1x1089x12xbf16> to vector<1089x12xbf16>
    %c1_8 = arith.constant 1 : index
    %c0_9 = arith.constant 0 : index
    %c0_10 = arith.constant 0 : index
    %9 = vector.load %arg2[%c1_8, %c0_9, %c0_10] : memref<4x12x16xbf16, #tpu.memory_space<vmem>>, vector<1x12x16xbf16>
    %10 = vector.shape_cast %9 : vector<1x12x16xbf16> to vector<12x16xbf16>
    %cst_11 = arith.constant dense<0.000000e+00> : vector<1089x16xf32>
    %11 = tpu.matmul %8, %10, %cst_11 {dimension_numbers = #tpu.dot_dimension_numbers<[1], [0], [0], [1], [0, 0, 1, 1], [], []>} : vector<1089x12xbf16>, vector<12x16xbf16>, vector<1089x16xf32> -> vector<1089x16xf32>
    %12 = arith.addf %6, %11 : vector<1089x16xf32>
    %c0_12 = arith.constant 0 : index
    %c33 = arith.constant 33 : index
    %c0_13 = arith.constant 0 : index
    %13 = vector.load %arg1[%c0_12, %c33, %c0_13] : memref<1x1123x12xbf16, #tpu.memory_space<vmem>>, vector<1x1089x12xbf16>
    %14 = vector.shape_cast %13 : vector<1x1089x12xbf16> to vector<1089x12xbf16>
    %c2 = arith.constant 2 : index
    %c0_14 = arith.constant 0 : index
    %c0_15 = arith.constant 0 : index
    %15 = vector.load %arg2[%c2, %c0_14, %c0_15] : memref<4x12x16xbf16, #tpu.memory_space<vmem>>, vector<1x12x16xbf16>
    %16 = vector.shape_cast %15 : vector<1x12x16xbf16> to vector<12x16xbf16>
    %cst_16 = arith.constant dense<0.000000e+00> : vector<1089x16xf32>
    %17 = tpu.matmul %14, %16, %cst_16 {dimension_numbers = #tpu.dot_dimension_numbers<[1], [0], [0], [1], [0, 0, 1, 1], [], []>} : vector<1089x12xbf16>, vector<12x16xbf16>, vector<1089x16xf32> -> vector<1089x16xf32>
    %18 = arith.addf %12, %17 : vector<1089x16xf32>
    %c0_17 = arith.constant 0 : index
    %c34 = arith.constant 34 : index
    %c0_18 = arith.constant 0 : index
    %19 = vector.load %arg1[%c0_17, %c34, %c0_18] : memref<1x1123x12xbf16, #tpu.memory_space<vmem>>, vector<1x1089x12xbf16>
    %20 = vector.shape_cast %19 : vector<1x1089x12xbf16> to vector<1089x12xbf16>
    %c3 = arith.constant 3 : index
    %c0_19 = arith.constant 0 : index
    %c0_20 = arith.constant 0 : index
    %21 = vector.load %arg2[%c3, %c0_19, %c0_20] : memref<4x12x16xbf16, #tpu.memory_space<vmem>>, vector<1x12x16xbf16>
    %22 = vector.shape_cast %21 : vector<1x12x16xbf16> to vector<12x16xbf16>
    %cst_21 = arith.constant dense<0.000000e+00> : vector<1089x16xf32>
    %23 = tpu.matmul %20, %22, %cst_21 {dimension_numbers = #tpu.dot_dimension_numbers<[1], [0], [0], [1], [0, 0, 1, 1], [], []>} : vector<1089x12xbf16>, vector<12x16xbf16>, vector<1089x16xf32> -> vector<1089x16xf32>
    %24 = arith.addf %18, %23 : vector<1089x16xf32>
    %c0_22 = arith.constant 0 : index
    %c0_23 = arith.constant 0 : index
    %25 = vector.load %arg3[%c0_22, %c0_23] : memref<1x16xf32, #tpu.memory_space<vmem>>, vector<1x16xf32>
    %26 = vector.broadcast %25 : vector<1x16xf32> to vector<1089x16xf32>
    %27 = arith.addf %24, %26 : vector<1089x16xf32>
    %cst_24 = arith.constant 0.000000e+00 : f32
    %28 = vector.broadcast %cst_24 : f32 to vector<1089x16xf32>
    %29 = arith.cmpf ogt, %27, %28 : vector<1089x16xf32>
    %cst_25 = arith.constant 2.000000e-01 : f32
    %30 = vector.broadcast %cst_25 : f32 to vector<1089x16xf32>
    %31 = arith.mulf %30, %27 : vector<1089x16xf32>
    %32 = arith.select %29, %27, %31 : vector<1089x16xi1>, vector<1089x16xf32>
    %33 = arith.truncf %32 : vector<1089x16xf32> to vector<1089x16xbf16>
    %c0_26 = arith.constant 0 : index
    %c0_27 = arith.constant 0 : index
    %c0_28 = arith.constant 0 : index
    %34 = vector.load %arg4[%c0_26, %c0_27, %c0_28] : memref<1x1089x16xbf16, #tpu.memory_space<vmem>>, vector<1x1089x16xbf16>
    %35 = vector.shape_cast %34 : vector<1x1089x16xbf16> to vector<1089x16xbf16>
    %36 = vector.shape_cast %33 : vector<1089x16xbf16> to vector<1x1089x16xbf16>
    tpu.vector_store %arg4[%c0_26, %c0_27, %c0_28], %36 {strides = array<i32>} : memref<1x1089x16xbf16, #tpu.memory_space<vmem>>, vector<1x1089x16xbf16>,
    return
  }
  func.func @transform_0(%arg0: i32) -> (i32, i32, i32) {
    %c0_i32 = arith.constant 0 : i32
    %c0_i32_0 = arith.constant 0 : i32
    %c0_i32_1 = arith.constant 0 : i32
    return %arg0, %c0_i32, %c0_i32_0 : i32, i32, i32
  }
  func.func @transform_1(%arg0: i32) -> (i32, i32, i32) {
    %c0_i32 = arith.constant 0 : i32
    %c0_i32_0 = arith.constant 0 : i32
    %c0_i32_1 = arith.constant 0 : i32
    %c0_i32_2 = arith.constant 0 : i32
    return %c0_i32, %c0_i32_0, %c0_i32_1 : i32, i32, i32
  }
  func.func @transform_2(%arg0: i32) -> (i32, i32) {
    %c0_i32 = arith.constant 0 : i32
    %c0_i32_0 = arith.constant 0 : i32
    %c0_i32_1 = arith.constant 0 : i32
    return %c0_i32, %c0_i32_0 : i32, i32
  }
  func.func @transform_3(%arg0: i32) -> (i32, i32, i32) {
    %c0_i32 = arith.constant 0 : i32
    %c0_i32_0 = arith.constant 0 : i32
    %c0_i32_1 = arith.constant 0 : i32
    return %arg0, %c0_i32, %c0_i32_0 : i32, i32, i32
  }
}

module attributes {stable_mosaic.version = 11 : i64} {
  func.func @_conv_bn_lrelu_kernel(%arg0: i32, %arg1: i32, %arg2: memref<1x307x64xbf16, #tpu.memory_space<vmem>>, %arg3: memref<4x64x32xbf16, #tpu.memory_space<vmem>>, %arg4: memref<1x32xf32, #tpu.memory_space<vmem>>, %arg5: memref<1x32xf32, #tpu.memory_space<vmem>>, %arg6: memref<289x1xf32, #tpu.memory_space<vmem>>, %arg7: memref<1x289x32xbf16, #tpu.memory_space<vmem>>, %arg8: memref<1x32xf32, #tpu.memory_space<vmem>>, %arg9: memref<1x32xf32, #tpu.memory_space<vmem>>) attributes {dimension_semantics = [#tpu.dimension_semantics<arbitrary>, #tpu.dimension_semantics<arbitrary>], iteration_bounds = array<i64: 2, 2>, scalar_prefetch = 0 : i64, scratch_operands = 2 : i64, tpu.core_type = #tpu.core_type<tc>, window_params = [{transform_indices = @transform_0, window_bounds = array<i64: 1, 307, 64>}, {pipeline_mode = #tpu.pipeline_mode<synchronous>, transform_indices = @transform_1, window_bounds = array<i64: 4, 64, 32>}, {pipeline_mode = #tpu.pipeline_mode<synchronous>, transform_indices = @transform_2, window_bounds = array<i64: 1, 32>}, {pipeline_mode = #tpu.pipeline_mode<synchronous>, transform_indices = @transform_3, window_bounds = array<i64: 1, 32>}, {pipeline_mode = #tpu.pipeline_mode<synchronous>, transform_indices = @transform_4, window_bounds = array<i64: 289, 1>}, {transform_indices = @transform_5, window_bounds = array<i64: 1, 289, 32>}]} {
    %c0_i32 = arith.constant 0 : i32
    %0 = arith.cmpi eq, %arg0, %c0_i32 : i32
    %c0_i32_0 = arith.constant 0 : i32
    %1 = arith.cmpi eq, %arg1, %c0_i32_0 : i32
    %2 = arith.andi %0, %1 : i1
    %3 = arith.extui %2 : i1 to i32
    %c0_i32_1 = arith.constant 0 : i32
    %4 = arith.cmpi ne, %3, %c0_i32_1 : i32
    scf.if %4 {
      %cst_27 = arith.constant 0.000000e+00 : f32
      %36 = vector.broadcast %cst_27 : f32 to vector<1x32xf32>
      %c0_28 = arith.constant 0 : index
      %c0_29 = arith.constant 0 : index
      %37 = vector.load %arg8[%c0_28, %c0_29] : memref<1x32xf32, #tpu.memory_space<vmem>>, vector<1x32xf32>
      tpu.vector_store %arg8[%c0_28, %c0_29], %36 {strides = array<i32>} : memref<1x32xf32, #tpu.memory_space<vmem>>, vector<1x32xf32>,
      %cst_30 = arith.constant 0.000000e+00 : f32
      %38 = vector.broadcast %cst_30 : f32 to vector<1x32xf32>
      %c0_31 = arith.constant 0 : index
      %c0_32 = arith.constant 0 : index
      %39 = vector.load %arg9[%c0_31, %c0_32] : memref<1x32xf32, #tpu.memory_space<vmem>>, vector<1x32xf32>
      tpu.vector_store %arg9[%c0_31, %c0_32], %38 {strides = array<i32>} : memref<1x32xf32, #tpu.memory_space<vmem>>, vector<1x32xf32>,
    } else {
    }
    %cst = arith.constant 0.000000e+00 : f32
    %5 = vector.broadcast %cst : f32 to vector<289x32xf32>
    %c0 = arith.constant 0 : index
    %c0_2 = arith.constant 0 : index
    %c0_3 = arith.constant 0 : index
    %6 = vector.load %arg2[%c0, %c0_2, %c0_3] : memref<1x307x64xbf16, #tpu.memory_space<vmem>>, vector<1x289x64xbf16>
    %7 = vector.shape_cast %6 : vector<1x289x64xbf16> to vector<289x64xbf16>
    %c0_4 = arith.constant 0 : index
    %c0_5 = arith.constant 0 : index
    %c0_6 = arith.constant 0 : index
    %8 = vector.load %arg3[%c0_4, %c0_5, %c0_6] : memref<4x64x32xbf16, #tpu.memory_space<vmem>>, vector<1x64x32xbf16>
    %9 = vector.shape_cast %8 : vector<1x64x32xbf16> to vector<64x32xbf16>
    %cst_7 = arith.constant dense<0.000000e+00> : vector<289x32xf32>
    %10 = tpu.matmul %7, %9, %cst_7 {dimension_numbers = #tpu.dot_dimension_numbers<[1], [0], [0], [1], [0, 0, 1, 1], [], []>} : vector<289x64xbf16>, vector<64x32xbf16>, vector<289x32xf32> -> vector<289x32xf32>
    %11 = arith.addf %5, %10 : vector<289x32xf32>
    %c0_8 = arith.constant 0 : index
    %c1 = arith.constant 1 : index
    %c0_9 = arith.constant 0 : index
    %12 = vector.load %arg2[%c0_8, %c1, %c0_9] : memref<1x307x64xbf16, #tpu.memory_space<vmem>>, vector<1x289x64xbf16>
    %13 = vector.shape_cast %12 : vector<1x289x64xbf16> to vector<289x64xbf16>
    %c1_10 = arith.constant 1 : index
    %c0_11 = arith.constant 0 : index
    %c0_12 = arith.constant 0 : index
    %14 = vector.load %arg3[%c1_10, %c0_11, %c0_12] : memref<4x64x32xbf16, #tpu.memory_space<vmem>>, vector<1x64x32xbf16>
    %15 = vector.shape_cast %14 : vector<1x64x32xbf16> to vector<64x32xbf16>
    %cst_13 = arith.constant dense<0.000000e+00> : vector<289x32xf32>
    %16 = tpu.matmul %13, %15, %cst_13 {dimension_numbers = #tpu.dot_dimension_numbers<[1], [0], [0], [1], [0, 0, 1, 1], [], []>} : vector<289x64xbf16>, vector<64x32xbf16>, vector<289x32xf32> -> vector<289x32xf32>
    %17 = arith.addf %11, %16 : vector<289x32xf32>
    %c0_14 = arith.constant 0 : index
    %c17 = arith.constant 17 : index
    %c0_15 = arith.constant 0 : index
    %18 = vector.load %arg2[%c0_14, %c17, %c0_15] : memref<1x307x64xbf16, #tpu.memory_space<vmem>>, vector<1x289x64xbf16>
    %19 = vector.shape_cast %18 : vector<1x289x64xbf16> to vector<289x64xbf16>
    %c2 = arith.constant 2 : index
    %c0_16 = arith.constant 0 : index
    %c0_17 = arith.constant 0 : index
    %20 = vector.load %arg3[%c2, %c0_16, %c0_17] : memref<4x64x32xbf16, #tpu.memory_space<vmem>>, vector<1x64x32xbf16>
    %21 = vector.shape_cast %20 : vector<1x64x32xbf16> to vector<64x32xbf16>
    %cst_18 = arith.constant dense<0.000000e+00> : vector<289x32xf32>
    %22 = tpu.matmul %19, %21, %cst_18 {dimension_numbers = #tpu.dot_dimension_numbers<[1], [0], [0], [1], [0, 0, 1, 1], [], []>} : vector<289x64xbf16>, vector<64x32xbf16>, vector<289x32xf32> -> vector<289x32xf32>
    %23 = arith.addf %17, %22 : vector<289x32xf32>
    %c0_19 = arith.constant 0 : index
    %c18 = arith.constant 18 : index
    %c0_20 = arith.constant 0 : index
    %24 = vector.load %arg2[%c0_19, %c18, %c0_20] : memref<1x307x64xbf16, #tpu.memory_space<vmem>>, vector<1x289x64xbf16>
    %25 = vector.shape_cast %24 : vector<1x289x64xbf16> to vector<289x64xbf16>
    %c3 = arith.constant 3 : index
    %c0_21 = arith.constant 0 : index
    %c0_22 = arith.constant 0 : index
    %26 = vector.load %arg3[%c3, %c0_21, %c0_22] : memref<4x64x32xbf16, #tpu.memory_space<vmem>>, vector<1x64x32xbf16>
    %27 = vector.shape_cast %26 : vector<1x64x32xbf16> to vector<64x32xbf16>
    %cst_23 = arith.constant dense<0.000000e+00> : vector<289x32xf32>
    %28 = tpu.matmul %25, %27, %cst_23 {dimension_numbers = #tpu.dot_dimension_numbers<[1], [0], [0], [1], [0, 0, 1, 1], [], []>} : vector<289x64xbf16>, vector<64x32xbf16>, vector<289x32xf32> -> vector<289x32xf32>
    %29 = arith.addf %23, %28 : vector<289x32xf32>
    %c0_i32_24 = arith.constant 0 : i32
    %30 = arith.cmpi eq, %arg0, %c0_i32_24 : i32
    %31 = arith.extui %30 : i1 to i32
    %c0_i32_25 = arith.constant 0 : i32
    %32 = arith.cmpi ne, %31, %c0_i32_25 : i32
    scf.if %32 {
      %c0_27 = arith.constant 0 : index
      %c0_28 = arith.constant 0 : index
      %36 = vector.load %arg6[%c0_27, %c0_28] : memref<289x1xf32, #tpu.memory_space<vmem>>, vector<289x1xf32>
      %37 = vector.broadcast %36 : vector<289x1xf32> to vector<289x32xf32>
      %38 = arith.mulf %29, %37 : vector<289x32xf32>
      %c0_29 = arith.constant 0 : index
      %c0_30 = arith.constant 0 : index
      %39 = vector.load %arg8[%c0_29, %c0_30] : memref<1x32xf32, #tpu.memory_space<vmem>>, vector<1x32xf32>
      %cst_31 = arith.constant dense<0.000000e+00> : vector<32xf32>
      %40 = vector.multi_reduction <add>, %38, %cst_31 [0] : vector<289x32xf32> to vector<32xf32>
      %41 = vector.shape_cast %40 : vector<32xf32> to vector<1x32xf32>
      %42 = arith.addf %39, %41 : vector<1x32xf32>
      %c0_32 = arith.constant 0 : index
      %c0_33 = arith.constant 0 : index
      %43 = vector.load %arg8[%c0_32, %c0_33] : memref<1x32xf32, #tpu.memory_space<vmem>>, vector<1x32xf32>
      tpu.vector_store %arg8[%c0_32, %c0_33], %42 {strides = array<i32>} : memref<1x32xf32, #tpu.memory_space<vmem>>, vector<1x32xf32>,
      %c0_34 = arith.constant 0 : index
      %c0_35 = arith.constant 0 : index
      %44 = vector.load %arg9[%c0_34, %c0_35] : memref<1x32xf32, #tpu.memory_space<vmem>>, vector<1x32xf32>
      %45 = arith.mulf %38, %29 : vector<289x32xf32>
      %cst_36 = arith.constant dense<0.000000e+00> : vector<32xf32>
      %46 = vector.multi_reduction <add>, %45, %cst_36 [0] : vector<289x32xf32> to vector<32xf32>
      %47 = vector.shape_cast %46 : vector<32xf32> to vector<1x32xf32>
      %48 = arith.addf %44, %47 : vector<1x32xf32>
      %c0_37 = arith.constant 0 : index
      %c0_38 = arith.constant 0 : index
      %49 = vector.load %arg9[%c0_37, %c0_38] : memref<1x32xf32, #tpu.memory_space<vmem>>, vector<1x32xf32>
      tpu.vector_store %arg9[%c0_37, %c0_38], %48 {strides = array<i32>} : memref<1x32xf32, #tpu.memory_space<vmem>>, vector<1x32xf32>,
    } else {
    }
    %c1_i32 = arith.constant 1 : i32
    %33 = arith.cmpi eq, %arg0, %c1_i32 : i32
    %34 = arith.extui %33 : i1 to i32
    %c0_i32_26 = arith.constant 0 : i32
    %35 = arith.cmpi ne, %34, %c0_i32_26 : i32
    scf.if %35 {
      %c0_27 = arith.constant 0 : index
      %c0_28 = arith.constant 0 : index
      %36 = vector.load %arg8[%c0_27, %c0_28] : memref<1x32xf32, #tpu.memory_space<vmem>>, vector<1x32xf32>
      %cst_29 = arith.constant 0.001953125 : f32
      %37 = vector.broadcast %cst_29 : f32 to vector<1x32xf32>
      %38 = arith.mulf %36, %37 : vector<1x32xf32>
      %c0_30 = arith.constant 0 : index
      %c0_31 = arith.constant 0 : index
      %39 = vector.load %arg9[%c0_30, %c0_31] : memref<1x32xf32, #tpu.memory_space<vmem>>, vector<1x32xf32>
      %cst_32 = arith.constant 0.001953125 : f32
      %40 = vector.broadcast %cst_32 : f32 to vector<1x32xf32>
      %41 = arith.mulf %39, %40 : vector<1x32xf32>
      %42 = arith.mulf %38, %38 : vector<1x32xf32>
      %43 = arith.subf %41, %42 : vector<1x32xf32>
      %cst_33 = arith.constant 0.000000e+00 : f32
      %44 = vector.broadcast %cst_33 : f32 to vector<1x32xf32>
      %45 = arith.maximumf %43, %44 : vector<1x32xf32>
      %c0_34 = arith.constant 0 : index
      %c0_35 = arith.constant 0 : index
      %46 = vector.load %arg4[%c0_34, %c0_35] : memref<1x32xf32, #tpu.memory_space<vmem>>, vector<1x32xf32>
      %cst_36 = arith.constant 9.99999974E-6 : f32
      %47 = vector.broadcast %cst_36 : f32 to vector<1x32xf32>
      %48 = arith.addf %45, %47 : vector<1x32xf32>
      %49 = math.rsqrt %48 : vector<1x32xf32>
      %50 = arith.mulf %46, %49 : vector<1x32xf32>
      %c0_37 = arith.constant 0 : index
      %c0_38 = arith.constant 0 : index
      %51 = vector.load %arg5[%c0_37, %c0_38] : memref<1x32xf32, #tpu.memory_space<vmem>>, vector<1x32xf32>
      %52 = arith.mulf %38, %50 : vector<1x32xf32>
      %53 = arith.subf %51, %52 : vector<1x32xf32>
      %54 = vector.broadcast %50 : vector<1x32xf32> to vector<289x32xf32>
      %55 = arith.mulf %29, %54 : vector<289x32xf32>
      %56 = vector.broadcast %53 : vector<1x32xf32> to vector<289x32xf32>
      %57 = arith.addf %55, %56 : vector<289x32xf32>
      %cst_39 = arith.constant 0.000000e+00 : f32
      %58 = vector.broadcast %cst_39 : f32 to vector<289x32xf32>
      %59 = arith.cmpf ogt, %57, %58 : vector<289x32xf32>
      %cst_40 = arith.constant 2.000000e-01 : f32
      %60 = vector.broadcast %cst_40 : f32 to vector<289x32xf32>
      %61 = arith.mulf %60, %57 : vector<289x32xf32>
      %62 = arith.select %59, %57, %61 : vector<289x32xi1>, vector<289x32xf32>
      %63 = arith.truncf %62 : vector<289x32xf32> to vector<289x32xbf16>
      %c0_41 = arith.constant 0 : index
      %c0_42 = arith.constant 0 : index
      %c0_43 = arith.constant 0 : index
      %64 = vector.load %arg7[%c0_41, %c0_42, %c0_43] : memref<1x289x32xbf16, #tpu.memory_space<vmem>>, vector<1x289x32xbf16>
      %65 = vector.shape_cast %64 : vector<1x289x32xbf16> to vector<289x32xbf16>
      %66 = vector.shape_cast %63 : vector<289x32xbf16> to vector<1x289x32xbf16>
      tpu.vector_store %arg7[%c0_41, %c0_42, %c0_43], %66 {strides = array<i32>} : memref<1x289x32xbf16, #tpu.memory_space<vmem>>, vector<1x289x32xbf16>,
    } else {
    }
    return
  }
  func.func @transform_0(%arg0: i32, %arg1: i32) -> (i32, i32, i32) {
    %c0_i32 = arith.constant 0 : i32
    %c0_i32_0 = arith.constant 0 : i32
    %c0_i32_1 = arith.constant 0 : i32
    return %arg1, %c0_i32, %c0_i32_0 : i32, i32, i32
  }
  func.func @transform_1(%arg0: i32, %arg1: i32) -> (i32, i32, i32) {
    %c0_i32 = arith.constant 0 : i32
    %c0_i32_0 = arith.constant 0 : i32
    %c0_i32_1 = arith.constant 0 : i32
    %c0_i32_2 = arith.constant 0 : i32
    return %c0_i32, %c0_i32_0, %c0_i32_1 : i32, i32, i32
  }
  func.func @transform_2(%arg0: i32, %arg1: i32) -> (i32, i32) {
    %c0_i32 = arith.constant 0 : i32
    %c0_i32_0 = arith.constant 0 : i32
    %c0_i32_1 = arith.constant 0 : i32
    return %c0_i32, %c0_i32_0 : i32, i32
  }
  func.func @transform_3(%arg0: i32, %arg1: i32) -> (i32, i32) {
    %c0_i32 = arith.constant 0 : i32
    %c0_i32_0 = arith.constant 0 : i32
    %c0_i32_1 = arith.constant 0 : i32
    return %c0_i32, %c0_i32_0 : i32, i32
  }
  func.func @transform_4(%arg0: i32, %arg1: i32) -> (i32, i32) {
    %c0_i32 = arith.constant 0 : i32
    %c0_i32_0 = arith.constant 0 : i32
    %c0_i32_1 = arith.constant 0 : i32
    return %c0_i32, %c0_i32_0 : i32, i32
  }
  func.func @transform_5(%arg0: i32, %arg1: i32) -> (i32, i32, i32) {
    %0 = arith.muli %arg0, %arg1 : i32
    %c0_i32 = arith.constant 0 : i32
    %c0_i32_0 = arith.constant 0 : i32
    %c0_i32_1 = arith.constant 0 : i32
    return %0, %c0_i32, %c0_i32_0 : i32, i32, i32
  }
}

module attributes {stable_mosaic.version = 11 : i64} {
  func.func @_conv_bn_lrelu_kernel(%arg0: i32, %arg1: i32, %arg2: memref<1x91x128xbf16, #tpu.memory_space<vmem>>, %arg3: memref<4x128x64xbf16, #tpu.memory_space<vmem>>, %arg4: memref<1x64xf32, #tpu.memory_space<vmem>>, %arg5: memref<1x64xf32, #tpu.memory_space<vmem>>, %arg6: memref<81x1xf32, #tpu.memory_space<vmem>>, %arg7: memref<1x81x64xbf16, #tpu.memory_space<vmem>>, %arg8: memref<1x64xf32, #tpu.memory_space<vmem>>, %arg9: memref<1x64xf32, #tpu.memory_space<vmem>>) attributes {dimension_semantics = [#tpu.dimension_semantics<arbitrary>, #tpu.dimension_semantics<arbitrary>], iteration_bounds = array<i64: 2, 2>, scalar_prefetch = 0 : i64, scratch_operands = 2 : i64, tpu.core_type = #tpu.core_type<tc>, window_params = [{transform_indices = @transform_0, window_bounds = array<i64: 1, 91, 128>}, {pipeline_mode = #tpu.pipeline_mode<synchronous>, transform_indices = @transform_1, window_bounds = array<i64: 4, 128, 64>}, {pipeline_mode = #tpu.pipeline_mode<synchronous>, transform_indices = @transform_2, window_bounds = array<i64: 1, 64>}, {pipeline_mode = #tpu.pipeline_mode<synchronous>, transform_indices = @transform_3, window_bounds = array<i64: 1, 64>}, {pipeline_mode = #tpu.pipeline_mode<synchronous>, transform_indices = @transform_4, window_bounds = array<i64: 81, 1>}, {transform_indices = @transform_5, window_bounds = array<i64: 1, 81, 64>}]} {
    %c0_i32 = arith.constant 0 : i32
    %0 = arith.cmpi eq, %arg0, %c0_i32 : i32
    %c0_i32_0 = arith.constant 0 : i32
    %1 = arith.cmpi eq, %arg1, %c0_i32_0 : i32
    %2 = arith.andi %0, %1 : i1
    %3 = arith.extui %2 : i1 to i32
    %c0_i32_1 = arith.constant 0 : i32
    %4 = arith.cmpi ne, %3, %c0_i32_1 : i32
    scf.if %4 {
      %cst_27 = arith.constant 0.000000e+00 : f32
      %36 = vector.broadcast %cst_27 : f32 to vector<1x64xf32>
      %c0_28 = arith.constant 0 : index
      %c0_29 = arith.constant 0 : index
      %37 = vector.load %arg8[%c0_28, %c0_29] : memref<1x64xf32, #tpu.memory_space<vmem>>, vector<1x64xf32>
      tpu.vector_store %arg8[%c0_28, %c0_29], %36 {strides = array<i32>} : memref<1x64xf32, #tpu.memory_space<vmem>>, vector<1x64xf32>,
      %cst_30 = arith.constant 0.000000e+00 : f32
      %38 = vector.broadcast %cst_30 : f32 to vector<1x64xf32>
      %c0_31 = arith.constant 0 : index
      %c0_32 = arith.constant 0 : index
      %39 = vector.load %arg9[%c0_31, %c0_32] : memref<1x64xf32, #tpu.memory_space<vmem>>, vector<1x64xf32>
      tpu.vector_store %arg9[%c0_31, %c0_32], %38 {strides = array<i32>} : memref<1x64xf32, #tpu.memory_space<vmem>>, vector<1x64xf32>,
    } else {
    }
    %cst = arith.constant 0.000000e+00 : f32
    %5 = vector.broadcast %cst : f32 to vector<81x64xf32>
    %c0 = arith.constant 0 : index
    %c0_2 = arith.constant 0 : index
    %c0_3 = arith.constant 0 : index
    %6 = vector.load %arg2[%c0, %c0_2, %c0_3] : memref<1x91x128xbf16, #tpu.memory_space<vmem>>, vector<1x81x128xbf16>
    %7 = vector.shape_cast %6 : vector<1x81x128xbf16> to vector<81x128xbf16>
    %c0_4 = arith.constant 0 : index
    %c0_5 = arith.constant 0 : index
    %c0_6 = arith.constant 0 : index
    %8 = vector.load %arg3[%c0_4, %c0_5, %c0_6] : memref<4x128x64xbf16, #tpu.memory_space<vmem>>, vector<1x128x64xbf16>
    %9 = vector.shape_cast %8 : vector<1x128x64xbf16> to vector<128x64xbf16>
    %cst_7 = arith.constant dense<0.000000e+00> : vector<81x64xf32>
    %10 = tpu.matmul %7, %9, %cst_7 {dimension_numbers = #tpu.dot_dimension_numbers<[1], [0], [0], [1], [0, 0, 1, 1], [], []>} : vector<81x128xbf16>, vector<128x64xbf16>, vector<81x64xf32> -> vector<81x64xf32>
    %11 = arith.addf %5, %10 : vector<81x64xf32>
    %c0_8 = arith.constant 0 : index
    %c1 = arith.constant 1 : index
    %c0_9 = arith.constant 0 : index
    %12 = vector.load %arg2[%c0_8, %c1, %c0_9] : memref<1x91x128xbf16, #tpu.memory_space<vmem>>, vector<1x81x128xbf16>
    %13 = vector.shape_cast %12 : vector<1x81x128xbf16> to vector<81x128xbf16>
    %c1_10 = arith.constant 1 : index
    %c0_11 = arith.constant 0 : index
    %c0_12 = arith.constant 0 : index
    %14 = vector.load %arg3[%c1_10, %c0_11, %c0_12] : memref<4x128x64xbf16, #tpu.memory_space<vmem>>, vector<1x128x64xbf16>
    %15 = vector.shape_cast %14 : vector<1x128x64xbf16> to vector<128x64xbf16>
    %cst_13 = arith.constant dense<0.000000e+00> : vector<81x64xf32>
    %16 = tpu.matmul %13, %15, %cst_13 {dimension_numbers = #tpu.dot_dimension_numbers<[1], [0], [0], [1], [0, 0, 1, 1], [], []>} : vector<81x128xbf16>, vector<128x64xbf16>, vector<81x64xf32> -> vector<81x64xf32>
    %17 = arith.addf %11, %16 : vector<81x64xf32>
    %c0_14 = arith.constant 0 : index
    %c9 = arith.constant 9 : index
    %c0_15 = arith.constant 0 : index
    %18 = vector.load %arg2[%c0_14, %c9, %c0_15] : memref<1x91x128xbf16, #tpu.memory_space<vmem>>, vector<1x81x128xbf16>
    %19 = vector.shape_cast %18 : vector<1x81x128xbf16> to vector<81x128xbf16>
    %c2 = arith.constant 2 : index
    %c0_16 = arith.constant 0 : index
    %c0_17 = arith.constant 0 : index
    %20 = vector.load %arg3[%c2, %c0_16, %c0_17] : memref<4x128x64xbf16, #tpu.memory_space<vmem>>, vector<1x128x64xbf16>
    %21 = vector.shape_cast %20 : vector<1x128x64xbf16> to vector<128x64xbf16>
    %cst_18 = arith.constant dense<0.000000e+00> : vector<81x64xf32>
    %22 = tpu.matmul %19, %21, %cst_18 {dimension_numbers = #tpu.dot_dimension_numbers<[1], [0], [0], [1], [0, 0, 1, 1], [], []>} : vector<81x128xbf16>, vector<128x64xbf16>, vector<81x64xf32> -> vector<81x64xf32>
    %23 = arith.addf %17, %22 : vector<81x64xf32>
    %c0_19 = arith.constant 0 : index
    %c10 = arith.constant 10 : index
    %c0_20 = arith.constant 0 : index
    %24 = vector.load %arg2[%c0_19, %c10, %c0_20] : memref<1x91x128xbf16, #tpu.memory_space<vmem>>, vector<1x81x128xbf16>
    %25 = vector.shape_cast %24 : vector<1x81x128xbf16> to vector<81x128xbf16>
    %c3 = arith.constant 3 : index
    %c0_21 = arith.constant 0 : index
    %c0_22 = arith.constant 0 : index
    %26 = vector.load %arg3[%c3, %c0_21, %c0_22] : memref<4x128x64xbf16, #tpu.memory_space<vmem>>, vector<1x128x64xbf16>
    %27 = vector.shape_cast %26 : vector<1x128x64xbf16> to vector<128x64xbf16>
    %cst_23 = arith.constant dense<0.000000e+00> : vector<81x64xf32>
    %28 = tpu.matmul %25, %27, %cst_23 {dimension_numbers = #tpu.dot_dimension_numbers<[1], [0], [0], [1], [0, 0, 1, 1], [], []>} : vector<81x128xbf16>, vector<128x64xbf16>, vector<81x64xf32> -> vector<81x64xf32>
    %29 = arith.addf %23, %28 : vector<81x64xf32>
    %c0_i32_24 = arith.constant 0 : i32
    %30 = arith.cmpi eq, %arg0, %c0_i32_24 : i32
    %31 = arith.extui %30 : i1 to i32
    %c0_i32_25 = arith.constant 0 : i32
    %32 = arith.cmpi ne, %31, %c0_i32_25 : i32
    scf.if %32 {
      %c0_27 = arith.constant 0 : index
      %c0_28 = arith.constant 0 : index
      %36 = vector.load %arg6[%c0_27, %c0_28] : memref<81x1xf32, #tpu.memory_space<vmem>>, vector<81x1xf32>
      %37 = vector.broadcast %36 : vector<81x1xf32> to vector<81x64xf32>
      %38 = arith.mulf %29, %37 : vector<81x64xf32>
      %c0_29 = arith.constant 0 : index
      %c0_30 = arith.constant 0 : index
      %39 = vector.load %arg8[%c0_29, %c0_30] : memref<1x64xf32, #tpu.memory_space<vmem>>, vector<1x64xf32>
      %cst_31 = arith.constant dense<0.000000e+00> : vector<64xf32>
      %40 = vector.multi_reduction <add>, %38, %cst_31 [0] : vector<81x64xf32> to vector<64xf32>
      %41 = vector.shape_cast %40 : vector<64xf32> to vector<1x64xf32>
      %42 = arith.addf %39, %41 : vector<1x64xf32>
      %c0_32 = arith.constant 0 : index
      %c0_33 = arith.constant 0 : index
      %43 = vector.load %arg8[%c0_32, %c0_33] : memref<1x64xf32, #tpu.memory_space<vmem>>, vector<1x64xf32>
      tpu.vector_store %arg8[%c0_32, %c0_33], %42 {strides = array<i32>} : memref<1x64xf32, #tpu.memory_space<vmem>>, vector<1x64xf32>,
      %c0_34 = arith.constant 0 : index
      %c0_35 = arith.constant 0 : index
      %44 = vector.load %arg9[%c0_34, %c0_35] : memref<1x64xf32, #tpu.memory_space<vmem>>, vector<1x64xf32>
      %45 = arith.mulf %38, %29 : vector<81x64xf32>
      %cst_36 = arith.constant dense<0.000000e+00> : vector<64xf32>
      %46 = vector.multi_reduction <add>, %45, %cst_36 [0] : vector<81x64xf32> to vector<64xf32>
      %47 = vector.shape_cast %46 : vector<64xf32> to vector<1x64xf32>
      %48 = arith.addf %44, %47 : vector<1x64xf32>
      %c0_37 = arith.constant 0 : index
      %c0_38 = arith.constant 0 : index
      %49 = vector.load %arg9[%c0_37, %c0_38] : memref<1x64xf32, #tpu.memory_space<vmem>>, vector<1x64xf32>
      tpu.vector_store %arg9[%c0_37, %c0_38], %48 {strides = array<i32>} : memref<1x64xf32, #tpu.memory_space<vmem>>, vector<1x64xf32>,
    } else {
    }
    %c1_i32 = arith.constant 1 : i32
    %33 = arith.cmpi eq, %arg0, %c1_i32 : i32
    %34 = arith.extui %33 : i1 to i32
    %c0_i32_26 = arith.constant 0 : i32
    %35 = arith.cmpi ne, %34, %c0_i32_26 : i32
    scf.if %35 {
      %c0_27 = arith.constant 0 : index
      %c0_28 = arith.constant 0 : index
      %36 = vector.load %arg8[%c0_27, %c0_28] : memref<1x64xf32, #tpu.memory_space<vmem>>, vector<1x64xf32>
      %cst_29 = arith.constant 7.812500e-03 : f32
      %37 = vector.broadcast %cst_29 : f32 to vector<1x64xf32>
      %38 = arith.mulf %36, %37 : vector<1x64xf32>
      %c0_30 = arith.constant 0 : index
      %c0_31 = arith.constant 0 : index
      %39 = vector.load %arg9[%c0_30, %c0_31] : memref<1x64xf32, #tpu.memory_space<vmem>>, vector<1x64xf32>
      %cst_32 = arith.constant 7.812500e-03 : f32
      %40 = vector.broadcast %cst_32 : f32 to vector<1x64xf32>
      %41 = arith.mulf %39, %40 : vector<1x64xf32>
      %42 = arith.mulf %38, %38 : vector<1x64xf32>
      %43 = arith.subf %41, %42 : vector<1x64xf32>
      %cst_33 = arith.constant 0.000000e+00 : f32
      %44 = vector.broadcast %cst_33 : f32 to vector<1x64xf32>
      %45 = arith.maximumf %43, %44 : vector<1x64xf32>
      %c0_34 = arith.constant 0 : index
      %c0_35 = arith.constant 0 : index
      %46 = vector.load %arg4[%c0_34, %c0_35] : memref<1x64xf32, #tpu.memory_space<vmem>>, vector<1x64xf32>
      %cst_36 = arith.constant 9.99999974E-6 : f32
      %47 = vector.broadcast %cst_36 : f32 to vector<1x64xf32>
      %48 = arith.addf %45, %47 : vector<1x64xf32>
      %49 = math.rsqrt %48 : vector<1x64xf32>
      %50 = arith.mulf %46, %49 : vector<1x64xf32>
      %c0_37 = arith.constant 0 : index
      %c0_38 = arith.constant 0 : index
      %51 = vector.load %arg5[%c0_37, %c0_38] : memref<1x64xf32, #tpu.memory_space<vmem>>, vector<1x64xf32>
      %52 = arith.mulf %38, %50 : vector<1x64xf32>
      %53 = arith.subf %51, %52 : vector<1x64xf32>
      %54 = vector.broadcast %50 : vector<1x64xf32> to vector<81x64xf32>
      %55 = arith.mulf %29, %54 : vector<81x64xf32>
      %56 = vector.broadcast %53 : vector<1x64xf32> to vector<81x64xf32>
      %57 = arith.addf %55, %56 : vector<81x64xf32>
      %cst_39 = arith.constant 0.000000e+00 : f32
      %58 = vector.broadcast %cst_39 : f32 to vector<81x64xf32>
      %59 = arith.cmpf ogt, %57, %58 : vector<81x64xf32>
      %cst_40 = arith.constant 2.000000e-01 : f32
      %60 = vector.broadcast %cst_40 : f32 to vector<81x64xf32>
      %61 = arith.mulf %60, %57 : vector<81x64xf32>
      %62 = arith.select %59, %57, %61 : vector<81x64xi1>, vector<81x64xf32>
      %63 = arith.truncf %62 : vector<81x64xf32> to vector<81x64xbf16>
      %c0_41 = arith.constant 0 : index
      %c0_42 = arith.constant 0 : index
      %c0_43 = arith.constant 0 : index
      %64 = vector.load %arg7[%c0_41, %c0_42, %c0_43] : memref<1x81x64xbf16, #tpu.memory_space<vmem>>, vector<1x81x64xbf16>
      %65 = vector.shape_cast %64 : vector<1x81x64xbf16> to vector<81x64xbf16>
      %66 = vector.shape_cast %63 : vector<81x64xbf16> to vector<1x81x64xbf16>
      tpu.vector_store %arg7[%c0_41, %c0_42, %c0_43], %66 {strides = array<i32>} : memref<1x81x64xbf16, #tpu.memory_space<vmem>>, vector<1x81x64xbf16>,
    } else {
    }
    return
  }
  func.func @transform_0(%arg0: i32, %arg1: i32) -> (i32, i32, i32) {
    %c0_i32 = arith.constant 0 : i32
    %c0_i32_0 = arith.constant 0 : i32
    %c0_i32_1 = arith.constant 0 : i32
    return %arg1, %c0_i32, %c0_i32_0 : i32, i32, i32
  }
  func.func @transform_1(%arg0: i32, %arg1: i32) -> (i32, i32, i32) {
    %c0_i32 = arith.constant 0 : i32
    %c0_i32_0 = arith.constant 0 : i32
    %c0_i32_1 = arith.constant 0 : i32
    %c0_i32_2 = arith.constant 0 : i32
    return %c0_i32, %c0_i32_0, %c0_i32_1 : i32, i32, i32
  }
  func.func @transform_2(%arg0: i32, %arg1: i32) -> (i32, i32) {
    %c0_i32 = arith.constant 0 : i32
    %c0_i32_0 = arith.constant 0 : i32
    %c0_i32_1 = arith.constant 0 : i32
    return %c0_i32, %c0_i32_0 : i32, i32
  }
  func.func @transform_3(%arg0: i32, %arg1: i32) -> (i32, i32) {
    %c0_i32 = arith.constant 0 : i32
    %c0_i32_0 = arith.constant 0 : i32
    %c0_i32_1 = arith.constant 0 : i32
    return %c0_i32, %c0_i32_0 : i32, i32
  }
  func.func @transform_4(%arg0: i32, %arg1: i32) -> (i32, i32) {
    %c0_i32 = arith.constant 0 : i32
    %c0_i32_0 = arith.constant 0 : i32
    %c0_i32_1 = arith.constant 0 : i32
    return %c0_i32, %c0_i32_0 : i32, i32
  }
  func.func @transform_5(%arg0: i32, %arg1: i32) -> (i32, i32, i32) {
    %0 = arith.muli %arg0, %arg1 : i32
    %c0_i32 = arith.constant 0 : i32
    %c0_i32_0 = arith.constant 0 : i32
    %c0_i32_1 = arith.constant 0 : i32
    return %0, %c0_i32, %c0_i32_0 : i32, i32, i32
  }
}

module attributes {stable_mosaic.version = 11 : i64} {
  func.func @_conv_bn_lrelu_kernel(%arg0: i32, %arg1: i32, %arg2: memref<1x31x256xbf16, #tpu.memory_space<vmem>>, %arg3: memref<4x256x128xbf16, #tpu.memory_space<vmem>>, %arg4: memref<1x128xf32, #tpu.memory_space<vmem>>, %arg5: memref<1x128xf32, #tpu.memory_space<vmem>>, %arg6: memref<25x1xf32, #tpu.memory_space<vmem>>, %arg7: memref<1x25x128xf32, #tpu.memory_space<vmem>>, %arg8: memref<1x128xf32, #tpu.memory_space<vmem>>, %arg9: memref<1x128xf32, #tpu.memory_space<vmem>>) attributes {dimension_semantics = [#tpu.dimension_semantics<arbitrary>, #tpu.dimension_semantics<arbitrary>], iteration_bounds = array<i64: 2, 2>, scalar_prefetch = 0 : i64, scratch_operands = 2 : i64, tpu.core_type = #tpu.core_type<tc>, window_params = [{transform_indices = @transform_0, window_bounds = array<i64: 1, 31, 256>}, {pipeline_mode = #tpu.pipeline_mode<synchronous>, transform_indices = @transform_1, window_bounds = array<i64: 4, 256, 128>}, {pipeline_mode = #tpu.pipeline_mode<synchronous>, transform_indices = @transform_2, window_bounds = array<i64: 1, 128>}, {pipeline_mode = #tpu.pipeline_mode<synchronous>, transform_indices = @transform_3, window_bounds = array<i64: 1, 128>}, {pipeline_mode = #tpu.pipeline_mode<synchronous>, transform_indices = @transform_4, window_bounds = array<i64: 25, 1>}, {transform_indices = @transform_5, window_bounds = array<i64: 1, 25, 128>}]} {
    %c0_i32 = arith.constant 0 : i32
    %0 = arith.cmpi eq, %arg0, %c0_i32 : i32
    %c0_i32_0 = arith.constant 0 : i32
    %1 = arith.cmpi eq, %arg1, %c0_i32_0 : i32
    %2 = arith.andi %0, %1 : i1
    %3 = arith.extui %2 : i1 to i32
    %c0_i32_1 = arith.constant 0 : i32
    %4 = arith.cmpi ne, %3, %c0_i32_1 : i32
    scf.if %4 {
      %cst_27 = arith.constant 0.000000e+00 : f32
      %36 = vector.broadcast %cst_27 : f32 to vector<1x128xf32>
      %c0_28 = arith.constant 0 : index
      %c0_29 = arith.constant 0 : index
      %37 = vector.load %arg8[%c0_28, %c0_29] : memref<1x128xf32, #tpu.memory_space<vmem>>, vector<1x128xf32>
      tpu.vector_store %arg8[%c0_28, %c0_29], %36 {strides = array<i32>} : memref<1x128xf32, #tpu.memory_space<vmem>>, vector<1x128xf32>,
      %cst_30 = arith.constant 0.000000e+00 : f32
      %38 = vector.broadcast %cst_30 : f32 to vector<1x128xf32>
      %c0_31 = arith.constant 0 : index
      %c0_32 = arith.constant 0 : index
      %39 = vector.load %arg9[%c0_31, %c0_32] : memref<1x128xf32, #tpu.memory_space<vmem>>, vector<1x128xf32>
      tpu.vector_store %arg9[%c0_31, %c0_32], %38 {strides = array<i32>} : memref<1x128xf32, #tpu.memory_space<vmem>>, vector<1x128xf32>,
    } else {
    }
    %cst = arith.constant 0.000000e+00 : f32
    %5 = vector.broadcast %cst : f32 to vector<25x128xf32>
    %c0 = arith.constant 0 : index
    %c0_2 = arith.constant 0 : index
    %c0_3 = arith.constant 0 : index
    %6 = vector.load %arg2[%c0, %c0_2, %c0_3] : memref<1x31x256xbf16, #tpu.memory_space<vmem>>, vector<1x25x256xbf16>
    %7 = vector.shape_cast %6 : vector<1x25x256xbf16> to vector<25x256xbf16>
    %c0_4 = arith.constant 0 : index
    %c0_5 = arith.constant 0 : index
    %c0_6 = arith.constant 0 : index
    %8 = vector.load %arg3[%c0_4, %c0_5, %c0_6] : memref<4x256x128xbf16, #tpu.memory_space<vmem>>, vector<1x256x128xbf16>
    %9 = vector.shape_cast %8 : vector<1x256x128xbf16> to vector<256x128xbf16>
    %cst_7 = arith.constant dense<0.000000e+00> : vector<25x128xf32>
    %10 = tpu.matmul %7, %9, %cst_7 {dimension_numbers = #tpu.dot_dimension_numbers<[1], [0], [0], [1], [0, 0, 1, 1], [], []>} : vector<25x256xbf16>, vector<256x128xbf16>, vector<25x128xf32> -> vector<25x128xf32>
    %11 = arith.addf %5, %10 : vector<25x128xf32>
    %c0_8 = arith.constant 0 : index
    %c1 = arith.constant 1 : index
    %c0_9 = arith.constant 0 : index
    %12 = vector.load %arg2[%c0_8, %c1, %c0_9] : memref<1x31x256xbf16, #tpu.memory_space<vmem>>, vector<1x25x256xbf16>
    %13 = vector.shape_cast %12 : vector<1x25x256xbf16> to vector<25x256xbf16>
    %c1_10 = arith.constant 1 : index
    %c0_11 = arith.constant 0 : index
    %c0_12 = arith.constant 0 : index
    %14 = vector.load %arg3[%c1_10, %c0_11, %c0_12] : memref<4x256x128xbf16, #tpu.memory_space<vmem>>, vector<1x256x128xbf16>
    %15 = vector.shape_cast %14 : vector<1x256x128xbf16> to vector<256x128xbf16>
    %cst_13 = arith.constant dense<0.000000e+00> : vector<25x128xf32>
    %16 = tpu.matmul %13, %15, %cst_13 {dimension_numbers = #tpu.dot_dimension_numbers<[1], [0], [0], [1], [0, 0, 1, 1], [], []>} : vector<25x256xbf16>, vector<256x128xbf16>, vector<25x128xf32> -> vector<25x128xf32>
    %17 = arith.addf %11, %16 : vector<25x128xf32>
    %c0_14 = arith.constant 0 : index
    %c5 = arith.constant 5 : index
    %c0_15 = arith.constant 0 : index
    %18 = vector.load %arg2[%c0_14, %c5, %c0_15] : memref<1x31x256xbf16, #tpu.memory_space<vmem>>, vector<1x25x256xbf16>
    %19 = vector.shape_cast %18 : vector<1x25x256xbf16> to vector<25x256xbf16>
    %c2 = arith.constant 2 : index
    %c0_16 = arith.constant 0 : index
    %c0_17 = arith.constant 0 : index
    %20 = vector.load %arg3[%c2, %c0_16, %c0_17] : memref<4x256x128xbf16, #tpu.memory_space<vmem>>, vector<1x256x128xbf16>
    %21 = vector.shape_cast %20 : vector<1x256x128xbf16> to vector<256x128xbf16>
    %cst_18 = arith.constant dense<0.000000e+00> : vector<25x128xf32>
    %22 = tpu.matmul %19, %21, %cst_18 {dimension_numbers = #tpu.dot_dimension_numbers<[1], [0], [0], [1], [0, 0, 1, 1], [], []>} : vector<25x256xbf16>, vector<256x128xbf16>, vector<25x128xf32> -> vector<25x128xf32>
    %23 = arith.addf %17, %22 : vector<25x128xf32>
    %c0_19 = arith.constant 0 : index
    %c6 = arith.constant 6 : index
    %c0_20 = arith.constant 0 : index
    %24 = vector.load %arg2[%c0_19, %c6, %c0_20] : memref<1x31x256xbf16, #tpu.memory_space<vmem>>, vector<1x25x256xbf16>
    %25 = vector.shape_cast %24 : vector<1x25x256xbf16> to vector<25x256xbf16>
    %c3 = arith.constant 3 : index
    %c0_21 = arith.constant 0 : index
    %c0_22 = arith.constant 0 : index
    %26 = vector.load %arg3[%c3, %c0_21, %c0_22] : memref<4x256x128xbf16, #tpu.memory_space<vmem>>, vector<1x256x128xbf16>
    %27 = vector.shape_cast %26 : vector<1x256x128xbf16> to vector<256x128xbf16>
    %cst_23 = arith.constant dense<0.000000e+00> : vector<25x128xf32>
    %28 = tpu.matmul %25, %27, %cst_23 {dimension_numbers = #tpu.dot_dimension_numbers<[1], [0], [0], [1], [0, 0, 1, 1], [], []>} : vector<25x256xbf16>, vector<256x128xbf16>, vector<25x128xf32> -> vector<25x128xf32>
    %29 = arith.addf %23, %28 : vector<25x128xf32>
    %c0_i32_24 = arith.constant 0 : i32
    %30 = arith.cmpi eq, %arg0, %c0_i32_24 : i32
    %31 = arith.extui %30 : i1 to i32
    %c0_i32_25 = arith.constant 0 : i32
    %32 = arith.cmpi ne, %31, %c0_i32_25 : i32
    scf.if %32 {
      %c0_27 = arith.constant 0 : index
      %c0_28 = arith.constant 0 : index
      %36 = vector.load %arg6[%c0_27, %c0_28] : memref<25x1xf32, #tpu.memory_space<vmem>>, vector<25x1xf32>
      %37 = vector.broadcast %36 : vector<25x1xf32> to vector<25x128xf32>
      %38 = arith.mulf %29, %37 : vector<25x128xf32>
      %c0_29 = arith.constant 0 : index
      %c0_30 = arith.constant 0 : index
      %39 = vector.load %arg8[%c0_29, %c0_30] : memref<1x128xf32, #tpu.memory_space<vmem>>, vector<1x128xf32>
      %cst_31 = arith.constant dense<0.000000e+00> : vector<128xf32>
      %40 = vector.multi_reduction <add>, %38, %cst_31 [0] : vector<25x128xf32> to vector<128xf32>
      %41 = vector.shape_cast %40 : vector<128xf32> to vector<1x128xf32>
      %42 = arith.addf %39, %41 : vector<1x128xf32>
      %c0_32 = arith.constant 0 : index
      %c0_33 = arith.constant 0 : index
      %43 = vector.load %arg8[%c0_32, %c0_33] : memref<1x128xf32, #tpu.memory_space<vmem>>, vector<1x128xf32>
      tpu.vector_store %arg8[%c0_32, %c0_33], %42 {strides = array<i32>} : memref<1x128xf32, #tpu.memory_space<vmem>>, vector<1x128xf32>,
      %c0_34 = arith.constant 0 : index
      %c0_35 = arith.constant 0 : index
      %44 = vector.load %arg9[%c0_34, %c0_35] : memref<1x128xf32, #tpu.memory_space<vmem>>, vector<1x128xf32>
      %45 = arith.mulf %38, %29 : vector<25x128xf32>
      %cst_36 = arith.constant dense<0.000000e+00> : vector<128xf32>
      %46 = vector.multi_reduction <add>, %45, %cst_36 [0] : vector<25x128xf32> to vector<128xf32>
      %47 = vector.shape_cast %46 : vector<128xf32> to vector<1x128xf32>
      %48 = arith.addf %44, %47 : vector<1x128xf32>
      %c0_37 = arith.constant 0 : index
      %c0_38 = arith.constant 0 : index
      %49 = vector.load %arg9[%c0_37, %c0_38] : memref<1x128xf32, #tpu.memory_space<vmem>>, vector<1x128xf32>
      tpu.vector_store %arg9[%c0_37, %c0_38], %48 {strides = array<i32>} : memref<1x128xf32, #tpu.memory_space<vmem>>, vector<1x128xf32>,
    } else {
    }
    %c1_i32 = arith.constant 1 : i32
    %33 = arith.cmpi eq, %arg0, %c1_i32 : i32
    %34 = arith.extui %33 : i1 to i32
    %c0_i32_26 = arith.constant 0 : i32
    %35 = arith.cmpi ne, %34, %c0_i32_26 : i32
    scf.if %35 {
      %c0_27 = arith.constant 0 : index
      %c0_28 = arith.constant 0 : index
      %36 = vector.load %arg8[%c0_27, %c0_28] : memref<1x128xf32, #tpu.memory_space<vmem>>, vector<1x128xf32>
      %cst_29 = arith.constant 3.125000e-02 : f32
      %37 = vector.broadcast %cst_29 : f32 to vector<1x128xf32>
      %38 = arith.mulf %36, %37 : vector<1x128xf32>
      %c0_30 = arith.constant 0 : index
      %c0_31 = arith.constant 0 : index
      %39 = vector.load %arg9[%c0_30, %c0_31] : memref<1x128xf32, #tpu.memory_space<vmem>>, vector<1x128xf32>
      %cst_32 = arith.constant 3.125000e-02 : f32
      %40 = vector.broadcast %cst_32 : f32 to vector<1x128xf32>
      %41 = arith.mulf %39, %40 : vector<1x128xf32>
      %42 = arith.mulf %38, %38 : vector<1x128xf32>
      %43 = arith.subf %41, %42 : vector<1x128xf32>
      %cst_33 = arith.constant 0.000000e+00 : f32
      %44 = vector.broadcast %cst_33 : f32 to vector<1x128xf32>
      %45 = arith.maximumf %43, %44 : vector<1x128xf32>
      %c0_34 = arith.constant 0 : index
      %c0_35 = arith.constant 0 : index
      %46 = vector.load %arg4[%c0_34, %c0_35] : memref<1x128xf32, #tpu.memory_space<vmem>>, vector<1x128xf32>
      %cst_36 = arith.constant 9.99999974E-6 : f32
      %47 = vector.broadcast %cst_36 : f32 to vector<1x128xf32>
      %48 = arith.addf %45, %47 : vector<1x128xf32>
      %49 = math.rsqrt %48 : vector<1x128xf32>
      %50 = arith.mulf %46, %49 : vector<1x128xf32>
      %c0_37 = arith.constant 0 : index
      %c0_38 = arith.constant 0 : index
      %51 = vector.load %arg5[%c0_37, %c0_38] : memref<1x128xf32, #tpu.memory_space<vmem>>, vector<1x128xf32>
      %52 = arith.mulf %38, %50 : vector<1x128xf32>
      %53 = arith.subf %51, %52 : vector<1x128xf32>
      %54 = vector.broadcast %50 : vector<1x128xf32> to vector<25x128xf32>
      %55 = arith.mulf %29, %54 : vector<25x128xf32>
      %56 = vector.broadcast %53 : vector<1x128xf32> to vector<25x128xf32>
      %57 = arith.addf %55, %56 : vector<25x128xf32>
      %cst_39 = arith.constant 0.000000e+00 : f32
      %58 = vector.broadcast %cst_39 : f32 to vector<25x128xf32>
      %59 = arith.cmpf ogt, %57, %58 : vector<25x128xf32>
      %cst_40 = arith.constant 2.000000e-01 : f32
      %60 = vector.broadcast %cst_40 : f32 to vector<25x128xf32>
      %61 = arith.mulf %60, %57 : vector<25x128xf32>
      %62 = arith.select %59, %57, %61 : vector<25x128xi1>, vector<25x128xf32>
      %c0_41 = arith.constant 0 : index
      %c0_42 = arith.constant 0 : index
      %c0_43 = arith.constant 0 : index
      %63 = vector.load %arg7[%c0_41, %c0_42, %c0_43] : memref<1x25x128xf32, #tpu.memory_space<vmem>>, vector<1x25x128xf32>
      %64 = vector.shape_cast %63 : vector<1x25x128xf32> to vector<25x128xf32>
      %65 = vector.shape_cast %62 : vector<25x128xf32> to vector<1x25x128xf32>
      tpu.vector_store %arg7[%c0_41, %c0_42, %c0_43], %65 {strides = array<i32>} : memref<1x25x128xf32, #tpu.memory_space<vmem>>, vector<1x25x128xf32>,
    } else {
    }
    return
  }
  func.func @transform_0(%arg0: i32, %arg1: i32) -> (i32, i32, i32) {
    %c0_i32 = arith.constant 0 : i32
    %c0_i32_0 = arith.constant 0 : i32
    %c0_i32_1 = arith.constant 0 : i32
    return %arg1, %c0_i32, %c0_i32_0 : i32, i32, i32
  }
  func.func @transform_1(%arg0: i32, %arg1: i32) -> (i32, i32, i32) {
    %c0_i32 = arith.constant 0 : i32
    %c0_i32_0 = arith.constant 0 : i32
    %c0_i32_1 = arith.constant 0 : i32
    %c0_i32_2 = arith.constant 0 : i32
    return %c0_i32, %c0_i32_0, %c0_i32_1 : i32, i32, i32
  }
  func.func @transform_2(%arg0: i32, %arg1: i32) -> (i32, i32) {
    %c0_i32 = arith.constant 0 : i32
    %c0_i32_0 = arith.constant 0 : i32
    %c0_i32_1 = arith.constant 0 : i32
    return %c0_i32, %c0_i32_0 : i32, i32
  }
  func.func @transform_3(%arg0: i32, %arg1: i32) -> (i32, i32) {
    %c0_i32 = arith.constant 0 : i32
    %c0_i32_0 = arith.constant 0 : i32
    %c0_i32_1 = arith.constant 0 : i32
    return %c0_i32, %c0_i32_0 : i32, i32
  }
  func.func @transform_4(%arg0: i32, %arg1: i32) -> (i32, i32) {
    %c0_i32 = arith.constant 0 : i32
    %c0_i32_0 = arith.constant 0 : i32
    %c0_i32_1 = arith.constant 0 : i32
    return %c0_i32, %c0_i32_0 : i32, i32
  }
  func.func @transform_5(%arg0: i32, %arg1: i32) -> (i32, i32, i32) {
    %0 = arith.muli %arg0, %arg1 : i32
    %c0_i32 = arith.constant 0 : i32
    %c0_i32_0 = arith.constant 0 : i32
    %c0_i32_1 = arith.constant 0 : i32
    return %0, %c0_i32, %c0_i32_0 : i32, i32, i32
  }
}

</mosaic_0001>

<bundles_post_ra>
// kernel: discriminator_forward.4
= control target key start
LH: loop header
LB: loop body
LE: loop exit
PB: predicated region body
PF: predicated region fallthrough
CT: control target
= control target key end

     0   :  { %s6794_s12 = smov 0   ;;  %s8505_s0 = inlined_call_operand.vmem [shape: bf16[2,1123,12], index: 0, kind: input, shape index: {}]   ;;  %s8506_s1 = inlined_call_operand.vmem [shape: bf16[4,12,16], index: 1, kind: input, shape index: {}]   ;;  %s8507_s2 = inlined_call_operand.vmem [shape: f32[1,16], index: 2, kind: input, shape index: {}]   ;;  %s8508_s3 = inlined_call_operand.vmem [shape: bf16[2,1089,16], index: 3, kind: output, shape index: {}]  }
   0x1 LB: > { %s5756_s13 = sadd.s32 4294967295, %s6772_s12   ;;  %p5760_p0 = scmp.ge.s32.totalorder %s6772_s12, 1  ;;  %s6772_s12 = sphi %s6794_s12, %s13_s12  }
   0x2   : > { %p137_p1 = scmp.lt.s32.totalorder %s6772_s12, 3 }
   0x4   : > { %p138_p2 = pnand %p5760_p0, %p137_p1 }
   0x5   : > { %p161_p3 = scmp.lt.s32.totalorder (!%p138_p2), %s5756_s13, 1 }
   0x6   : > { %141 = sbr.rel (%p138_p2) target bundleno = 1260 (0x4ec), region = 32 }
   0xb   : > { %v6112_v0 = vld [vmem:[%s8506_s1] sm:$0xf]  ;;  %v6671_v1 = vld [vmem:[%s8506_s1] sm:$0x30]  ;;  %vm1421_vm0 = vcmask 1045504   ;;  %s8510_s13 = smov (!%p161_p3, %s5756_s13), 1 }
   0xc   : > { %v6113_v2 = vor.u32 %v6671_v1, %v6112_v0  ;;  %v6530_v3 = vld [vmem:[%s8506_s1 + $0x18] sm:$0xf]  ;;  %v6741_v4 = vld [vmem:[%s8506_s1 + $0x18] sm:$0x30]  ;;  %v6455_v6 = vld [vmem:[%s8506_s1 + $0x10] sm:$0xf] }
   0xd   : > { %v6531_v5 = vor.u32 %v6741_v4, %v6530_v3  ;;  %v6740_v7 = vld [vmem:[%s8506_s1 + $0x10] sm:$0x30]  ;;  %v6039_v10 = vld [vmem:[%s8506_s1 + $0x8] sm:$0xf]  ;;  %v6672_v11 = vld [vmem:[%s8506_s1 + $0x8] sm:$0x30] }
   0xe   : > { %v1922_v8 = vsel %vm1421_vm0, %v6113_v2, 0  ;;  %v6456_v9 = vor.u32 %v6740_v7, %v6455_v6  ;;  %s6750_s30 = smul.u32 564, %s8510_s13  ;;  %v6040_v13 = vor.u32 %v6672_v11, %v6039_v10  ;;  %vm1213_vm1 = vcmask 97280  }
   0xf   : > { %1931 = vmatpush.bf16.msra.mxu1 %v1922_v8  ;;  %v4377_v12 = vsel %vm1421_vm0, %v6531_v5, 0  ;;  %vm4026_vm2 = vcmask 1046528   ;;  %vm657_vm3 = vsmask.f32 7424  ;;  %s6751_s9 = smul.u32 548, %s8510_s13  ;;  %vm5558_vm5 = vcmask 125952  }
  0x10   : > { %4386 = vmatpush.bf16.msra.mxu3 %v4377_v12  ;;  %v3523_v14 = vsel %vm1421_vm0, %v6456_v9, 0  ;;  %s6835_s6 = scalar_lea.vmem %s8505_s0, %s6750_s30  ;;  %v1423_v15 = vsel %vm1421_vm0, %v6040_v13, 0 }
  0x11   : > { %3532 = vmatpush.bf16.msra.mxu2 %v3523_v14  ;;  %v6603_v16 = vld [vmem:[%s6835_s6] sm:$0xff]  ;;  %v6747_v17 = vld [vmem:[%s6835_s6 + $0x10] sm:$0xf0]  ;;  %v6673_v18 = vld [vmem:[%s6835_s6 + $0x18] sm:$0xff]  ;;  %1432 = vmatpush.bf16.msra.mxu0 %v1423_v15  ;;  %s6944_s14 = scalar_lea.vmem %s8508_s3, %s6751_s9 }
  0x12   : > { %v6748_v19 = vld [vmem:[%s6835_s6 + $0x10] sm:$0xe]  ;;  %v6604_v21 = vld [vmem:[%s6835_s6 + $0x8] sm:$0xff]  ;;  %v661_v22 = vshll.u32 %v6603_v16, 16  ;;  %6114 = vmatmul.msk.bf16.vlgmr.msra.gmra.mxu1 %vm1213_vm1, %v6603_v16  ;;  %v4028_v24 = vrot.slane %v6673_v18, 1  ;;  %v2768_v27 = vshll.u32 %v6673_v18, 16 }
  0x13   : > { %v6746_v20 = vld [vmem:[%s6835_s6 + $0x10] sm:$0xff]   ;;  %v6749_v23 = vor.u32 %v6748_v19, %v6747_v17  ;;  %v659_v28 = vshrl.u32 %v6603_v16, 16  ;;  %v666_v29 = vshll.u32 %v6604_v21, 16  ;;  %v6674_v41 = vld [vmem:[%s6835_s6 + $0x20] sm:$0xff]  ;;  %v670_v42 = vshrl.u32 %v6604_v21, 16  ;;  %v6606_v54 = vld [vmem:[%s6835_s6 + $0x18] sm:$0xff] }
  0x14   : > { %v2761_v25 = vshrl.u32 %v6746_v20, 16  ;;  %v2763_v26 = vshll.u32 %v6746_v20, 16  ;;  %v663_v31 = vrot.slane %v661_v22, 1  ;;  %v2770_v33 = vrot.slane %v2768_v27, 1  ;;  %v6605_v40 = vld [vmem:[%s6835_s6 + $0x10] sm:$0xff]  ;;  %v6675_v55 = vld [vmem:[%s6835_s6 + $0x28] sm:$0xff] }
  0x15   : > { %v4027_v30 = vrot.slane %v6749_v23, 1  ;;  %v668_v34 = vrot.slane %v666_v29, 1  ;;  %v674_v43 = vshll.u32 %v6605_v40, 16  ;;  %v2772_v44 = vshrl.u32 %v6673_v18, 16  ;;  %v6607_v4 = vld [vmem:[%s6835_s6 + $0x20] sm:$0xff]  ;;  %v6676_v5 = vld [vmem:[%s6835_s6 + $0x30] sm:$0xff] }
  0x16   : > { %v2765_v32 = vrot.slane %v2763_v26, 1  ;;  %v664_v36 = vor.u32 %v663_v31, %v659_v28  ;;  %v2776_v45 = vshll.u32 %v6674_v41, 16  ;;  %v4030_v46 = vrot.slane %v6674_v41, 1  ;;  %v6608_v18 = vld [vmem:[%s6835_s6 + $0x28] sm:$0xff]  ;;  %v6677_v19 = vld [vmem:[%s6835_s6 + $0x38] sm:$0xff] }
  0x17   : > { %v4029_v35 = vsel %vm4026_vm2, %v4027_v30, %v4028_v24  ;;  %v672_v47 = vor.u32 %v670_v42, %v668_v34  ;;  %v676_v48 = vrot.slane %v674_v43, 1  ;;  %v2774_v49 = vor.u32 %v2772_v44, %v2770_v33 }
  0x18   : > { %6532 = vmatmul.msk.bf16.vlgmr.msra.gmra.mxu3 %vm1213_vm1, %v4029_v35  ;;  %v2766_v37 = vor.u32 %v2765_v32, %v2761_v25  ;;  %v669_v38 = vsel %vm657_vm3, %v664_v36, %v668_v34  ;;  %v2778_v50 = vrot.slane %v2776_v45, 1  ;;  %v4031_v51 = vsel %vm4026_vm2, %v4028_v24, %v4030_v46  ;;  %v6609_v32 = vld [vmem:[%s6835_s6 + $0x30] sm:$0xff] }
  0x19   : > { %6041 = vmatmul.msk.bf16.vlgmr.msra.gmra.mxu0 %vm1213_vm1, %v669_v38  ;;  %v677_v52 = vsel %vm657_vm3, %v672_v47, %v676_v48  ;;  %v678_v56 = vshrl.u32 %v6605_v40, 16  ;;  %v682_v57 = vshll.u32 %v6606_v54, 16  ;;  %v2780_v58 = vshrl.u32 %v6674_v41, 16  ;;  %v6679_v47 = vld [vmem:[%s6835_s6 + $0x48] sm:$0xff] }
  0x1a   : > { %v2771_v39 = vsel %vm657_vm3, %v2766_v37, %v2770_v33  ;;  %v2779_v53 = vsel %vm657_vm3, %v2774_v49, %v2778_v50  ;;  %v2784_v59 = vshll.u32 %v6675_v55, 16  ;;  %v4032_v60 = vrot.slane %v6675_v55, 1  ;;  %v6678_v33 = vld [vmem:[%s6835_s6 + $0x40] sm:$0xff] }
  0x1b   : > { %6457 = vmatmul.msk.bf16.vlgmr.msra.gmra.mxu2 %vm1213_vm1, %v2771_v39  ;;  %v680_v61 = vor.u32 %v678_v56, %v676_v48  ;;  %v684_v62 = vrot.slane %v682_v57, 1  ;;  %v2782_v63 = vor.u32 %v2780_v58, %v2778_v50  ;;  %v686_v6 = vshrl.u32 %v6606_v54, 16 }
  0x1c   : > { %v2786_v0 = vrot.slane %v2784_v59, 1  ;;  %v4033_v1 = vsel %vm4026_vm2, %v4030_v46, %v4032_v60  ;;  %v690_v7 = vshll.u32 %v6607_v4, 16  ;;  %v2788_v8 = vshrl.u32 %v6675_v55, 16  ;;  %v6610_v46 = vld [vmem:[%s6835_s6 + $0x38] sm:$0xff] }
  0x1d   : > { %v685_v2 = vsel %vm657_vm3, %v680_v61, %v684_v62  ;;  %v2792_v9 = vshll.u32 %v6676_v5, 16  ;;  %v4034_v10 = vrot.slane %v6676_v5, 1  ;;  %v688_v11 = vor.u32 %v686_v6, %v684_v62  ;;  %v6680_v61 = vld [vmem:[%s6835_s6 + $0x50] sm:$0xff] }
  0x1e   : > { %v2787_v3 = vsel %vm657_vm3, %v2782_v63, %v2786_v0  ;;  %v692_v12 = vrot.slane %v690_v7, 1  ;;  %v2790_v13 = vor.u32 %v2788_v8, %v2786_v0  ;;  %v694_v20 = vshrl.u32 %v6607_v4, 16 }
  0x1f   : > { %v2794_v14 = vrot.slane %v2792_v9, 1  ;;  %v4035_v15 = vsel %vm4026_vm2, %v4032_v60, %v4034_v10  ;;  %v2796_v22 = vshrl.u32 %v6676_v5, 16  ;;  %v2800_v23 = vshll.u32 %v6677_v19, 16  ;;  %v6611_v60 = vld [vmem:[%s6835_s6 + $0x40] sm:$0xff] }
  0x20   : > { %v693_v16 = vsel %vm657_vm3, %v688_v11, %v692_v12  ;;  %v4036_v24 = vrot.slane %v6677_v19, 1  ;;  %v696_v25 = vor.u32 %v694_v20, %v692_v12  ;;  %v702_v34 = vshrl.u32 %v6608_v18, 16  ;;  %v6681_v11 = vld [vmem:[%s6835_s6 + $0x58] sm:$0xff] }
  0x21   : > { %v2795_v17 = vsel %vm657_vm3, %v2790_v13, %v2794_v14  ;;  %v2798_v27 = vor.u32 %v2796_v22, %v2794_v14  ;;  %v2802_v28 = vrot.slane %v2800_v23, 1  ;;  %v706_v35 = vshll.u32 %v6609_v32, 16 }
  0x22   : > { %6115 = vmatmul.msk.bf16.gmra.mxu1 %vm1213_vm1, %v6604_v21  ;;  %v698_v21 = vshll.u32 %v6608_v18, 16  ;;  %v4037_v29 = vsel %vm4026_vm2, %v4034_v10, %v4036_v24  ;;  %v2804_v36 = vshrl.u32 %v6677_v19, 16  ;;  %v2808_v37 = vshll.u32 %v6678_v33, 16  ;;  %v6612_v10 = vld [vmem:[%s6835_s6 + $0x48] sm:$0xff] }
  0x23   : > { %v2803_v31 = vsel %vm657_vm3, %v2798_v27, %v2802_v28  ;;  %v4038_v38 = vrot.slane %v6678_v33, 1  ;;  %v710_v48 = vshrl.u32 %v6609_v32, 16  ;;  %v714_v49 = vshll.u32 %v6610_v46, 16 }
  0x24   : > { %v700_v26 = vrot.slane %v698_v21, 1  ;;  %v2806_v41 = vor.u32 %v2804_v36, %v2802_v28  ;;  %v2810_v42 = vrot.slane %v2808_v37, 1  ;;  %v2812_v50 = vshrl.u32 %v6678_v33, 16  ;;  %v6932_v33 = vld [vmem:[%s8507_s2] ss:$0 sm:$0xff] }
  0x25   : > { %v4039_v43 = vsel %vm4026_vm2, %v4036_v24, %v4038_v38  ;;  %v718_v62 = vshrl.u32 %v6610_v46, 16  ;;  %v722_v63 = vshll.u32 %v6611_v60, 16  ;;  %v2820_v0 = vshrl.u32 %v6679_v47, 16 }
  0x26   : > { %v701_v30 = vsel %vm657_vm3, %v696_v25, %v700_v26  ;;  %v704_v39 = vor.u32 %v702_v34, %v700_v26  ;;  %v2811_v45 = vsel %vm657_vm3, %v2806_v41, %v2810_v42  ;;  %v2814_v55 = vor.u32 %v2812_v50, %v2810_v42 }
  0x27   : > { %v726_v12 = vshrl.u32 %v6611_v60, 16  ;;  %v730_v13 = vshll.u32 %v6612_v10, 16 }
  0x28   : > { %6533 = vmatmul.msk.bf16.gmra.mxu3 %vm1213_vm1, %v4031_v51  ;;  %v2816_v51 = vshll.u32 %v6679_v47, 16 }
  0x29   : > { %6042 = vmatmul.msk.bf16.gmra.mxu0 %vm1213_vm1, %v677_v52  ;;  %v4040_v52 = vrot.slane %v6679_v47, 1  ;;  %v732_v19 = vrot.slane %v730_v13, 1 }
  0x2a   : > { %v2818_v56 = vrot.slane %v2816_v51, 1 }
  0x2b   : > { %6458 = vmatmul.msk.bf16.gmra.mxu2 %vm1213_vm1, %v2779_v53  ;;  %v4041_v57 = vsel %vm4026_vm2, %v4038_v38, %v4040_v52  ;;  %v2836_v38 = vshrl.u32 %v6681_v11, 16 }
  0x2c   : > { %v2819_v59 = vsel %vm657_vm3, %v2814_v55, %v2818_v56  ;;  %v2822_v5 = vor.u32 %v2820_v0, %v2818_v56  ;;  %v6958_v0 = vld [vmem:[%s6835_s6 + $0x68] sm:$0xff] }
  0x2d   : > { %v4048_v13 = vrot.slane %v6958_v0, 1 }
  0x32   : > { %6116 = vmatmul.msk.bf16.gmra.mxu1 %vm1213_vm1, %v6605_v40  ;;  %v708_v40 = vrot.slane %v706_v35, 1  ;;  %v734_v35 = vshrl.u32 %v6612_v10, 16 }
  0x34   : > { %v709_v44 = vsel %vm657_vm3, %v704_v39, %v708_v40  ;;  %v712_v53 = vor.u32 %v710_v48, %v708_v40 }
  0x38   : > { %6534 = vmatmul.msk.bf16.gmra.mxu3 %vm1213_vm1, %v4033_v1  ;;  %v2824_v1 = vshll.u32 %v6680_v61, 16 }
  0x39   : > { %6043 = vmatmul.msk.bf16.gmra.mxu0 %vm1213_vm1, %v685_v2  ;;  %v4042_v2 = vrot.slane %v6680_v61, 1 }
  0x3a   : > { %v2826_v6 = vrot.slane %v2824_v1, 1 }
  0x3b   : > { %6459 = vmatmul.msk.bf16.gmra.mxu2 %vm1213_vm1, %v2787_v3  ;;  %v4043_v7 = vsel %vm4026_vm2, %v4040_v52, %v4042_v2 }
  0x3c   : > { %v2827_v9 = vsel %vm657_vm3, %v2822_v5, %v2826_v6 }
  0x42   : > { %6117 = vmatmul.msk.bf16.gmra.mxu1 %vm1213_vm1, %v6606_v54  ;;  %v716_v54 = vrot.slane %v714_v49, 1 }
  0x44   : > { %v717_v58 = vsel %vm657_vm3, %v712_v53, %v716_v54  ;;  %v720_v3 = vor.u32 %v718_v62, %v716_v54 }
  0x48   : > { %6535 = vmatmul.msk.bf16.gmra.mxu3 %vm1213_vm1, %v4035_v15  ;;  %v2828_v15 = vshrl.u32 %v6680_v61, 16 }
  0x49   : > { %6044 = vmatmul.msk.bf16.gmra.mxu0 %vm1213_vm1, %v693_v16  ;;  %v2832_v16 = vshll.u32 %v6681_v11, 16 }
  0x4a   : > { %v2830_v20 = vor.u32 %v2828_v15, %v2826_v6 }
  0x4b   : > { %6460 = vmatmul.msk.bf16.gmra.mxu2 %vm1213_vm1, %v2795_v17  ;;  %v4044_v17 = vrot.slane %v6681_v11, 1  ;;  %v2834_v21 = vrot.slane %v2832_v16, 1  ;;  %v2848_v11 = vshll.u32 %v6958_v0, 16 }
  0x4d   : > { %v4045_v22 = vsel %vm4026_vm2, %v4042_v2, %v4044_v17  ;;  %v2835_v25 = vsel %vm657_vm3, %v2830_v20, %v2834_v21 }
  0x52   : > { %6118 = vmatmul.msk.bf16.gmra.mxu1 %vm1213_vm1, %v6607_v4  ;;  %v724_v4 = vrot.slane %v722_v63, 1  ;;  %v6955_v63 = vld [vmem:[%s6835_s6 + $0x58] sm:$0xff] }
  0x54   : > { %v725_v8 = vsel %vm657_vm3, %v720_v3, %v724_v4 }
  0x58   : > { %6536 = vmatmul.msk.bf16.gmra.mxu3 %vm1213_vm1, %v4037_v29  ;;  %v6924_v29 = vld [vmem:[%s6835_s6 + $0x50] sm:$0xff] }
  0x59   : > { %6045 = vmatmul.msk.bf16.gmra.mxu0 %vm1213_vm1, %v701_v30  ;;  %v6927_v30 = vld [vmem:[%s6835_s6 + $0x60] sm:$0xff]  ;;  %v738_v36 = vshll.u32 %v6924_v29, 16  ;;  %v742_v6 = vshrl.u32 %v6924_v29, 16 }
  0x5a   : > { %v2840_v39 = vshll.u32 %v6927_v30, 16  ;;  %v4046_v41 = vrot.slane %v6927_v30, 1 }
  0x5b   : > { %6461 = vmatmul.msk.bf16.gmra.mxu2 %vm1213_vm1, %v2803_v31 }
  0x5c   : > { %v2842_v47 = vrot.slane %v2840_v39, 1  ;;  %v4047_v50 = vsel %vm4026_vm2, %v4044_v17, %v4046_v41 }
  0x62   : > { %6119 = vmatmul.msk.bf16.gmra.mxu1 %vm1213_vm1, %v6608_v18  ;;  %v728_v18 = vor.u32 %v726_v12, %v724_v4 }
  0x64   : > { %v733_v24 = vsel %vm657_vm3, %v728_v18, %v732_v19 }
  0x68   : > { %6537 = vmatmul.msk.bf16.gmra.mxu3 %vm1213_vm1, %v4039_v43 }
  0x69   : > { %6046 = vmatmul.msk.bf16.gmra.mxu0 %vm1213_vm1, %v709_v44  ;;  %v736_v44 = vor.u32 %v734_v35, %v732_v19  ;;  %v2850_v19 = vrot.slane %v2848_v11, 1 }
  0x6b   : > { %6462 = vmatmul.msk.bf16.gmra.mxu2 %vm1213_vm1, %v2811_v45  ;;  %v740_v45 = vrot.slane %v738_v36, 1  ;;  %v6980_v36 = vld [vmem:[%s6835_s6 + $0x60] sm:$0xff] }
  0x6d   : > { %v741_v55 = vsel %vm657_vm3, %v736_v44, %v740_v45  ;;  %v744_v16 = vor.u32 %v742_v6, %v740_v45  ;;  %v754_v44 = vshll.u32 %v6980_v36, 16 }
  0x72   : > { %6120 = vmatmul.msk.bf16.gmra.mxu1 %vm1213_vm1, %v6609_v32 }
  0x78   : > { %6538 = vmatmul.msk.bf16.gmra.mxu3 %vm1213_vm1, %v4041_v57 }
  0x79   : > { %6047 = vmatmul.msk.bf16.gmra.mxu0 %vm1213_vm1, %v717_v58 }
  0x7b   : > { %6463 = vmatmul.msk.bf16.gmra.mxu2 %vm1213_vm1, %v2819_v59 }
  0x82   : > { %6121 = vmatmul.msk.bf16.gmra.mxu1 %vm1213_vm1, %v6610_v46  ;;  %v2838_v46 = vor.u32 %v2836_v38, %v2834_v21 }
  0x84   : > { %v2843_v57 = vsel %vm657_vm3, %v2838_v46, %v2842_v47 }
  0x88   : > { %6539 = vmatmul.msk.bf16.gmra.mxu3 %vm1213_vm1, %v4043_v7  ;;  %v746_v7 = vshll.u32 %v6955_v63, 16 }
  0x89   : > { %6048 = vmatmul.msk.bf16.gmra.mxu0 %vm1213_vm1, %v725_v8 }
  0x8a   : > { %v748_v17 = vrot.slane %v746_v7, 1 }
  0x8b   : > { %6464 = vmatmul.msk.bf16.gmra.mxu2 %vm1213_vm1, %v2827_v9 }
  0x8f   : > { %v1933_v14 = vpop.f32.mrf.mxu1 }
  0x92   : > { %6122 = vmatmul.msk.bf16.gmra.mxu1 %vm1213_vm1, %v6611_v60 }
  0x96   : > { %v1434_v23 = vpop.f32.mrf.mxu0 }
  0x97   : > { %v1935_v26 = vpop.f32.mrf.mxu1  ;;  %v1934_v27 = vadd.f32 %v1933_v14, %v1434_v23 }
  0x98   : > { %6540 = vmatmul.msk.bf16.gmra.mxu3 %vm1213_vm1, %v4045_v22  ;;  %v4049_v22 = vsel %vm4026_vm2, %v4046_v41, %v4048_v13 }
  0x99   : > { %6049 = vmatmul.msk.bf16.gmra.mxu0 %vm1213_vm1, %v733_v24 }
  0x9b   : > { %6465 = vmatmul.msk.bf16.gmra.mxu2 %vm1213_vm1, %v2835_v25  ;;  %v4388_v28 = vpop.f32.mrf.mxu3 }
  0x9e   : > { %v3534_v31 = vpop.f32.mrf.mxu2  ;;  %v1436_v34 = vpop.f32.mrf.mxu0 }
  0x9f   : > { %v3878_v32 = vadd.f32 %v3534_v31, %v1934_v27  ;;  %v1938_v37 = vpop.f32.mrf.mxu1  ;;  %v1936_v49 = vadd.f32 %v1935_v26, %v1436_v34  ;;  %v749_v27 = vsel %vm657_vm3, %v744_v16, %v748_v17 }
  0xa1   : > { %v4732_v40 = vadd.f32 %v4388_v28, %v3878_v32 }
  0xa2   : > { %6123 = vmatmul.msk.bf16.gmra.mxu1 %vm1213_vm1, %v6612_v10  ;;  %v2844_v10 = vshrl.u32 %v6927_v30, 16 }
  0xa3   : > { %v4873_v42 = vadd.f32 %v6932_v33, %v4732_v40  ;;  %v4390_v43 = vpop.f32.mrf.mxu3 }
  0xa4   : > { %v2846_v18 = vor.u32 %v2844_v10, %v2842_v47  ;;  %v2852_v47 = vshrl.u32 %v6958_v0, 16 }
  0xa5   : > { %vm5010_vm4 = vcmp.gt.f32.partialorder %v4873_v42, 0.0  ;;  %v5147_v48 = vmul.f32 0.2, %v4873_v42 }
  0xa6   : > { %v3536_v51 = vpop.f32.mrf.mxu2  ;;  %v1439_v54 = vpop.f32.mrf.mxu0 }
  0xa7   : > { %v5284_v52 = vsel %vm5010_vm4, %v4873_v42, %v5147_v48  ;;  %v3879_v53 = vadd.f32 %v3536_v51, %v1936_v49  ;;  %v1940_v58 = vpop.f32.mrf.mxu1  ;;  %v1939_v61 = vadd.f32 %v1938_v37, %v1439_v54  ;;  %v6983_v37 = vld [vmem:[%s6835_s6 + $0x70] sm:$0xff]  ;;  %v756_v54 = vrot.slane %v754_v44, 1 }
  0xa8   : > { %v5421_v56 = vpack.c.bf16 %v5284_v52, %v5284_v52  ;;  %6541 = vmatmul.msk.bf16.gmra.mxu3 %vm1213_vm1, %v4047_v50  ;;  %v2856_v48 = vshll.u32 %v6983_v37, 16  ;;  %v4050_v50 = vrot.slane %v6983_v37, 1 }
  0xa9   : > { %v4733_v59 = vadd.f32 %v4390_v43, %v3879_v53  ;;  %6050 = vmatmul.msk.bf16.gmra.mxu0 %vm1213_vm1, %v741_v55  ;;  %v750_v43 = vshrl.u32 %v6955_v63, 16  ;;  %v2854_v55 = vor.u32 %v2852_v47, %v2850_v19 }
  0xaa   : > { %5559 = vst.msk [vmem:[%s6944_s14] sm:$0xf] %vm5558_vm5, %v5421_v56  ;;  %v2858_v56 = vrot.slane %v2856_v48, 1 }
  0xab   : > { %v4874_v60 = vadd.f32 %v6932_v33, %v4733_v59  ;;  %6466 = vmatmul.msk.bf16.gmra.mxu2 %vm1213_vm1, %v2843_v57  ;;  %v4393_v62 = vpop.f32.mrf.mxu3  ;;  %v752_v53 = vor.u32 %v750_v43, %v748_v17  ;;  %v4051_v59 = vsel %vm4026_vm2, %v4048_v13, %v4050_v50 }
  0xad   : > { %vm5011_vm6 = vcmp.gt.f32.partialorder %v4874_v60, 0.0  ;;  %v5148_v1 = vmul.f32 0.2, %v4874_v60 }
  0xae   : > { %v3539_v2 = vpop.f32.mrf.mxu2  ;;  %v1441_v5 = vpop.f32.mrf.mxu0 }
  0xaf   : > { %v5285_v3 = vsel %vm5011_vm6, %v4874_v60, %v5148_v1  ;;  %v3880_v4 = vadd.f32 %v3539_v2, %v1939_v61  ;;  %v1943_v9 = vpop.f32.mrf.mxu1  ;;  %v1941_v21 = vadd.f32 %v1940_v58, %v1441_v5  ;;  %v757_v1 = vsel %vm657_vm3, %v752_v53, %v756_v54 }
  0xb0   : > { %v5422_v8 = vpack.c.bf16 %v5285_v3, %v5285_v3 }
  0xb1   : > { %v4734_v12 = vadd.f32 %v4393_v62, %v3880_v4 }
  0xb2   : > { %5560 = vst.msk [vmem:[%s6944_s14 + $0x4] sm:$0xf] %vm5558_vm5, %v5422_v8  ;;  %6124 = vmatmul.msk.bf16.gmra.mxu1 %vm1213_vm1, %v6924_v29  ;;  %v2851_v29 = vsel %vm657_vm3, %v2846_v18, %v2850_v19  ;;  %v7005_v8 = vld [vmem:[%s6835_s6 + $0x68] sm:$0xff]  ;;  %v2860_v19 = vshrl.u32 %v6983_v37, 16 }
  0xb3   : > { %v4875_v14 = vadd.f32 %v6932_v33, %v4734_v12  ;;  %v4395_v15 = vpop.f32.mrf.mxu3  ;;  %v762_v16 = vshll.u32 %v7005_v8, 16 }
  0xb5   : > { %vm5012_vm7 = vcmp.gt.f32.partialorder %v4875_v14, 0.0  ;;  %v5149_v20 = vmul.f32 0.2, %v4875_v14 }
  0xb6   : > { %v3541_v23 = vpop.f32.mrf.mxu2  ;;  %v1444_v26 = vpop.f32.mrf.mxu0 }
  0xb7   : > { %v5286_v24 = vsel %vm5012_vm7, %v4875_v14, %v5149_v20  ;;  %v3881_v25 = vadd.f32 %v3541_v23, %v1941_v21  ;;  %v1945_v30 = vpop.f32.mrf.mxu1  ;;  %v1944_v34 = vadd.f32 %v1943_v9, %v1444_v26  ;;  %v7008_v9 = vld [vmem:[%s6835_s6 + $0x78] sm:$0xff]  ;;  %v764_v26 = vrot.slane %v762_v16, 1 }
  0xb8   : > { %v5423_v28 = vpack.c.bf16 %v5286_v24, %v5286_v24  ;;  %6542 = vmatmul.msk.bf16.gmra.mxu3 %vm1213_vm1, %v4049_v22  ;;  %v2864_v20 = vshll.u32 %v7008_v9, 16  ;;  %v4052_v22 = vrot.slane %v7008_v9, 1 }
  0xb9   : > { %v4735_v31 = vadd.f32 %v4395_v15, %v3881_v25  ;;  %6051 = vmatmul.msk.bf16.gmra.mxu0 %vm1213_vm1, %v749_v27  ;;  %v758_v15 = vshrl.u32 %v6980_v36, 16  ;;  %v2862_v27 = vor.u32 %v2860_v19, %v2858_v56 }
  0xba   : > { %5561 = vst.msk [vmem:[%s6944_s14 + $0x8] sm:$0xf] %vm5558_vm5, %v5423_v28  ;;  %v2866_v28 = vrot.slane %v2864_v20, 1 }
  0xbb   : > { %v4876_v32 = vadd.f32 %v6932_v33, %v4735_v31  ;;  %6467 = vmatmul.msk.bf16.gmra.mxu2 %vm1213_vm1, %v2851_v29  ;;  %v4398_v35 = vpop.f32.mrf.mxu3  ;;  %v760_v25 = vor.u32 %v758_v15, %v756_v54  ;;  %v4053_v31 = vsel %vm4026_vm2, %v4050_v50, %v4052_v22 }
  0xbd   : > { %vm5013_vm8 = vcmp.gt.f32.partialorder %v4876_v32, 0.0  ;;  %v5150_v38 = vmul.f32 0.2, %v4876_v32 }
  0xbe   : > { %v3544_v39 = vpop.f32.mrf.mxu2  ;;  %v1446_v42 = vpop.f32.mrf.mxu0 }
  0xbf   : > { %v5287_v40 = vsel %vm5013_vm8, %v4876_v32, %v5150_v38  ;;  %v3882_v41 = vadd.f32 %v3544_v39, %v1944_v34  ;;  %v1948_v46 = vpop.f32.mrf.mxu1  ;;  %v1946_v58 = vadd.f32 %v1945_v30, %v1446_v42  ;;  %v765_v38 = vsel %vm657_vm3, %v760_v25, %v764_v26 }
  0xc0   : > { %v5424_v45 = vpack.c.bf16 %v5287_v40, %v5287_v40 }
  0xc1   : > { %v4736_v49 = vadd.f32 %v4398_v35, %v3882_v41 }
  0xc2   : > { %5562 = vst.msk [vmem:[%s6944_s14 + $0xc] sm:$0xf] %vm5558_vm5, %v5424_v45  ;;  %6125 = vmatmul.msk.bf16.gmra.mxu1 %vm1213_vm1, %v6955_v63  ;;  %v2859_v63 = vsel %vm657_vm3, %v2854_v55, %v2858_v56  ;;  %v7030_v45 = vld [vmem:[%s6835_s6 + $0x70] sm:$0xff]  ;;  %v2868_v56 = vshrl.u32 %v7008_v9, 16 }
  0xc3   : > { %v4877_v51 = vadd.f32 %v6932_v33, %v4736_v49  ;;  %v4400_v52 = vpop.f32.mrf.mxu3  ;;  %v770_v53 = vshll.u32 %v7030_v45, 16 }
  0xc5   : > { %vm5014_vm9 = vcmp.gt.f32.partialorder %v4877_v51, 0.0  ;;  %v5151_v57 = vmul.f32 0.2, %v4877_v51 }
  0xc6   : > { %v3546_v60 = vpop.f32.mrf.mxu2  ;;  %v1449_v0 = vpop.f32.mrf.mxu0 }
  0xc7   : > { %v5288_v61 = vsel %vm5014_vm9, %v4877_v51, %v5151_v57  ;;  %v3883_v62 = vadd.f32 %v3546_v60, %v1946_v58  ;;  %v1950_v3 = vpop.f32.mrf.mxu1  ;;  %v1949_v6 = vadd.f32 %v1948_v46, %v1449_v0  ;;  %v7033_v46 = vld [vmem:[%s6835_s6 + $0x80] sm:$0xff]  ;;  %v772_v0 = vrot.slane %v770_v53, 1 }
  0xc8   : > { %v5425_v2 = vpack.c.bf16 %v5288_v61, %v5288_v61  ;;  %6543 = vmatmul.msk.bf16.gmra.mxu3 %vm1213_vm1, %v4051_v59  ;;  %v2872_v57 = vshll.u32 %v7033_v46, 16  ;;  %v4054_v59 = vrot.slane %v7033_v46, 1 }
  0xc9   : > { %v4737_v4 = vadd.f32 %v4400_v52, %v3883_v62  ;;  %6052 = vmatmul.msk.bf16.gmra.mxu0 %vm1213_vm1, %v757_v1  ;;  %v766_v52 = vshrl.u32 %v7005_v8, 16  ;;  %v2870_v1 = vor.u32 %v2868_v56, %v2866_v28 }
  0xca   : > { %5563 = vst.msk [vmem:[%s6944_s14 + $0x10] sm:$0xf] %vm5558_vm5, %v5425_v2  ;;  %v2874_v2 = vrot.slane %v2872_v57, 1 }
  0xcb   : > { %v4878_v5 = vadd.f32 %v6932_v33, %v4737_v4  ;;  %6468 = vmatmul.msk.bf16.gmra.mxu2 %vm1213_vm1, %v2859_v63  ;;  %v4403_v7 = vpop.f32.mrf.mxu3  ;;  %v768_v62 = vor.u32 %v766_v52, %v764_v26  ;;  %v4055_v4 = vsel %vm4026_vm2, %v4052_v22, %v4054_v59 }
  0xcd   : > { %vm5015_vm10 = vcmp.gt.f32.partialorder %v4878_v5, 0.0  ;;  %v5152_v10 = vmul.f32 0.2, %v4878_v5 }
  0xce   : > { %v3549_v11 = vpop.f32.mrf.mxu2  ;;  %v1451_v14 = vpop.f32.mrf.mxu0 }
  0xcf   : > { %v5289_v12 = vsel %vm5015_vm10, %v4878_v5, %v5152_v10  ;;  %v3884_v13 = vadd.f32 %v3549_v11, %v1949_v6  ;;  %v1953_v18 = vpop.f32.mrf.mxu1  ;;  %v1951_v30 = vadd.f32 %v1950_v3, %v1451_v14  ;;  %v773_v10 = vsel %vm657_vm3, %v768_v62, %v772_v0 }
  0xd0   : > { %v5426_v17 = vpack.c.bf16 %v5289_v12, %v5289_v12 }
  0xd1   : > { %v4738_v21 = vadd.f32 %v4403_v7, %v3884_v13 }
  0xd2   : > { %5564 = vst.msk [vmem:[%s6944_s14 + $0x14] sm:$0xf] %vm5558_vm5, %v5426_v17  ;;  %6126 = vmatmul.msk.bf16.gmra.mxu1 %vm1213_vm1, %v6980_v36  ;;  %v2867_v36 = vsel %vm657_vm3, %v2862_v27, %v2866_v28  ;;  %v7055_v17 = vld [vmem:[%s6835_s6 + $0x78] sm:$0xff]  ;;  %v2876_v28 = vshrl.u32 %v7033_v46, 16 }
  0xd3   : > { %v4879_v23 = vadd.f32 %v6932_v33, %v4738_v21  ;;  %v4405_v24 = vpop.f32.mrf.mxu3  ;;  %v778_v25 = vshll.u32 %v7055_v17, 16 }
  0xd5   : > { %vm5016_vm11 = vcmp.gt.f32.partialorder %v4879_v23, 0.0  ;;  %v5153_v29 = vmul.f32 0.2, %v4879_v23 }
  0xd6   : > { %v3551_v32 = vpop.f32.mrf.mxu2  ;;  %v1454_v37 = vpop.f32.mrf.mxu0 }
  0xd7   : > { %v5290_v34 = vsel %vm5016_vm11, %v4879_v23, %v5153_v29  ;;  %v3885_v35 = vadd.f32 %v3551_v32, %v1951_v30  ;;  %v1955_v40 = vpop.f32.mrf.mxu1  ;;  %v1954_v43 = vadd.f32 %v1953_v18, %v1454_v37  ;;  %v7058_v18 = vld [vmem:[%s6835_s6 + $0x88] sm:$0xff]  ;;  %v780_v37 = vrot.slane %v778_v25, 1 }
  0xd8   : > { %v5427_v39 = vpack.c.bf16 %v5290_v34, %v5290_v34  ;;  %6544 = vmatmul.msk.bf16.gmra.mxu3 %vm1213_vm1, %v4053_v31  ;;  %v2880_v29 = vshll.u32 %v7058_v18, 16  ;;  %v4056_v31 = vrot.slane %v7058_v18, 1 }
  0xd9   : > { %v4739_v41 = vadd.f32 %v4405_v24, %v3885_v35  ;;  %6053 = vmatmul.msk.bf16.gmra.mxu0 %vm1213_vm1, %v765_v38  ;;  %v774_v24 = vshrl.u32 %v7030_v45, 16  ;;  %v2878_v38 = vor.u32 %v2876_v28, %v2874_v2 }
  0xda   : > { %5565 = vst.msk [vmem:[%s6944_s14 + $0x18] sm:$0xf] %vm5558_vm5, %v5427_v39  ;;  %v2882_v39 = vrot.slane %v2880_v29, 1 }
  0xdb   : > { %v4880_v42 = vadd.f32 %v6932_v33, %v4739_v41  ;;  %6469 = vmatmul.msk.bf16.gmra.mxu2 %vm1213_vm1, %v2867_v36  ;;  %v4408_v44 = vpop.f32.mrf.mxu3  ;;  %v776_v35 = vor.u32 %v774_v24, %v772_v0  ;;  %v4057_v41 = vsel %vm4026_vm2, %v4054_v59, %v4056_v31 }
  0xdd   : > { %vm5017_vm12 = vcmp.gt.f32.partialorder %v4880_v42, 0.0  ;;  %v5154_v47 = vmul.f32 0.2, %v4880_v42 }
  0xde   : > { %v3554_v48 = vpop.f32.mrf.mxu2  ;;  %v1456_v51 = vpop.f32.mrf.mxu0 }
  0xdf   : > { %v5291_v49 = vsel %vm5017_vm12, %v4880_v42, %v5154_v47  ;;  %v3886_v50 = vadd.f32 %v3554_v48, %v1954_v43  ;;  %v1958_v55 = vpop.f32.mrf.mxu1  ;;  %v1956_v3 = vadd.f32 %v1955_v40, %v1456_v51  ;;  %v781_v47 = vsel %vm657_vm3, %v776_v35, %v780_v37 }
  0xe0   : > { %v5428_v54 = vpack.c.bf16 %v5291_v49, %v5291_v49 }
  0xe1   : > { %v4740_v58 = vadd.f32 %v4408_v44, %v3886_v50 }
  0xe2   : > { %5566 = vst.msk [vmem:[%s6944_s14 + $0x1c] sm:$0xf] %vm5558_vm5, %v5428_v54  ;;  %6127 = vmatmul.msk.bf16.gmra.mxu1 %vm1213_vm1, %v7005_v8  ;;  %v2875_v8 = vsel %vm657_vm3, %v2870_v1, %v2874_v2  ;;  %v7080_v54 = vld [vmem:[%s6835_s6 + $0x80] sm:$0xff]  ;;  %v2884_v2 = vshrl.u32 %v7058_v18, 16 }
  0xe3   : > { %v4881_v60 = vadd.f32 %v6932_v33, %v4740_v58  ;;  %v4410_v61 = vpop.f32.mrf.mxu3  ;;  %v786_v62 = vshll.u32 %v7080_v54, 16 }
  0xe5   : > { %vm5018_vm13 = vcmp.gt.f32.partialorder %v4881_v60, 0.0  ;;  %v5155_v63 = vmul.f32 0.2, %v4881_v60 }
  0xe6   : > { %v3556_v5 = vpop.f32.mrf.mxu2  ;;  %v1459_v9 = vpop.f32.mrf.mxu0 }
  0xe7   : > { %v5292_v6 = vsel %vm5018_vm13, %v4881_v60, %v5155_v63  ;;  %v3887_v7 = vadd.f32 %v3556_v5, %v1956_v3  ;;  %v1960_v12 = vpop.f32.mrf.mxu1  ;;  %v1959_v15 = vadd.f32 %v1958_v55, %v1459_v9  ;;  %v7083_v55 = vld [vmem:[%s6835_s6 + $0x90] sm:$0xff]  ;;  %v788_v9 = vrot.slane %v786_v62, 1 }
  0xe8   : > { %v5429_v11 = vpack.c.bf16 %v5292_v6, %v5292_v6  ;;  %6545 = vmatmul.msk.bf16.gmra.mxu3 %vm1213_vm1, %v4055_v4  ;;  %v2888_v63 = vshll.u32 %v7083_v55, 16  ;;  %v4058_v4 = vrot.slane %v7083_v55, 1 }
  0xe9   : > { %v4741_v13 = vadd.f32 %v4410_v61, %v3887_v7  ;;  %6054 = vmatmul.msk.bf16.gmra.mxu0 %vm1213_vm1, %v773_v10  ;;  %v782_v61 = vshrl.u32 %v7055_v17, 16  ;;  %v2886_v10 = vor.u32 %v2884_v2, %v2882_v39 }
  0xea   : > { %5567 = vst.msk [vmem:[%s6944_s14 + $0x20] sm:$0xf] %vm5558_vm5, %v5429_v11  ;;  %v2890_v11 = vrot.slane %v2888_v63, 1 }
  0xeb   : > { %v4882_v14 = vadd.f32 %v6932_v33, %v4741_v13  ;;  %6470 = vmatmul.msk.bf16.gmra.mxu2 %vm1213_vm1, %v2875_v8  ;;  %v4413_v16 = vpop.f32.mrf.mxu3  ;;  %v784_v7 = vor.u32 %v782_v61, %v780_v37  ;;  %v4059_v13 = vsel %vm4026_vm2, %v4056_v31, %v4058_v4 }
  0xed   : > { %vm5019_vm14 = vcmp.gt.f32.partialorder %v4882_v14, 0.0  ;;  %v5156_v19 = vmul.f32 0.2, %v4882_v14 }
  0xee   : > { %v3559_v20 = vpop.f32.mrf.mxu2  ;;  %v1461_v23 = vpop.f32.mrf.mxu0 }
  0xef   : > { %v5293_v21 = vsel %vm5019_vm14, %v4882_v14, %v5156_v19  ;;  %v3888_v22 = vadd.f32 %v3559_v20, %v1959_v15  ;;  %v1963_v27 = vpop.f32.mrf.mxu1  ;;  %v1961_v40 = vadd.f32 %v1960_v12, %v1461_v23  ;;  %v789_v19 = vsel %vm657_vm3, %v784_v7, %v788_v9 }
  0xf0   : > { %v5430_v26 = vpack.c.bf16 %v5293_v21, %v5293_v21 }
  0xf1   : > { %v4742_v30 = vadd.f32 %v4413_v16, %v3888_v22 }
  0xf2   : > { %5568 = vst.msk [vmem:[%s6944_s14 + $0x24] sm:$0xf] %vm5558_vm5, %v5430_v26  ;;  %6128 = vmatmul.msk.bf16.gmra.mxu1 %vm1213_vm1, %v7030_v45  ;;  %v2883_v45 = vsel %vm657_vm3, %v2878_v38, %v2882_v39  ;;  %v7105_v26 = vld [vmem:[%s6835_s6 + $0x88] sm:$0xff]  ;;  %v2892_v39 = vshrl.u32 %v7083_v55, 16 }
  0xf3   : > { %v4883_v32 = vadd.f32 %v6932_v33, %v4742_v30  ;;  %v4415_v34 = vpop.f32.mrf.mxu3  ;;  %v794_v35 = vshll.u32 %v7105_v26, 16 }
  0xf5   : > { %vm5020_vm15 = vcmp.gt.f32.partialorder %v4883_v32, 0.0  ;;  %v5157_v36 = vmul.f32 0.2, %v4883_v32 }
  0xf6   : > { %v3561_v42 = vpop.f32.mrf.mxu2  ;;  %v1464_v46 = vpop.f32.mrf.mxu0 }
  0xf7   : > { %v5294_v43 = vsel %vm5020_vm15, %v4883_v32, %v5157_v36  ;;  %v3889_v44 = vadd.f32 %v3561_v42, %v1961_v40  ;;  %v1965_v49 = vpop.f32.mrf.mxu1  ;;  %v1964_v52 = vadd.f32 %v1963_v27, %v1464_v46  ;;  %v7108_v27 = vld [vmem:[%s6835_s6 + $0x98] sm:$0xff]  ;;  %v796_v46 = vrot.slane %v794_v35, 1 }
  0xf8   : > { %v5431_v48 = vpack.c.bf16 %v5294_v43, %v5294_v43  ;;  %6546 = vmatmul.msk.bf16.gmra.mxu3 %vm1213_vm1, %v4057_v41  ;;  %v2896_v36 = vshll.u32 %v7108_v27, 16  ;;  %v4060_v41 = vrot.slane %v7108_v27, 1 }
  0xf9   : > { %v4743_v50 = vadd.f32 %v4415_v34, %v3889_v44  ;;  %6055 = vmatmul.msk.bf16.gmra.mxu0 %vm1213_vm1, %v781_v47  ;;  %v790_v34 = vshrl.u32 %v7080_v54, 16  ;;  %v2894_v47 = vor.u32 %v2892_v39, %v2890_v11 }
  0xfa   : > { %5569 = vst.msk [vmem:[%s6944_s14 + $0x28] sm:$0xf] %vm5558_vm5, %v5431_v48  ;;  %v2898_v48 = vrot.slane %v2896_v36, 1 }
  0xfb   : > { %v4884_v51 = vadd.f32 %v6932_v33, %v4743_v50  ;;  %6471 = vmatmul.msk.bf16.gmra.mxu2 %vm1213_vm1, %v2883_v45  ;;  %v4418_v53 = vpop.f32.mrf.mxu3  ;;  %v792_v44 = vor.u32 %v790_v34, %v788_v9  ;;  %v4061_v50 = vsel %vm4026_vm2, %v4058_v4, %v4060_v41 }
  0xfd   : > { %vm5021_vm0 = vcmp.gt.f32.partialorder %v4884_v51, 0.0  ;;  %v5158_v56 = vmul.f32 0.2, %v4884_v51 }
  0xfe   : > { %v3564_v57 = vpop.f32.mrf.mxu2  ;;  %v1466_v60 = vpop.f32.mrf.mxu0 }
  0xff   : > { %v5295_v58 = vsel %vm5021_vm0, %v4884_v51, %v5158_v56  ;;  %v3890_v59 = vadd.f32 %v3564_v57, %v1964_v52  ;;  %v1968_v1 = vpop.f32.mrf.mxu1  ;;  %v1966_v12 = vadd.f32 %v1965_v49, %v1466_v60  ;;  %v797_v56 = vsel %vm657_vm3, %v792_v44, %v796_v46 }
 0x100   : > { %v5432_v0 = vpack.c.bf16 %v5295_v58, %v5295_v58 }
 0x101   : > { %v4744_v3 = vadd.f32 %v4418_v53, %v3890_v59 }
 0x102   : > { %5570 = vst.msk [vmem:[%s6944_s14 + $0x2c] sm:$0xf] %vm5558_vm5, %v5432_v0  ;;  %6129 = vmatmul.msk.bf16.gmra.mxu1 %vm1213_vm1, %v7055_v17  ;;  %v2891_v17 = vsel %vm657_vm3, %v2886_v10, %v2890_v11  ;;  %v7130_v0 = vld [vmem:[%s6835_s6 + $0x90] sm:$0xff]  ;;  %v2900_v11 = vshrl.u32 %v7108_v27, 16 }
 0x103   : > { %v4885_v5 = vadd.f32 %v6932_v33, %v4744_v3  ;;  %v4420_v6 = vpop.f32.mrf.mxu3  ;;  %v802_v7 = vshll.u32 %v7130_v0, 16 }
 0x105   : > { %vm5022_vm4 = vcmp.gt.f32.partialorder %v4885_v5, 0.0  ;;  %v5159_v8 = vmul.f32 0.2, %v4885_v5 }
 0x106   : > { %v3566_v14 = vpop.f32.mrf.mxu2  ;;  %v1469_v18 = vpop.f32.mrf.mxu0 }
 0x107   : > { %v5296_v15 = vsel %vm5022_vm4, %v4885_v5, %v5159_v8  ;;  %v3891_v16 = vadd.f32 %v3566_v14, %v1966_v12  ;;  %v1970_v21 = vpop.f32.mrf.mxu1  ;;  %v1969_v24 = vadd.f32 %v1968_v1, %v1469_v18  ;;  %v7133_v1 = vld [vmem:[%s6835_s6 + $0xa0] sm:$0xff]  ;;  %v804_v18 = vrot.slane %v802_v7, 1 }
 0x108   : > { %v5433_v20 = vpack.c.bf16 %v5296_v15, %v5296_v15  ;;  %6547 = vmatmul.msk.bf16.gmra.mxu3 %vm1213_vm1, %v4059_v13  ;;  %v2904_v8 = vshll.u32 %v7133_v1, 16  ;;  %v4062_v13 = vrot.slane %v7133_v1, 1 }
 0x109   : > { %v4745_v22 = vadd.f32 %v4420_v6, %v3891_v16  ;;  %6056 = vmatmul.msk.bf16.gmra.mxu0 %vm1213_vm1, %v789_v19  ;;  %v798_v6 = vshrl.u32 %v7105_v26, 16  ;;  %v2902_v19 = vor.u32 %v2900_v11, %v2898_v48 }
 0x10a   : > { %5571 = vst.msk [vmem:[%s6944_s14 + $0x30] sm:$0xf] %vm5558_vm5, %v5433_v20  ;;  %v2906_v20 = vrot.slane %v2904_v8, 1 }
 0x10b   : > { %v4886_v23 = vadd.f32 %v6932_v33, %v4745_v22  ;;  %6472 = vmatmul.msk.bf16.gmra.mxu2 %vm1213_vm1, %v2891_v17  ;;  %v4423_v25 = vpop.f32.mrf.mxu3  ;;  %v800_v16 = vor.u32 %v798_v6, %v796_v46  ;;  %v4063_v22 = vsel %vm4026_vm2, %v4060_v41, %v4062_v13 }
 0x10d   : > { %vm5023_vm6 = vcmp.gt.f32.partialorder %v4886_v23, 0.0  ;;  %v5160_v28 = vmul.f32 0.2, %v4886_v23 }
 0x10e   : > { %v3569_v29 = vpop.f32.mrf.mxu2  ;;  %v1471_v32 = vpop.f32.mrf.mxu0 }
 0x10f   : > { %v5297_v30 = vsel %vm5023_vm6, %v4886_v23, %v5160_v28  ;;  %v3892_v31 = vadd.f32 %v3569_v29, %v1969_v24  ;;  %v1973_v38 = vpop.f32.mrf.mxu1  ;;  %v1971_v49 = vadd.f32 %v1970_v21, %v1471_v32  ;;  %v805_v28 = vsel %vm657_vm3, %v800_v16, %v804_v18 }
 0x110   : > { %v5434_v37 = vpack.c.bf16 %v5297_v30, %v5297_v30 }
 0x111   : > { %v4746_v40 = vadd.f32 %v4423_v25, %v3892_v31 }
 0x112   : > { %5572 = vst.msk [vmem:[%s6944_s14 + $0x34] sm:$0xf] %vm5558_vm5, %v5434_v37  ;;  %6130 = vmatmul.msk.bf16.gmra.mxu1 %vm1213_vm1, %v7080_v54  ;;  %v2899_v54 = vsel %vm657_vm3, %v2894_v47, %v2898_v48  ;;  %v7155_v37 = vld [vmem:[%s6835_s6 + $0x98] sm:$0xff]  ;;  %v2908_v48 = vshrl.u32 %v7133_v1, 16 }
 0x113   : > { %v4887_v42 = vadd.f32 %v6932_v33, %v4746_v40  ;;  %v4425_v43 = vpop.f32.mrf.mxu3  ;;  %v810_v44 = vshll.u32 %v7155_v37, 16 }
 0x115   : > { %vm5024_vm7 = vcmp.gt.f32.partialorder %v4887_v42, 0.0  ;;  %v5161_v45 = vmul.f32 0.2, %v4887_v42 }
 0x116   : > { %v3571_v51 = vpop.f32.mrf.mxu2  ;;  %v1474_v55 = vpop.f32.mrf.mxu0 }
 0x117   : > { %v5298_v52 = vsel %vm5024_vm7, %v4887_v42, %v5161_v45  ;;  %v3893_v53 = vadd.f32 %v3571_v51, %v1971_v49  ;;  %v1975_v58 = vpop.f32.mrf.mxu1  ;;  %v1974_v61 = vadd.f32 %v1973_v38, %v1474_v55  ;;  %v7158_v38 = vld [vmem:[%s6835_s6 + $0xa8] sm:$0xff]  ;;  %v812_v55 = vrot.slane %v810_v44, 1 }
 0x118   : > { %v5435_v57 = vpack.c.bf16 %v5298_v52, %v5298_v52  ;;  %6548 = vmatmul.msk.bf16.gmra.mxu3 %vm1213_vm1, %v4061_v50  ;;  %v2912_v45 = vshll.u32 %v7158_v38, 16  ;;  %v4064_v50 = vrot.slane %v7158_v38, 1 }
 0x119   : > { %v4747_v59 = vadd.f32 %v4425_v43, %v3893_v53  ;;  %6057 = vmatmul.msk.bf16.gmra.mxu0 %vm1213_vm1, %v797_v56  ;;  %v806_v43 = vshrl.u32 %v7130_v0, 16  ;;  %v2910_v56 = vor.u32 %v2908_v48, %v2906_v20 }
 0x11a   : > { %5573 = vst.msk [vmem:[%s6944_s14 + $0x38] sm:$0xf] %vm5558_vm5, %v5435_v57  ;;  %v2914_v57 = vrot.slane %v2912_v45, 1 }
 0x11b   : > { %v4888_v60 = vadd.f32 %v6932_v33, %v4747_v59  ;;  %6473 = vmatmul.msk.bf16.gmra.mxu2 %vm1213_vm1, %v2899_v54  ;;  %v4428_v62 = vpop.f32.mrf.mxu3  ;;  %v808_v53 = vor.u32 %v806_v43, %v804_v18  ;;  %v4065_v59 = vsel %vm4026_vm2, %v4062_v13, %v4064_v50 }
 0x11d   : > { %vm5025_vm8 = vcmp.gt.f32.partialorder %v4888_v60, 0.0  ;;  %v5162_v2 = vmul.f32 0.2, %v4888_v60 }
 0x11e   : > { %v3574_v63 = vpop.f32.mrf.mxu2  ;;  %v1476_v5 = vpop.f32.mrf.mxu0 }
 0x11f   : > { %v5299_v3 = vsel %vm5025_vm8, %v4888_v60, %v5162_v2  ;;  %v3894_v4 = vadd.f32 %v3574_v63, %v1974_v61  ;;  %v1978_v10 = vpop.f32.mrf.mxu1  ;;  %v1976_v21 = vadd.f32 %v1975_v58, %v1476_v5  ;;  %v813_v2 = vsel %vm657_vm3, %v808_v53, %v812_v55 }
 0x120   : > { %v5436_v9 = vpack.c.bf16 %v5299_v3, %v5299_v3 }
 0x121   : > { %v4748_v12 = vadd.f32 %v4428_v62, %v3894_v4 }
 0x122   : > { %5574 = vst.msk [vmem:[%s6944_s14 + $0x3c] sm:$0xf] %vm5558_vm5, %v5436_v9  ;;  %6131 = vmatmul.msk.bf16.gmra.mxu1 %vm1213_vm1, %v7105_v26  ;;  %v2907_v26 = vsel %vm657_vm3, %v2902_v19, %v2906_v20  ;;  %v7180_v9 = vld [vmem:[%s6835_s6 + $0xa0] sm:$0xff]  ;;  %v2916_v20 = vshrl.u32 %v7158_v38, 16 }
 0x123   : > { %v4889_v14 = vadd.f32 %v6932_v33, %v4748_v12  ;;  %v4430_v15 = vpop.f32.mrf.mxu3  ;;  %v818_v16 = vshll.u32 %v7180_v9, 16 }
 0x125   : > { %vm5026_vm9 = vcmp.gt.f32.partialorder %v4889_v14, 0.0  ;;  %v5163_v17 = vmul.f32 0.2, %v4889_v14 }
 0x126   : > { %v3576_v23 = vpop.f32.mrf.mxu2  ;;  %v1479_v27 = vpop.f32.mrf.mxu0 }
 0x127   : > { %v5300_v24 = vsel %vm5026_vm9, %v4889_v14, %v5163_v17  ;;  %v3895_v25 = vadd.f32 %v3576_v23, %v1976_v21  ;;  %v1980_v30 = vpop.f32.mrf.mxu1  ;;  %v1979_v34 = vadd.f32 %v1978_v10, %v1479_v27  ;;  %v7183_v10 = vld [vmem:[%s6835_s6 + $0xb0] sm:$0xff]  ;;  %v820_v27 = vrot.slane %v818_v16, 1 }
 0x128   : > { %v5437_v29 = vpack.c.bf16 %v5300_v24, %v5300_v24  ;;  %6549 = vmatmul.msk.bf16.gmra.mxu3 %vm1213_vm1, %v4063_v22  ;;  %v2920_v17 = vshll.u32 %v7183_v10, 16  ;;  %v4066_v22 = vrot.slane %v7183_v10, 1 }
 0x129   : > { %v4749_v31 = vadd.f32 %v4430_v15, %v3895_v25  ;;  %6058 = vmatmul.msk.bf16.gmra.mxu0 %vm1213_vm1, %v805_v28  ;;  %v814_v15 = vshrl.u32 %v7155_v37, 16  ;;  %v2918_v28 = vor.u32 %v2916_v20, %v2914_v57 }
 0x12a   : > { %5575 = vst.msk [vmem:[%s6944_s14 + $0x40] sm:$0xf] %vm5558_vm5, %v5437_v29  ;;  %v2922_v29 = vrot.slane %v2920_v17, 1 }
 0x12b   : > { %v4890_v32 = vadd.f32 %v6932_v33, %v4749_v31  ;;  %6474 = vmatmul.msk.bf16.gmra.mxu2 %vm1213_vm1, %v2907_v26  ;;  %v4433_v35 = vpop.f32.mrf.mxu3  ;;  %v816_v25 = vor.u32 %v814_v15, %v812_v55  ;;  %v4067_v31 = vsel %vm4026_vm2, %v4064_v50, %v4066_v22 }
 0x12d   : > { %vm5027_vm10 = vcmp.gt.f32.partialorder %v4890_v32, 0.0  ;;  %v5164_v39 = vmul.f32 0.2, %v4890_v32 }
 0x12e   : > { %v3579_v36 = vpop.f32.mrf.mxu2  ;;  %v1481_v42 = vpop.f32.mrf.mxu0 }
 0x12f   : > { %v5301_v40 = vsel %vm5027_vm10, %v4890_v32, %v5164_v39  ;;  %v3896_v41 = vadd.f32 %v3579_v36, %v1979_v34  ;;  %v1983_v47 = vpop.f32.mrf.mxu1  ;;  %v1981_v58 = vadd.f32 %v1980_v30, %v1481_v42  ;;  %v821_v39 = vsel %vm657_vm3, %v816_v25, %v820_v27 }
 0x130   : > { %v5438_v46 = vpack.c.bf16 %v5301_v40, %v5301_v40 }
 0x131   : > { %v4750_v49 = vadd.f32 %v4433_v35, %v3896_v41 }
 0x132   : > { %5576 = vst.msk [vmem:[%s6944_s14 + $0x44] sm:$0xf] %vm5558_vm5, %v5438_v46  ;;  %6132 = vmatmul.msk.bf16.gmra.mxu1 %vm1213_vm1, %v7130_v0  ;;  %v2915_v0 = vsel %vm657_vm3, %v2910_v56, %v2914_v57  ;;  %v7205_v46 = vld [vmem:[%s6835_s6 + $0xa8] sm:$0xff]  ;;  %v2924_v57 = vshrl.u32 %v7183_v10, 16 }
 0x133   : > { %v4891_v51 = vadd.f32 %v6932_v33, %v4750_v49  ;;  %v4435_v52 = vpop.f32.mrf.mxu3  ;;  %v826_v53 = vshll.u32 %v7205_v46, 16 }
 0x135   : > { %vm5028_vm11 = vcmp.gt.f32.partialorder %v4891_v51, 0.0  ;;  %v5165_v54 = vmul.f32 0.2, %v4891_v51 }
 0x136   : > { %v3581_v60 = vpop.f32.mrf.mxu2  ;;  %v1484_v1 = vpop.f32.mrf.mxu0 }
 0x137   : > { %v5302_v61 = vsel %vm5028_vm11, %v4891_v51, %v5165_v54  ;;  %v3897_v62 = vadd.f32 %v3581_v60, %v1981_v58  ;;  %v1985_v3 = vpop.f32.mrf.mxu1  ;;  %v1984_v6 = vadd.f32 %v1983_v47, %v1484_v1  ;;  %v7208_v47 = vld [vmem:[%s6835_s6 + $0xb8] sm:$0xff]  ;;  %v828_v1 = vrot.slane %v826_v53, 1 }
 0x138   : > { %v5439_v63 = vpack.c.bf16 %v5302_v61, %v5302_v61  ;;  %6550 = vmatmul.msk.bf16.gmra.mxu3 %vm1213_vm1, %v4065_v59  ;;  %v2928_v54 = vshll.u32 %v7208_v47, 16  ;;  %v4068_v59 = vrot.slane %v7208_v47, 1 }
 0x139   : > { %v4751_v4 = vadd.f32 %v4435_v52, %v3897_v62  ;;  %6059 = vmatmul.msk.bf16.gmra.mxu0 %vm1213_vm1, %v813_v2  ;;  %v822_v52 = vshrl.u32 %v7180_v9, 16  ;;  %v2926_v2 = vor.u32 %v2924_v57, %v2922_v29 }
 0x13a   : > { %5577 = vst.msk [vmem:[%s6944_s14 + $0x48] sm:$0xf] %vm5558_vm5, %v5439_v63  ;;  %v2930_v63 = vrot.slane %v2928_v54, 1 }
 0x13b   : > { %v4892_v5 = vadd.f32 %v6932_v33, %v4751_v4  ;;  %6475 = vmatmul.msk.bf16.gmra.mxu2 %vm1213_vm1, %v2915_v0  ;;  %v4438_v7 = vpop.f32.mrf.mxu3  ;;  %v824_v62 = vor.u32 %v822_v52, %v820_v27  ;;  %v4069_v4 = vsel %vm4026_vm2, %v4066_v22, %v4068_v59 }
 0x13d   : > { %vm5029_vm12 = vcmp.gt.f32.partialorder %v4892_v5, 0.0  ;;  %v5166_v11 = vmul.f32 0.2, %v4892_v5  ;;  %v829_v10 = vsel %vm657_vm3, %v824_v62, %v828_v1 }
 0x13e   : > { %v3584_v8 = vpop.f32.mrf.mxu2  ;;  %v1486_v14 = vpop.f32.mrf.mxu0 }
 0x13f   : > { %v5303_v12 = vsel %vm5029_vm12, %v4892_v5, %v5166_v11  ;;  %v3898_v13 = vadd.f32 %v3584_v8, %v1984_v6  ;;  %v1988_v19 = vpop.f32.mrf.mxu1  ;;  %v1986_v30 = vadd.f32 %v1985_v3, %v1486_v14 }
 0x140   : > { %v5440_v18 = vpack.c.bf16 %v5303_v12, %v5303_v12 }
 0x141   : > { %v4752_v21 = vadd.f32 %v4438_v7, %v3898_v13  ;;  %v7230_v13 = vld [vmem:[%s8507_s2] ss:$0 sm:$0xff] }
 0x142   : > { %5578 = vst.msk [vmem:[%s6944_s14 + $0x4c] sm:$0xf] %vm5558_vm5, %v5440_v18  ;;  %6133 = vmatmul.msk.bf16.gmra.mxu1 %vm1213_vm1, %v7155_v37  ;;  %v2923_v37 = vsel %vm657_vm3, %v2918_v28, %v2922_v29  ;;  %v7235_v18 = vld [vmem:[%s6835_s6 + $0xb0] sm:$0xff]  ;;  %v2932_v29 = vshrl.u32 %v7208_v47, 16 }
 0x143   : > { %v4893_v23 = vadd.f32 %v6932_v33, %v4752_v21  ;;  %v4440_v24 = vpop.f32.mrf.mxu3  ;;  %v834_v25 = vshll.u32 %v7235_v18, 16 }
 0x145   : > { %vm5030_vm13 = vcmp.gt.f32.partialorder %v4893_v23, 0.0  ;;  %v5167_v26 = vmul.f32 0.2, %v4893_v23 }
 0x146   : > { %v3586_v32 = vpop.f32.mrf.mxu2  ;;  %v1489_v38 = vpop.f32.mrf.mxu0 }
 0x147   : > { %v5304_v34 = vsel %vm5030_vm13, %v4893_v23, %v5167_v26  ;;  %v3899_v35 = vadd.f32 %v3586_v32, %v1986_v30  ;;  %v1990_v40 = vpop.f32.mrf.mxu1  ;;  %v1989_v43 = vadd.f32 %v1988_v19, %v1489_v38  ;;  %v7238_v19 = vld [vmem:[%s6835_s6 + $0xc0] sm:$0xff]  ;;  %v836_v38 = vrot.slane %v834_v25, 1 }
 0x148   : > { %v5441_v36 = vpack.c.bf16 %v5304_v34, %v5304_v34  ;;  %6551 = vmatmul.msk.bf16.gmra.mxu3 %vm1213_vm1, %v4067_v31  ;;  %v2936_v26 = vshll.u32 %v7238_v19, 16  ;;  %v4070_v31 = vrot.slane %v7238_v19, 1 }
 0x149   : > { %v4753_v41 = vadd.f32 %v4440_v24, %v3899_v35  ;;  %6060 = vmatmul.msk.bf16.gmra.mxu0 %vm1213_vm1, %v821_v39  ;;  %v830_v24 = vshrl.u32 %v7205_v46, 16  ;;  %v2934_v39 = vor.u32 %v2932_v29, %v2930_v63 }
 0x14a   : > { %5579 = vst.msk [vmem:[%s6944_s14 + $0x50] sm:$0xf] %vm5558_vm5, %v5441_v36  ;;  %v2938_v36 = vrot.slane %v2936_v26, 1 }
 0x14b   : > { %v4894_v42 = vadd.f32 %v6932_v33, %v4753_v41  ;;  %6476 = vmatmul.msk.bf16.gmra.mxu2 %vm1213_vm1, %v2923_v37  ;;  %v4443_v44 = vpop.f32.mrf.mxu3  ;;  %v832_v35 = vor.u32 %v830_v24, %v828_v1  ;;  %v4071_v41 = vsel %vm4026_vm2, %v4068_v59, %v4070_v31 }
 0x14d   : > { %vm5031_vm14 = vcmp.gt.f32.partialorder %v4894_v42, 0.0  ;;  %v5168_v48 = vmul.f32 0.2, %v4894_v42 }
 0x14e   : > { %v3589_v45 = vpop.f32.mrf.mxu2  ;;  %v1491_v51 = vpop.f32.mrf.mxu0 }
 0x14f   : > { %v5305_v49 = vsel %vm5031_vm14, %v4894_v42, %v5168_v48  ;;  %v3900_v50 = vadd.f32 %v3589_v45, %v1989_v43  ;;  %v1993_v56 = vpop.f32.mrf.mxu1  ;;  %v1991_v3 = vadd.f32 %v1990_v40, %v1491_v51  ;;  %v837_v48 = vsel %vm657_vm3, %v832_v35, %v836_v38 }
 0x150   : > { %v5442_v55 = vpack.c.bf16 %v5305_v49, %v5305_v49 }
 0x151   : > { %v4754_v58 = vadd.f32 %v4443_v44, %v3900_v50 }
 0x152   : > { %5580 = vst.msk [vmem:[%s6944_s14 + $0x54] sm:$0xf] %vm5558_vm5, %v5442_v55  ;;  %6134 = vmatmul.msk.bf16.gmra.mxu1 %vm1213_vm1, %v7180_v9  ;;  %v2931_v9 = vsel %vm657_vm3, %v2926_v2, %v2930_v63  ;;  %v7260_v55 = vld [vmem:[%s6835_s6 + $0xb8] sm:$0xff]  ;;  %v2940_v63 = vshrl.u32 %v7238_v19, 16 }
 0x153   : > { %v4895_v60 = vadd.f32 %v6932_v33, %v4754_v58  ;;  %v4445_v61 = vpop.f32.mrf.mxu3  ;;  %v842_v62 = vshll.u32 %v7260_v55, 16 }
 0x155   : > { %vm5032_vm15 = vcmp.gt.f32.partialorder %v4895_v60, 0.0  ;;  %v5169_v0 = vmul.f32 0.2, %v4895_v60 }
 0x156   : > { %v3591_v5 = vpop.f32.mrf.mxu2  ;;  %v1494_v33 = vpop.f32.mrf.mxu0 }
 0x157   : > { %v5306_v6 = vsel %vm5032_vm15, %v4895_v60, %v5169_v0  ;;  %v3901_v7 = vadd.f32 %v3591_v5, %v1991_v3  ;;  %v1995_v8 = vpop.f32.mrf.mxu1  ;;  %v1994_v15 = vadd.f32 %v1993_v56, %v1494_v33  ;;  %v7263_v56 = vld [vmem:[%s6835_s6 + $0xc8] sm:$0xff]  ;;  %v844_v33 = vrot.slane %v842_v62, 1 }
 0x158   : > { %v5443_v11 = vpack.c.bf16 %v5306_v6, %v5306_v6  ;;  %6552 = vmatmul.msk.bf16.gmra.mxu3 %vm1213_vm1, %v4069_v4  ;;  %v2944_v0 = vshll.u32 %v7263_v56, 16  ;;  %v4072_v4 = vrot.slane %v7263_v56, 1 }
 0x159   : > { %v4755_v12 = vadd.f32 %v4445_v61, %v3901_v7  ;;  %6061 = vmatmul.msk.bf16.gmra.mxu0 %vm1213_vm1, %v829_v10  ;;  %v838_v61 = vshrl.u32 %v7235_v18, 16  ;;  %v2942_v10 = vor.u32 %v2940_v63, %v2938_v36 }
 0x15a   : > { %5581 = vst.msk [vmem:[%s6944_s14 + $0x58] sm:$0xf] %vm5558_vm5, %v5443_v11  ;;  %v2946_v11 = vrot.slane %v2944_v0, 1 }
 0x15b   : > { %v4896_v14 = vadd.f32 %v7230_v13, %v4755_v12  ;;  %6477 = vmatmul.msk.bf16.gmra.mxu2 %vm1213_vm1, %v2931_v9  ;;  %v4448_v16 = vpop.f32.mrf.mxu3  ;;  %v840_v7 = vor.u32 %v838_v61, %v836_v38  ;;  %v4073_v12 = vsel %vm4026_vm2, %v4070_v31, %v4072_v4 }
 0x15d   : > { %vm5033_vm0 = vcmp.gt.f32.partialorder %v4896_v14, 0.0  ;;  %v5170_v20 = vmul.f32 0.2, %v4896_v14 }
 0x15e   : > { %v3594_v17 = vpop.f32.mrf.mxu2  ;;  %v1496_v23 = vpop.f32.mrf.mxu0 }
 0x15f   : > { %v5307_v21 = vsel %vm5033_vm0, %v4896_v14, %v5170_v20  ;;  %v3902_v22 = vadd.f32 %v3594_v17, %v1994_v15  ;;  %v1998_v28 = vpop.f32.mrf.mxu1  ;;  %v1996_v40 = vadd.f32 %v1995_v8, %v1496_v23  ;;  %v845_v20 = vsel %vm657_vm3, %v840_v7, %v844_v33 }
 0x160   : > { %v5444_v27 = vpack.c.bf16 %v5307_v21, %v5307_v21 }
 0x161   : > { %v4756_v30 = vadd.f32 %v4448_v16, %v3902_v22 }
 0x162   : > { %5582 = vst.msk [vmem:[%s6944_s14 + $0x5c] sm:$0xf] %vm5558_vm5, %v5444_v27  ;;  %6135 = vmatmul.msk.bf16.gmra.mxu1 %vm1213_vm1, %v7205_v46  ;;  %v2939_v46 = vsel %vm657_vm3, %v2934_v39, %v2938_v36  ;;  %v7285_v27 = vld [vmem:[%s6835_s6 + $0xc0] sm:$0xff]  ;;  %v2948_v36 = vshrl.u32 %v7263_v56, 16 }
 0x163   : > { %v4897_v32 = vadd.f32 %v7230_v13, %v4756_v30  ;;  %v4450_v34 = vpop.f32.mrf.mxu3  ;;  %v850_v35 = vshll.u32 %v7285_v27, 16 }
 0x165   : > { %vm5034_vm4 = vcmp.gt.f32.partialorder %v4897_v32, 0.0  ;;  %v5171_v37 = vmul.f32 0.2, %v4897_v32 }
 0x166   : > { %v3596_v42 = vpop.f32.mrf.mxu2  ;;  %v1499_v47 = vpop.f32.mrf.mxu0 }
 0x167   : > { %v5308_v43 = vsel %vm5034_vm4, %v4897_v32, %v5171_v37  ;;  %v3903_v44 = vadd.f32 %v3596_v42, %v1996_v40  ;;  %v2000_v49 = vpop.f32.mrf.mxu1  ;;  %v1999_v52 = vadd.f32 %v1998_v28, %v1499_v47  ;;  %v7288_v28 = vld [vmem:[%s6835_s6 + $0xd0] sm:$0xff]  ;;  %v852_v47 = vrot.slane %v850_v35, 1 }
 0x168   : > { %v5445_v45 = vpack.c.bf16 %v5308_v43, %v5308_v43  ;;  %6553 = vmatmul.msk.bf16.gmra.mxu3 %vm1213_vm1, %v4071_v41  ;;  %v2952_v37 = vshll.u32 %v7288_v28, 16  ;;  %v4074_v41 = vrot.slane %v7288_v28, 1 }
 0x169   : > { %v4757_v50 = vadd.f32 %v4450_v34, %v3903_v44  ;;  %6062 = vmatmul.msk.bf16.gmra.mxu0 %vm1213_vm1, %v837_v48  ;;  %v846_v34 = vshrl.u32 %v7260_v55, 16  ;;  %v2950_v48 = vor.u32 %v2948_v36, %v2946_v11 }
 0x16a   : > { %5583 = vst.msk [vmem:[%s6944_s14 + $0x60] sm:$0xf] %vm5558_vm5, %v5445_v45  ;;  %v2954_v45 = vrot.slane %v2952_v37, 1 }
 0x16b   : > { %v4898_v51 = vadd.f32 %v7230_v13, %v4757_v50  ;;  %6478 = vmatmul.msk.bf16.gmra.mxu2 %vm1213_vm1, %v2939_v46  ;;  %v4453_v53 = vpop.f32.mrf.mxu3  ;;  %v848_v44 = vor.u32 %v846_v34, %v844_v33  ;;  %v4075_v50 = vsel %vm4026_vm2, %v4072_v4, %v4074_v41 }
 0x16d   : > { %vm5035_vm6 = vcmp.gt.f32.partialorder %v4898_v51, 0.0  ;;  %v5172_v57 = vmul.f32 0.2, %v4898_v51 }
 0x16e   : > { %v3599_v54 = vpop.f32.mrf.mxu2  ;;  %v1501_v60 = vpop.f32.mrf.mxu0 }
 0x16f   : > { %v5309_v58 = vsel %vm5035_vm6, %v4898_v51, %v5172_v57  ;;  %v3904_v59 = vadd.f32 %v3599_v54, %v1999_v52  ;;  %v2003_v2 = vpop.f32.mrf.mxu1  ;;  %v2001_v8 = vadd.f32 %v2000_v49, %v1501_v60  ;;  %v853_v57 = vsel %vm657_vm3, %v848_v44, %v852_v47 }
 0x170   : > { %v5446_v1 = vpack.c.bf16 %v5309_v58, %v5309_v58 }
 0x171   : > { %v4758_v3 = vadd.f32 %v4453_v53, %v3904_v59 }
 0x172   : > { %5584 = vst.msk [vmem:[%s6944_s14 + $0x64] sm:$0xf] %vm5558_vm5, %v5446_v1  ;;  %6136 = vmatmul.msk.bf16.gmra.mxu1 %vm1213_vm1, %v7235_v18  ;;  %v2947_v18 = vsel %vm657_vm3, %v2942_v10, %v2946_v11  ;;  %v7310_v1 = vld [vmem:[%s6835_s6 + $0xc8] sm:$0xff]  ;;  %v2956_v11 = vshrl.u32 %v7288_v28, 16 }
 0x173   : > { %v4899_v5 = vadd.f32 %v7230_v13, %v4758_v3  ;;  %v4455_v6 = vpop.f32.mrf.mxu3  ;;  %v858_v7 = vshll.u32 %v7310_v1, 16 }
 0x175   : > { %vm5036_vm7 = vcmp.gt.f32.partialorder %v4899_v5, 0.0  ;;  %v5173_v9 = vmul.f32 0.2, %v4899_v5 }
 0x176   : > { %v3601_v14 = vpop.f32.mrf.mxu2  ;;  %v1504_v19 = vpop.f32.mrf.mxu0 }
 0x177   : > { %v5310_v15 = vsel %vm5036_vm7, %v4899_v5, %v5173_v9  ;;  %v3905_v16 = vadd.f32 %v3601_v14, %v2001_v8  ;;  %v2005_v21 = vpop.f32.mrf.mxu1  ;;  %v2004_v24 = vadd.f32 %v2003_v2, %v1504_v19  ;;  %v7313_v2 = vld [vmem:[%s6835_s6 + $0xd8] sm:$0xff]  ;;  %v860_v19 = vrot.slane %v858_v7, 1 }
 0x178   : > { %v5447_v17 = vpack.c.bf16 %v5310_v15, %v5310_v15  ;;  %6554 = vmatmul.msk.bf16.gmra.mxu3 %vm1213_vm1, %v4073_v12  ;;  %v2960_v9 = vshll.u32 %v7313_v2, 16  ;;  %v4076_v12 = vrot.slane %v7313_v2, 1 }
 0x179   : > { %v4759_v22 = vadd.f32 %v4455_v6, %v3905_v16  ;;  %6063 = vmatmul.msk.bf16.gmra.mxu0 %vm1213_vm1, %v845_v20  ;;  %v854_v6 = vshrl.u32 %v7285_v27, 16  ;;  %v2958_v20 = vor.u32 %v2956_v11, %v2954_v45 }
 0x17a   : > { %5585 = vst.msk [vmem:[%s6944_s14 + $0x68] sm:$0xf] %vm5558_vm5, %v5447_v17  ;;  %v2962_v17 = vrot.slane %v2960_v9, 1 }
 0x17b   : > { %v4900_v23 = vadd.f32 %v7230_v13, %v4759_v22  ;;  %6479 = vmatmul.msk.bf16.gmra.mxu2 %vm1213_vm1, %v2947_v18  ;;  %v4458_v25 = vpop.f32.mrf.mxu3  ;;  %v856_v16 = vor.u32 %v854_v6, %v852_v47  ;;  %v4077_v22 = vsel %vm4026_vm2, %v4074_v41, %v4076_v12 }
 0x17d   : > { %vm5037_vm8 = vcmp.gt.f32.partialorder %v4900_v23, 0.0  ;;  %v5174_v29 = vmul.f32 0.2, %v4900_v23 }
 0x17e   : > { %v3604_v26 = vpop.f32.mrf.mxu2  ;;  %v1506_v32 = vpop.f32.mrf.mxu0 }
 0x17f   : > { %v5311_v30 = vsel %vm5037_vm8, %v4900_v23, %v5174_v29  ;;  %v3906_v31 = vadd.f32 %v3604_v26, %v2004_v24  ;;  %v2008_v39 = vpop.f32.mrf.mxu1  ;;  %v2006_v49 = vadd.f32 %v2005_v21, %v1506_v32  ;;  %v861_v29 = vsel %vm657_vm3, %v856_v16, %v860_v19 }
 0x180   : > { %v5448_v38 = vpack.c.bf16 %v5311_v30, %v5311_v30 }
 0x181   : > { %v4760_v40 = vadd.f32 %v4458_v25, %v3906_v31 }
 0x182   : > { %5586 = vst.msk [vmem:[%s6944_s14 + $0x6c] sm:$0xf] %vm5558_vm5, %v5448_v38  ;;  %6137 = vmatmul.msk.bf16.gmra.mxu1 %vm1213_vm1, %v7260_v55  ;;  %v2955_v55 = vsel %vm657_vm3, %v2950_v48, %v2954_v45  ;;  %v7335_v38 = vld [vmem:[%s6835_s6 + $0xd0] sm:$0xff]  ;;  %v2964_v45 = vshrl.u32 %v7313_v2, 16 }
 0x183   : > { %v4901_v42 = vadd.f32 %v7230_v13, %v4760_v40  ;;  %v4460_v43 = vpop.f32.mrf.mxu3  ;;  %v866_v44 = vshll.u32 %v7335_v38, 16 }
 0x185   : > { %vm5038_vm9 = vcmp.gt.f32.partialorder %v4901_v42, 0.0  ;;  %v5175_v46 = vmul.f32 0.2, %v4901_v42 }
 0x186   : > { %v3606_v51 = vpop.f32.mrf.mxu2  ;;  %v1509_v56 = vpop.f32.mrf.mxu0 }
 0x187   : > { %v5312_v52 = vsel %vm5038_vm9, %v4901_v42, %v5175_v46  ;;  %v3907_v53 = vadd.f32 %v3606_v51, %v2006_v49  ;;  %v2010_v58 = vpop.f32.mrf.mxu1  ;;  %v2009_v61 = vadd.f32 %v2008_v39, %v1509_v56  ;;  %v7338_v39 = vld [vmem:[%s6835_s6 + $0xe0] sm:$0xff]  ;;  %v868_v56 = vrot.slane %v866_v44, 1 }
 0x188   : > { %v5449_v54 = vpack.c.bf16 %v5312_v52, %v5312_v52  ;;  %6555 = vmatmul.msk.bf16.gmra.mxu3 %vm1213_vm1, %v4075_v50  ;;  %v2968_v46 = vshll.u32 %v7338_v39, 16  ;;  %v4078_v50 = vrot.slane %v7338_v39, 1 }
 0x189   : > { %v4761_v59 = vadd.f32 %v4460_v43, %v3907_v53  ;;  %6064 = vmatmul.msk.bf16.gmra.mxu0 %vm1213_vm1, %v853_v57  ;;  %v862_v43 = vshrl.u32 %v7310_v1, 16  ;;  %v2966_v57 = vor.u32 %v2964_v45, %v2962_v17 }
 0x18a   : > { %5587 = vst.msk [vmem:[%s6944_s14 + $0x70] sm:$0xf] %vm5558_vm5, %v5449_v54  ;;  %v2970_v54 = vrot.slane %v2968_v46, 1 }
 0x18b   : > { %v4902_v60 = vadd.f32 %v7230_v13, %v4761_v59  ;;  %6480 = vmatmul.msk.bf16.gmra.mxu2 %vm1213_vm1, %v2955_v55  ;;  %v4463_v62 = vpop.f32.mrf.mxu3  ;;  %v864_v53 = vor.u32 %v862_v43, %v860_v19  ;;  %v4079_v59 = vsel %vm4026_vm2, %v4076_v12, %v4078_v50 }
 0x18d   : > { %vm5039_vm10 = vcmp.gt.f32.partialorder %v4902_v60, 0.0  ;;  %v5176_v63 = vmul.f32 0.2, %v4902_v60 }
 0x18e   : > { %v3609_v0 = vpop.f32.mrf.mxu2  ;;  %v1511_v5 = vpop.f32.mrf.mxu0 }
 0x18f   : > { %v5313_v3 = vsel %vm5039_vm10, %v4902_v60, %v5176_v63  ;;  %v3908_v4 = vadd.f32 %v3609_v0, %v2009_v61  ;;  %v2013_v10 = vpop.f32.mrf.mxu1  ;;  %v2011_v21 = vadd.f32 %v2010_v58, %v1511_v5  ;;  %v869_v63 = vsel %vm657_vm3, %v864_v53, %v868_v56 }
 0x190   : > { %v5450_v33 = vpack.c.bf16 %v5313_v3, %v5313_v3 }
 0x191   : > { %v4762_v8 = vadd.f32 %v4463_v62, %v3908_v4 }
 0x192   : > { %5588 = vst.msk [vmem:[%s6944_s14 + $0x74] sm:$0xf] %vm5558_vm5, %v5450_v33  ;;  %6138 = vmatmul.msk.bf16.gmra.mxu1 %vm1213_vm1, %v7285_v27  ;;  %v2963_v27 = vsel %vm657_vm3, %v2958_v20, %v2962_v17  ;;  %v7360_v33 = vld [vmem:[%s6835_s6 + $0xd8] sm:$0xff]  ;;  %v2972_v17 = vshrl.u32 %v7338_v39, 16 }
 0x193   : > { %v4903_v14 = vadd.f32 %v7230_v13, %v4762_v8  ;;  %v4465_v15 = vpop.f32.mrf.mxu3  ;;  %v874_v16 = vshll.u32 %v7360_v33, 16 }
 0x195   : > { %vm5040_vm11 = vcmp.gt.f32.partialorder %v4903_v14, 0.0  ;;  %v5177_v18 = vmul.f32 0.2, %v4903_v14 }
 0x196   : > { %v3611_v23 = vpop.f32.mrf.mxu2  ;;  %v1514_v28 = vpop.f32.mrf.mxu0 }
 0x197   : > { %v5314_v24 = vsel %vm5040_vm11, %v4903_v14, %v5177_v18  ;;  %v3909_v25 = vadd.f32 %v3611_v23, %v2011_v21  ;;  %v2015_v30 = vpop.f32.mrf.mxu1  ;;  %v2014_v34 = vadd.f32 %v2013_v10, %v1514_v28  ;;  %v7363_v10 = vld [vmem:[%s6835_s6 + $0xe8] sm:$0xff]  ;;  %v876_v28 = vrot.slane %v874_v16, 1 }
 0x198   : > { %v5451_v26 = vpack.c.bf16 %v5314_v24, %v5314_v24  ;;  %6556 = vmatmul.msk.bf16.gmra.mxu3 %vm1213_vm1, %v4077_v22  ;;  %v2976_v18 = vshll.u32 %v7363_v10, 16  ;;  %v4080_v22 = vrot.slane %v7363_v10, 1 }
 0x199   : > { %v4763_v31 = vadd.f32 %v4465_v15, %v3909_v25  ;;  %6065 = vmatmul.msk.bf16.gmra.mxu0 %vm1213_vm1, %v861_v29  ;;  %v870_v15 = vshrl.u32 %v7335_v38, 16  ;;  %v2974_v29 = vor.u32 %v2972_v17, %v2970_v54 }
 0x19a   : > { %5589 = vst.msk [vmem:[%s6944_s14 + $0x78] sm:$0xf] %vm5558_vm5, %v5451_v26  ;;  %v2978_v26 = vrot.slane %v2976_v18, 1 }
 0x19b   : > { %v4904_v32 = vadd.f32 %v7230_v13, %v4763_v31  ;;  %6481 = vmatmul.msk.bf16.gmra.mxu2 %vm1213_vm1, %v2963_v27  ;;  %v4468_v35 = vpop.f32.mrf.mxu3  ;;  %v872_v25 = vor.u32 %v870_v15, %v868_v56  ;;  %v4081_v31 = vsel %vm4026_vm2, %v4078_v50, %v4080_v22 }
 0x19d   : > { %vm5041_vm12 = vcmp.gt.f32.partialorder %v4904_v32, 0.0  ;;  %v5178_v36 = vmul.f32 0.2, %v4904_v32 }
 0x19e   : > { %v3614_v37 = vpop.f32.mrf.mxu2  ;;  %v1516_v42 = vpop.f32.mrf.mxu0 }
 0x19f   : > { %v5315_v40 = vsel %vm5041_vm12, %v4904_v32, %v5178_v36  ;;  %v3910_v41 = vadd.f32 %v3614_v37, %v2014_v34  ;;  %v2018_v48 = vpop.f32.mrf.mxu1  ;;  %v2016_v58 = vadd.f32 %v2015_v30, %v1516_v42  ;;  %v877_v36 = vsel %vm657_vm3, %v872_v25, %v876_v28 }
 0x1a0   : > { %v5452_v47 = vpack.c.bf16 %v5315_v40, %v5315_v40 }
 0x1a1   : > { %v4764_v49 = vadd.f32 %v4468_v35, %v3910_v41 }
 0x1a2   : > { %5590 = vst.msk [vmem:[%s6944_s14 + $0x7c] sm:$0xf] %vm5558_vm5, %v5452_v47  ;;  %6139 = vmatmul.msk.bf16.gmra.mxu1 %vm1213_vm1, %v7310_v1  ;;  %v2971_v1 = vsel %vm657_vm3, %v2966_v57, %v2970_v54  ;;  %v7385_v47 = vld [vmem:[%s6835_s6 + $0xe0] sm:$0xff]  ;;  %v2980_v54 = vshrl.u32 %v7363_v10, 16 }
 0x1a3   : > { %v4905_v51 = vadd.f32 %v7230_v13, %v4764_v49  ;;  %v4470_v52 = vpop.f32.mrf.mxu3  ;;  %v882_v53 = vshll.u32 %v7385_v47, 16 }
 0x1a5   : > { %vm5042_vm13 = vcmp.gt.f32.partialorder %v4905_v51, 0.0  ;;  %v5179_v55 = vmul.f32 0.2, %v4905_v51 }
 0x1a6   : > { %v3616_v60 = vpop.f32.mrf.mxu2  ;;  %v1519_v2 = vpop.f32.mrf.mxu0 }
 0x1a7   : > { %v5316_v61 = vsel %vm5042_vm13, %v4905_v51, %v5179_v55  ;;  %v3911_v62 = vadd.f32 %v3616_v60, %v2016_v58  ;;  %v2020_v3 = vpop.f32.mrf.mxu1  ;;  %v2019_v6 = vadd.f32 %v2018_v48, %v1519_v2  ;;  %v7388_v48 = vld [vmem:[%s6835_s6 + $0xf0] sm:$0xff]  ;;  %v884_v2 = vrot.slane %v882_v53, 1 }
 0x1a8   : > { %v5453_v0 = vpack.c.bf16 %v5316_v61, %v5316_v61  ;;  %6557 = vmatmul.msk.bf16.gmra.mxu3 %vm1213_vm1, %v4079_v59  ;;  %v2984_v55 = vshll.u32 %v7388_v48, 16  ;;  %v4082_v59 = vrot.slane %v7388_v48, 1 }
 0x1a9   : > { %v4765_v4 = vadd.f32 %v4470_v52, %v3911_v62  ;;  %6066 = vmatmul.msk.bf16.gmra.mxu0 %vm1213_vm1, %v869_v63  ;;  %v878_v52 = vshrl.u32 %v7360_v33, 16  ;;  %v2982_v63 = vor.u32 %v2980_v54, %v2978_v26 }
 0x1aa   : > { %5591 = vst.msk [vmem:[%s6944_s14 + $0x80] sm:$0xf] %vm5558_vm5, %v5453_v0  ;;  %v2986_v0 = vrot.slane %v2984_v55, 1 }
 0x1ab   : > { %v4906_v5 = vadd.f32 %v7230_v13, %v4765_v4  ;;  %6482 = vmatmul.msk.bf16.gmra.mxu2 %vm1213_vm1, %v2971_v1  ;;  %v4473_v7 = vpop.f32.mrf.mxu3  ;;  %v880_v62 = vor.u32 %v878_v52, %v876_v28  ;;  %v4083_v4 = vsel %vm4026_vm2, %v4080_v22, %v4082_v59 }
 0x1ad   : > { %vm5043_vm14 = vcmp.gt.f32.partialorder %v4906_v5, 0.0  ;;  %v5180_v11 = vmul.f32 0.2, %v4906_v5 }
 0x1ae   : > { %v3619_v9 = vpop.f32.mrf.mxu2  ;;  %v1521_v14 = vpop.f32.mrf.mxu0 }
 0x1af   : > { %v5317_v8 = vsel %vm5043_vm14, %v4906_v5, %v5180_v11  ;;  %v3912_v12 = vadd.f32 %v3619_v9, %v2019_v6  ;;  %v2023_v20 = vpop.f32.mrf.mxu1  ;;  %v2021_v30 = vadd.f32 %v2020_v3, %v1521_v14  ;;  %v885_v11 = vsel %vm657_vm3, %v880_v62, %v884_v2 }
 0x1b0   : > { %v5454_v19 = vpack.c.bf16 %v5317_v8, %v5317_v8 }
 0x1b1   : > { %v4766_v21 = vadd.f32 %v4473_v7, %v3912_v12 }
 0x1b2   : > { %5592 = vst.msk [vmem:[%s6944_s14 + $0x84] sm:$0xf] %vm5558_vm5, %v5454_v19  ;;  %6140 = vmatmul.msk.bf16.gmra.mxu1 %vm1213_vm1, %v7335_v38  ;;  %v2979_v38 = vsel %vm657_vm3, %v2974_v29, %v2978_v26  ;;  %v7410_v19 = vld [vmem:[%s6835_s6 + $0xe8] sm:$0xff]  ;;  %v2988_v26 = vshrl.u32 %v7388_v48, 16 }
 0x1b3   : > { %v4907_v23 = vadd.f32 %v7230_v13, %v4766_v21  ;;  %v4475_v24 = vpop.f32.mrf.mxu3  ;;  %v890_v25 = vshll.u32 %v7410_v19, 16 }
 0x1b5   : > { %vm5044_vm15 = vcmp.gt.f32.partialorder %v4907_v23, 0.0  ;;  %v5181_v27 = vmul.f32 0.2, %v4907_v23 }
 0x1b6   : > { %v3621_v32 = vpop.f32.mrf.mxu2  ;;  %v1524_v39 = vpop.f32.mrf.mxu0 }
 0x1b7   : > { %v5318_v34 = vsel %vm5044_vm15, %v4907_v23, %v5181_v27  ;;  %v3913_v35 = vadd.f32 %v3621_v32, %v2021_v30  ;;  %v2025_v40 = vpop.f32.mrf.mxu1  ;;  %v2024_v43 = vadd.f32 %v2023_v20, %v1524_v39  ;;  %v7413_v20 = vld [vmem:[%s6835_s6 + $0xf8] sm:$0xff]  ;;  %v892_v39 = vrot.slane %v890_v25, 1 }
 0x1b8   : > { %v5455_v37 = vpack.c.bf16 %v5318_v34, %v5318_v34  ;;  %6558 = vmatmul.msk.bf16.gmra.mxu3 %vm1213_vm1, %v4081_v31  ;;  %v2992_v27 = vshll.u32 %v7413_v20, 16  ;;  %v4084_v31 = vrot.slane %v7413_v20, 1 }
 0x1b9   : > { %v4767_v41 = vadd.f32 %v4475_v24, %v3913_v35  ;;  %6067 = vmatmul.msk.bf16.gmra.mxu0 %vm1213_vm1, %v877_v36  ;;  %v886_v24 = vshrl.u32 %v7385_v47, 16  ;;  %v2990_v36 = vor.u32 %v2988_v26, %v2986_v0 }
 0x1ba   : > { %5593 = vst.msk [vmem:[%s6944_s14 + $0x88] sm:$0xf] %vm5558_vm5, %v5455_v37  ;;  %v2994_v37 = vrot.slane %v2992_v27, 1 }
 0x1bb   : > { %v4908_v42 = vadd.f32 %v7230_v13, %v4767_v41  ;;  %6483 = vmatmul.msk.bf16.gmra.mxu2 %vm1213_vm1, %v2979_v38  ;;  %v4478_v44 = vpop.f32.mrf.mxu3  ;;  %v888_v35 = vor.u32 %v886_v24, %v884_v2  ;;  %v4085_v41 = vsel %vm4026_vm2, %v4082_v59, %v4084_v31 }
 0x1bd   : > { %vm5045_vm0 = vcmp.gt.f32.partialorder %v4908_v42, 0.0  ;;  %v5182_v45 = vmul.f32 0.2, %v4908_v42 }
 0x1be   : > { %v3624_v46 = vpop.f32.mrf.mxu2  ;;  %v1526_v51 = vpop.f32.mrf.mxu0 }
 0x1bf   : > { %v5319_v49 = vsel %vm5045_vm0, %v4908_v42, %v5182_v45  ;;  %v3914_v50 = vadd.f32 %v3624_v46, %v2024_v43  ;;  %v2028_v57 = vpop.f32.mrf.mxu1  ;;  %v2026_v3 = vadd.f32 %v2025_v40, %v1526_v51  ;;  %v893_v45 = vsel %vm657_vm3, %v888_v35, %v892_v39 }
 0x1c0   : > { %v5456_v56 = vpack.c.bf16 %v5319_v49, %v5319_v49 }
 0x1c1   : > { %v4768_v58 = vadd.f32 %v4478_v44, %v3914_v50 }
 0x1c2   : > { %5594 = vst.msk [vmem:[%s6944_s14 + $0x8c] sm:$0xf] %vm5558_vm5, %v5456_v56  ;;  %6141 = vmatmul.msk.bf16.gmra.mxu1 %vm1213_vm1, %v7360_v33  ;;  %v2987_v33 = vsel %vm657_vm3, %v2982_v63, %v2986_v0  ;;  %v7435_v56 = vld [vmem:[%s6835_s6 + $0xf0] sm:$0xff]  ;;  %v2996_v0 = vshrl.u32 %v7413_v20, 16 }
 0x1c3   : > { %v4909_v60 = vadd.f32 %v7230_v13, %v4768_v58  ;;  %v4480_v61 = vpop.f32.mrf.mxu3  ;;  %v898_v62 = vshll.u32 %v7435_v56, 16 }
 0x1c5   : > { %vm5046_vm4 = vcmp.gt.f32.partialorder %v4909_v60, 0.0  ;;  %v5183_v1 = vmul.f32 0.2, %v4909_v60 }
 0x1c6   : > { %v3626_v5 = vpop.f32.mrf.mxu2  ;;  %v1529_v10 = vpop.f32.mrf.mxu0 }
 0x1c7   : > { %v5320_v6 = vsel %vm5046_vm4, %v4909_v60, %v5183_v1  ;;  %v3915_v7 = vadd.f32 %v3626_v5, %v2026_v3  ;;  %v2030_v8 = vpop.f32.mrf.mxu1  ;;  %v2029_v15 = vadd.f32 %v2028_v57, %v1529_v10  ;;  %v7438_v57 = vld [vmem:[%s6835_s6 + $0x100] sm:$0xff]  ;;  %v900_v10 = vrot.slane %v898_v62, 1 }
 0x1c8   : > { %v5457_v9 = vpack.c.bf16 %v5320_v6, %v5320_v6  ;;  %6559 = vmatmul.msk.bf16.gmra.mxu3 %vm1213_vm1, %v4083_v4  ;;  %v3000_v1 = vshll.u32 %v7438_v57, 16  ;;  %v4086_v4 = vrot.slane %v7438_v57, 1 }
 0x1c9   : > { %v4769_v12 = vadd.f32 %v4480_v61, %v3915_v7  ;;  %6068 = vmatmul.msk.bf16.gmra.mxu0 %vm1213_vm1, %v885_v11  ;;  %v894_v61 = vshrl.u32 %v7410_v19, 16  ;;  %v2998_v11 = vor.u32 %v2996_v0, %v2994_v37 }
 0x1ca   : > { %5595 = vst.msk [vmem:[%s6944_s14 + $0x90] sm:$0xf] %vm5558_vm5, %v5457_v9  ;;  %v3002_v9 = vrot.slane %v3000_v1, 1 }
 0x1cb   : > { %v4910_v14 = vadd.f32 %v7230_v13, %v4769_v12  ;;  %6484 = vmatmul.msk.bf16.gmra.mxu2 %vm1213_vm1, %v2987_v33  ;;  %v4483_v16 = vpop.f32.mrf.mxu3  ;;  %v896_v7 = vor.u32 %v894_v61, %v892_v39  ;;  %v4087_v12 = vsel %vm4026_vm2, %v4084_v31, %v4086_v4 }
 0x1cd   : > { %vm5047_vm6 = vcmp.gt.f32.partialorder %v4910_v14, 0.0  ;;  %v5184_v17 = vmul.f32 0.2, %v4910_v14 }
 0x1ce   : > { %v3629_v18 = vpop.f32.mrf.mxu2  ;;  %v1531_v23 = vpop.f32.mrf.mxu0 }
 0x1cf   : > { %v5321_v21 = vsel %vm5047_vm6, %v4910_v14, %v5184_v17  ;;  %v3916_v22 = vadd.f32 %v3629_v18, %v2029_v15  ;;  %v2033_v29 = vpop.f32.mrf.mxu1  ;;  %v2031_v40 = vadd.f32 %v2030_v8, %v1531_v23  ;;  %v901_v17 = vsel %vm657_vm3, %v896_v7, %v900_v10 }
 0x1d0   : > { %v5458_v28 = vpack.c.bf16 %v5321_v21, %v5321_v21 }
 0x1d1   : > { %v4770_v30 = vadd.f32 %v4483_v16, %v3916_v22 }
 0x1d2   : > { %5596 = vst.msk [vmem:[%s6944_s14 + $0x94] sm:$0xf] %vm5558_vm5, %v5458_v28  ;;  %6142 = vmatmul.msk.bf16.gmra.mxu1 %vm1213_vm1, %v7385_v47  ;;  %v2995_v47 = vsel %vm657_vm3, %v2990_v36, %v2994_v37  ;;  %v7460_v28 = vld [vmem:[%s6835_s6 + $0xf8] sm:$0xff]  ;;  %v3004_v37 = vshrl.u32 %v7438_v57, 16 }
 0x1d3   : > { %v4911_v32 = vadd.f32 %v7230_v13, %v4770_v30  ;;  %v4485_v34 = vpop.f32.mrf.mxu3  ;;  %v906_v35 = vshll.u32 %v7460_v28, 16 }
 0x1d5   : > { %vm5048_vm7 = vcmp.gt.f32.partialorder %v4911_v32, 0.0  ;;  %v5185_v38 = vmul.f32 0.2, %v4911_v32 }
 0x1d6   : > { %v3631_v42 = vpop.f32.mrf.mxu2  ;;  %v1534_v48 = vpop.f32.mrf.mxu0 }
 0x1d7   : > { %v5322_v43 = vsel %vm5048_vm7, %v4911_v32, %v5185_v38  ;;  %v3917_v44 = vadd.f32 %v3631_v42, %v2031_v40  ;;  %v2035_v49 = vpop.f32.mrf.mxu1  ;;  %v2034_v52 = vadd.f32 %v2033_v29, %v1534_v48  ;;  %v7463_v29 = vld [vmem:[%s6835_s6 + $0x108] sm:$0xff]  ;;  %v908_v48 = vrot.slane %v906_v35, 1 }
 0x1d8   : > { %v5459_v46 = vpack.c.bf16 %v5322_v43, %v5322_v43  ;;  %6560 = vmatmul.msk.bf16.gmra.mxu3 %vm1213_vm1, %v4085_v41  ;;  %v3008_v38 = vshll.u32 %v7463_v29, 16  ;;  %v4088_v41 = vrot.slane %v7463_v29, 1 }
 0x1d9   : > { %v4771_v50 = vadd.f32 %v4485_v34, %v3917_v44  ;;  %6069 = vmatmul.msk.bf16.gmra.mxu0 %vm1213_vm1, %v893_v45  ;;  %v902_v34 = vshrl.u32 %v7435_v56, 16  ;;  %v3006_v45 = vor.u32 %v3004_v37, %v3002_v9 }
 0x1da   : > { %5597 = vst.msk [vmem:[%s6944_s14 + $0x98] sm:$0xf] %vm5558_vm5, %v5459_v46  ;;  %v3010_v46 = vrot.slane %v3008_v38, 1 }
 0x1db   : > { %v4912_v51 = vadd.f32 %v7230_v13, %v4771_v50  ;;  %6485 = vmatmul.msk.bf16.gmra.mxu2 %vm1213_vm1, %v2995_v47  ;;  %v4488_v53 = vpop.f32.mrf.mxu3  ;;  %v904_v44 = vor.u32 %v902_v34, %v900_v10  ;;  %v4089_v50 = vsel %vm4026_vm2, %v4086_v4, %v4088_v41 }
 0x1dd   : > { %vm5049_vm8 = vcmp.gt.f32.partialorder %v4912_v51, 0.0  ;;  %v5186_v54 = vmul.f32 0.2, %v4912_v51 }
 0x1de   : > { %v3634_v55 = vpop.f32.mrf.mxu2  ;;  %v1536_v60 = vpop.f32.mrf.mxu0 }
 0x1df   : > { %v5323_v58 = vsel %vm5049_vm8, %v4912_v51, %v5186_v54  ;;  %v3918_v59 = vadd.f32 %v3634_v55, %v2034_v52  ;;  %v2038_v63 = vpop.f32.mrf.mxu1  ;;  %v2036_v8 = vadd.f32 %v2035_v49, %v1536_v60  ;;  %v909_v54 = vsel %vm657_vm3, %v904_v44, %v908_v48 }
 0x1e0   : > { %v5460_v2 = vpack.c.bf16 %v5323_v58, %v5323_v58 }
 0x1e1   : > { %v4772_v3 = vadd.f32 %v4488_v53, %v3918_v59 }
 0x1e2   : > { %5598 = vst.msk [vmem:[%s6944_s14 + $0x9c] sm:$0xf] %vm5558_vm5, %v5460_v2  ;;  %6143 = vmatmul.msk.bf16.gmra.mxu1 %vm1213_vm1, %v7410_v19  ;;  %v3003_v19 = vsel %vm657_vm3, %v2998_v11, %v3002_v9  ;;  %v7485_v2 = vld [vmem:[%s6835_s6 + $0x100] sm:$0xff]  ;;  %v3012_v9 = vshrl.u32 %v7463_v29, 16 }
 0x1e3   : > { %v4913_v5 = vadd.f32 %v7230_v13, %v4772_v3  ;;  %v4490_v6 = vpop.f32.mrf.mxu3  ;;  %v914_v7 = vshll.u32 %v7485_v2, 16 }
 0x1e5   : > { %vm5050_vm9 = vcmp.gt.f32.partialorder %v4913_v5, 0.0  ;;  %v5187_v33 = vmul.f32 0.2, %v4913_v5 }
 0x1e6   : > { %v3636_v14 = vpop.f32.mrf.mxu2  ;;  %v1539_v20 = vpop.f32.mrf.mxu0 }
 0x1e7   : > { %v5324_v15 = vsel %vm5050_vm9, %v4913_v5, %v5187_v33  ;;  %v3919_v16 = vadd.f32 %v3636_v14, %v2036_v8  ;;  %v2040_v21 = vpop.f32.mrf.mxu1  ;;  %v2039_v24 = vadd.f32 %v2038_v63, %v1539_v20  ;;  %v7488_v63 = vld [vmem:[%s6835_s6 + $0x110] sm:$0xff]  ;;  %v916_v20 = vrot.slane %v914_v7, 1 }
 0x1e8   : > { %v5461_v18 = vpack.c.bf16 %v5324_v15, %v5324_v15  ;;  %6561 = vmatmul.msk.bf16.gmra.mxu3 %vm1213_vm1, %v4087_v12  ;;  %v3016_v33 = vshll.u32 %v7488_v63, 16  ;;  %v4090_v12 = vrot.slane %v7488_v63, 1 }
 0x1e9   : > { %v4773_v22 = vadd.f32 %v4490_v6, %v3919_v16  ;;  %6070 = vmatmul.msk.bf16.gmra.mxu0 %vm1213_vm1, %v901_v17  ;;  %v910_v6 = vshrl.u32 %v7460_v28, 16  ;;  %v3014_v17 = vor.u32 %v3012_v9, %v3010_v46 }
 0x1ea   : > { %5599 = vst.msk [vmem:[%s6944_s14 + $0xa0] sm:$0xf] %vm5558_vm5, %v5461_v18  ;;  %v3018_v18 = vrot.slane %v3016_v33, 1 }
 0x1eb   : > { %v4914_v23 = vadd.f32 %v7230_v13, %v4773_v22  ;;  %6486 = vmatmul.msk.bf16.gmra.mxu2 %vm1213_vm1, %v3003_v19  ;;  %v4493_v25 = vpop.f32.mrf.mxu3  ;;  %v912_v16 = vor.u32 %v910_v6, %v908_v48  ;;  %v4091_v22 = vsel %vm4026_vm2, %v4088_v41, %v4090_v12 }
 0x1ed   : > { %vm5051_vm10 = vcmp.gt.f32.partialorder %v4914_v23, 0.0  ;;  %v5188_v26 = vmul.f32 0.2, %v4914_v23 }
 0x1ee   : > { %v3639_v27 = vpop.f32.mrf.mxu2  ;;  %v1541_v32 = vpop.f32.mrf.mxu0 }
 0x1ef   : > { %v5325_v30 = vsel %vm5051_vm10, %v4914_v23, %v5188_v26  ;;  %v3920_v31 = vadd.f32 %v3639_v27, %v2039_v24  ;;  %v2043_v36 = vpop.f32.mrf.mxu1  ;;  %v2041_v49 = vadd.f32 %v2040_v21, %v1541_v32  ;;  %v917_v26 = vsel %vm657_vm3, %v912_v16, %v916_v20 }
 0x1f0   : > { %v5462_v39 = vpack.c.bf16 %v5325_v30, %v5325_v30 }
 0x1f1   : > { %v4774_v40 = vadd.f32 %v4493_v25, %v3920_v31 }
 0x1f2   : > { %5600 = vst.msk [vmem:[%s6944_s14 + $0xa4] sm:$0xf] %vm5558_vm5, %v5462_v39  ;;  %6144 = vmatmul.msk.bf16.gmra.mxu1 %vm1213_vm1, %v7435_v56  ;;  %v3011_v56 = vsel %vm657_vm3, %v3006_v45, %v3010_v46  ;;  %v7510_v39 = vld [vmem:[%s6835_s6 + $0x108] sm:$0xff]  ;;  %v3020_v46 = vshrl.u32 %v7488_v63, 16 }
 0x1f3   : > { %v4915_v42 = vadd.f32 %v7230_v13, %v4774_v40  ;;  %v4495_v43 = vpop.f32.mrf.mxu3  ;;  %v922_v44 = vshll.u32 %v7510_v39, 16 }
 0x1f5   : > { %vm5052_vm11 = vcmp.gt.f32.partialorder %v4915_v42, 0.0  ;;  %v5189_v47 = vmul.f32 0.2, %v4915_v42 }
 0x1f6   : > { %v3641_v51 = vpop.f32.mrf.mxu2  ;;  %v1544_v57 = vpop.f32.mrf.mxu0 }
 0x1f7   : > { %v5326_v52 = vsel %vm5052_vm11, %v4915_v42, %v5189_v47  ;;  %v3921_v53 = vadd.f32 %v3641_v51, %v2041_v49  ;;  %v2045_v58 = vpop.f32.mrf.mxu1  ;;  %v2044_v61 = vadd.f32 %v2043_v36, %v1544_v57  ;;  %v7513_v36 = vld [vmem:[%s6835_s6 + $0x118] sm:$0xff]  ;;  %v924_v57 = vrot.slane %v922_v44, 1 }
 0x1f8   : > { %v5463_v55 = vpack.c.bf16 %v5326_v52, %v5326_v52  ;;  %6562 = vmatmul.msk.bf16.gmra.mxu3 %vm1213_vm1, %v4089_v50  ;;  %v3024_v47 = vshll.u32 %v7513_v36, 16  ;;  %v4092_v50 = vrot.slane %v7513_v36, 1 }
 0x1f9   : > { %v4775_v59 = vadd.f32 %v4495_v43, %v3921_v53  ;;  %6071 = vmatmul.msk.bf16.gmra.mxu0 %vm1213_vm1, %v909_v54  ;;  %v918_v43 = vshrl.u32 %v7485_v2, 16  ;;  %v3022_v54 = vor.u32 %v3020_v46, %v3018_v18 }
 0x1fa   : > { %5601 = vst.msk [vmem:[%s6944_s14 + $0xa8] sm:$0xf] %vm5558_vm5, %v5463_v55  ;;  %v3026_v55 = vrot.slane %v3024_v47, 1 }
 0x1fb   : > { %v4916_v60 = vadd.f32 %v7230_v13, %v4775_v59  ;;  %6487 = vmatmul.msk.bf16.gmra.mxu2 %vm1213_vm1, %v3011_v56  ;;  %v4498_v62 = vpop.f32.mrf.mxu3  ;;  %v920_v53 = vor.u32 %v918_v43, %v916_v20  ;;  %v4093_v59 = vsel %vm4026_vm2, %v4090_v12, %v4092_v50 }
 0x1fd   : > { %vm5053_vm12 = vcmp.gt.f32.partialorder %v4916_v60, 0.0  ;;  %v5190_v0 = vmul.f32 0.2, %v4916_v60  ;;  %v925_v63 = vsel %vm657_vm3, %v920_v53, %v924_v57 }
 0x1fe   : > { %v3644_v1 = vpop.f32.mrf.mxu2  ;;  %v1546_v5 = vpop.f32.mrf.mxu0 }
 0x1ff   : > { %v5327_v3 = vsel %vm5053_vm12, %v4916_v60, %v5190_v0  ;;  %v3922_v4 = vadd.f32 %v3644_v1, %v2044_v61  ;;  %v2048_v11 = vpop.f32.mrf.mxu1  ;;  %v2046_v21 = vadd.f32 %v2045_v58, %v1546_v5 }
 0x200   : > { %v5464_v10 = vpack.c.bf16 %v5327_v3, %v5327_v3 }
 0x201   : > { %v4776_v8 = vadd.f32 %v4498_v62, %v3922_v4  ;;  %v7535_v4 = vld [vmem:[%s8507_s2] ss:$0 sm:$0xff] }
 0x202   : > { %5602 = vst.msk [vmem:[%s6944_s14 + $0xac] sm:$0xf] %vm5558_vm5, %v5464_v10  ;;  %6145 = vmatmul.msk.bf16.gmra.mxu1 %vm1213_vm1, %v7460_v28  ;;  %v3019_v28 = vsel %vm657_vm3, %v3014_v17, %v3018_v18  ;;  %v7540_v10 = vld [vmem:[%s6835_s6 + $0x110] sm:$0xff]  ;;  %v3028_v18 = vshrl.u32 %v7513_v36, 16 }
 0x203   : > { %v4917_v14 = vadd.f32 %v7230_v13, %v4776_v8  ;;  %v4500_v15 = vpop.f32.mrf.mxu3  ;;  %v930_v16 = vshll.u32 %v7540_v10, 16 }
 0x205   : > { %vm5054_vm13 = vcmp.gt.f32.partialorder %v4917_v14, 0.0  ;;  %v5191_v19 = vmul.f32 0.2, %v4917_v14 }
 0x206   : > { %v3646_v23 = vpop.f32.mrf.mxu2  ;;  %v1549_v29 = vpop.f32.mrf.mxu0 }
 0x207   : > { %v5328_v24 = vsel %vm5054_vm13, %v4917_v14, %v5191_v19  ;;  %v3923_v25 = vadd.f32 %v3646_v23, %v2046_v21  ;;  %v2050_v30 = vpop.f32.mrf.mxu1  ;;  %v2049_v34 = vadd.f32 %v2048_v11, %v1549_v29  ;;  %v7543_v11 = vld [vmem:[%s6835_s6 + $0x120] sm:$0xff]  ;;  %v932_v29 = vrot.slane %v930_v16, 1 }
 0x208   : > { %v5465_v27 = vpack.c.bf16 %v5328_v24, %v5328_v24  ;;  %6563 = vmatmul.msk.bf16.gmra.mxu3 %vm1213_vm1, %v4091_v22  ;;  %v3032_v19 = vshll.u32 %v7543_v11, 16  ;;  %v4094_v22 = vrot.slane %v7543_v11, 1 }
 0x209   : > { %v4777_v31 = vadd.f32 %v4500_v15, %v3923_v25  ;;  %6072 = vmatmul.msk.bf16.gmra.mxu0 %vm1213_vm1, %v917_v26  ;;  %v926_v15 = vshrl.u32 %v7510_v39, 16  ;;  %v3030_v26 = vor.u32 %v3028_v18, %v3026_v55 }
 0x20a   : > { %5603 = vst.msk [vmem:[%s6944_s14 + $0xb0] sm:$0xf] %vm5558_vm5, %v5465_v27  ;;  %v3034_v27 = vrot.slane %v3032_v19, 1 }
 0x20b   : > { %v4918_v32 = vadd.f32 %v7230_v13, %v4777_v31  ;;  %6488 = vmatmul.msk.bf16.gmra.mxu2 %vm1213_vm1, %v3019_v28  ;;  %v4503_v35 = vpop.f32.mrf.mxu3  ;;  %v928_v25 = vor.u32 %v926_v15, %v924_v57  ;;  %v4095_v31 = vsel %vm4026_vm2, %v4092_v50, %v4094_v22 }
 0x20d   : > { %vm5055_vm14 = vcmp.gt.f32.partialorder %v4918_v32, 0.0  ;;  %v5192_v37 = vmul.f32 0.2, %v4918_v32 }
 0x20e   : > { %v3649_v38 = vpop.f32.mrf.mxu2  ;;  %v1551_v42 = vpop.f32.mrf.mxu0 }
 0x20f   : > { %v5329_v40 = vsel %vm5055_vm14, %v4918_v32, %v5192_v37  ;;  %v3924_v41 = vadd.f32 %v3649_v38, %v2049_v34  ;;  %v2053_v45 = vpop.f32.mrf.mxu1  ;;  %v2051_v58 = vadd.f32 %v2050_v30, %v1551_v42  ;;  %v933_v37 = vsel %vm657_vm3, %v928_v25, %v932_v29 }
 0x210   : > { %v5466_v48 = vpack.c.bf16 %v5329_v40, %v5329_v40 }
 0x211   : > { %v4778_v49 = vadd.f32 %v4503_v35, %v3924_v41 }
 0x212   : > { %5604 = vst.msk [vmem:[%s6944_s14 + $0xb4] sm:$0xf] %vm5558_vm5, %v5466_v48  ;;  %6146 = vmatmul.msk.bf16.gmra.mxu1 %vm1213_vm1, %v7485_v2  ;;  %v3027_v2 = vsel %vm657_vm3, %v3022_v54, %v3026_v55  ;;  %v7565_v48 = vld [vmem:[%s6835_s6 + $0x118] sm:$0xff]  ;;  %v3036_v55 = vshrl.u32 %v7543_v11, 16 }
 0x213   : > { %v4919_v51 = vadd.f32 %v7230_v13, %v4778_v49  ;;  %v4505_v52 = vpop.f32.mrf.mxu3  ;;  %v938_v53 = vshll.u32 %v7565_v48, 16 }
 0x215   : > { %vm5056_vm15 = vcmp.gt.f32.partialorder %v4919_v51, 0.0  ;;  %v5193_v56 = vmul.f32 0.2, %v4919_v51 }
 0x216   : > { %v3651_v60 = vpop.f32.mrf.mxu2  ;;  %v1554_v13 = vpop.f32.mrf.mxu0 }
 0x217   : > { %v5330_v61 = vsel %vm5056_vm15, %v4919_v51, %v5193_v56  ;;  %v3925_v62 = vadd.f32 %v3651_v60, %v2051_v58  ;;  %v2055_v1 = vpop.f32.mrf.mxu1  ;;  %v2054_v6 = vadd.f32 %v2053_v45, %v1554_v13  ;;  %v7568_v45 = vld [vmem:[%s6835_s6 + $0x128] sm:$0xff]  ;;  %v940_v13 = vrot.slane %v938_v53, 1 }
 0x218   : > { %v5467_v0 = vpack.c.bf16 %v5330_v61, %v5330_v61  ;;  %6564 = vmatmul.msk.bf16.gmra.mxu3 %vm1213_vm1, %v4093_v59  ;;  %v3040_v56 = vshll.u32 %v7568_v45, 16  ;;  %v4096_v59 = vrot.slane %v7568_v45, 1 }
 0x219   : > { %v4779_v3 = vadd.f32 %v4505_v52, %v3925_v62  ;;  %6073 = vmatmul.msk.bf16.gmra.mxu0 %vm1213_vm1, %v925_v63  ;;  %v934_v52 = vshrl.u32 %v7540_v10, 16  ;;  %v3038_v63 = vor.u32 %v3036_v55, %v3034_v27 }
 0x21a   : > { %5605 = vst.msk [vmem:[%s6944_s14 + $0xb8] sm:$0xf] %vm5558_vm5, %v5467_v0  ;;  %v3042_v0 = vrot.slane %v3040_v56, 1 }
 0x21b   : > { %v4920_v5 = vadd.f32 %v7535_v4, %v4779_v3  ;;  %6489 = vmatmul.msk.bf16.gmra.mxu2 %vm1213_vm1, %v3027_v2  ;;  %v4508_v7 = vpop.f32.mrf.mxu3  ;;  %v936_v62 = vor.u32 %v934_v52, %v932_v29  ;;  %v4097_v3 = vsel %vm4026_vm2, %v4094_v22, %v4096_v59 }
 0x21d   : > { %vm5057_vm0 = vcmp.gt.f32.partialorder %v4920_v5, 0.0  ;;  %v5194_v9 = vmul.f32 0.2, %v4920_v5 }
 0x21e   : > { %v3654_v33 = vpop.f32.mrf.mxu2  ;;  %v1556_v14 = vpop.f32.mrf.mxu0 }
 0x21f   : > { %v5331_v8 = vsel %vm5057_vm0, %v4920_v5, %v5194_v9  ;;  %v3926_v12 = vadd.f32 %v3654_v33, %v2054_v6  ;;  %v2058_v17 = vpop.f32.mrf.mxu1  ;;  %v2056_v30 = vadd.f32 %v2055_v1, %v1556_v14  ;;  %v941_v9 = vsel %vm657_vm3, %v936_v62, %v940_v13 }
 0x220   : > { %v5468_v20 = vpack.c.bf16 %v5331_v8, %v5331_v8 }
 0x221   : > { %v4780_v21 = vadd.f32 %v4508_v7, %v3926_v12 }
 0x222   : > { %5606 = vst.msk [vmem:[%s6944_s14 + $0xbc] sm:$0xf] %vm5558_vm5, %v5468_v20  ;;  %6147 = vmatmul.msk.bf16.gmra.mxu1 %vm1213_vm1, %v7510_v39  ;;  %v3035_v39 = vsel %vm657_vm3, %v3030_v26, %v3034_v27  ;;  %v7590_v20 = vld [vmem:[%s6835_s6 + $0x120] sm:$0xff]  ;;  %v3044_v27 = vshrl.u32 %v7568_v45, 16 }
 0x223   : > { %v4921_v23 = vadd.f32 %v7535_v4, %v4780_v21  ;;  %v4510_v24 = vpop.f32.mrf.mxu3  ;;  %v946_v25 = vshll.u32 %v7590_v20, 16 }
 0x225   : > { %vm5058_vm4 = vcmp.gt.f32.partialorder %v4921_v23, 0.0  ;;  %v5195_v28 = vmul.f32 0.2, %v4921_v23 }
 0x226   : > { %v3656_v32 = vpop.f32.mrf.mxu2  ;;  %v1559_v36 = vpop.f32.mrf.mxu0 }
 0x227   : > { %v5332_v34 = vsel %vm5058_vm4, %v4921_v23, %v5195_v28  ;;  %v3927_v35 = vadd.f32 %v3656_v32, %v2056_v30  ;;  %v2060_v40 = vpop.f32.mrf.mxu1  ;;  %v2059_v43 = vadd.f32 %v2058_v17, %v1559_v36  ;;  %v7593_v17 = vld [vmem:[%s6835_s6 + $0x130] sm:$0xff]  ;;  %v948_v36 = vrot.slane %v946_v25, 1 }
 0x228   : > { %v5469_v38 = vpack.c.bf16 %v5332_v34, %v5332_v34  ;;  %6565 = vmatmul.msk.bf16.gmra.mxu3 %vm1213_vm1, %v4095_v31  ;;  %v3048_v28 = vshll.u32 %v7593_v17, 16  ;;  %v4098_v31 = vrot.slane %v7593_v17, 1 }
 0x229   : > { %v4781_v41 = vadd.f32 %v4510_v24, %v3927_v35  ;;  %6074 = vmatmul.msk.bf16.gmra.mxu0 %vm1213_vm1, %v933_v37  ;;  %v942_v24 = vshrl.u32 %v7565_v48, 16  ;;  %v3046_v37 = vor.u32 %v3044_v27, %v3042_v0 }
 0x22a   : > { %5607 = vst.msk [vmem:[%s6944_s14 + $0xc0] sm:$0xf] %vm5558_vm5, %v5469_v38  ;;  %v3050_v38 = vrot.slane %v3048_v28, 1 }
 0x22b   : > { %v4922_v42 = vadd.f32 %v7535_v4, %v4781_v41  ;;  %6490 = vmatmul.msk.bf16.gmra.mxu2 %vm1213_vm1, %v3035_v39  ;;  %v4513_v44 = vpop.f32.mrf.mxu3  ;;  %v944_v35 = vor.u32 %v942_v24, %v940_v13  ;;  %v4099_v41 = vsel %vm4026_vm2, %v4096_v59, %v4098_v31 }
 0x22d   : > { %vm5059_vm6 = vcmp.gt.f32.partialorder %v4922_v42, 0.0  ;;  %v5196_v46 = vmul.f32 0.2, %v4922_v42 }
 0x22e   : > { %v3659_v47 = vpop.f32.mrf.mxu2  ;;  %v1561_v51 = vpop.f32.mrf.mxu0 }
 0x22f   : > { %v5333_v49 = vsel %vm5059_vm6, %v4922_v42, %v5196_v46  ;;  %v3928_v50 = vadd.f32 %v3659_v47, %v2059_v43  ;;  %v2063_v54 = vpop.f32.mrf.mxu1  ;;  %v2061_v1 = vadd.f32 %v2060_v40, %v1561_v51  ;;  %v949_v46 = vsel %vm657_vm3, %v944_v35, %v948_v36 }
 0x230   : > { %v5470_v57 = vpack.c.bf16 %v5333_v49, %v5333_v49 }
 0x231   : > { %v4782_v58 = vadd.f32 %v4513_v44, %v3928_v50 }
 0x232   : > { %5608 = vst.msk [vmem:[%s6944_s14 + $0xc4] sm:$0xf] %vm5558_vm5, %v5470_v57  ;;  %6148 = vmatmul.msk.bf16.gmra.mxu1 %vm1213_vm1, %v7540_v10  ;;  %v3043_v10 = vsel %vm657_vm3, %v3038_v63, %v3042_v0  ;;  %v7615_v57 = vld [vmem:[%s6835_s6 + $0x128] sm:$0xff]  ;;  %v3052_v0 = vshrl.u32 %v7593_v17, 16 }
 0x233   : > { %v4923_v60 = vadd.f32 %v7535_v4, %v4782_v58  ;;  %v4515_v61 = vpop.f32.mrf.mxu3  ;;  %v954_v62 = vshll.u32 %v7615_v57, 16 }
 0x235   : > { %vm5060_vm7 = vcmp.gt.f32.partialorder %v4923_v60, 0.0  ;;  %v5197_v2 = vmul.f32 0.2, %v4923_v60 }
 0x236   : > { %v3661_v5 = vpop.f32.mrf.mxu2  ;;  %v1564_v11 = vpop.f32.mrf.mxu0 }
 0x237   : > { %v5334_v6 = vsel %vm5060_vm7, %v4923_v60, %v5197_v2  ;;  %v3929_v7 = vadd.f32 %v3661_v5, %v2061_v1  ;;  %v2065_v8 = vpop.f32.mrf.mxu1  ;;  %v2064_v15 = vadd.f32 %v2063_v54, %v1564_v11  ;;  %v7618_v54 = vld [vmem:[%s6835_s6 + $0x138] sm:$0xff]  ;;  %v956_v11 = vrot.slane %v954_v62, 1 }
 0x238   : > { %v5471_v33 = vpack.c.bf16 %v5334_v6, %v5334_v6  ;;  %6566 = vmatmul.msk.bf16.gmra.mxu3 %vm1213_vm1, %v4097_v3  ;;  %v3056_v2 = vshll.u32 %v7618_v54, 16  ;;  %v4100_v3 = vrot.slane %v7618_v54, 1 }
 0x239   : > { %v4783_v12 = vadd.f32 %v4515_v61, %v3929_v7  ;;  %6075 = vmatmul.msk.bf16.gmra.mxu0 %vm1213_vm1, %v941_v9  ;;  %v950_v61 = vshrl.u32 %v7590_v20, 16  ;;  %v3054_v9 = vor.u32 %v3052_v0, %v3050_v38 }
 0x23a   : > { %5609 = vst.msk [vmem:[%s6944_s14 + $0xc8] sm:$0xf] %vm5558_vm5, %v5471_v33  ;;  %v3058_v33 = vrot.slane %v3056_v2, 1 }
 0x23b   : > { %v4924_v14 = vadd.f32 %v7535_v4, %v4783_v12  ;;  %6491 = vmatmul.msk.bf16.gmra.mxu2 %vm1213_vm1, %v3043_v10  ;;  %v4518_v16 = vpop.f32.mrf.mxu3  ;;  %v952_v7 = vor.u32 %v950_v61, %v948_v36  ;;  %v4101_v12 = vsel %vm4026_vm2, %v4098_v31, %v4100_v3 }
 0x23d   : > { %vm5061_vm8 = vcmp.gt.f32.partialorder %v4924_v14, 0.0  ;;  %v5198_v18 = vmul.f32 0.2, %v4924_v14 }
 0x23e   : > { %v3664_v19 = vpop.f32.mrf.mxu2  ;;  %v1566_v23 = vpop.f32.mrf.mxu0 }
 0x23f   : > { %v5335_v21 = vsel %vm5061_vm8, %v4924_v14, %v5198_v18  ;;  %v3930_v22 = vadd.f32 %v3664_v19, %v2064_v15  ;;  %v2068_v26 = vpop.f32.mrf.mxu1  ;;  %v2066_v40 = vadd.f32 %v2065_v8, %v1566_v23  ;;  %v957_v18 = vsel %vm657_vm3, %v952_v7, %v956_v11 }
 0x240   : > { %v5472_v29 = vpack.c.bf16 %v5335_v21, %v5335_v21 }
 0x241   : > { %v4784_v30 = vadd.f32 %v4518_v16, %v3930_v22 }
 0x242   : > { %5610 = vst.msk [vmem:[%s6944_s14 + $0xcc] sm:$0xf] %vm5558_vm5, %v5472_v29  ;;  %6149 = vmatmul.msk.bf16.gmra.mxu1 %vm1213_vm1, %v7565_v48  ;;  %v3051_v48 = vsel %vm657_vm3, %v3046_v37, %v3050_v38  ;;  %v7640_v29 = vld [vmem:[%s6835_s6 + $0x130] sm:$0xff]  ;;  %v3060_v38 = vshrl.u32 %v7618_v54, 16 }
 0x243   : > { %v4925_v32 = vadd.f32 %v7535_v4, %v4784_v30  ;;  %v4520_v34 = vpop.f32.mrf.mxu3  ;;  %v962_v35 = vshll.u32 %v7640_v29, 16 }
 0x245   : > { %vm5062_vm9 = vcmp.gt.f32.partialorder %v4925_v32, 0.0  ;;  %v5199_v39 = vmul.f32 0.2, %v4925_v32 }
 0x246   : > { %v3666_v42 = vpop.f32.mrf.mxu2  ;;  %v1569_v45 = vpop.f32.mrf.mxu0 }
 0x247   : > { %v5336_v43 = vsel %vm5062_vm9, %v4925_v32, %v5199_v39  ;;  %v3931_v44 = vadd.f32 %v3666_v42, %v2066_v40  ;;  %v2070_v49 = vpop.f32.mrf.mxu1  ;;  %v2069_v52 = vadd.f32 %v2068_v26, %v1569_v45  ;;  %v7643_v26 = vld [vmem:[%s6835_s6 + $0x140] sm:$0xff]  ;;  %v964_v45 = vrot.slane %v962_v35, 1 }
 0x248   : > { %v5473_v47 = vpack.c.bf16 %v5336_v43, %v5336_v43  ;;  %6567 = vmatmul.msk.bf16.gmra.mxu3 %vm1213_vm1, %v4099_v41  ;;  %v3064_v39 = vshll.u32 %v7643_v26, 16  ;;  %v4102_v41 = vrot.slane %v7643_v26, 1 }
 0x249   : > { %v4785_v50 = vadd.f32 %v4520_v34, %v3931_v44  ;;  %6076 = vmatmul.msk.bf16.gmra.mxu0 %vm1213_vm1, %v949_v46  ;;  %v958_v34 = vshrl.u32 %v7615_v57, 16  ;;  %v3062_v46 = vor.u32 %v3060_v38, %v3058_v33 }
 0x24a   : > { %5611 = vst.msk [vmem:[%s6944_s14 + $0xd0] sm:$0xf] %vm5558_vm5, %v5473_v47  ;;  %v3066_v47 = vrot.slane %v3064_v39, 1 }
 0x24b   : > { %v4926_v51 = vadd.f32 %v7535_v4, %v4785_v50  ;;  %6492 = vmatmul.msk.bf16.gmra.mxu2 %vm1213_vm1, %v3051_v48  ;;  %v4523_v53 = vpop.f32.mrf.mxu3  ;;  %v960_v44 = vor.u32 %v958_v34, %v956_v11  ;;  %v4103_v50 = vsel %vm4026_vm2, %v4100_v3, %v4102_v41 }
 0x24d   : > { %vm5063_vm10 = vcmp.gt.f32.partialorder %v4926_v51, 0.0  ;;  %v5200_v55 = vmul.f32 0.2, %v4926_v51 }
 0x24e   : > { %v3669_v56 = vpop.f32.mrf.mxu2  ;;  %v1571_v60 = vpop.f32.mrf.mxu0 }
 0x24f   : > { %v5337_v58 = vsel %vm5063_vm10, %v4926_v51, %v5200_v55  ;;  %v3932_v59 = vadd.f32 %v3669_v56, %v2069_v52  ;;  %v2073_v63 = vpop.f32.mrf.mxu1  ;;  %v2071_v8 = vadd.f32 %v2070_v49, %v1571_v60  ;;  %v965_v55 = vsel %vm657_vm3, %v960_v44, %v964_v45 }
 0x250   : > { %v5474_v13 = vpack.c.bf16 %v5337_v58, %v5337_v58 }
 0x251   : > { %v4786_v1 = vadd.f32 %v4523_v53, %v3932_v59 }
 0x252   : > { %5612 = vst.msk [vmem:[%s6944_s14 + $0xd4] sm:$0xf] %vm5558_vm5, %v5474_v13  ;;  %6150 = vmatmul.msk.bf16.gmra.mxu1 %vm1213_vm1, %v7590_v20  ;;  %v3059_v20 = vsel %vm657_vm3, %v3054_v9, %v3058_v33  ;;  %v7665_v13 = vld [vmem:[%s6835_s6 + $0x138] sm:$0xff]  ;;  %v3068_v33 = vshrl.u32 %v7643_v26, 16 }
 0x253   : > { %v4927_v5 = vadd.f32 %v7535_v4, %v4786_v1  ;;  %v4525_v6 = vpop.f32.mrf.mxu3  ;;  %v970_v7 = vshll.u32 %v7665_v13, 16 }
 0x255   : > { %vm5064_vm11 = vcmp.gt.f32.partialorder %v4927_v5, 0.0  ;;  %v5201_v10 = vmul.f32 0.2, %v4927_v5 }
 0x256   : > { %v3671_v14 = vpop.f32.mrf.mxu2  ;;  %v1574_v17 = vpop.f32.mrf.mxu0 }
 0x257   : > { %v5338_v15 = vsel %vm5064_vm11, %v4927_v5, %v5201_v10  ;;  %v3933_v16 = vadd.f32 %v3671_v14, %v2071_v8  ;;  %v2075_v21 = vpop.f32.mrf.mxu1  ;;  %v2074_v24 = vadd.f32 %v2073_v63, %v1574_v17  ;;  %v7668_v63 = vld [vmem:[%s6835_s6 + $0x148] sm:$0xff]  ;;  %v972_v17 = vrot.slane %v970_v7, 1 }
 0x258   : > { %v5475_v19 = vpack.c.bf16 %v5338_v15, %v5338_v15  ;;  %6568 = vmatmul.msk.bf16.gmra.mxu3 %vm1213_vm1, %v4101_v12  ;;  %v3072_v10 = vshll.u32 %v7668_v63, 16  ;;  %v4104_v12 = vrot.slane %v7668_v63, 1 }
 0x259   : > { %v4787_v22 = vadd.f32 %v4525_v6, %v3933_v16  ;;  %6077 = vmatmul.msk.bf16.gmra.mxu0 %vm1213_vm1, %v957_v18  ;;  %v966_v6 = vshrl.u32 %v7640_v29, 16  ;;  %v3070_v18 = vor.u32 %v3068_v33, %v3066_v47 }
 0x25a   : > { %5613 = vst.msk [vmem:[%s6944_s14 + $0xd8] sm:$0xf] %vm5558_vm5, %v5475_v19  ;;  %v3074_v19 = vrot.slane %v3072_v10, 1 }
 0x25b   : > { %v4928_v23 = vadd.f32 %v7535_v4, %v4787_v22  ;;  %6493 = vmatmul.msk.bf16.gmra.mxu2 %vm1213_vm1, %v3059_v20  ;;  %v4528_v25 = vpop.f32.mrf.mxu3  ;;  %v968_v16 = vor.u32 %v966_v6, %v964_v45  ;;  %v4105_v22 = vsel %vm4026_vm2, %v4102_v41, %v4104_v12 }
 0x25d   : > { %vm5065_vm12 = vcmp.gt.f32.partialorder %v4928_v23, 0.0  ;;  %v5202_v27 = vmul.f32 0.2, %v4928_v23 }
 0x25e   : > { %v3674_v28 = vpop.f32.mrf.mxu2  ;;  %v1576_v32 = vpop.f32.mrf.mxu0 }
 0x25f   : > { %v5339_v30 = vsel %vm5065_vm12, %v4928_v23, %v5202_v27  ;;  %v3934_v31 = vadd.f32 %v3674_v28, %v2074_v24  ;;  %v2078_v37 = vpop.f32.mrf.mxu1  ;;  %v2076_v49 = vadd.f32 %v2075_v21, %v1576_v32  ;;  %v973_v27 = vsel %vm657_vm3, %v968_v16, %v972_v17 }
 0x260   : > { %v5476_v36 = vpack.c.bf16 %v5339_v30, %v5339_v30 }
 0x261   : > { %v4788_v40 = vadd.f32 %v4528_v25, %v3934_v31 }
 0x262   : > { %5614 = vst.msk [vmem:[%s6944_s14 + $0xdc] sm:$0xf] %vm5558_vm5, %v5476_v36  ;;  %6151 = vmatmul.msk.bf16.gmra.mxu1 %vm1213_vm1, %v7615_v57  ;;  %v3067_v57 = vsel %vm657_vm3, %v3062_v46, %v3066_v47  ;;  %v7690_v36 = vld [vmem:[%s6835_s6 + $0x140] sm:$0xff]  ;;  %v3076_v47 = vshrl.u32 %v7668_v63, 16 }
 0x263   : > { %v4929_v42 = vadd.f32 %v7535_v4, %v4788_v40  ;;  %v4530_v43 = vpop.f32.mrf.mxu3  ;;  %v978_v44 = vshll.u32 %v7690_v36, 16 }
 0x265   : > { %vm5066_vm13 = vcmp.gt.f32.partialorder %v4929_v42, 0.0  ;;  %v5203_v48 = vmul.f32 0.2, %v4929_v42 }
 0x266   : > { %v3676_v51 = vpop.f32.mrf.mxu2  ;;  %v1579_v54 = vpop.f32.mrf.mxu0 }
 0x267   : > { %v5340_v52 = vsel %vm5066_vm13, %v4929_v42, %v5203_v48  ;;  %v3935_v53 = vadd.f32 %v3676_v51, %v2076_v49  ;;  %v2080_v58 = vpop.f32.mrf.mxu1  ;;  %v2079_v61 = vadd.f32 %v2078_v37, %v1579_v54  ;;  %v7693_v37 = vld [vmem:[%s6835_s6 + $0x150] sm:$0xff]  ;;  %v980_v54 = vrot.slane %v978_v44, 1 }
 0x268   : > { %v5477_v56 = vpack.c.bf16 %v5340_v52, %v5340_v52  ;;  %6569 = vmatmul.msk.bf16.gmra.mxu3 %vm1213_vm1, %v4103_v50  ;;  %v3080_v48 = vshll.u32 %v7693_v37, 16  ;;  %v4106_v50 = vrot.slane %v7693_v37, 1 }
 0x269   : > { %v4789_v59 = vadd.f32 %v4530_v43, %v3935_v53  ;;  %6078 = vmatmul.msk.bf16.gmra.mxu0 %vm1213_vm1, %v965_v55  ;;  %v974_v43 = vshrl.u32 %v7665_v13, 16  ;;  %v3078_v55 = vor.u32 %v3076_v47, %v3074_v19 }
 0x26a   : > { %5615 = vst.msk [vmem:[%s6944_s14 + $0xe0] sm:$0xf] %vm5558_vm5, %v5477_v56  ;;  %v3082_v56 = vrot.slane %v3080_v48, 1 }
 0x26b   : > { %v4930_v60 = vadd.f32 %v7535_v4, %v4789_v59  ;;  %6494 = vmatmul.msk.bf16.gmra.mxu2 %vm1213_vm1, %v3067_v57  ;;  %v4533_v62 = vpop.f32.mrf.mxu3  ;;  %v976_v53 = vor.u32 %v974_v43, %v972_v17  ;;  %v4107_v59 = vsel %vm4026_vm2, %v4104_v12, %v4106_v50 }
 0x26d   : > { %vm5067_vm14 = vcmp.gt.f32.partialorder %v4930_v60, 0.0  ;;  %v5204_v0 = vmul.f32 0.2, %v4930_v60 }
 0x26e   : > { %v3679_v2 = vpop.f32.mrf.mxu2  ;;  %v1581_v5 = vpop.f32.mrf.mxu0 }
 0x26f   : > { %v5341_v1 = vsel %vm5067_vm14, %v4930_v60, %v5204_v0  ;;  %v3936_v3 = vadd.f32 %v3679_v2, %v2079_v61  ;;  %v2083_v9 = vpop.f32.mrf.mxu1  ;;  %v2081_v21 = vadd.f32 %v2080_v58, %v1581_v5  ;;  %v981_v0 = vsel %vm657_vm3, %v976_v53, %v980_v54 }
 0x270   : > { %v5478_v11 = vpack.c.bf16 %v5341_v1, %v5341_v1 }
 0x271   : > { %v4790_v8 = vadd.f32 %v4533_v62, %v3936_v3 }
 0x272   : > { %5616 = vst.msk [vmem:[%s6944_s14 + $0xe4] sm:$0xf] %vm5558_vm5, %v5478_v11  ;;  %6152 = vmatmul.msk.bf16.gmra.mxu1 %vm1213_vm1, %v7640_v29  ;;  %v3075_v29 = vsel %vm657_vm3, %v3070_v18, %v3074_v19  ;;  %v7715_v11 = vld [vmem:[%s6835_s6 + $0x148] sm:$0xff]  ;;  %v3084_v19 = vshrl.u32 %v7693_v37, 16 }
 0x273   : > { %v4931_v14 = vadd.f32 %v7535_v4, %v4790_v8  ;;  %v4535_v15 = vpop.f32.mrf.mxu3  ;;  %v986_v16 = vshll.u32 %v7715_v11, 16 }
 0x275   : > { %vm5068_vm15 = vcmp.gt.f32.partialorder %v4931_v14, 0.0  ;;  %v5205_v20 = vmul.f32 0.2, %v4931_v14 }
 0x276   : > { %v3681_v23 = vpop.f32.mrf.mxu2  ;;  %v1584_v26 = vpop.f32.mrf.mxu0 }
 0x277   : > { %v5342_v24 = vsel %vm5068_vm15, %v4931_v14, %v5205_v20  ;;  %v3937_v25 = vadd.f32 %v3681_v23, %v2081_v21  ;;  %v2085_v30 = vpop.f32.mrf.mxu1  ;;  %v2084_v34 = vadd.f32 %v2083_v9, %v1584_v26  ;;  %v7718_v9 = vld [vmem:[%s6835_s6 + $0x158] sm:$0xff]  ;;  %v988_v26 = vrot.slane %v986_v16, 1 }
 0x278   : > { %v5479_v28 = vpack.c.bf16 %v5342_v24, %v5342_v24  ;;  %6570 = vmatmul.msk.bf16.gmra.mxu3 %vm1213_vm1, %v4105_v22  ;;  %v3088_v20 = vshll.u32 %v7718_v9, 16  ;;  %v4108_v22 = vrot.slane %v7718_v9, 1 }
 0x279   : > { %v4791_v31 = vadd.f32 %v4535_v15, %v3937_v25  ;;  %6079 = vmatmul.msk.bf16.gmra.mxu0 %vm1213_vm1, %v973_v27  ;;  %v982_v15 = vshrl.u32 %v7690_v36, 16  ;;  %v3086_v27 = vor.u32 %v3084_v19, %v3082_v56 }
 0x27a   : > { %5617 = vst.msk [vmem:[%s6944_s14 + $0xe8] sm:$0xf] %vm5558_vm5, %v5479_v28  ;;  %v3090_v28 = vrot.slane %v3088_v20, 1 }
 0x27b   : > { %v4932_v32 = vadd.f32 %v7535_v4, %v4791_v31  ;;  %6495 = vmatmul.msk.bf16.gmra.mxu2 %vm1213_vm1, %v3075_v29  ;;  %v4538_v35 = vpop.f32.mrf.mxu3  ;;  %v984_v25 = vor.u32 %v982_v15, %v980_v54  ;;  %v4109_v31 = vsel %vm4026_vm2, %v4106_v50, %v4108_v22 }
 0x27d   : > { %vm5069_vm0 = vcmp.gt.f32.partialorder %v4932_v32, 0.0  ;;  %v5206_v38 = vmul.f32 0.2, %v4932_v32 }
 0x27e   : > { %v3684_v39 = vpop.f32.mrf.mxu2  ;;  %v1586_v42 = vpop.f32.mrf.mxu0 }
 0x27f   : > { %v5343_v40 = vsel %vm5069_vm0, %v4932_v32, %v5206_v38  ;;  %v3938_v41 = vadd.f32 %v3684_v39, %v2084_v34  ;;  %v2088_v46 = vpop.f32.mrf.mxu1  ;;  %v2086_v58 = vadd.f32 %v2085_v30, %v1586_v42  ;;  %v989_v38 = vsel %vm657_vm3, %v984_v25, %v988_v26 }
 0x280   : > { %v5480_v45 = vpack.c.bf16 %v5343_v40, %v5343_v40 }
 0x281   : > { %v4792_v49 = vadd.f32 %v4538_v35, %v3938_v41 }
 0x282   : > { %5618 = vst.msk [vmem:[%s6944_s14 + $0xec] sm:$0xf] %vm5558_vm5, %v5480_v45  ;;  %6153 = vmatmul.msk.bf16.gmra.mxu1 %vm1213_vm1, %v7665_v13  ;;  %v3083_v13 = vsel %vm657_vm3, %v3078_v55, %v3082_v56  ;;  %v7740_v45 = vld [vmem:[%s6835_s6 + $0x150] sm:$0xff]  ;;  %v3092_v56 = vshrl.u32 %v7718_v9, 16 }
 0x283   : > { %v4933_v51 = vadd.f32 %v7535_v4, %v4792_v49  ;;  %v4540_v52 = vpop.f32.mrf.mxu3  ;;  %v994_v53 = vshll.u32 %v7740_v45, 16 }
 0x285   : > { %vm5070_vm4 = vcmp.gt.f32.partialorder %v4933_v51, 0.0  ;;  %v5207_v57 = vmul.f32 0.2, %v4933_v51 }
 0x286   : > { %v3686_v60 = vpop.f32.mrf.mxu2  ;;  %v1589_v63 = vpop.f32.mrf.mxu0 }
 0x287   : > { %v5344_v61 = vsel %vm5070_vm4, %v4933_v51, %v5207_v57  ;;  %v3939_v62 = vadd.f32 %v3686_v60, %v2086_v58  ;;  %v2090_v1 = vpop.f32.mrf.mxu1  ;;  %v2089_v6 = vadd.f32 %v2088_v46, %v1589_v63  ;;  %v7743_v46 = vld [vmem:[%s6835_s6 + $0x160] sm:$0xff]  ;;  %v996_v63 = vrot.slane %v994_v53, 1 }
 0x288   : > { %v5481_v2 = vpack.c.bf16 %v5344_v61, %v5344_v61  ;;  %6571 = vmatmul.msk.bf16.gmra.mxu3 %vm1213_vm1, %v4107_v59  ;;  %v3096_v57 = vshll.u32 %v7743_v46, 16  ;;  %v4110_v59 = vrot.slane %v7743_v46, 1 }
 0x289   : > { %v4793_v3 = vadd.f32 %v4540_v52, %v3939_v62  ;;  %6080 = vmatmul.msk.bf16.gmra.mxu0 %vm1213_vm1, %v981_v0  ;;  %v990_v52 = vshrl.u32 %v7715_v11, 16  ;;  %v3094_v0 = vor.u32 %v3092_v56, %v3090_v28 }
 0x28a   : > { %5619 = vst.msk [vmem:[%s6944_s14 + $0xf0] sm:$0xf] %vm5558_vm5, %v5481_v2  ;;  %v3098_v2 = vrot.slane %v3096_v57, 1 }
 0x28b   : > { %v4934_v5 = vadd.f32 %v7535_v4, %v4793_v3  ;;  %6496 = vmatmul.msk.bf16.gmra.mxu2 %vm1213_vm1, %v3083_v13  ;;  %v4543_v7 = vpop.f32.mrf.mxu3  ;;  %v992_v62 = vor.u32 %v990_v52, %v988_v26  ;;  %v4111_v3 = vsel %vm4026_vm2, %v4108_v22, %v4110_v59 }
 0x28d   : > { %vm5071_vm6 = vcmp.gt.f32.partialorder %v4934_v5, 0.0  ;;  %v5208_v33 = vmul.f32 0.2, %v4934_v5 }
 0x28e   : > { %v3689_v10 = vpop.f32.mrf.mxu2  ;;  %v1591_v14 = vpop.f32.mrf.mxu0 }
 0x28f   : > { %v5345_v8 = vsel %vm5071_vm6, %v4934_v5, %v5208_v33  ;;  %v3940_v12 = vadd.f32 %v3689_v10, %v2089_v6  ;;  %v2093_v18 = vpop.f32.mrf.mxu1  ;;  %v2091_v30 = vadd.f32 %v2090_v1, %v1591_v14  ;;  %v997_v33 = vsel %vm657_vm3, %v992_v62, %v996_v63 }
 0x290   : > { %v5482_v17 = vpack.c.bf16 %v5345_v8, %v5345_v8 }
 0x291   : > { %v4794_v21 = vadd.f32 %v4543_v7, %v3940_v12 }
 0x292   : > { %5620 = vst.msk [vmem:[%s6944_s14 + $0xf4] sm:$0xf] %vm5558_vm5, %v5482_v17  ;;  %6154 = vmatmul.msk.bf16.gmra.mxu1 %vm1213_vm1, %v7690_v36  ;;  %v3091_v36 = vsel %vm657_vm3, %v3086_v27, %v3090_v28  ;;  %v7765_v17 = vld [vmem:[%s6835_s6 + $0x158] sm:$0xff]  ;;  %v3100_v28 = vshrl.u32 %v7743_v46, 16 }
 0x293   : > { %v4935_v23 = vadd.f32 %v7535_v4, %v4794_v21  ;;  %v4545_v24 = vpop.f32.mrf.mxu3  ;;  %v1002_v25 = vshll.u32 %v7765_v17, 16 }
 0x295   : > { %vm5072_vm7 = vcmp.gt.f32.partialorder %v4935_v23, 0.0  ;;  %v5209_v29 = vmul.f32 0.2, %v4935_v23 }
 0x296   : > { %v3691_v32 = vpop.f32.mrf.mxu2  ;;  %v1594_v37 = vpop.f32.mrf.mxu0 }
 0x297   : > { %v5346_v34 = vsel %vm5072_vm7, %v4935_v23, %v5209_v29  ;;  %v3941_v35 = vadd.f32 %v3691_v32, %v2091_v30  ;;  %v2095_v40 = vpop.f32.mrf.mxu1  ;;  %v2094_v43 = vadd.f32 %v2093_v18, %v1594_v37  ;;  %v7768_v18 = vld [vmem:[%s6835_s6 + $0x168] sm:$0xff]  ;;  %v1004_v37 = vrot.slane %v1002_v25, 1 }
 0x298   : > { %v5483_v39 = vpack.c.bf16 %v5346_v34, %v5346_v34  ;;  %6572 = vmatmul.msk.bf16.gmra.mxu3 %vm1213_vm1, %v4109_v31  ;;  %v3104_v29 = vshll.u32 %v7768_v18, 16  ;;  %v4112_v31 = vrot.slane %v7768_v18, 1 }
 0x299   : > { %v4795_v41 = vadd.f32 %v4545_v24, %v3941_v35  ;;  %6081 = vmatmul.msk.bf16.gmra.mxu0 %vm1213_vm1, %v989_v38  ;;  %v998_v24 = vshrl.u32 %v7740_v45, 16  ;;  %v3102_v38 = vor.u32 %v3100_v28, %v3098_v2 }
 0x29a   : > { %5621 = vst.msk [vmem:[%s6944_s14 + $0xf8] sm:$0xf] %vm5558_vm5, %v5483_v39  ;;  %v3106_v39 = vrot.slane %v3104_v29, 1 }
 0x29b   : > { %v4936_v42 = vadd.f32 %v7535_v4, %v4795_v41  ;;  %6497 = vmatmul.msk.bf16.gmra.mxu2 %vm1213_vm1, %v3091_v36  ;;  %v4548_v44 = vpop.f32.mrf.mxu3  ;;  %v1000_v35 = vor.u32 %v998_v24, %v996_v63  ;;  %v4113_v41 = vsel %vm4026_vm2, %v4110_v59, %v4112_v31 }
 0x29d   : > { %vm5073_vm8 = vcmp.gt.f32.partialorder %v4936_v42, 0.0  ;;  %v5210_v47 = vmul.f32 0.2, %v4936_v42 }
 0x29e   : > { %v3694_v48 = vpop.f32.mrf.mxu2  ;;  %v1596_v51 = vpop.f32.mrf.mxu0 }
 0x29f   : > { %v5347_v49 = vsel %vm5073_vm8, %v4936_v42, %v5210_v47  ;;  %v3942_v50 = vadd.f32 %v3694_v48, %v2094_v43  ;;  %v2098_v55 = vpop.f32.mrf.mxu1  ;;  %v2096_v1 = vadd.f32 %v2095_v40, %v1596_v51  ;;  %v1005_v47 = vsel %vm657_vm3, %v1000_v35, %v1004_v37 }
 0x2a0   : > { %v5484_v54 = vpack.c.bf16 %v5347_v49, %v5347_v49 }
 0x2a1   : > { %v4796_v58 = vadd.f32 %v4548_v44, %v3942_v50 }
 0x2a2   : > { %5622 = vst.msk [vmem:[%s6944_s14 + $0xfc] sm:$0xf] %vm5558_vm5, %v5484_v54  ;;  %6155 = vmatmul.msk.bf16.gmra.mxu1 %vm1213_vm1, %v7715_v11  ;;  %v3099_v11 = vsel %vm657_vm3, %v3094_v0, %v3098_v2  ;;  %v7790_v54 = vld [vmem:[%s6835_s6 + $0x160] sm:$0xff]  ;;  %v3108_v2 = vshrl.u32 %v7768_v18, 16 }
 0x2a3   : > { %v4937_v60 = vadd.f32 %v7535_v4, %v4796_v58  ;;  %v4550_v61 = vpop.f32.mrf.mxu3  ;;  %v1010_v62 = vshll.u32 %v7790_v54, 16 }
 0x2a5   : > { %vm5074_vm9 = vcmp.gt.f32.partialorder %v4937_v60, 0.0  ;;  %v5211_v13 = vmul.f32 0.2, %v4937_v60 }
 0x2a6   : > { %v3696_v5 = vpop.f32.mrf.mxu2  ;;  %v1599_v9 = vpop.f32.mrf.mxu0 }
 0x2a7   : > { %v5348_v6 = vsel %vm5074_vm9, %v4937_v60, %v5211_v13  ;;  %v3943_v7 = vadd.f32 %v3696_v5, %v2096_v1  ;;  %v2100_v8 = vpop.f32.mrf.mxu1  ;;  %v2099_v15 = vadd.f32 %v2098_v55, %v1599_v9  ;;  %v7793_v55 = vld [vmem:[%s6835_s6 + $0x170] sm:$0xff]  ;;  %v1012_v9 = vrot.slane %v1010_v62, 1 }
 0x2a8   : > { %v5485_v10 = vpack.c.bf16 %v5348_v6, %v5348_v6  ;;  %6573 = vmatmul.msk.bf16.gmra.mxu3 %vm1213_vm1, %v4111_v3  ;;  %v3112_v13 = vshll.u32 %v7793_v55, 16  ;;  %v4114_v3 = vrot.slane %v7793_v55, 1 }
 0x2a9   : > { %v4797_v12 = vadd.f32 %v4550_v61, %v3943_v7  ;;  %6082 = vmatmul.msk.bf16.gmra.mxu0 %vm1213_vm1, %v997_v33  ;;  %v1006_v61 = vshrl.u32 %v7765_v17, 16  ;;  %v3110_v33 = vor.u32 %v3108_v2, %v3106_v39 }
 0x2aa   : > { %5623 = vst.msk [vmem:[%s6944_s14 + $0x100] sm:$0xf] %vm5558_vm5, %v5485_v10  ;;  %v3114_v10 = vrot.slane %v3112_v13, 1 }
 0x2ab   : > { %v4938_v14 = vadd.f32 %v7535_v4, %v4797_v12  ;;  %6498 = vmatmul.msk.bf16.gmra.mxu2 %vm1213_vm1, %v3099_v11  ;;  %v4553_v16 = vpop.f32.mrf.mxu3  ;;  %v1008_v7 = vor.u32 %v1006_v61, %v1004_v37  ;;  %v4115_v12 = vsel %vm4026_vm2, %v4112_v31, %v4114_v3 }
 0x2ad   : > { %vm5075_vm10 = vcmp.gt.f32.partialorder %v4938_v14, 0.0  ;;  %v5212_v19 = vmul.f32 0.2, %v4938_v14 }
 0x2ae   : > { %v3699_v20 = vpop.f32.mrf.mxu2  ;;  %v1601_v23 = vpop.f32.mrf.mxu0 }
 0x2af   : > { %v5349_v21 = vsel %vm5075_vm10, %v4938_v14, %v5212_v19  ;;  %v3944_v22 = vadd.f32 %v3699_v20, %v2099_v15  ;;  %v2103_v27 = vpop.f32.mrf.mxu1  ;;  %v2101_v40 = vadd.f32 %v2100_v8, %v1601_v23  ;;  %v1013_v19 = vsel %vm657_vm3, %v1008_v7, %v1012_v9 }
 0x2b0   : > { %v5486_v26 = vpack.c.bf16 %v5349_v21, %v5349_v21 }
 0x2b1   : > { %v4798_v30 = vadd.f32 %v4553_v16, %v3944_v22 }
 0x2b2   : > { %5624 = vst.msk [vmem:[%s6944_s14 + $0x104] sm:$0xf] %vm5558_vm5, %v5486_v26  ;;  %6156 = vmatmul.msk.bf16.gmra.mxu1 %vm1213_vm1, %v7740_v45  ;;  %v3107_v45 = vsel %vm657_vm3, %v3102_v38, %v3106_v39  ;;  %v7815_v26 = vld [vmem:[%s6835_s6 + $0x168] sm:$0xff]  ;;  %v3116_v39 = vshrl.u32 %v7793_v55, 16 }
 0x2b3   : > { %v4939_v32 = vadd.f32 %v7535_v4, %v4798_v30  ;;  %v4555_v34 = vpop.f32.mrf.mxu3  ;;  %v1018_v35 = vshll.u32 %v7815_v26, 16 }
 0x2b5   : > { %vm5076_vm11 = vcmp.gt.f32.partialorder %v4939_v32, 0.0  ;;  %v5213_v36 = vmul.f32 0.2, %v4939_v32 }
 0x2b6   : > { %v3701_v42 = vpop.f32.mrf.mxu2  ;;  %v1604_v46 = vpop.f32.mrf.mxu0 }
 0x2b7   : > { %v5350_v43 = vsel %vm5076_vm11, %v4939_v32, %v5213_v36  ;;  %v3945_v44 = vadd.f32 %v3701_v42, %v2101_v40  ;;  %v2105_v49 = vpop.f32.mrf.mxu1  ;;  %v2104_v52 = vadd.f32 %v2103_v27, %v1604_v46  ;;  %v7818_v27 = vld [vmem:[%s6835_s6 + $0x178] sm:$0xff]  ;;  %v1020_v46 = vrot.slane %v1018_v35, 1 }
 0x2b8   : > { %v5487_v48 = vpack.c.bf16 %v5350_v43, %v5350_v43  ;;  %6574 = vmatmul.msk.bf16.gmra.mxu3 %vm1213_vm1, %v4113_v41  ;;  %v3120_v36 = vshll.u32 %v7818_v27, 16  ;;  %v4116_v41 = vrot.slane %v7818_v27, 1 }
 0x2b9   : > { %v4799_v50 = vadd.f32 %v4555_v34, %v3945_v44  ;;  %6083 = vmatmul.msk.bf16.gmra.mxu0 %vm1213_vm1, %v1005_v47  ;;  %v1014_v34 = vshrl.u32 %v7790_v54, 16  ;;  %v3118_v47 = vor.u32 %v3116_v39, %v3114_v10 }
 0x2ba   : > { %5625 = vst.msk [vmem:[%s6944_s14 + $0x108] sm:$0xf] %vm5558_vm5, %v5487_v48  ;;  %v3122_v48 = vrot.slane %v3120_v36, 1 }
 0x2bb   : > { %v4940_v51 = vadd.f32 %v7535_v4, %v4799_v50  ;;  %6499 = vmatmul.msk.bf16.gmra.mxu2 %vm1213_vm1, %v3107_v45  ;;  %v4558_v53 = vpop.f32.mrf.mxu3  ;;  %v1016_v44 = vor.u32 %v1014_v34, %v1012_v9  ;;  %v4117_v50 = vsel %vm4026_vm2, %v4114_v3, %v4116_v41 }
 0x2bd   : > { %vm5077_vm12 = vcmp.gt.f32.partialorder %v4940_v51, 0.0  ;;  %v5214_v56 = vmul.f32 0.2, %v4940_v51  ;;  %v1021_v55 = vsel %vm657_vm3, %v1016_v44, %v1020_v46 }
 0x2be   : > { %v3704_v57 = vpop.f32.mrf.mxu2  ;;  %v1606_v60 = vpop.f32.mrf.mxu0 }
 0x2bf   : > { %v5351_v58 = vsel %vm5077_vm12, %v4940_v51, %v5214_v56  ;;  %v3946_v59 = vadd.f32 %v3704_v57, %v2104_v52  ;;  %v2108_v0 = vpop.f32.mrf.mxu1  ;;  %v2106_v8 = vadd.f32 %v2105_v49, %v1606_v60 }
 0x2c0   : > { %v5488_v63 = vpack.c.bf16 %v5351_v58, %v5351_v58 }
 0x2c1   : > { %v4800_v1 = vadd.f32 %v4558_v53, %v3946_v59  ;;  %v7840_v59 = vld [vmem:[%s8507_s2] ss:$0 sm:$0xff] }
 0x2c2   : > { %5626 = vst.msk [vmem:[%s6944_s14 + $0x10c] sm:$0xf] %vm5558_vm5, %v5488_v63  ;;  %6157 = vmatmul.msk.bf16.gmra.mxu1 %vm1213_vm1, %v7765_v17  ;;  %v3115_v17 = vsel %vm657_vm3, %v3110_v33, %v3114_v10  ;;  %v7845_v63 = vld [vmem:[%s6835_s6 + $0x170] sm:$0xff]  ;;  %v3124_v10 = vshrl.u32 %v7818_v27, 16 }
 0x2c3   : > { %v4941_v5 = vadd.f32 %v7535_v4, %v4800_v1  ;;  %v4560_v6 = vpop.f32.mrf.mxu3  ;;  %v1026_v7 = vshll.u32 %v7845_v63, 16 }
 0x2c5   : > { %vm5078_vm13 = vcmp.gt.f32.partialorder %v4941_v5, 0.0  ;;  %v5215_v11 = vmul.f32 0.2, %v4941_v5 }
 0x2c6   : > { %v3706_v14 = vpop.f32.mrf.mxu2  ;;  %v1609_v18 = vpop.f32.mrf.mxu0 }
 0x2c7   : > { %v5352_v15 = vsel %vm5078_vm13, %v4941_v5, %v5215_v11  ;;  %v3947_v16 = vadd.f32 %v3706_v14, %v2106_v8  ;;  %v2110_v21 = vpop.f32.mrf.mxu1  ;;  %v2109_v24 = vadd.f32 %v2108_v0, %v1609_v18  ;;  %v7848_v0 = vld [vmem:[%s6835_s6 + $0x180] sm:$0xff]  ;;  %v1028_v18 = vrot.slane %v1026_v7, 1 }
 0x2c8   : > { %v5489_v20 = vpack.c.bf16 %v5352_v15, %v5352_v15  ;;  %6575 = vmatmul.msk.bf16.gmra.mxu3 %vm1213_vm1, %v4115_v12  ;;  %v3128_v11 = vshll.u32 %v7848_v0, 16  ;;  %v4118_v12 = vrot.slane %v7848_v0, 1 }
 0x2c9   : > { %v4801_v22 = vadd.f32 %v4560_v6, %v3947_v16  ;;  %6084 = vmatmul.msk.bf16.gmra.mxu0 %vm1213_vm1, %v1013_v19  ;;  %v1022_v6 = vshrl.u32 %v7815_v26, 16  ;;  %v3126_v19 = vor.u32 %v3124_v10, %v3122_v48 }
 0x2ca   : > { %5627 = vst.msk [vmem:[%s6944_s14 + $0x110] sm:$0xf] %vm5558_vm5, %v5489_v20  ;;  %v3130_v20 = vrot.slane %v3128_v11, 1 }
 0x2cb   : > { %v4942_v23 = vadd.f32 %v7535_v4, %v4801_v22  ;;  %6500 = vmatmul.msk.bf16.gmra.mxu2 %vm1213_vm1, %v3115_v17  ;;  %v4563_v25 = vpop.f32.mrf.mxu3  ;;  %v1024_v16 = vor.u32 %v1022_v6, %v1020_v46  ;;  %v4119_v22 = vsel %vm4026_vm2, %v4116_v41, %v4118_v12 }
 0x2cd   : > { %vm5079_vm14 = vcmp.gt.f32.partialorder %v4942_v23, 0.0  ;;  %v5216_v28 = vmul.f32 0.2, %v4942_v23 }
 0x2ce   : > { %v3709_v29 = vpop.f32.mrf.mxu2  ;;  %v1611_v32 = vpop.f32.mrf.mxu0 }
 0x2cf   : > { %v5353_v30 = vsel %vm5079_vm14, %v4942_v23, %v5216_v28  ;;  %v3948_v31 = vadd.f32 %v3709_v29, %v2109_v24  ;;  %v2113_v38 = vpop.f32.mrf.mxu1  ;;  %v2111_v49 = vadd.f32 %v2110_v21, %v1611_v32  ;;  %v1029_v28 = vsel %vm657_vm3, %v1024_v16, %v1028_v18 }
 0x2d0   : > { %v5490_v37 = vpack.c.bf16 %v5353_v30, %v5353_v30 }
 0x2d1   : > { %v4802_v40 = vadd.f32 %v4563_v25, %v3948_v31 }
 0x2d2   : > { %5628 = vst.msk [vmem:[%s6944_s14 + $0x114] sm:$0xf] %vm5558_vm5, %v5490_v37  ;;  %6158 = vmatmul.msk.bf16.gmra.mxu1 %vm1213_vm1, %v7790_v54  ;;  %v3123_v54 = vsel %vm657_vm3, %v3118_v47, %v3122_v48  ;;  %v7870_v37 = vld [vmem:[%s6835_s6 + $0x178] sm:$0xff]  ;;  %v3132_v48 = vshrl.u32 %v7848_v0, 16 }
 0x2d3   : > { %v4943_v42 = vadd.f32 %v7535_v4, %v4802_v40  ;;  %v4565_v43 = vpop.f32.mrf.mxu3  ;;  %v1034_v44 = vshll.u32 %v7870_v37, 16 }
 0x2d5   : > { %vm5080_vm15 = vcmp.gt.f32.partialorder %v4943_v42, 0.0  ;;  %v5217_v45 = vmul.f32 0.2, %v4943_v42 }
 0x2d6   : > { %v3711_v51 = vpop.f32.mrf.mxu2  ;;  %v1614_v4 = vpop.f32.mrf.mxu0 }
 0x2d7   : > { %v5354_v52 = vsel %vm5080_vm15, %v4943_v42, %v5217_v45  ;;  %v3949_v53 = vadd.f32 %v3711_v51, %v2111_v49  ;;  %v2115_v57 = vpop.f32.mrf.mxu1  ;;  %v2114_v61 = vadd.f32 %v2113_v38, %v1614_v4  ;;  %v7873_v38 = vld [vmem:[%s6835_s6 + $0x188] sm:$0xff]  ;;  %v1036_v4 = vrot.slane %v1034_v44, 1 }
 0x2d8   : > { %v5491_v56 = vpack.c.bf16 %v5354_v52, %v5354_v52  ;;  %6576 = vmatmul.msk.bf16.gmra.mxu3 %vm1213_vm1, %v4117_v50  ;;  %v3136_v45 = vshll.u32 %v7873_v38, 16  ;;  %v4120_v50 = vrot.slane %v7873_v38, 1 }
 0x2d9   : > { %v4803_v58 = vadd.f32 %v4565_v43, %v3949_v53  ;;  %6085 = vmatmul.msk.bf16.gmra.mxu0 %vm1213_vm1, %v1021_v55  ;;  %v1030_v43 = vshrl.u32 %v7845_v63, 16  ;;  %v3134_v55 = vor.u32 %v3132_v48, %v3130_v20 }
 0x2da   : > { %5629 = vst.msk [vmem:[%s6944_s14 + $0x118] sm:$0xf] %vm5558_vm5, %v5491_v56  ;;  %v3138_v56 = vrot.slane %v3136_v45, 1 }
 0x2db   : > { %v4944_v60 = vadd.f32 %v7840_v59, %v4803_v58  ;;  %6501 = vmatmul.msk.bf16.gmra.mxu2 %vm1213_vm1, %v3123_v54  ;;  %v4568_v62 = vpop.f32.mrf.mxu3  ;;  %v1032_v53 = vor.u32 %v1030_v43, %v1028_v18  ;;  %v4121_v58 = vsel %vm4026_vm2, %v4118_v12, %v4120_v50 }
 0x2dd   : > { %vm5081_vm0 = vcmp.gt.f32.partialorder %v4944_v60, 0.0  ;;  %v5218_v2 = vmul.f32 0.2, %v4944_v60 }
 0x2de   : > { %v3714_v13 = vpop.f32.mrf.mxu2  ;;  %v1616_v5 = vpop.f32.mrf.mxu0 }
 0x2df   : > { %v5355_v1 = vsel %vm5081_vm0, %v4944_v60, %v5218_v2  ;;  %v3950_v3 = vadd.f32 %v3714_v13, %v2114_v61  ;;  %v2118_v33 = vpop.f32.mrf.mxu1  ;;  %v2116_v21 = vadd.f32 %v2115_v57, %v1616_v5  ;;  %v1037_v2 = vsel %vm657_vm3, %v1032_v53, %v1036_v4 }
 0x2e0   : > { %v5492_v9 = vpack.c.bf16 %v5355_v1, %v5355_v1 }
 0x2e1   : > { %v4804_v8 = vadd.f32 %v4568_v62, %v3950_v3 }
 0x2e2   : > { %5630 = vst.msk [vmem:[%s6944_s14 + $0x11c] sm:$0xf] %vm5558_vm5, %v5492_v9  ;;  %6159 = vmatmul.msk.bf16.gmra.mxu1 %vm1213_vm1, %v7815_v26  ;;  %v3131_v26 = vsel %vm657_vm3, %v3126_v19, %v3130_v20  ;;  %v7895_v9 = vld [vmem:[%s6835_s6 + $0x180] sm:$0xff]  ;;  %v3140_v20 = vshrl.u32 %v7873_v38, 16 }
 0x2e3   : > { %v4945_v14 = vadd.f32 %v7840_v59, %v4804_v8  ;;  %v4570_v15 = vpop.f32.mrf.mxu3  ;;  %v1042_v16 = vshll.u32 %v7895_v9, 16 }
 0x2e5   : > { %vm5082_vm4 = vcmp.gt.f32.partialorder %v4945_v14, 0.0  ;;  %v5219_v17 = vmul.f32 0.2, %v4945_v14 }
 0x2e6   : > { %v3716_v23 = vpop.f32.mrf.mxu2  ;;  %v1619_v27 = vpop.f32.mrf.mxu0 }
 0x2e7   : > { %v5356_v24 = vsel %vm5082_vm4, %v4945_v14, %v5219_v17  ;;  %v3951_v25 = vadd.f32 %v3716_v23, %v2116_v21  ;;  %v2120_v30 = vpop.f32.mrf.mxu1  ;;  %v2119_v34 = vadd.f32 %v2118_v33, %v1619_v27  ;;  %v7898_v33 = vld [vmem:[%s6835_s6 + $0x190] sm:$0xff]  ;;  %v1044_v27 = vrot.slane %v1042_v16, 1 }
 0x2e8   : > { %v5493_v29 = vpack.c.bf16 %v5356_v24, %v5356_v24  ;;  %6577 = vmatmul.msk.bf16.gmra.mxu3 %vm1213_vm1, %v4119_v22  ;;  %v3144_v17 = vshll.u32 %v7898_v33, 16  ;;  %v4122_v22 = vrot.slane %v7898_v33, 1 }
 0x2e9   : > { %v4805_v31 = vadd.f32 %v4570_v15, %v3951_v25  ;;  %6086 = vmatmul.msk.bf16.gmra.mxu0 %vm1213_vm1, %v1029_v28  ;;  %v1038_v15 = vshrl.u32 %v7870_v37, 16  ;;  %v3142_v28 = vor.u32 %v3140_v20, %v3138_v56 }
 0x2ea   : > { %5631 = vst.msk [vmem:[%s6944_s14 + $0x120] sm:$0xf] %vm5558_vm5, %v5493_v29  ;;  %v3146_v29 = vrot.slane %v3144_v17, 1 }
 0x2eb   : > { %v4946_v32 = vadd.f32 %v7840_v59, %v4805_v31  ;;  %6502 = vmatmul.msk.bf16.gmra.mxu2 %vm1213_vm1, %v3131_v26  ;;  %v4573_v35 = vpop.f32.mrf.mxu3  ;;  %v1040_v25 = vor.u32 %v1038_v15, %v1036_v4  ;;  %v4123_v31 = vsel %vm4026_vm2, %v4120_v50, %v4122_v22 }
 0x2ed   : > { %vm5083_vm6 = vcmp.gt.f32.partialorder %v4946_v32, 0.0  ;;  %v5220_v39 = vmul.f32 0.2, %v4946_v32 }
 0x2ee   : > { %v3719_v36 = vpop.f32.mrf.mxu2  ;;  %v1621_v42 = vpop.f32.mrf.mxu0 }
 0x2ef   : > { %v5357_v40 = vsel %vm5083_vm6, %v4946_v32, %v5220_v39  ;;  %v3952_v41 = vadd.f32 %v3719_v36, %v2119_v34  ;;  %v2123_v47 = vpop.f32.mrf.mxu1  ;;  %v2121_v57 = vadd.f32 %v2120_v30, %v1621_v42  ;;  %v1045_v39 = vsel %vm657_vm3, %v1040_v25, %v1044_v27 }
 0x2f0   : > { %v5494_v46 = vpack.c.bf16 %v5357_v40, %v5357_v40 }
 0x2f1   : > { %v4806_v49 = vadd.f32 %v4573_v35, %v3952_v41 }
 0x2f2   : > { %5632 = vst.msk [vmem:[%s6944_s14 + $0x124] sm:$0xf] %vm5558_vm5, %v5494_v46  ;;  %6160 = vmatmul.msk.bf16.gmra.mxu1 %vm1213_vm1, %v7845_v63  ;;  %v3139_v63 = vsel %vm657_vm3, %v3134_v55, %v3138_v56  ;;  %v7920_v46 = vld [vmem:[%s6835_s6 + $0x188] sm:$0xff]  ;;  %v3148_v56 = vshrl.u32 %v7898_v33, 16 }
 0x2f3   : > { %v4947_v51 = vadd.f32 %v7840_v59, %v4806_v49  ;;  %v4575_v52 = vpop.f32.mrf.mxu3  ;;  %v1050_v53 = vshll.u32 %v7920_v46, 16 }
 0x2f5   : > { %vm5084_vm7 = vcmp.gt.f32.partialorder %v4947_v51, 0.0  ;;  %v5221_v54 = vmul.f32 0.2, %v4947_v51 }
 0x2f6   : > { %v3721_v60 = vpop.f32.mrf.mxu2  ;;  %v1624_v0 = vpop.f32.mrf.mxu0 }
 0x2f7   : > { %v5358_v61 = vsel %vm5084_vm7, %v4947_v51, %v5221_v54  ;;  %v3953_v62 = vadd.f32 %v3721_v60, %v2121_v57  ;;  %v2125_v1 = vpop.f32.mrf.mxu1  ;;  %v2124_v6 = vadd.f32 %v2123_v47, %v1624_v0  ;;  %v7923_v47 = vld [vmem:[%s6835_s6 + $0x198] sm:$0xff]  ;;  %v1052_v0 = vrot.slane %v1050_v53, 1 }
 0x2f8   : > { %v5495_v13 = vpack.c.bf16 %v5358_v61, %v5358_v61  ;;  %6578 = vmatmul.msk.bf16.gmra.mxu3 %vm1213_vm1, %v4121_v58  ;;  %v3152_v54 = vshll.u32 %v7923_v47, 16  ;;  %v4124_v58 = vrot.slane %v7923_v47, 1 }
 0x2f9   : > { %v4807_v3 = vadd.f32 %v4575_v52, %v3953_v62  ;;  %6087 = vmatmul.msk.bf16.gmra.mxu0 %vm1213_vm1, %v1037_v2  ;;  %v1046_v52 = vshrl.u32 %v7895_v9, 16  ;;  %v3150_v2 = vor.u32 %v3148_v56, %v3146_v29 }
 0x2fa   : > { %5633 = vst.msk [vmem:[%s6944_s14 + $0x128] sm:$0xf] %vm5558_vm5, %v5495_v13  ;;  %v3154_v13 = vrot.slane %v3152_v54, 1 }
 0x2fb   : > { %v4948_v5 = vadd.f32 %v7840_v59, %v4807_v3  ;;  %6503 = vmatmul.msk.bf16.gmra.mxu2 %vm1213_vm1, %v3139_v63  ;;  %v4578_v7 = vpop.f32.mrf.mxu3  ;;  %v1048_v62 = vor.u32 %v1046_v52, %v1044_v27  ;;  %v4125_v3 = vsel %vm4026_vm2, %v4122_v22, %v4124_v58 }
 0x2fd   : > { %vm5085_vm8 = vcmp.gt.f32.partialorder %v4948_v5, 0.0  ;;  %v5222_v10 = vmul.f32 0.2, %v4948_v5 }
 0x2fe   : > { %v3724_v11 = vpop.f32.mrf.mxu2  ;;  %v1626_v14 = vpop.f32.mrf.mxu0 }
 0x2ff   : > { %v5359_v8 = vsel %vm5085_vm8, %v4948_v5, %v5222_v10  ;;  %v3954_v12 = vadd.f32 %v3724_v11, %v2124_v6  ;;  %v2128_v19 = vpop.f32.mrf.mxu1  ;;  %v2126_v30 = vadd.f32 %v2125_v1, %v1626_v14  ;;  %v1053_v10 = vsel %vm657_vm3, %v1048_v62, %v1052_v0 }
 0x300   : > { %v5496_v18 = vpack.c.bf16 %v5359_v8, %v5359_v8 }
 0x301   : > { %v4808_v21 = vadd.f32 %v4578_v7, %v3954_v12 }
 0x302   : > { %5634 = vst.msk [vmem:[%s6944_s14 + $0x12c] sm:$0xf] %vm5558_vm5, %v5496_v18  ;;  %6161 = vmatmul.msk.bf16.gmra.mxu1 %vm1213_vm1, %v7870_v37  ;;  %v3147_v37 = vsel %vm657_vm3, %v3142_v28, %v3146_v29  ;;  %v7945_v18 = vld [vmem:[%s6835_s6 + $0x190] sm:$0xff]  ;;  %v3156_v29 = vshrl.u32 %v7923_v47, 16 }
 0x303   : > { %v4949_v23 = vadd.f32 %v7840_v59, %v4808_v21  ;;  %v4580_v24 = vpop.f32.mrf.mxu3  ;;  %v1058_v25 = vshll.u32 %v7945_v18, 16 }
 0x305   : > { %vm5086_vm9 = vcmp.gt.f32.partialorder %v4949_v23, 0.0  ;;  %v5223_v26 = vmul.f32 0.2, %v4949_v23 }
 0x306   : > { %v3726_v32 = vpop.f32.mrf.mxu2  ;;  %v1629_v38 = vpop.f32.mrf.mxu0 }
 0x307   : > { %v5360_v34 = vsel %vm5086_vm9, %v4949_v23, %v5223_v26  ;;  %v3955_v35 = vadd.f32 %v3726_v32, %v2126_v30  ;;  %v2130_v40 = vpop.f32.mrf.mxu1  ;;  %v2129_v43 = vadd.f32 %v2128_v19, %v1629_v38  ;;  %v7948_v19 = vld [vmem:[%s6835_s6 + $0x1a0] sm:$0xff]  ;;  %v1060_v38 = vrot.slane %v1058_v25, 1 }
 0x308   : > { %v5497_v36 = vpack.c.bf16 %v5360_v34, %v5360_v34  ;;  %6579 = vmatmul.msk.bf16.gmra.mxu3 %vm1213_vm1, %v4123_v31  ;;  %v3160_v26 = vshll.u32 %v7948_v19, 16  ;;  %v4126_v31 = vrot.slane %v7948_v19, 1 }
 0x309   : > { %v4809_v41 = vadd.f32 %v4580_v24, %v3955_v35  ;;  %6088 = vmatmul.msk.bf16.gmra.mxu0 %vm1213_vm1, %v1045_v39  ;;  %v1054_v24 = vshrl.u32 %v7920_v46, 16  ;;  %v3158_v39 = vor.u32 %v3156_v29, %v3154_v13 }
 0x30a   : > { %5635 = vst.msk [vmem:[%s6944_s14 + $0x130] sm:$0xf] %vm5558_vm5, %v5497_v36  ;;  %v3162_v36 = vrot.slane %v3160_v26, 1 }
 0x30b   : > { %v4950_v42 = vadd.f32 %v7840_v59, %v4809_v41  ;;  %6504 = vmatmul.msk.bf16.gmra.mxu2 %vm1213_vm1, %v3147_v37  ;;  %v4583_v44 = vpop.f32.mrf.mxu3  ;;  %v1056_v35 = vor.u32 %v1054_v24, %v1052_v0  ;;  %v4127_v41 = vsel %vm4026_vm2, %v4124_v58, %v4126_v31 }
 0x30d   : > { %vm5087_vm10 = vcmp.gt.f32.partialorder %v4950_v42, 0.0  ;;  %v5224_v48 = vmul.f32 0.2, %v4950_v42 }
 0x30e   : > { %v3729_v45 = vpop.f32.mrf.mxu2  ;;  %v1631_v51 = vpop.f32.mrf.mxu0 }
 0x30f   : > { %v5361_v49 = vsel %vm5087_vm10, %v4950_v42, %v5224_v48  ;;  %v3956_v50 = vadd.f32 %v3729_v45, %v2129_v43  ;;  %v2133_v55 = vpop.f32.mrf.mxu1  ;;  %v2131_v1 = vadd.f32 %v2130_v40, %v1631_v51  ;;  %v1061_v48 = vsel %vm657_vm3, %v1056_v35, %v1060_v38 }
 0x310   : > { %v5498_v4 = vpack.c.bf16 %v5361_v49, %v5361_v49 }
 0x311   : > { %v4810_v57 = vadd.f32 %v4583_v44, %v3956_v50 }
 0x312   : > { %5636 = vst.msk [vmem:[%s6944_s14 + $0x134] sm:$0xf] %vm5558_vm5, %v5498_v4  ;;  %6162 = vmatmul.msk.bf16.gmra.mxu1 %vm1213_vm1, %v7895_v9  ;;  %v3155_v9 = vsel %vm657_vm3, %v3150_v2, %v3154_v13  ;;  %v7970_v4 = vld [vmem:[%s6835_s6 + $0x198] sm:$0xff]  ;;  %v3164_v13 = vshrl.u32 %v7948_v19, 16 }
 0x313   : > { %v4951_v60 = vadd.f32 %v7840_v59, %v4810_v57  ;;  %v4585_v61 = vpop.f32.mrf.mxu3  ;;  %v1066_v62 = vshll.u32 %v7970_v4, 16 }
 0x315   : > { %vm5088_vm11 = vcmp.gt.f32.partialorder %v4951_v60, 0.0  ;;  %v5225_v63 = vmul.f32 0.2, %v4951_v60 }
 0x316   : > { %v3731_v5 = vpop.f32.mrf.mxu2  ;;  %v1634_v33 = vpop.f32.mrf.mxu0 }
 0x317   : > { %v5362_v6 = vsel %vm5088_vm11, %v4951_v60, %v5225_v63  ;;  %v3957_v7 = vadd.f32 %v3731_v5, %v2131_v1  ;;  %v2135_v8 = vpop.f32.mrf.mxu1  ;;  %v2134_v15 = vadd.f32 %v2133_v55, %v1634_v33  ;;  %v7973_v55 = vld [vmem:[%s6835_s6 + $0x1a8] sm:$0xff]  ;;  %v1068_v33 = vrot.slane %v1066_v62, 1 }
 0x318   : > { %v5499_v11 = vpack.c.bf16 %v5362_v6, %v5362_v6  ;;  %6580 = vmatmul.msk.bf16.gmra.mxu3 %vm1213_vm1, %v4125_v3  ;;  %v3168_v63 = vshll.u32 %v7973_v55, 16  ;;  %v4128_v3 = vrot.slane %v7973_v55, 1 }
 0x319   : > { %v4811_v12 = vadd.f32 %v4585_v61, %v3957_v7  ;;  %6089 = vmatmul.msk.bf16.gmra.mxu0 %vm1213_vm1, %v1053_v10  ;;  %v1062_v61 = vshrl.u32 %v7945_v18, 16  ;;  %v3166_v10 = vor.u32 %v3164_v13, %v3162_v36 }
 0x31a   : > { %5637 = vst.msk [vmem:[%s6944_s14 + $0x138] sm:$0xf] %vm5558_vm5, %v5499_v11  ;;  %v3170_v11 = vrot.slane %v3168_v63, 1 }
 0x31b   : > { %v4952_v14 = vadd.f32 %v7840_v59, %v4811_v12  ;;  %6505 = vmatmul.msk.bf16.gmra.mxu2 %vm1213_vm1, %v3155_v9  ;;  %v4588_v16 = vpop.f32.mrf.mxu3  ;;  %v1064_v7 = vor.u32 %v1062_v61, %v1060_v38  ;;  %v4129_v12 = vsel %vm4026_vm2, %v4126_v31, %v4128_v3 }
 0x31d   : > { %vm5089_vm12 = vcmp.gt.f32.partialorder %v4952_v14, 0.0  ;;  %v5226_v20 = vmul.f32 0.2, %v4952_v14 }
 0x31e   : > { %v3734_v17 = vpop.f32.mrf.mxu2  ;;  %v1636_v23 = vpop.f32.mrf.mxu0 }
 0x31f   : > { %v5363_v21 = vsel %vm5089_vm12, %v4952_v14, %v5226_v20  ;;  %v3958_v22 = vadd.f32 %v3734_v17, %v2134_v15  ;;  %v2138_v28 = vpop.f32.mrf.mxu1  ;;  %v2136_v40 = vadd.f32 %v2135_v8, %v1636_v23  ;;  %v1069_v20 = vsel %vm657_vm3, %v1064_v7, %v1068_v33 }
 0x320   : > { %v5500_v27 = vpack.c.bf16 %v5363_v21, %v5363_v21 }
 0x321   : > { %v4812_v30 = vadd.f32 %v4588_v16, %v3958_v22 }
 0x322   : > { %5638 = vst.msk [vmem:[%s6944_s14 + $0x13c] sm:$0xf] %vm5558_vm5, %v5500_v27  ;;  %6163 = vmatmul.msk.bf16.gmra.mxu1 %vm1213_vm1, %v7920_v46  ;;  %v3163_v46 = vsel %vm657_vm3, %v3158_v39, %v3162_v36  ;;  %v7995_v27 = vld [vmem:[%s6835_s6 + $0x1a0] sm:$0xff]  ;;  %v3172_v36 = vshrl.u32 %v7973_v55, 16 }
 0x323   : > { %v4953_v32 = vadd.f32 %v7840_v59, %v4812_v30  ;;  %v4590_v34 = vpop.f32.mrf.mxu3  ;;  %v1074_v35 = vshll.u32 %v7995_v27, 16 }
 0x325   : > { %vm5090_vm13 = vcmp.gt.f32.partialorder %v4953_v32, 0.0  ;;  %v5227_v37 = vmul.f32 0.2, %v4953_v32 }
 0x326   : > { %v3736_v42 = vpop.f32.mrf.mxu2  ;;  %v1639_v47 = vpop.f32.mrf.mxu0 }
 0x327   : > { %v5364_v43 = vsel %vm5090_vm13, %v4953_v32, %v5227_v37  ;;  %v3959_v44 = vadd.f32 %v3736_v42, %v2136_v40  ;;  %v2140_v49 = vpop.f32.mrf.mxu1  ;;  %v2139_v52 = vadd.f32 %v2138_v28, %v1639_v47  ;;  %v7998_v28 = vld [vmem:[%s6835_s6 + $0x1b0] sm:$0xff]  ;;  %v1076_v47 = vrot.slane %v1074_v35, 1 }
 0x328   : > { %v5501_v45 = vpack.c.bf16 %v5364_v43, %v5364_v43  ;;  %6581 = vmatmul.msk.bf16.gmra.mxu3 %vm1213_vm1, %v4127_v41  ;;  %v3176_v37 = vshll.u32 %v7998_v28, 16  ;;  %v4130_v41 = vrot.slane %v7998_v28, 1 }
 0x329   : > { %v4813_v50 = vadd.f32 %v4590_v34, %v3959_v44  ;;  %6090 = vmatmul.msk.bf16.gmra.mxu0 %vm1213_vm1, %v1061_v48  ;;  %v1070_v34 = vshrl.u32 %v7970_v4, 16  ;;  %v3174_v48 = vor.u32 %v3172_v36, %v3170_v11 }
 0x32a   : > { %5639 = vst.msk [vmem:[%s6944_s14 + $0x140] sm:$0xf] %vm5558_vm5, %v5501_v45  ;;  %v3178_v45 = vrot.slane %v3176_v37, 1 }
 0x32b   : > { %v4954_v51 = vadd.f32 %v7840_v59, %v4813_v50  ;;  %6506 = vmatmul.msk.bf16.gmra.mxu2 %vm1213_vm1, %v3163_v46  ;;  %v4593_v53 = vpop.f32.mrf.mxu3  ;;  %v1072_v44 = vor.u32 %v1070_v34, %v1068_v33  ;;  %v4131_v50 = vsel %vm4026_vm2, %v4128_v3, %v4130_v41 }
 0x32d   : > { %vm5091_vm14 = vcmp.gt.f32.partialorder %v4954_v51, 0.0  ;;  %v5228_v56 = vmul.f32 0.2, %v4954_v51 }
 0x32e   : > { %v3739_v54 = vpop.f32.mrf.mxu2  ;;  %v1641_v60 = vpop.f32.mrf.mxu0 }
 0x32f   : > { %v5365_v57 = vsel %vm5091_vm14, %v4954_v51, %v5228_v56  ;;  %v3960_v58 = vadd.f32 %v3739_v54, %v2139_v52  ;;  %v2143_v2 = vpop.f32.mrf.mxu1  ;;  %v2141_v8 = vadd.f32 %v2140_v49, %v1641_v60  ;;  %v1077_v56 = vsel %vm657_vm3, %v1072_v44, %v1076_v47 }
 0x330   : > { %v5502_v0 = vpack.c.bf16 %v5365_v57, %v5365_v57 }
 0x331   : > { %v4814_v1 = vadd.f32 %v4593_v53, %v3960_v58 }
 0x332   : > { %5640 = vst.msk [vmem:[%s6944_s14 + $0x144] sm:$0xf] %vm5558_vm5, %v5502_v0  ;;  %6164 = vmatmul.msk.bf16.gmra.mxu1 %vm1213_vm1, %v7945_v18  ;;  %v3171_v18 = vsel %vm657_vm3, %v3166_v10, %v3170_v11  ;;  %v8020_v0 = vld [vmem:[%s6835_s6 + $0x1a8] sm:$0xff]  ;;  %v3180_v11 = vshrl.u32 %v7998_v28, 16 }
 0x333   : > { %v4955_v5 = vadd.f32 %v7840_v59, %v4814_v1  ;;  %v4595_v6 = vpop.f32.mrf.mxu3  ;;  %v1082_v7 = vshll.u32 %v8020_v0, 16 }
 0x335   : > { %vm5092_vm15 = vcmp.gt.f32.partialorder %v4955_v5, 0.0  ;;  %v5229_v9 = vmul.f32 0.2, %v4955_v5 }
 0x336   : > { %v3741_v14 = vpop.f32.mrf.mxu2  ;;  %v1644_v19 = vpop.f32.mrf.mxu0 }
 0x337   : > { %v5366_v15 = vsel %vm5092_vm15, %v4955_v5, %v5229_v9  ;;  %v3961_v16 = vadd.f32 %v3741_v14, %v2141_v8  ;;  %v2145_v21 = vpop.f32.mrf.mxu1  ;;  %v2144_v24 = vadd.f32 %v2143_v2, %v1644_v19  ;;  %v8023_v2 = vld [vmem:[%s6835_s6 + $0x1b8] sm:$0xff]  ;;  %v1084_v19 = vrot.slane %v1082_v7, 1 }
 0x338   : > { %v5503_v17 = vpack.c.bf16 %v5366_v15, %v5366_v15  ;;  %6582 = vmatmul.msk.bf16.gmra.mxu3 %vm1213_vm1, %v4129_v12  ;;  %v3184_v9 = vshll.u32 %v8023_v2, 16  ;;  %v4132_v12 = vrot.slane %v8023_v2, 1 }
 0x339   : > { %v4815_v22 = vadd.f32 %v4595_v6, %v3961_v16  ;;  %6091 = vmatmul.msk.bf16.gmra.mxu0 %vm1213_vm1, %v1069_v20  ;;  %v1078_v6 = vshrl.u32 %v7995_v27, 16  ;;  %v3182_v20 = vor.u32 %v3180_v11, %v3178_v45 }
 0x33a   : > { %5641 = vst.msk [vmem:[%s6944_s14 + $0x148] sm:$0xf] %vm5558_vm5, %v5503_v17  ;;  %v3186_v17 = vrot.slane %v3184_v9, 1 }
 0x33b   : > { %v4956_v23 = vadd.f32 %v7840_v59, %v4815_v22  ;;  %6507 = vmatmul.msk.bf16.gmra.mxu2 %vm1213_vm1, %v3171_v18  ;;  %v4598_v25 = vpop.f32.mrf.mxu3  ;;  %v1080_v16 = vor.u32 %v1078_v6, %v1076_v47  ;;  %v4133_v22 = vsel %vm4026_vm2, %v4130_v41, %v4132_v12 }
 0x33d   : > { %vm5093_vm0 = vcmp.gt.f32.partialorder %v4956_v23, 0.0  ;;  %v5230_v29 = vmul.f32 0.2, %v4956_v23 }
 0x33e   : > { %v3744_v26 = vpop.f32.mrf.mxu2  ;;  %v1646_v32 = vpop.f32.mrf.mxu0 }
 0x33f   : > { %v5367_v30 = vsel %vm5093_vm0, %v4956_v23, %v5230_v29  ;;  %v3962_v31 = vadd.f32 %v3744_v26, %v2144_v24  ;;  %v2148_v39 = vpop.f32.mrf.mxu1  ;;  %v2146_v49 = vadd.f32 %v2145_v21, %v1646_v32  ;;  %v1085_v29 = vsel %vm657_vm3, %v1080_v16, %v1084_v19 }
 0x340   : > { %v5504_v38 = vpack.c.bf16 %v5367_v30, %v5367_v30 }
 0x341   : > { %v4816_v40 = vadd.f32 %v4598_v25, %v3962_v31 }
 0x342   : > { %5642 = vst.msk [vmem:[%s6944_s14 + $0x14c] sm:$0xf] %vm5558_vm5, %v5504_v38  ;;  %6165 = vmatmul.msk.bf16.gmra.mxu1 %vm1213_vm1, %v7970_v4  ;;  %v3179_v4 = vsel %vm657_vm3, %v3174_v48, %v3178_v45  ;;  %v8045_v38 = vld [vmem:[%s6835_s6 + $0x1b0] sm:$0xff]  ;;  %v3188_v45 = vshrl.u32 %v8023_v2, 16 }
 0x343   : > { %v4957_v42 = vadd.f32 %v7840_v59, %v4816_v40  ;;  %v4600_v43 = vpop.f32.mrf.mxu3  ;;  %v1090_v44 = vshll.u32 %v8045_v38, 16 }
 0x345   : > { %vm5094_vm4 = vcmp.gt.f32.partialorder %v4957_v42, 0.0  ;;  %v5231_v46 = vmul.f32 0.2, %v4957_v42 }
 0x346   : > { %v3746_v51 = vpop.f32.mrf.mxu2  ;;  %v1649_v55 = vpop.f32.mrf.mxu0 }
 0x347   : > { %v5368_v52 = vsel %vm5094_vm4, %v4957_v42, %v5231_v46  ;;  %v3963_v53 = vadd.f32 %v3746_v51, %v2146_v49  ;;  %v2150_v57 = vpop.f32.mrf.mxu1  ;;  %v2149_v61 = vadd.f32 %v2148_v39, %v1649_v55  ;;  %v8048_v39 = vld [vmem:[%s6835_s6 + $0x1c0] sm:$0xff]  ;;  %v1092_v55 = vrot.slane %v1090_v44, 1 }
 0x348   : > { %v5505_v54 = vpack.c.bf16 %v5368_v52, %v5368_v52  ;;  %6583 = vmatmul.msk.bf16.gmra.mxu3 %vm1213_vm1, %v4131_v50  ;;  %v3192_v46 = vshll.u32 %v8048_v39, 16  ;;  %v4134_v50 = vrot.slane %v8048_v39, 1 }
 0x349   : > { %v4817_v58 = vadd.f32 %v4600_v43, %v3963_v53  ;;  %6092 = vmatmul.msk.bf16.gmra.mxu0 %vm1213_vm1, %v1077_v56  ;;  %v1086_v43 = vshrl.u32 %v8020_v0, 16  ;;  %v3190_v56 = vor.u32 %v3188_v45, %v3186_v17 }
 0x34a   : > { %5643 = vst.msk [vmem:[%s6944_s14 + $0x150] sm:$0xf] %vm5558_vm5, %v5505_v54  ;;  %v3194_v54 = vrot.slane %v3192_v46, 1 }
 0x34b   : > { %v4958_v60 = vadd.f32 %v7840_v59, %v4817_v58  ;;  %6508 = vmatmul.msk.bf16.gmra.mxu2 %vm1213_vm1, %v3179_v4  ;;  %v4603_v62 = vpop.f32.mrf.mxu3  ;;  %v1088_v53 = vor.u32 %v1086_v43, %v1084_v19  ;;  %v4135_v58 = vsel %vm4026_vm2, %v4132_v12, %v4134_v50 }
 0x34d   : > { %vm5095_vm6 = vcmp.gt.f32.partialorder %v4958_v60, 0.0  ;;  %v5232_v13 = vmul.f32 0.2, %v4958_v60 }
 0x34e   : > { %v3749_v63 = vpop.f32.mrf.mxu2  ;;  %v1651_v5 = vpop.f32.mrf.mxu0 }
 0x34f   : > { %v5369_v1 = vsel %vm5095_vm6, %v4958_v60, %v5232_v13  ;;  %v3964_v3 = vadd.f32 %v3749_v63, %v2149_v61  ;;  %v2153_v10 = vpop.f32.mrf.mxu1  ;;  %v2151_v21 = vadd.f32 %v2150_v57, %v1651_v5  ;;  %v1093_v13 = vsel %vm657_vm3, %v1088_v53, %v1092_v55 }
 0x350   : > { %v5506_v33 = vpack.c.bf16 %v5369_v1, %v5369_v1 }
 0x351   : > { %v4818_v8 = vadd.f32 %v4603_v62, %v3964_v3 }
 0x352   : > { %5644 = vst.msk [vmem:[%s6944_s14 + $0x154] sm:$0xf] %vm5558_vm5, %v5506_v33  ;;  %6166 = vmatmul.msk.bf16.gmra.mxu1 %vm1213_vm1, %v7995_v27  ;;  %v3187_v27 = vsel %vm657_vm3, %v3182_v20, %v3186_v17  ;;  %v8070_v33 = vld [vmem:[%s6835_s6 + $0x1b8] sm:$0xff]  ;;  %v3196_v17 = vshrl.u32 %v8048_v39, 16 }
 0x353   : > { %v4959_v14 = vadd.f32 %v7840_v59, %v4818_v8  ;;  %v4605_v15 = vpop.f32.mrf.mxu3  ;;  %v1098_v16 = vshll.u32 %v8070_v33, 16 }
 0x355   : > { %vm5096_vm7 = vcmp.gt.f32.partialorder %v4959_v14, 0.0  ;;  %v5233_v18 = vmul.f32 0.2, %v4959_v14 }
 0x356   : > { %v3751_v23 = vpop.f32.mrf.mxu2  ;;  %v1654_v28 = vpop.f32.mrf.mxu0 }
 0x357   : > { %v5370_v24 = vsel %vm5096_vm7, %v4959_v14, %v5233_v18  ;;  %v3965_v25 = vadd.f32 %v3751_v23, %v2151_v21  ;;  %v2155_v30 = vpop.f32.mrf.mxu1  ;;  %v2154_v34 = vadd.f32 %v2153_v10, %v1654_v28  ;;  %v8073_v10 = vld [vmem:[%s6835_s6 + $0x1c8] sm:$0xff]  ;;  %v1100_v28 = vrot.slane %v1098_v16, 1 }
 0x358   : > { %v5507_v26 = vpack.c.bf16 %v5370_v24, %v5370_v24  ;;  %6584 = vmatmul.msk.bf16.gmra.mxu3 %vm1213_vm1, %v4133_v22  ;;  %v3200_v18 = vshll.u32 %v8073_v10, 16  ;;  %v4136_v22 = vrot.slane %v8073_v10, 1 }
 0x359   : > { %v4819_v31 = vadd.f32 %v4605_v15, %v3965_v25  ;;  %6093 = vmatmul.msk.bf16.gmra.mxu0 %vm1213_vm1, %v1085_v29  ;;  %v1094_v15 = vshrl.u32 %v8045_v38, 16  ;;  %v3198_v29 = vor.u32 %v3196_v17, %v3194_v54 }
 0x35a   : > { %5645 = vst.msk [vmem:[%s6944_s14 + $0x158] sm:$0xf] %vm5558_vm5, %v5507_v26  ;;  %v3202_v26 = vrot.slane %v3200_v18, 1 }
 0x35b   : > { %v4960_v32 = vadd.f32 %v7840_v59, %v4819_v31  ;;  %6509 = vmatmul.msk.bf16.gmra.mxu2 %vm1213_vm1, %v3187_v27  ;;  %v4608_v35 = vpop.f32.mrf.mxu3  ;;  %v1096_v25 = vor.u32 %v1094_v15, %v1092_v55  ;;  %v4137_v31 = vsel %vm4026_vm2, %v4134_v50, %v4136_v22 }
 0x35d   : > { %vm5097_vm8 = vcmp.gt.f32.partialorder %v4960_v32, 0.0  ;;  %v5234_v36 = vmul.f32 0.2, %v4960_v32 }
 0x35e   : > { %v3754_v37 = vpop.f32.mrf.mxu2  ;;  %v1656_v42 = vpop.f32.mrf.mxu0 }
 0x35f   : > { %v5371_v40 = vsel %vm5097_vm8, %v4960_v32, %v5234_v36  ;;  %v3966_v41 = vadd.f32 %v3754_v37, %v2154_v34  ;;  %v2158_v48 = vpop.f32.mrf.mxu1  ;;  %v2156_v57 = vadd.f32 %v2155_v30, %v1656_v42  ;;  %v1101_v36 = vsel %vm657_vm3, %v1096_v25, %v1100_v28 }
 0x360   : > { %v5508_v47 = vpack.c.bf16 %v5371_v40, %v5371_v40 }
 0x361   : > { %v4820_v49 = vadd.f32 %v4608_v35, %v3966_v41 }
 0x362   : > { %5646 = vst.msk [vmem:[%s6944_s14 + $0x15c] sm:$0xf] %vm5558_vm5, %v5508_v47  ;;  %6167 = vmatmul.msk.bf16.gmra.mxu1 %vm1213_vm1, %v8020_v0  ;;  %v3195_v0 = vsel %vm657_vm3, %v3190_v56, %v3194_v54  ;;  %v8095_v47 = vld [vmem:[%s6835_s6 + $0x1c0] sm:$0xff]  ;;  %v3204_v54 = vshrl.u32 %v8073_v10, 16 }
 0x363   : > { %v4961_v51 = vadd.f32 %v7840_v59, %v4820_v49  ;;  %v4610_v52 = vpop.f32.mrf.mxu3  ;;  %v1106_v53 = vshll.u32 %v8095_v47, 16 }
 0x365   : > { %vm5098_vm9 = vcmp.gt.f32.partialorder %v4961_v51, 0.0  ;;  %v5235_v4 = vmul.f32 0.2, %v4961_v51 }
 0x366   : > { %v3756_v60 = vpop.f32.mrf.mxu2  ;;  %v1659_v2 = vpop.f32.mrf.mxu0 }
 0x367   : > { %v5372_v61 = vsel %vm5098_vm9, %v4961_v51, %v5235_v4  ;;  %v3967_v62 = vadd.f32 %v3756_v60, %v2156_v57  ;;  %v2160_v1 = vpop.f32.mrf.mxu1  ;;  %v2159_v6 = vadd.f32 %v2158_v48, %v1659_v2  ;;  %v8098_v48 = vld [vmem:[%s6835_s6 + $0x1d0] sm:$0xff]  ;;  %v1108_v2 = vrot.slane %v1106_v53, 1 }
 0x368   : > { %v5509_v63 = vpack.c.bf16 %v5372_v61, %v5372_v61  ;;  %6585 = vmatmul.msk.bf16.gmra.mxu3 %vm1213_vm1, %v4135_v58  ;;  %v3208_v4 = vshll.u32 %v8098_v48, 16  ;;  %v4138_v58 = vrot.slane %v8098_v48, 1 }
 0x369   : > { %v4821_v3 = vadd.f32 %v4610_v52, %v3967_v62  ;;  %6094 = vmatmul.msk.bf16.gmra.mxu0 %vm1213_vm1, %v1093_v13  ;;  %v1102_v52 = vshrl.u32 %v8070_v33, 16  ;;  %v3206_v13 = vor.u32 %v3204_v54, %v3202_v26 }
 0x36a   : > { %5647 = vst.msk [vmem:[%s6944_s14 + $0x160] sm:$0xf] %vm5558_vm5, %v5509_v63  ;;  %v3210_v63 = vrot.slane %v3208_v4, 1 }
 0x36b   : > { %v4962_v5 = vadd.f32 %v7840_v59, %v4821_v3  ;;  %6510 = vmatmul.msk.bf16.gmra.mxu2 %vm1213_vm1, %v3195_v0  ;;  %v4613_v7 = vpop.f32.mrf.mxu3  ;;  %v1104_v62 = vor.u32 %v1102_v52, %v1100_v28  ;;  %v4139_v3 = vsel %vm4026_vm2, %v4136_v22, %v4138_v58 }
 0x36d   : > { %vm5099_vm10 = vcmp.gt.f32.partialorder %v4962_v5, 0.0  ;;  %v5236_v11 = vmul.f32 0.2, %v4962_v5 }
 0x36e   : > { %v3759_v9 = vpop.f32.mrf.mxu2  ;;  %v1661_v14 = vpop.f32.mrf.mxu0 }
 0x36f   : > { %v5373_v8 = vsel %vm5099_vm10, %v4962_v5, %v5236_v11  ;;  %v3968_v12 = vadd.f32 %v3759_v9, %v2159_v6  ;;  %v2163_v20 = vpop.f32.mrf.mxu1  ;;  %v2161_v30 = vadd.f32 %v2160_v1, %v1661_v14  ;;  %v1109_v11 = vsel %vm657_vm3, %v1104_v62, %v1108_v2 }
 0x370   : > { %v5510_v19 = vpack.c.bf16 %v5373_v8, %v5373_v8 }
 0x371   : > { %v4822_v21 = vadd.f32 %v4613_v7, %v3968_v12 }
 0x372   : > { %5648 = vst.msk [vmem:[%s6944_s14 + $0x164] sm:$0xf] %vm5558_vm5, %v5510_v19  ;;  %6168 = vmatmul.msk.bf16.gmra.mxu1 %vm1213_vm1, %v8045_v38  ;;  %v3203_v38 = vsel %vm657_vm3, %v3198_v29, %v3202_v26  ;;  %v8120_v19 = vld [vmem:[%s6835_s6 + $0x1c8] sm:$0xff]  ;;  %v3212_v26 = vshrl.u32 %v8098_v48, 16 }
 0x373   : > { %v4963_v23 = vadd.f32 %v7840_v59, %v4822_v21  ;;  %v4615_v24 = vpop.f32.mrf.mxu3  ;;  %v1114_v25 = vshll.u32 %v8120_v19, 16 }
 0x375   : > { %vm5100_vm11 = vcmp.gt.f32.partialorder %v4963_v23, 0.0  ;;  %v5237_v27 = vmul.f32 0.2, %v4963_v23 }
 0x376   : > { %v3761_v32 = vpop.f32.mrf.mxu2  ;;  %v1664_v39 = vpop.f32.mrf.mxu0 }
 0x377   : > { %v5374_v34 = vsel %vm5100_vm11, %v4963_v23, %v5237_v27  ;;  %v3969_v35 = vadd.f32 %v3761_v32, %v2161_v30  ;;  %v2165_v40 = vpop.f32.mrf.mxu1  ;;  %v2164_v43 = vadd.f32 %v2163_v20, %v1664_v39  ;;  %v8123_v20 = vld [vmem:[%s6835_s6 + $0x1d8] sm:$0xff]  ;;  %v1116_v39 = vrot.slane %v1114_v25, 1 }
 0x378   : > { %v5511_v37 = vpack.c.bf16 %v5374_v34, %v5374_v34  ;;  %6586 = vmatmul.msk.bf16.gmra.mxu3 %vm1213_vm1, %v4137_v31  ;;  %v3216_v27 = vshll.u32 %v8123_v20, 16  ;;  %v4140_v31 = vrot.slane %v8123_v20, 1 }
 0x379   : > { %v4823_v41 = vadd.f32 %v4615_v24, %v3969_v35  ;;  %6095 = vmatmul.msk.bf16.gmra.mxu0 %vm1213_vm1, %v1101_v36  ;;  %v1110_v24 = vshrl.u32 %v8095_v47, 16  ;;  %v3214_v36 = vor.u32 %v3212_v26, %v3210_v63 }
 0x37a   : > { %5649 = vst.msk [vmem:[%s6944_s14 + $0x168] sm:$0xf] %vm5558_vm5, %v5511_v37  ;;  %v3218_v37 = vrot.slane %v3216_v27, 1 }
 0x37b   : > { %v4964_v42 = vadd.f32 %v7840_v59, %v4823_v41  ;;  %6511 = vmatmul.msk.bf16.gmra.mxu2 %vm1213_vm1, %v3203_v38  ;;  %v4618_v44 = vpop.f32.mrf.mxu3  ;;  %v1112_v35 = vor.u32 %v1110_v24, %v1108_v2  ;;  %v4141_v41 = vsel %vm4026_vm2, %v4138_v58, %v4140_v31 }
 0x37d   : > { %vm5101_vm12 = vcmp.gt.f32.partialorder %v4964_v42, 0.0  ;;  %v5238_v45 = vmul.f32 0.2, %v4964_v42  ;;  %v1117_v48 = vsel %vm657_vm3, %v1112_v35, %v1116_v39 }
 0x37e   : > { %v3764_v46 = vpop.f32.mrf.mxu2  ;;  %v1666_v51 = vpop.f32.mrf.mxu0 }
 0x37f   : > { %v5375_v49 = vsel %vm5101_vm12, %v4964_v42, %v5238_v45  ;;  %v3970_v50 = vadd.f32 %v3764_v46, %v2164_v43  ;;  %v2168_v56 = vpop.f32.mrf.mxu1  ;;  %v2166_v1 = vadd.f32 %v2165_v40, %v1666_v51 }
 0x380   : > { %v5512_v55 = vpack.c.bf16 %v5375_v49, %v5375_v49 }
 0x381   : > { %v4824_v57 = vadd.f32 %v4618_v44, %v3970_v50  ;;  %v8145_v50 = vld [vmem:[%s8507_s2] ss:$0 sm:$0xff] }
 0x382   : > { %5650 = vst.msk [vmem:[%s6944_s14 + $0x16c] sm:$0xf] %vm5558_vm5, %v5512_v55  ;;  %6169 = vmatmul.msk.bf16.gmra.mxu1 %vm1213_vm1, %v8070_v33  ;;  %v3211_v33 = vsel %vm657_vm3, %v3206_v13, %v3210_v63  ;;  %v8150_v55 = vld [vmem:[%s6835_s6 + $0x1d0] sm:$0xff]  ;;  %v3220_v63 = vshrl.u32 %v8123_v20, 16 }
 0x383   : > { %v4965_v60 = vadd.f32 %v7840_v59, %v4824_v57  ;;  %v4620_v61 = vpop.f32.mrf.mxu3  ;;  %v1122_v62 = vshll.u32 %v8150_v55, 16 }
 0x385   : > { %vm5102_vm13 = vcmp.gt.f32.partialorder %v4965_v60, 0.0  ;;  %v5239_v0 = vmul.f32 0.2, %v4965_v60 }
 0x386   : > { %v3766_v5 = vpop.f32.mrf.mxu2  ;;  %v1669_v10 = vpop.f32.mrf.mxu0 }
 0x387   : > { %v5376_v6 = vsel %vm5102_vm13, %v4965_v60, %v5239_v0  ;;  %v3971_v7 = vadd.f32 %v3766_v5, %v2166_v1  ;;  %v2170_v8 = vpop.f32.mrf.mxu1  ;;  %v2169_v15 = vadd.f32 %v2168_v56, %v1669_v10  ;;  %v8153_v56 = vld [vmem:[%s6835_s6 + $0x1e0] sm:$0xff]  ;;  %v1124_v10 = vrot.slane %v1122_v62, 1 }
 0x388   : > { %v5513_v9 = vpack.c.bf16 %v5376_v6, %v5376_v6  ;;  %6587 = vmatmul.msk.bf16.gmra.mxu3 %vm1213_vm1, %v4139_v3  ;;  %v3224_v0 = vshll.u32 %v8153_v56, 16  ;;  %v4142_v3 = vrot.slane %v8153_v56, 1 }
 0x389   : > { %v4825_v12 = vadd.f32 %v4620_v61, %v3971_v7  ;;  %6096 = vmatmul.msk.bf16.gmra.mxu0 %vm1213_vm1, %v1109_v11  ;;  %v1118_v61 = vshrl.u32 %v8120_v19, 16  ;;  %v3222_v11 = vor.u32 %v3220_v63, %v3218_v37 }
 0x38a   : > { %5651 = vst.msk [vmem:[%s6944_s14 + $0x170] sm:$0xf] %vm5558_vm5, %v5513_v9  ;;  %v3226_v9 = vrot.slane %v3224_v0, 1 }
 0x38b   : > { %v4966_v14 = vadd.f32 %v7840_v59, %v4825_v12  ;;  %6512 = vmatmul.msk.bf16.gmra.mxu2 %vm1213_vm1, %v3211_v33  ;;  %v4623_v16 = vpop.f32.mrf.mxu3  ;;  %v1120_v7 = vor.u32 %v1118_v61, %v1116_v39  ;;  %v4143_v12 = vsel %vm4026_vm2, %v4140_v31, %v4142_v3 }
 0x38d   : > { %vm5103_vm14 = vcmp.gt.f32.partialorder %v4966_v14, 0.0  ;;  %v5240_v17 = vmul.f32 0.2, %v4966_v14 }
 0x38e   : > { %v3769_v18 = vpop.f32.mrf.mxu2  ;;  %v1671_v23 = vpop.f32.mrf.mxu0 }
 0x38f   : > { %v5377_v21 = vsel %vm5103_vm14, %v4966_v14, %v5240_v17  ;;  %v3972_v22 = vadd.f32 %v3769_v18, %v2169_v15  ;;  %v2173_v29 = vpop.f32.mrf.mxu1  ;;  %v2171_v40 = vadd.f32 %v2170_v8, %v1671_v23  ;;  %v1125_v17 = vsel %vm657_vm3, %v1120_v7, %v1124_v10 }
 0x390   : > { %v5514_v28 = vpack.c.bf16 %v5377_v21, %v5377_v21 }
 0x391   : > { %v4826_v30 = vadd.f32 %v4623_v16, %v3972_v22 }
 0x392   : > { %5652 = vst.msk [vmem:[%s6944_s14 + $0x174] sm:$0xf] %vm5558_vm5, %v5514_v28  ;;  %6170 = vmatmul.msk.bf16.gmra.mxu1 %vm1213_vm1, %v8095_v47  ;;  %v3219_v47 = vsel %vm657_vm3, %v3214_v36, %v3218_v37  ;;  %v8175_v28 = vld [vmem:[%s6835_s6 + $0x1d8] sm:$0xff]  ;;  %v3228_v37 = vshrl.u32 %v8153_v56, 16 }
 0x393   : > { %v4967_v32 = vadd.f32 %v7840_v59, %v4826_v30  ;;  %v4625_v34 = vpop.f32.mrf.mxu3  ;;  %v1130_v35 = vshll.u32 %v8175_v28, 16 }
 0x395   : > { %vm5104_vm15 = vcmp.gt.f32.partialorder %v4967_v32, 0.0  ;;  %v5241_v38 = vmul.f32 0.2, %v4967_v32 }
 0x396   : > { %v3771_v42 = vpop.f32.mrf.mxu2  ;;  %v1674_v59 = vpop.f32.mrf.mxu0 }
 0x397   : > { %v5378_v43 = vsel %vm5104_vm15, %v4967_v32, %v5241_v38  ;;  %v3973_v44 = vadd.f32 %v3771_v42, %v2171_v40  ;;  %v2175_v46 = vpop.f32.mrf.mxu1  ;;  %v2174_v52 = vadd.f32 %v2173_v29, %v1674_v59  ;;  %v8178_v29 = vld [vmem:[%s6835_s6 + $0x1e8] sm:$0xff]  ;;  %v1132_v59 = vrot.slane %v1130_v35, 1 }
 0x398   : > { %v5515_v45 = vpack.c.bf16 %v5378_v43, %v5378_v43  ;;  %6588 = vmatmul.msk.bf16.gmra.mxu3 %vm1213_vm1, %v4141_v41  ;;  %v3232_v38 = vshll.u32 %v8178_v29, 16  ;;  %v4144_v41 = vrot.slane %v8178_v29, 1 }
 0x399   : > { %v4827_v49 = vadd.f32 %v4625_v34, %v3973_v44  ;;  %6097 = vmatmul.msk.bf16.gmra.mxu0 %vm1213_vm1, %v1117_v48  ;;  %v1126_v34 = vshrl.u32 %v8150_v55, 16  ;;  %v3230_v48 = vor.u32 %v3228_v37, %v3226_v9 }
 0x39a   : > { %5653 = vst.msk [vmem:[%s6944_s14 + $0x178] sm:$0xf] %vm5558_vm5, %v5515_v45  ;;  %v3234_v45 = vrot.slane %v3232_v38, 1 }
 0x39b   : > { %v4968_v51 = vadd.f32 %v8145_v50, %v4827_v49  ;;  %6513 = vmatmul.msk.bf16.gmra.mxu2 %vm1213_vm1, %v3219_v47  ;;  %v4628_v53 = vpop.f32.mrf.mxu3  ;;  %v1128_v44 = vor.u32 %v1126_v34, %v1124_v10  ;;  %v4145_v49 = vsel %vm4026_vm2, %v4142_v3, %v4144_v41 }
 0x39d   : > { %vm5105_vm0 = vcmp.gt.f32.partialorder %v4968_v51, 0.0  ;;  %v5242_v54 = vmul.f32 0.2, %v4968_v51 }
 0x39e   : > { %v3774_v4 = vpop.f32.mrf.mxu2  ;;  %v1676_v60 = vpop.f32.mrf.mxu0 }
 0x39f   : > { %v5379_v57 = vsel %vm5105_vm0, %v4968_v51, %v5242_v54  ;;  %v3974_v58 = vadd.f32 %v3774_v4, %v2174_v52  ;;  %v2178_v13 = vpop.f32.mrf.mxu1  ;;  %v2176_v8 = vadd.f32 %v2175_v46, %v1676_v60  ;;  %v1133_v54 = vsel %vm657_vm3, %v1128_v44, %v1132_v59 }
 0x3a0   : > { %v5516_v2 = vpack.c.bf16 %v5379_v57, %v5379_v57 }
 0x3a1   : > { %v4828_v1 = vadd.f32 %v4628_v53, %v3974_v58 }
 0x3a2   : > { %5654 = vst.msk [vmem:[%s6944_s14 + $0x17c] sm:$0xf] %vm5558_vm5, %v5516_v2  ;;  %6171 = vmatmul.msk.bf16.gmra.mxu1 %vm1213_vm1, %v8120_v19  ;;  %v3227_v19 = vsel %vm657_vm3, %v3222_v11, %v3226_v9  ;;  %v8200_v2 = vld [vmem:[%s6835_s6 + $0x1e0] sm:$0xff]  ;;  %v3236_v9 = vshrl.u32 %v8178_v29, 16 }
 0x3a3   : > { %v4969_v5 = vadd.f32 %v8145_v50, %v4828_v1  ;;  %v4630_v6 = vpop.f32.mrf.mxu3  ;;  %v1138_v7 = vshll.u32 %v8200_v2, 16 }
 0x3a5   : > { %vm5106_vm4 = vcmp.gt.f32.partialorder %v4969_v5, 0.0  ;;  %v5243_v33 = vmul.f32 0.2, %v4969_v5 }
 0x3a6   : > { %v3776_v14 = vpop.f32.mrf.mxu2  ;;  %v1679_v20 = vpop.f32.mrf.mxu0 }
 0x3a7   : > { %v5380_v15 = vsel %vm5106_vm4, %v4969_v5, %v5243_v33  ;;  %v3975_v16 = vadd.f32 %v3776_v14, %v2176_v8  ;;  %v2180_v21 = vpop.f32.mrf.mxu1  ;;  %v2179_v24 = vadd.f32 %v2178_v13, %v1679_v20  ;;  %v8203_v13 = vld [vmem:[%s6835_s6 + $0x1f0] sm:$0xff]  ;;  %v1140_v20 = vrot.slane %v1138_v7, 1 }
 0x3a8   : > { %v5517_v18 = vpack.c.bf16 %v5380_v15, %v5380_v15  ;;  %6589 = vmatmul.msk.bf16.gmra.mxu3 %vm1213_vm1, %v4143_v12  ;;  %v3240_v33 = vshll.u32 %v8203_v13, 16  ;;  %v4146_v12 = vrot.slane %v8203_v13, 1 }
 0x3a9   : > { %v4829_v22 = vadd.f32 %v4630_v6, %v3975_v16  ;;  %6098 = vmatmul.msk.bf16.gmra.mxu0 %vm1213_vm1, %v1125_v17  ;;  %v1134_v6 = vshrl.u32 %v8175_v28, 16  ;;  %v3238_v17 = vor.u32 %v3236_v9, %v3234_v45 }
 0x3aa   : > { %5655 = vst.msk [vmem:[%s6944_s14 + $0x180] sm:$0xf] %vm5558_vm5, %v5517_v18  ;;  %v3242_v18 = vrot.slane %v3240_v33, 1 }
 0x3ab   : > { %v4970_v23 = vadd.f32 %v8145_v50, %v4829_v22  ;;  %6514 = vmatmul.msk.bf16.gmra.mxu2 %vm1213_vm1, %v3227_v19  ;;  %v4633_v25 = vpop.f32.mrf.mxu3  ;;  %v1136_v16 = vor.u32 %v1134_v6, %v1132_v59  ;;  %v4147_v22 = vsel %vm4026_vm2, %v4144_v41, %v4146_v12 }
 0x3ad   : > { %vm5107_vm6 = vcmp.gt.f32.partialorder %v4970_v23, 0.0  ;;  %v5244_v26 = vmul.f32 0.2, %v4970_v23 }
 0x3ae   : > { %v3779_v27 = vpop.f32.mrf.mxu2  ;;  %v1681_v32 = vpop.f32.mrf.mxu0 }
 0x3af   : > { %v5381_v30 = vsel %vm5107_vm6, %v4970_v23, %v5244_v26  ;;  %v3976_v31 = vadd.f32 %v3779_v27, %v2179_v24  ;;  %v2183_v36 = vpop.f32.mrf.mxu1  ;;  %v2181_v46 = vadd.f32 %v2180_v21, %v1681_v32  ;;  %v1141_v26 = vsel %vm657_vm3, %v1136_v16, %v1140_v20 }
 0x3b0   : > { %v5518_v39 = vpack.c.bf16 %v5381_v30, %v5381_v30 }
 0x3b1   : > { %v4830_v40 = vadd.f32 %v4633_v25, %v3976_v31 }
 0x3b2   : > { %5656 = vst.msk [vmem:[%s6944_s14 + $0x184] sm:$0xf] %vm5558_vm5, %v5518_v39  ;;  %6172 = vmatmul.msk.bf16.gmra.mxu1 %vm1213_vm1, %v8150_v55  ;;  %v3235_v55 = vsel %vm657_vm3, %v3230_v48, %v3234_v45  ;;  %v8225_v39 = vld [vmem:[%s6835_s6 + $0x1e8] sm:$0xff]  ;;  %v3244_v45 = vshrl.u32 %v8203_v13, 16 }
 0x3b3   : > { %v4971_v42 = vadd.f32 %v8145_v50, %v4830_v40  ;;  %v4635_v43 = vpop.f32.mrf.mxu3  ;;  %v1146_v44 = vshll.u32 %v8225_v39, 16 }
 0x3b5   : > { %vm5108_vm7 = vcmp.gt.f32.partialorder %v4971_v42, 0.0  ;;  %v5245_v47 = vmul.f32 0.2, %v4971_v42 }
 0x3b6   : > { %v3781_v51 = vpop.f32.mrf.mxu2  ;;  %v1684_v56 = vpop.f32.mrf.mxu0 }
 0x3b7   : > { %v5382_v52 = vsel %vm5108_vm7, %v4971_v42, %v5245_v47  ;;  %v3977_v53 = vadd.f32 %v3781_v51, %v2181_v46  ;;  %v2185_v57 = vpop.f32.mrf.mxu1  ;;  %v2184_v61 = vadd.f32 %v2183_v36, %v1684_v56  ;;  %v8228_v36 = vld [vmem:[%s6835_s6 + $0x1f8] sm:$0xff]  ;;  %v1148_v56 = vrot.slane %v1146_v44, 1 }
 0x3b8   : > { %v5519_v4 = vpack.c.bf16 %v5382_v52, %v5382_v52  ;;  %6590 = vmatmul.msk.bf16.gmra.mxu3 %vm1213_vm1, %v4145_v49  ;;  %v3248_v47 = vshll.u32 %v8228_v36, 16  ;;  %v4148_v49 = vrot.slane %v8228_v36, 1 }
 0x3b9   : > { %v4831_v58 = vadd.f32 %v4635_v43, %v3977_v53  ;;  %6099 = vmatmul.msk.bf16.gmra.mxu0 %vm1213_vm1, %v1133_v54  ;;  %v1142_v43 = vshrl.u32 %v8200_v2, 16  ;;  %v3246_v54 = vor.u32 %v3244_v45, %v3242_v18 }
 0x3ba   : > { %5657 = vst.msk [vmem:[%s6944_s14 + $0x188] sm:$0xf] %vm5558_vm5, %v5519_v4  ;;  %v3250_v4 = vrot.slane %v3248_v47, 1 }
 0x3bb   : > { %v4972_v60 = vadd.f32 %v8145_v50, %v4831_v58  ;;  %6515 = vmatmul.msk.bf16.gmra.mxu2 %vm1213_vm1, %v3235_v55  ;;  %v4638_v62 = vpop.f32.mrf.mxu3  ;;  %v1144_v53 = vor.u32 %v1142_v43, %v1140_v20  ;;  %v4149_v58 = vsel %vm4026_vm2, %v4146_v12, %v4148_v49 }
 0x3bd   : > { %vm5109_vm8 = vcmp.gt.f32.partialorder %v4972_v60, 0.0  ;;  %v5246_v63 = vmul.f32 0.2, %v4972_v60 }
 0x3be   : > { %v3784_v0 = vpop.f32.mrf.mxu2  ;;  %v1686_v5 = vpop.f32.mrf.mxu0 }
 0x3bf   : > { %v5383_v1 = vsel %vm5109_vm8, %v4972_v60, %v5246_v63  ;;  %v3978_v3 = vadd.f32 %v3784_v0, %v2184_v61  ;;  %v2188_v11 = vpop.f32.mrf.mxu1  ;;  %v2186_v21 = vadd.f32 %v2185_v57, %v1686_v5  ;;  %v1149_v63 = vsel %vm657_vm3, %v1144_v53, %v1148_v56 }
 0x3c0   : > { %v5520_v10 = vpack.c.bf16 %v5383_v1, %v5383_v1 }
 0x3c1   : > { %v4832_v8 = vadd.f32 %v4638_v62, %v3978_v3 }
 0x3c2   : > { %5658 = vst.msk [vmem:[%s6944_s14 + $0x18c] sm:$0xf] %vm5558_vm5, %v5520_v10  ;;  %6173 = vmatmul.msk.bf16.gmra.mxu1 %vm1213_vm1, %v8175_v28  ;;  %v3243_v28 = vsel %vm657_vm3, %v3238_v17, %v3242_v18  ;;  %v8250_v10 = vld [vmem:[%s6835_s6 + $0x1f0] sm:$0xff]  ;;  %v3252_v18 = vshrl.u32 %v8228_v36, 16 }
 0x3c3   : > { %v4973_v14 = vadd.f32 %v8145_v50, %v4832_v8  ;;  %v4640_v15 = vpop.f32.mrf.mxu3  ;;  %v1154_v16 = vshll.u32 %v8250_v10, 16 }
 0x3c5   : > { %vm5110_vm9 = vcmp.gt.f32.partialorder %v4973_v14, 0.0  ;;  %v5247_v19 = vmul.f32 0.2, %v4973_v14 }
 0x3c6   : > { %v3786_v23 = vpop.f32.mrf.mxu2  ;;  %v1689_v29 = vpop.f32.mrf.mxu0 }
 0x3c7   : > { %v5384_v24 = vsel %vm5110_vm9, %v4973_v14, %v5247_v19  ;;  %v3979_v25 = vadd.f32 %v3786_v23, %v2186_v21  ;;  %v2190_v30 = vpop.f32.mrf.mxu1  ;;  %v2189_v34 = vadd.f32 %v2188_v11, %v1689_v29  ;;  %v8253_v11 = vld [vmem:[%s6835_s6 + $0x200] sm:$0xff]  ;;  %v1156_v29 = vrot.slane %v1154_v16, 1 }
 0x3c8   : > { %v5521_v27 = vpack.c.bf16 %v5384_v24, %v5384_v24  ;;  %6591 = vmatmul.msk.bf16.gmra.mxu3 %vm1213_vm1, %v4147_v22  ;;  %v3256_v19 = vshll.u32 %v8253_v11, 16  ;;  %v4150_v22 = vrot.slane %v8253_v11, 1 }
 0x3c9   : > { %v4833_v31 = vadd.f32 %v4640_v15, %v3979_v25  ;;  %6100 = vmatmul.msk.bf16.gmra.mxu0 %vm1213_vm1, %v1141_v26  ;;  %v1150_v15 = vshrl.u32 %v8225_v39, 16  ;;  %v3254_v26 = vor.u32 %v3252_v18, %v3250_v4 }
 0x3ca   : > { %5659 = vst.msk [vmem:[%s6944_s14 + $0x190] sm:$0xf] %vm5558_vm5, %v5521_v27  ;;  %v3258_v27 = vrot.slane %v3256_v19, 1 }
 0x3cb   : > { %v4974_v32 = vadd.f32 %v8145_v50, %v4833_v31  ;;  %6516 = vmatmul.msk.bf16.gmra.mxu2 %vm1213_vm1, %v3243_v28  ;;  %v4643_v35 = vpop.f32.mrf.mxu3  ;;  %v1152_v25 = vor.u32 %v1150_v15, %v1148_v56  ;;  %v4151_v31 = vsel %vm4026_vm2, %v4148_v49, %v4150_v22 }
 0x3cd   : > { %vm5111_vm10 = vcmp.gt.f32.partialorder %v4974_v32, 0.0  ;;  %v5248_v37 = vmul.f32 0.2, %v4974_v32 }
 0x3ce   : > { %v3789_v38 = vpop.f32.mrf.mxu2  ;;  %v1691_v42 = vpop.f32.mrf.mxu0 }
 0x3cf   : > { %v5385_v40 = vsel %vm5111_vm10, %v4974_v32, %v5248_v37  ;;  %v3980_v41 = vadd.f32 %v3789_v38, %v2189_v34  ;;  %v2193_v48 = vpop.f32.mrf.mxu1  ;;  %v2191_v57 = vadd.f32 %v2190_v30, %v1691_v42  ;;  %v1157_v37 = vsel %vm657_vm3, %v1152_v25, %v1156_v29 }
 0x3d0   : > { %v5522_v59 = vpack.c.bf16 %v5385_v40, %v5385_v40 }
 0x3d1   : > { %v4834_v46 = vadd.f32 %v4643_v35, %v3980_v41 }
 0x3d2   : > { %5660 = vst.msk [vmem:[%s6944_s14 + $0x194] sm:$0xf] %vm5558_vm5, %v5522_v59  ;;  %6174 = vmatmul.msk.bf16.gmra.mxu1 %vm1213_vm1, %v8200_v2  ;;  %v3251_v2 = vsel %vm657_vm3, %v3246_v54, %v3250_v4  ;;  %v8275_v59 = vld [vmem:[%s6835_s6 + $0x1f8] sm:$0xff]  ;;  %v3260_v4 = vshrl.u32 %v8253_v11, 16 }
 0x3d3   : > { %v4975_v51 = vadd.f32 %v8145_v50, %v4834_v46  ;;  %v4645_v52 = vpop.f32.mrf.mxu3  ;;  %v1162_v53 = vshll.u32 %v8275_v59, 16 }
 0x3d5   : > { %vm5112_vm11 = vcmp.gt.f32.partialorder %v4975_v51, 0.0  ;;  %v5249_v55 = vmul.f32 0.2, %v4975_v51 }
 0x3d6   : > { %v3791_v60 = vpop.f32.mrf.mxu2  ;;  %v1694_v13 = vpop.f32.mrf.mxu0 }
 0x3d7   : > { %v5386_v61 = vsel %vm5112_vm11, %v4975_v51, %v5249_v55  ;;  %v3981_v62 = vadd.f32 %v3791_v60, %v2191_v57  ;;  %v2195_v1 = vpop.f32.mrf.mxu1  ;;  %v2194_v6 = vadd.f32 %v2193_v48, %v1694_v13  ;;  %v8278_v48 = vld [vmem:[%s6835_s6 + $0x208] sm:$0xff]  ;;  %v1164_v13 = vrot.slane %v1162_v53, 1 }
 0x3d8   : > { %v5523_v0 = vpack.c.bf16 %v5386_v61, %v5386_v61  ;;  %6592 = vmatmul.msk.bf16.gmra.mxu3 %vm1213_vm1, %v4149_v58  ;;  %v3264_v55 = vshll.u32 %v8278_v48, 16  ;;  %v4152_v58 = vrot.slane %v8278_v48, 1 }
 0x3d9   : > { %v4835_v3 = vadd.f32 %v4645_v52, %v3981_v62  ;;  %6101 = vmatmul.msk.bf16.gmra.mxu0 %vm1213_vm1, %v1149_v63  ;;  %v1158_v52 = vshrl.u32 %v8250_v10, 16  ;;  %v3262_v63 = vor.u32 %v3260_v4, %v3258_v27 }
 0x3da   : > { %5661 = vst.msk [vmem:[%s6944_s14 + $0x198] sm:$0xf] %vm5558_vm5, %v5523_v0  ;;  %v3266_v0 = vrot.slane %v3264_v55, 1 }
 0x3db   : > { %v4976_v5 = vadd.f32 %v8145_v50, %v4835_v3  ;;  %6517 = vmatmul.msk.bf16.gmra.mxu2 %vm1213_vm1, %v3251_v2  ;;  %v4648_v7 = vpop.f32.mrf.mxu3  ;;  %v1160_v62 = vor.u32 %v1158_v52, %v1156_v29  ;;  %v4153_v3 = vsel %vm4026_vm2, %v4150_v22, %v4152_v58 }
 0x3dd   : > { %vm5113_vm12 = vcmp.gt.f32.partialorder %v4976_v5, 0.0  ;;  %v5250_v9 = vmul.f32 0.2, %v4976_v5 }
 0x3de   : > { %v3794_v33 = vpop.f32.mrf.mxu2  ;;  %v1696_v14 = vpop.f32.mrf.mxu0 }
 0x3df   : > { %v5387_v8 = vsel %vm5113_vm12, %v4976_v5, %v5250_v9  ;;  %v3982_v12 = vadd.f32 %v3794_v33, %v2194_v6  ;;  %v2198_v17 = vpop.f32.mrf.mxu1  ;;  %v2196_v30 = vadd.f32 %v2195_v1, %v1696_v14  ;;  %v1165_v9 = vsel %vm657_vm3, %v1160_v62, %v1164_v13 }
 0x3e0   : > { %v5524_v20 = vpack.c.bf16 %v5387_v8, %v5387_v8 }
 0x3e1   : > { %v4836_v21 = vadd.f32 %v4648_v7, %v3982_v12 }
 0x3e2   : > { %5662 = vst.msk [vmem:[%s6944_s14 + $0x19c] sm:$0xf] %vm5558_vm5, %v5524_v20  ;;  %6175 = vmatmul.msk.bf16.gmra.mxu1 %vm1213_vm1, %v8225_v39  ;;  %v3259_v39 = vsel %vm657_vm3, %v3254_v26, %v3258_v27  ;;  %v8300_v20 = vld [vmem:[%s6835_s6 + $0x200] sm:$0xff]  ;;  %v3268_v27 = vshrl.u32 %v8278_v48, 16 }
 0x3e3   : > { %v4977_v23 = vadd.f32 %v8145_v50, %v4836_v21  ;;  %v4650_v24 = vpop.f32.mrf.mxu3  ;;  %v1170_v25 = vshll.u32 %v8300_v20, 16 }
 0x3e5   : > { %vm5114_vm13 = vcmp.gt.f32.partialorder %v4977_v23, 0.0  ;;  %v5251_v28 = vmul.f32 0.2, %v4977_v23 }
 0x3e6   : > { %v3796_v32 = vpop.f32.mrf.mxu2  ;;  %v1699_v36 = vpop.f32.mrf.mxu0 }
 0x3e7   : > { %v5388_v34 = vsel %vm5114_vm13, %v4977_v23, %v5251_v28  ;;  %v3983_v35 = vadd.f32 %v3796_v32, %v2196_v30  ;;  %v2200_v40 = vpop.f32.mrf.mxu1  ;;  %v2199_v43 = vadd.f32 %v2198_v17, %v1699_v36  ;;  %v8303_v17 = vld [vmem:[%s6835_s6 + $0x210] sm:$0xff]  ;;  %v1172_v36 = vrot.slane %v1170_v25, 1 }
 0x3e8   : > { %v5525_v38 = vpack.c.bf16 %v5388_v34, %v5388_v34  ;;  %6593 = vmatmul.msk.bf16.gmra.mxu3 %vm1213_vm1, %v4151_v31  ;;  %v3272_v28 = vshll.u32 %v8303_v17, 16  ;;  %v4154_v31 = vrot.slane %v8303_v17, 1 }
 0x3e9   : > { %v4837_v41 = vadd.f32 %v4650_v24, %v3983_v35  ;;  %6102 = vmatmul.msk.bf16.gmra.mxu0 %vm1213_vm1, %v1157_v37  ;;  %v1166_v24 = vshrl.u32 %v8275_v59, 16  ;;  %v3270_v37 = vor.u32 %v3268_v27, %v3266_v0 }
 0x3ea   : > { %5663 = vst.msk [vmem:[%s6944_s14 + $0x1a0] sm:$0xf] %vm5558_vm5, %v5525_v38  ;;  %v3274_v38 = vrot.slane %v3272_v28, 1 }
 0x3eb   : > { %v4978_v42 = vadd.f32 %v8145_v50, %v4837_v41  ;;  %6518 = vmatmul.msk.bf16.gmra.mxu2 %vm1213_vm1, %v3259_v39  ;;  %v4653_v44 = vpop.f32.mrf.mxu3  ;;  %v1168_v35 = vor.u32 %v1166_v24, %v1164_v13  ;;  %v4155_v41 = vsel %vm4026_vm2, %v4152_v58, %v4154_v31 }
 0x3ed   : > { %vm5115_vm14 = vcmp.gt.f32.partialorder %v4978_v42, 0.0  ;;  %v5252_v45 = vmul.f32 0.2, %v4978_v42 }
 0x3ee   : > { %v3799_v47 = vpop.f32.mrf.mxu2  ;;  %v1701_v51 = vpop.f32.mrf.mxu0 }
 0x3ef   : > { %v5389_v46 = vsel %vm5115_vm14, %v4978_v42, %v5252_v45  ;;  %v3984_v49 = vadd.f32 %v3799_v47, %v2199_v43  ;;  %v2203_v54 = vpop.f32.mrf.mxu1  ;;  %v2201_v1 = vadd.f32 %v2200_v40, %v1701_v51  ;;  %v1173_v45 = vsel %vm657_vm3, %v1168_v35, %v1172_v36 }
 0x3f0   : > { %v5526_v56 = vpack.c.bf16 %v5389_v46, %v5389_v46 }
 0x3f1   : > { %v4838_v57 = vadd.f32 %v4653_v44, %v3984_v49 }
 0x3f2   : > { %5664 = vst.msk [vmem:[%s6944_s14 + $0x1a4] sm:$0xf] %vm5558_vm5, %v5526_v56  ;;  %6176 = vmatmul.msk.bf16.gmra.mxu1 %vm1213_vm1, %v8250_v10  ;;  %v3267_v10 = vsel %vm657_vm3, %v3262_v63, %v3266_v0  ;;  %v8325_v56 = vld [vmem:[%s6835_s6 + $0x208] sm:$0xff]  ;;  %v3276_v0 = vshrl.u32 %v8303_v17, 16 }
 0x3f3   : > { %v4979_v60 = vadd.f32 %v8145_v50, %v4838_v57  ;;  %v4655_v61 = vpop.f32.mrf.mxu3  ;;  %v1178_v62 = vshll.u32 %v8325_v56, 16 }
 0x3f5   : > { %vm5116_vm15 = vcmp.gt.f32.partialorder %v4979_v60, 0.0  ;;  %v5253_v2 = vmul.f32 0.2, %v4979_v60 }
 0x3f6   : > { %v3801_v5 = vpop.f32.mrf.mxu2  ;;  %v1704_v11 = vpop.f32.mrf.mxu0 }
 0x3f7   : > { %v5390_v6 = vsel %vm5116_vm15, %v4979_v60, %v5253_v2  ;;  %v3985_v7 = vadd.f32 %v3801_v5, %v2201_v1  ;;  %v2205_v8 = vpop.f32.mrf.mxu1  ;;  %v2204_v15 = vadd.f32 %v2203_v54, %v1704_v11  ;;  %v8328_v54 = vld [vmem:[%s6835_s6 + $0x218] sm:$0xff]  ;;  %v1180_v11 = vrot.slane %v1178_v62, 1 }
 0x3f8   : > { %v5527_v33 = vpack.c.bf16 %v5390_v6, %v5390_v6  ;;  %6594 = vmatmul.msk.bf16.gmra.mxu3 %vm1213_vm1, %v4153_v3  ;;  %v3280_v2 = vshll.u32 %v8328_v54, 16  ;;  %v4156_v3 = vrot.slane %v8328_v54, 1 }
 0x3f9   : > { %v4839_v12 = vadd.f32 %v4655_v61, %v3985_v7  ;;  %6103 = vmatmul.msk.bf16.gmra.mxu0 %vm1213_vm1, %v1165_v9  ;;  %v1174_v61 = vshrl.u32 %v8300_v20, 16  ;;  %v3278_v9 = vor.u32 %v3276_v0, %v3274_v38 }
 0x3fa   : > { %5665 = vst.msk [vmem:[%s6944_s14 + $0x1a8] sm:$0xf] %vm5558_vm5, %v5527_v33  ;;  %v3282_v33 = vrot.slane %v3280_v2, 1 }
 0x3fb   : > { %v4980_v14 = vadd.f32 %v8145_v50, %v4839_v12  ;;  %6519 = vmatmul.msk.bf16.gmra.mxu2 %vm1213_vm1, %v3267_v10  ;;  %v4658_v16 = vpop.f32.mrf.mxu3  ;;  %v1176_v7 = vor.u32 %v1174_v61, %v1172_v36  ;;  %v4157_v12 = vsel %vm4026_vm2, %v4154_v31, %v4156_v3 }
 0x3fd   : > { %vm5117_vm0 = vcmp.gt.f32.partialorder %v4980_v14, 0.0  ;;  %v5254_v18 = vmul.f32 0.2, %v4980_v14 }
 0x3fe   : > { %v3804_v19 = vpop.f32.mrf.mxu2  ;;  %v1706_v23 = vpop.f32.mrf.mxu0 }
 0x3ff   : > { %v5391_v21 = vsel %vm5117_vm0, %v4980_v14, %v5254_v18  ;;  %v3986_v22 = vadd.f32 %v3804_v19, %v2204_v15  ;;  %v2208_v26 = vpop.f32.mrf.mxu1  ;;  %v2206_v40 = vadd.f32 %v2205_v8, %v1706_v23  ;;  %v1181_v18 = vsel %vm657_vm3, %v1176_v7, %v1180_v11 }
 0x400   : > { %v5528_v29 = vpack.c.bf16 %v5391_v21, %v5391_v21 }
 0x401   : > { %v4840_v30 = vadd.f32 %v4658_v16, %v3986_v22 }
 0x402   : > { %5666 = vst.msk [vmem:[%s6944_s14 + $0x1ac] sm:$0xf] %vm5558_vm5, %v5528_v29  ;;  %6177 = vmatmul.msk.bf16.gmra.mxu1 %vm1213_vm1, %v8275_v59  ;;  %v3275_v59 = vsel %vm657_vm3, %v3270_v37, %v3274_v38  ;;  %v8350_v29 = vld [vmem:[%s6835_s6 + $0x210] sm:$0xff]  ;;  %v3284_v38 = vshrl.u32 %v8328_v54, 16 }
 0x403   : > { %v4981_v32 = vadd.f32 %v8145_v50, %v4840_v30  ;;  %v4660_v34 = vpop.f32.mrf.mxu3  ;;  %v1186_v35 = vshll.u32 %v8350_v29, 16 }
 0x405   : > { %vm5118_vm4 = vcmp.gt.f32.partialorder %v4981_v32, 0.0  ;;  %v5255_v39 = vmul.f32 0.2, %v4981_v32 }
 0x406   : > { %v3806_v42 = vpop.f32.mrf.mxu2  ;;  %v1709_v48 = vpop.f32.mrf.mxu0 }
 0x407   : > { %v5392_v43 = vsel %vm5118_vm4, %v4981_v32, %v5255_v39  ;;  %v3987_v44 = vadd.f32 %v3806_v42, %v2206_v40  ;;  %v2210_v46 = vpop.f32.mrf.mxu1  ;;  %v2209_v52 = vadd.f32 %v2208_v26, %v1709_v48  ;;  %v8353_v26 = vld [vmem:[%s6835_s6 + $0x220] sm:$0xff]  ;;  %v1188_v48 = vrot.slane %v1186_v35, 1 }
 0x408   : > { %v5529_v47 = vpack.c.bf16 %v5392_v43, %v5392_v43  ;;  %6595 = vmatmul.msk.bf16.gmra.mxu3 %vm1213_vm1, %v4155_v41  ;;  %v3288_v39 = vshll.u32 %v8353_v26, 16  ;;  %v4158_v41 = vrot.slane %v8353_v26, 1 }
 0x409   : > { %v4841_v49 = vadd.f32 %v4660_v34, %v3987_v44  ;;  %6104 = vmatmul.msk.bf16.gmra.mxu0 %vm1213_vm1, %v1173_v45  ;;  %v1182_v34 = vshrl.u32 %v8325_v56, 16  ;;  %v3286_v45 = vor.u32 %v3284_v38, %v3282_v33 }
 0x40a   : > { %5667 = vst.msk [vmem:[%s6944_s14 + $0x1b0] sm:$0xf] %vm5558_vm5, %v5529_v47  ;;  %v3290_v47 = vrot.slane %v3288_v39, 1 }
 0x40b   : > { %v4982_v51 = vadd.f32 %v8145_v50, %v4841_v49  ;;  %6520 = vmatmul.msk.bf16.gmra.mxu2 %vm1213_vm1, %v3275_v59  ;;  %v4663_v53 = vpop.f32.mrf.mxu3  ;;  %v1184_v44 = vor.u32 %v1182_v34, %v1180_v11  ;;  %v4159_v49 = vsel %vm4026_vm2, %v4156_v3, %v4158_v41 }
 0x40d   : > { %vm5119_vm6 = vcmp.gt.f32.partialorder %v4982_v51, 0.0  ;;  %v5256_v4 = vmul.f32 0.2, %v4982_v51 }
 0x40e   : > { %v3809_v55 = vpop.f32.mrf.mxu2  ;;  %v1711_v60 = vpop.f32.mrf.mxu0 }
 0x40f   : > { %v5393_v57 = vsel %vm5119_vm6, %v4982_v51, %v5256_v4  ;;  %v3988_v58 = vadd.f32 %v3809_v55, %v2209_v52  ;;  %v2213_v63 = vpop.f32.mrf.mxu1  ;;  %v2211_v8 = vadd.f32 %v2210_v46, %v1711_v60  ;;  %v1189_v4 = vsel %vm657_vm3, %v1184_v44, %v1188_v48 }
 0x410   : > { %v5530_v13 = vpack.c.bf16 %v5393_v57, %v5393_v57 }
 0x411   : > { %v4842_v1 = vadd.f32 %v4663_v53, %v3988_v58 }
 0x412   : > { %5668 = vst.msk [vmem:[%s6944_s14 + $0x1b4] sm:$0xf] %vm5558_vm5, %v5530_v13  ;;  %6178 = vmatmul.msk.bf16.gmra.mxu1 %vm1213_vm1, %v8300_v20  ;;  %v3283_v20 = vsel %vm657_vm3, %v3278_v9, %v3282_v33  ;;  %v8375_v13 = vld [vmem:[%s6835_s6 + $0x218] sm:$0xff]  ;;  %v3292_v33 = vshrl.u32 %v8353_v26, 16  ;;  %v4016_v26 = vld [vmem:[%s6835_s6 + $0x230] sm:$0x3] }
 0x413   : > { %v4983_v5 = vadd.f32 %v8145_v50, %v4842_v1  ;;  %v4665_v6 = vpop.f32.mrf.mxu3  ;;  %v1194_v7 = vshll.u32 %v8375_v13, 16  ;;  %v4023_v38 = vunpack.c.l.b16 %v4016_v26 }
 0x415   : > { %vm5120_vm7 = vcmp.gt.f32.partialorder %v4983_v5, 0.0  ;;  %v5257_v10 = vmul.f32 0.2, %v4983_v5 }
 0x416   : > { %v3811_v14 = vpop.f32.mrf.mxu2  ;;  %v1714_v17 = vpop.f32.mrf.mxu0 }
 0x417   : > { %v5394_v15 = vsel %vm5120_vm7, %v4983_v5, %v5257_v10  ;;  %v3989_v16 = vadd.f32 %v3811_v14, %v2211_v8  ;;  %v2215_v21 = vpop.f32.mrf.mxu1  ;;  %v2214_v24 = vadd.f32 %v2213_v63, %v1714_v17  ;;  %v8378_v63 = vld [vmem:[%s6835_s6 + $0x228] sm:$0xff]  ;;  %v1196_v17 = vrot.slane %v1194_v7, 1 }
 0x418   : > { %v5531_v19 = vpack.c.bf16 %v5394_v15, %v5394_v15  ;;  %6596 = vmatmul.msk.bf16.gmra.mxu3 %vm1213_vm1, %v4157_v12  ;;  %v3296_v10 = vshll.u32 %v8378_v63, 16  ;;  %v4160_v12 = vrot.slane %v8378_v63, 1 }
 0x419   : > { %v4843_v22 = vadd.f32 %v4665_v6, %v3989_v16  ;;  %6105 = vmatmul.msk.bf16.gmra.mxu0 %vm1213_vm1, %v1181_v18  ;;  %v1190_v6 = vshrl.u32 %v8350_v29, 16  ;;  %v3294_v18 = vor.u32 %v3292_v33, %v3290_v47 }
 0x41a   : > { %5669 = vst.msk [vmem:[%s6944_s14 + $0x1b8] sm:$0xf] %vm5558_vm5, %v5531_v19  ;;  %v3298_v19 = vrot.slane %v3296_v10, 1 }
 0x41b   : > { %v4984_v23 = vadd.f32 %v8145_v50, %v4843_v22  ;;  %6521 = vmatmul.msk.bf16.gmra.mxu2 %vm1213_vm1, %v3283_v20  ;;  %v4668_v25 = vpop.f32.mrf.mxu3  ;;  %v1192_v16 = vor.u32 %v1190_v6, %v1188_v48  ;;  %v308_v20 = vld [vmem:[%s6835_s6 + $0x220] sm:$0x1]  ;;  %v8408_v48 = vpack.c.b16 %v4023_v38, %v4023_v38 }
 0x41c   : > { %v3299_v34 = vsel %vm657_vm3, %v3294_v18, %v3298_v19 }
 0x41d   : > { %vm5121_vm8 = vcmp.gt.f32.partialorder %v4984_v23, 0.0  ;;  %v5258_v27 = vmul.f32 0.2, %v4984_v23 }
 0x41e   : > { %v3814_v28 = vpop.f32.mrf.mxu2  ;;  %v1716_v32 = vpop.f32.mrf.mxu0 }
 0x41f   : > { %v5395_v30 = vsel %vm5121_vm8, %v4984_v23, %v5258_v27  ;;  %v3990_v31 = vadd.f32 %v3814_v28, %v2214_v24  ;;  %v2218_v37 = vpop.f32.mrf.mxu1  ;;  %v2216_v46 = vadd.f32 %v2215_v21, %v1716_v32  ;;  %v4161_v23 = vsel %vm4026_vm2, %v4158_v41, %v4160_v12  ;;  %v2413_v24 = vld [vmem:[%s6835_s6 + $0x230] sm:$0x1] }
 0x420   : > { %v5532_v36 = vpack.c.bf16 %v5395_v30, %v5395_v30 }
 0x421   : > { %v4844_v40 = vadd.f32 %v4668_v25, %v3990_v31  ;;  %v587_v31 = vunpack.c.l.b16 %v308_v20 }
 0x422   : > { %5670 = vst.msk [vmem:[%s6944_s14 + $0x1bc] sm:$0xf] %vm5558_vm5, %v5532_v36  ;;  %6179 = vmatmul.msk.bf16.gmra.mxu1 %vm1213_vm1, %v8325_v56  ;;  %v3291_v56 = vsel %vm657_vm3, %v3286_v45, %v3290_v47  ;;  %v2690_v36 = vunpack.c.l.b16 %v2413_v24 }
 0x423   : > { %v4985_v42 = vadd.f32 %v8145_v50, %v4844_v40  ;;  %v4670_v43 = vpop.f32.mrf.mxu3 }
 0x425   : > { %vm5122_vm9 = vcmp.gt.f32.partialorder %v4985_v42, 0.0  ;;  %v5259_v59 = vmul.f32 0.2, %v4985_v42 }
 0x426   : > { %v3816_v51 = vpop.f32.mrf.mxu2  ;;  %v1719_v54 = vpop.f32.mrf.mxu0 }
 0x427   : > { %v5396_v52 = vsel %vm5122_vm9, %v4985_v42, %v5259_v59  ;;  %v3991_v53 = vadd.f32 %v3816_v51, %v2216_v46  ;;  %v2220_v57 = vpop.f32.mrf.mxu1  ;;  %v2219_v61 = vadd.f32 %v2218_v37, %v1719_v54  ;;  %v8404_v42 = vpack.c.b16 %v587_v31, %v587_v31 }
 0x428   : > { %v5533_v55 = vpack.c.bf16 %v5396_v52, %v5396_v52  ;;  %6597 = vmatmul.msk.bf16.gmra.mxu3 %vm1213_vm1, %v4159_v49  ;;  %v1198_v49 = vshrl.u32 %v8375_v13, 16  ;;  %v3300_v54 = vshrl.u32 %v8378_v63, 16 }
 0x429   : > { %v4845_v58 = vadd.f32 %v4670_v43, %v3991_v53  ;;  %6106 = vmatmul.msk.bf16.gmra.mxu0 %vm1213_vm1, %v1189_v4  ;;  %v8406_v43 = vpack.c.b16 %v2690_v36, %v2690_v36  ;;  %v1202_v51 = vshll.u32 %v8404_v42, 16  ;;  %v8445_v36 = vld [vmem:[%s8507_s2] ss:$0 sm:$0xff] }
 0x42a   : > { %5671 = vst.msk [vmem:[%s6944_s14 + $0x1c0] sm:$0xf] %vm5558_vm5, %v5533_v55 }
 0x42b   : > { %v4986_v60 = vadd.f32 %v8145_v50, %v4845_v58  ;;  %6522 = vmatmul.msk.bf16.gmra.mxu2 %vm1213_vm1, %v3291_v56  ;;  %v4673_v62 = vpop.f32.mrf.mxu3  ;;  %v3304_v4 = vshll.u32 %v8406_v43, 16  ;;  %v4162_v56 = vrot.slane %v8408_v48, 1 }
 0x42d   : > { %vm5123_vm10 = vcmp.gt.f32.partialorder %v4986_v60, 0.0  ;;  %v5260_v0 = vmul.f32 0.2, %v4986_v60 }
 0x42e   : > { %v3819_v2 = vpop.f32.mrf.mxu2  ;;  %v1721_v5 = vpop.f32.mrf.mxu0 }
 0x42f   : > { %v5397_v1 = vsel %vm5123_vm10, %v4986_v60, %v5260_v0  ;;  %v3992_v3 = vadd.f32 %v3819_v2, %v2219_v61  ;;  %v2223_v9 = vpop.f32.mrf.mxu1  ;;  %v2221_v22 = vadd.f32 %v2220_v57, %v1721_v5  ;;  %v1200_v60 = vor.u32 %v1198_v49, %v1196_v17 }
 0x430   : > { %v5534_v11 = vpack.c.bf16 %v5397_v1, %v5397_v1  ;;  %v1204_v61 = vrot.slane %v1202_v51, 1  ;;  %v3306_v0 = vrot.slane %v3304_v4, 1 }
 0x431   : > { %v4846_v8 = vadd.f32 %v4673_v62, %v3992_v3  ;;  %v3302_v62 = vor.u32 %v3300_v54, %v3298_v19  ;;  %v4163_v3 = vsel %vm4026_vm2, %v4160_v12, %v4162_v56 }
 0x432   : > { %5672 = vst.msk [vmem:[%s6944_s14 + $0x1c4] sm:$0xf] %vm5558_vm5, %v5534_v11  ;;  %6180 = vmatmul.msk.bf16.gmra.mxu1 %vm1213_vm1, %v8350_v29  ;;  %v1197_v29 = vsel %vm657_vm3, %v1192_v16, %v1196_v17 }
 0x433   : > { %v4987_v14 = vadd.f32 %v8145_v50, %v4846_v8  ;;  %v4675_v15 = vpop.f32.mrf.mxu3 }
 0x435   : > { %vm5124_vm11 = vcmp.gt.f32.partialorder %v4987_v14, 0.0  ;;  %v5261_v21 = vmul.f32 0.2, %v4987_v14 }
 0x436   : > { %v3821_v25 = vpop.f32.mrf.mxu2  ;;  %v1724_v30 = vpop.f32.mrf.mxu0 }
 0x437   : > { %v5398_v27 = vsel %vm5124_vm11, %v4987_v14, %v5261_v21  ;;  %v3993_v28 = vadd.f32 %v3821_v25, %v2221_v22  ;;  %v2225_v35 = vpop.f32.mrf.mxu1  ;;  %v2224_v40 = vadd.f32 %v2223_v9, %v1724_v30  ;;  %v1205_v9 = vsel %vm657_vm3, %v1200_v60, %v1204_v61 }
 0x438   : > { %v5535_v32 = vpack.c.bf16 %v5398_v27, %v5398_v27  ;;  %6598 = vmatmul.msk.bf16.gmra.mxu3 %vm1213_vm1, %v4161_v23 }
 0x439   : > { %v4847_v37 = vadd.f32 %v4675_v15, %v3993_v28  ;;  %6107 = vmatmul.msk.bf16.gmra.mxu0 %vm1213_vm1, %v1197_v29  ;;  %v1206_v28 = vshrl.u32 %v8404_v42, 16 }
 0x43a   : > { %5673 = vst.msk [vmem:[%s6944_s14 + $0x1c8] sm:$0xf] %vm5558_vm5, %v5535_v32  ;;  %v3308_v32 = vshrl.u32 %v8406_v43, 16 }
 0x43b   : > { %v4988_v39 = vadd.f32 %v8145_v50, %v4847_v37  ;;  %6523 = vmatmul.msk.bf16.gmra.mxu2 %vm1213_vm1, %v3299_v34  ;;  %v4678_v41 = vpop.f32.mrf.mxu3 }
 0x43d   : > { %vm5125_vm12 = vcmp.gt.f32.partialorder %v4988_v39, 0.0  ;;  %v5262_v44 = vmul.f32 0.2, %v4988_v39 }
 0x43e   : > { %v3824_v45 = vpop.f32.mrf.mxu2  ;;  %v1726_v46 = vpop.f32.mrf.mxu0 }
 0x43f   : > { %v5399_v47 = vsel %vm5125_vm12, %v4988_v39, %v5262_v44  ;;  %v3994_v59 = vadd.f32 %v3824_v45, %v2224_v40  ;;  %v2228_v53 = vpop.f32.mrf.mxu1  ;;  %v2226_v1 = vadd.f32 %v2225_v35, %v1726_v46 }
 0x440   : > { %v5536_v52 = vpack.c.bf16 %v5399_v47, %v5399_v47 }
 0x441   : > { %v4848_v55 = vadd.f32 %v4678_v41, %v3994_v59 }
 0x442   : > { %5674 = vst.msk [vmem:[%s6944_s14 + $0x1cc] sm:$0xf] %vm5558_vm5, %v5536_v52  ;;  %6181 = vmatmul.msk.bf16.gmra.mxu1 %vm1213_vm1, %v8375_v13  ;;  %v3307_v13 = vsel %vm657_vm3, %v3302_v62, %v3306_v0 }
 0x443   : > { %v4989_v57 = vadd.f32 %v8145_v50, %v4848_v55  ;;  %v4680_v58 = vpop.f32.mrf.mxu3 }
 0x445   : > { %vm5126_vm13 = vcmp.gt.f32.partialorder %v4989_v57, 0.0  ;;  %v5263_v2 = vmul.f32 0.2, %v4989_v57 }
 0x446   : > { %v3826_v5 = vpop.f32.mrf.mxu2  ;;  %v1729_v11 = vpop.f32.mrf.mxu0 }
 0x447   : > { %v5400_v6 = vsel %vm5126_vm13, %v4989_v57, %v5263_v2  ;;  %v3995_v7 = vadd.f32 %v3826_v5, %v2226_v1  ;;  %v2230_v10 = vpop.f32.mrf.mxu1  ;;  %v2229_v12 = vadd.f32 %v2228_v53, %v1729_v11 }
 0x448   : > { %v5537_v33 = vpack.c.bf16 %v5400_v6, %v5400_v6  ;;  %6599 = vmatmul.msk.bf16.gmra.mxu3 %vm1213_vm1, %v4163_v3 }
 0x449   : > { %v4849_v8 = vadd.f32 %v4680_v58, %v3995_v7  ;;  %6108 = vmatmul.msk.bf16.gmra.mxu0 %vm1213_vm1, %v1205_v9 }
 0x44a   : > { %5675 = vst.msk [vmem:[%s6944_s14 + $0x1d0] sm:$0xf] %vm5558_vm5, %v5537_v33 }
 0x44b   : > { %v4990_v63 = vadd.f32 %v8145_v50, %v4849_v8  ;;  %6524 = vmatmul.msk.bf16.gmra.mxu2 %vm1213_vm1, %v3307_v13  ;;  %v4683_v14 = vpop.f32.mrf.mxu3 }
 0x44d   : > { %vm5127_vm2 = vcmp.gt.f32.partialorder %v4990_v63, 0.0  ;;  %v5264_v15 = vmul.f32 0.2, %v4990_v63 }
 0x44e   : > { %v3829_v16 = vpop.f32.mrf.mxu2  ;;  %v1731_v19 = vpop.f32.mrf.mxu0 }
 0x44f   : > { %v5401_v17 = vsel %vm5127_vm2, %v4990_v63, %v5264_v15  ;;  %v3996_v18 = vadd.f32 %v3829_v16, %v2229_v12  ;;  %v2233_v21 = vpop.f32.mrf.mxu1  ;;  %v2231_v26 = vadd.f32 %v2230_v10, %v1731_v19 }
 0x450   : > { %v5538_v20 = vpack.c.bf16 %v5401_v17, %v5401_v17 }
 0x451   : > { %v4850_v22 = vadd.f32 %v4683_v14, %v3996_v18 }
 0x452   : > { %5676 = vst.msk [vmem:[%s6944_s14 + $0x1d4] sm:$0xf] %vm5558_vm5, %v5538_v20  ;;  %6182 = vmatmul.msk.bf16.gmra.mxu1 %vm1213_vm1, %v8404_v42 }
 0x453   : > { %v4991_v23 = vadd.f32 %v8145_v50, %v4850_v22  ;;  %v4685_v24 = vpop.f32.mrf.mxu3 }
 0x455   : > { %vm5128_vm3 = vcmp.gt.f32.partialorder %v4991_v23, 0.0  ;;  %v5265_v25 = vmul.f32 0.2, %v4991_v23 }
 0x456   : > { %v3831_v27 = vpop.f32.mrf.mxu2  ;;  %v1734_v31 = vpop.f32.mrf.mxu0 }
 0x457   : > { %v5402_v30 = vsel %vm5128_vm3, %v4991_v23, %v5265_v25  ;;  %v3997_v29 = vadd.f32 %v3831_v27, %v2231_v26  ;;  %v2235_v50 = vpop.f32.mrf.mxu1  ;;  %v2234_v38 = vadd.f32 %v2233_v21, %v1734_v31 }
 0x458   : > { %v5539_v34 = vpack.c.bf16 %v5402_v30, %v5402_v30  ;;  %6600 = vmatmul.msk.bf16.gmra.mxu3 %vm1213_vm1, %v4162_v56 }
 0x459   : > { %v4851_v35 = vadd.f32 %v4685_v24, %v3997_v29  ;;  %6109 = vmatmul.msk.bf16.gmra.mxu0 %vm1213_vm1, %v1206_v28 }
 0x45a   : > { %5677 = vst.msk [vmem:[%s6944_s14 + $0x1d8] sm:$0xf] %vm5558_vm5, %v5539_v34 }
 0x45b   : > { %v4992_v37 = vadd.f32 %v8445_v36, %v4851_v35  ;;  %6525 = vmatmul.msk.bf16.gmra.mxu2 %vm1213_vm1, %v3308_v32  ;;  %v4688_v39 = vpop.f32.mrf.mxu3 }
 0x45d   : > { %vm5129_vm14 = vcmp.gt.f32.partialorder %v4992_v37, 0.0  ;;  %v5266_v40 = vmul.f32 0.2, %v4992_v37 }
 0x45e   : > { %v3834_v41 = vpop.f32.mrf.mxu2  ;;  %v1736_v44 = vpop.f32.mrf.mxu0 }
 0x45f   : > { %v5403_v42 = vsel %vm5129_vm14, %v4992_v37, %v5266_v40  ;;  %v3998_v43 = vadd.f32 %v3834_v41, %v2234_v38  ;;  %v2238_v45 = vpop.f32.mrf.mxu1  ;;  %v2236_v51 = vadd.f32 %v2235_v50, %v1736_v44 }
 0x460   : > { %v5540_v48 = vpack.c.bf16 %v5403_v42, %v5403_v42 }
 0x461   : > { %v4852_v47 = vadd.f32 %v4688_v39, %v3998_v43 }
 0x462   : > { %5678 = vst.msk [vmem:[%s6944_s14 + $0x1dc] sm:$0xf] %vm5558_vm5, %v5540_v48 }
 0x463   : > { %v4993_v59 = vadd.f32 %v8445_v36, %v4852_v47  ;;  %v4690_v46 = vpop.f32.mrf.mxu3 }
 0x465   : > { %vm5130_vm15 = vcmp.gt.f32.partialorder %v4993_v59, 0.0  ;;  %v5267_v49 = vmul.f32 0.2, %v4993_v59 }
 0x466   : > { %v3836_v52 = vpop.f32.mrf.mxu2  ;;  %v1739_v4 = vpop.f32.mrf.mxu0 }
 0x467   : > { %v5404_v53 = vsel %vm5130_vm15, %v4993_v59, %v5267_v49  ;;  %v3999_v54 = vadd.f32 %v3836_v52, %v2236_v51  ;;  %v2240_v56 = vpop.f32.mrf.mxu1  ;;  %v2239_v60 = vadd.f32 %v2238_v45, %v1739_v4 }
 0x468   : > { %v5541_v55 = vpack.c.bf16 %v5404_v53, %v5404_v53 }
 0x469   : > { %v4853_v57 = vadd.f32 %v4690_v46, %v3999_v54 }
 0x46a   : > { %5679 = vst.msk [vmem:[%s6944_s14 + $0x1e0] sm:$0xf] %vm5558_vm5, %v5541_v55 }
 0x46b   : > { %v4994_v58 = vadd.f32 %v8445_v36, %v4853_v57  ;;  %v4693_v61 = vpop.f32.mrf.mxu3 }
 0x46d   : > { %vm5131_vm1 = vcmp.gt.f32.partialorder %v4994_v58, 0.0  ;;  %v5268_v62 = vmul.f32 0.2, %v4994_v58 }
 0x46e   : > { %v3839_v0 = vpop.f32.mrf.mxu2  ;;  %v1741_v3 = vpop.f32.mrf.mxu0 }
 0x46f   : > { %v5405_v2 = vsel %vm5131_vm1, %v4994_v58, %v5268_v62  ;;  %v4000_v1 = vadd.f32 %v3839_v0, %v2239_v60  ;;  %v2243_v6 = vpop.f32.mrf.mxu1  ;;  %v2241_v13 = vadd.f32 %v2240_v56, %v1741_v3  ;;  %vm5695_vm1 = vcmask 122880  }
 0x470   : > { %v5542_v5 = vpack.c.bf16 %v5405_v2, %v5405_v2 }
 0x471   : > { %v4854_v7 = vadd.f32 %v4693_v61, %v4000_v1 }
 0x472   : > { %5680 = vst.msk [vmem:[%s6944_s14 + $0x1e4] sm:$0xf] %vm5558_vm5, %v5542_v5 }
 0x473   : > { %v4995_v11 = vadd.f32 %v8445_v36, %v4854_v7  ;;  %v4695_v9 = vpop.f32.mrf.mxu3 }
 0x475   : > { %vm5132_vm0 = vcmp.gt.f32.partialorder %v4995_v11, 0.0  ;;  %v5269_v33 = vmul.f32 0.2, %v4995_v11 }
 0x476   : > { %v3841_v10 = vpop.f32.mrf.mxu2  ;;  %v1744_v12 = vpop.f32.mrf.mxu0 }
 0x477   : > { %v5406_v8 = vsel %vm5132_vm0, %v4995_v11, %v5269_v33  ;;  %v4001_v63 = vadd.f32 %v3841_v10, %v2241_v13  ;;  %v2245_v15 = vpop.f32.mrf.mxu1  ;;  %v2244_v18 = vadd.f32 %v2243_v6, %v1744_v12  ;;  %vm5696_vm0 = vsmask.f32 256 }
 0x478   : > { %v5543_v14 = vpack.c.bf16 %v5406_v8, %v5406_v8 }
 0x479   : > { %v4855_v16 = vadd.f32 %v4695_v9, %v4001_v63 }
 0x47a   : > { %5681 = vst.msk [vmem:[%s6944_s14 + $0x1e8] sm:$0xf] %vm5558_vm5, %v5543_v14 }
 0x47b   : > { %v4996_v17 = vadd.f32 %v8445_v36, %v4855_v16  ;;  %v4698_v19 = vpop.f32.mrf.mxu3 }
 0x47d   : > { %vm5133_vm4 = vcmp.gt.f32.partialorder %v4996_v17, 0.0  ;;  %v5270_v20 = vmul.f32 0.2, %v4996_v17 }
 0x47e   : > { %v3844_v21 = vpop.f32.mrf.mxu2  ;;  %v1746_v24 = vpop.f32.mrf.mxu0 }
 0x47f   : > { %v5407_v22 = vsel %vm5133_vm4, %v4996_v17, %v5270_v20  ;;  %v4002_v23 = vadd.f32 %v3844_v21, %v2244_v18  ;;  %v2248_v26 = vpop.f32.mrf.mxu1  ;;  %v2246_v31 = vadd.f32 %v2245_v15, %v1746_v24 }
 0x480   : > { %v5544_v25 = vpack.c.bf16 %v5407_v22, %v5407_v22 }
 0x481   : > { %v4856_v27 = vadd.f32 %v4698_v19, %v4002_v23 }
 0x482   : > { %5682 = vst.msk [vmem:[%s6944_s14 + $0x1ec] sm:$0xf] %vm5558_vm5, %v5544_v25 }
 0x483   : > { %v4997_v28 = vadd.f32 %v8445_v36, %v4856_v27  ;;  %v4700_v30 = vpop.f32.mrf.mxu3 }
 0x485   : > { %vm5134_vm6 = vcmp.gt.f32.partialorder %v4997_v28, 0.0  ;;  %v5271_v29 = vmul.f32 0.2, %v4997_v28 }
 0x486   : > { %v3846_v32 = vpop.f32.mrf.mxu2  ;;  %v1749_v35 = vpop.f32.mrf.mxu0 }
 0x487   : > { %v5408_v34 = vsel %vm5134_vm6, %v4997_v28, %v5271_v29  ;;  %v4003_v50 = vadd.f32 %v3846_v32, %v2246_v31  ;;  %v2250_v38 = vpop.f32.mrf.mxu1  ;;  %v2249_v41 = vadd.f32 %v2248_v26, %v1749_v35  ;;  %vm5697_vm6 = vmand %vm5695_vm1, %vm5696_vm0 }
 0x488   : > { %v5545_v37 = vpack.c.bf16 %v5408_v34, %v5408_v34 }
 0x489   : > { %v4857_v39 = vadd.f32 %v4700_v30, %v4003_v50 }
 0x48a   : > { %5683 = vst.msk [vmem:[%s6944_s14 + $0x1f0] sm:$0xf] %vm5558_vm5, %v5545_v37 }
 0x48b   : > { %v4998_v40 = vadd.f32 %v8445_v36, %v4857_v39  ;;  %v4703_v42 = vpop.f32.mrf.mxu3 }
 0x48d   : > { %vm5135_vm7 = vcmp.gt.f32.partialorder %v4998_v40, 0.0  ;;  %v5272_v43 = vmul.f32 0.2, %v4998_v40 }
 0x48e   : > { %v3849_v44 = vpop.f32.mrf.mxu2  ;;  %v1751_v47 = vpop.f32.mrf.mxu0 }
 0x48f   : > { %v5409_v48 = vsel %vm5135_vm7, %v4998_v40, %v5272_v43  ;;  %v4004_v45 = vadd.f32 %v3849_v44, %v2249_v41  ;;  %v2253_v46 = vpop.f32.mrf.mxu1  ;;  %v2251_v54 = vadd.f32 %v2250_v38, %v1751_v47 }
 0x490   : > { %v5546_v59 = vpack.c.bf16 %v5409_v48, %v5409_v48 }
 0x491   : > { %v4858_v49 = vadd.f32 %v4703_v42, %v4004_v45 }
 0x492   : > { %5684 = vst.msk [vmem:[%s6944_s14 + $0x1f4] sm:$0xf] %vm5558_vm5, %v5546_v59 }
 0x493   : > { %v4999_v51 = vadd.f32 %v8445_v36, %v4858_v49  ;;  %v4705_v52 = vpop.f32.mrf.mxu3 }
 0x495   : > { %vm5136_vm8 = vcmp.gt.f32.partialorder %v4999_v51, 0.0  ;;  %v5273_v53 = vmul.f32 0.2, %v4999_v51 }
 0x496   : > { %v3851_v4 = vpop.f32.mrf.mxu2  ;;  %v1754_v57 = vpop.f32.mrf.mxu0 }
 0x497   : > { %v5410_v55 = vsel %vm5136_vm8, %v4999_v51, %v5273_v53  ;;  %v4005_v56 = vadd.f32 %v3851_v4, %v2251_v54  ;;  %v2255_v60 = vpop.f32.mrf.mxu1  ;;  %v2254_v0 = vadd.f32 %v2253_v46, %v1754_v57 }
 0x498   : > { %v5547_v58 = vpack.c.bf16 %v5410_v55, %v5410_v55 }
 0x499   : > { %v4859_v61 = vadd.f32 %v4705_v52, %v4005_v56 }
 0x49a   : > { %5685 = vst.msk [vmem:[%s6944_s14 + $0x1f8] sm:$0xf] %vm5558_vm5, %v5547_v58 }
 0x49b   : > { %v5000_v62 = vadd.f32 %v8445_v36, %v4859_v61  ;;  %v4708_v2 = vpop.f32.mrf.mxu3 }
 0x49d   : > { %vm5137_vm9 = vcmp.gt.f32.partialorder %v5000_v62, 0.0  ;;  %v5274_v1 = vmul.f32 0.2, %v5000_v62 }
 0x49e   : > { %v3854_v3 = vpop.f32.mrf.mxu2  ;;  %v1756_v7 = vpop.f32.mrf.mxu0 }
 0x49f   : > { %v5411_v5 = vsel %vm5137_vm9, %v5000_v62, %v5274_v1  ;;  %v4006_v6 = vadd.f32 %v3854_v3, %v2254_v0  ;;  %v2258_v9 = vpop.f32.mrf.mxu1  ;;  %v2256_v63 = vadd.f32 %v2255_v60, %v1756_v7 }
 0x4a0   : > { %v5548_v11 = vpack.c.bf16 %v5411_v5, %v5411_v5 }
 0x4a1   : > { %v4860_v33 = vadd.f32 %v4708_v2, %v4006_v6 }
 0x4a2   : > { %5686 = vst.msk [vmem:[%s6944_s14 + $0x1fc] sm:$0xf] %vm5558_vm5, %v5548_v11 }
 0x4a3   : > { %v5001_v13 = vadd.f32 %v8445_v36, %v4860_v33  ;;  %v4710_v10 = vpop.f32.mrf.mxu3 }
 0x4a5   : > { %vm5138_vm10 = vcmp.gt.f32.partialorder %v5001_v13, 0.0  ;;  %v5275_v8 = vmul.f32 0.2, %v5001_v13 }
 0x4a6   : > { %v3856_v12 = vpop.f32.mrf.mxu2  ;;  %v1759_v16 = vpop.f32.mrf.mxu0 }
 0x4a7   : > { %v5412_v14 = vsel %vm5138_vm10, %v5001_v13, %v5275_v8  ;;  %v4007_v15 = vadd.f32 %v3856_v12, %v2256_v63  ;;  %v2260_v18 = vpop.f32.mrf.mxu1  ;;  %v2259_v21 = vadd.f32 %v2258_v9, %v1759_v16 }
 0x4a8   : > { %v5549_v17 = vpack.c.bf16 %v5412_v14, %v5412_v14 }
 0x4a9   : > { %v4861_v19 = vadd.f32 %v4710_v10, %v4007_v15 }
 0x4aa   : > { %5687 = vst.msk [vmem:[%s6944_s14 + $0x200] sm:$0xf] %vm5558_vm5, %v5549_v17 }
 0x4ab   : > { %v5002_v20 = vadd.f32 %v8445_v36, %v4861_v19  ;;  %v4713_v22 = vpop.f32.mrf.mxu3 }
 0x4ad   : > { %vm5139_vm11 = vcmp.gt.f32.partialorder %v5002_v20, 0.0  ;;  %v5276_v23 = vmul.f32 0.2, %v5002_v20 }
 0x4ae   : > { %v3859_v24 = vpop.f32.mrf.mxu2  ;;  %v1761_v27 = vpop.f32.mrf.mxu0 }
 0x4af   : > { %v5413_v25 = vsel %vm5139_vm11, %v5002_v20, %v5276_v23  ;;  %v4008_v26 = vadd.f32 %v3859_v24, %v2259_v21  ;;  %v2263_v30 = vpop.f32.mrf.mxu1  ;;  %v2261_v50 = vadd.f32 %v2260_v18, %v1761_v27 }
 0x4b0   : > { %v5550_v28 = vpack.c.bf16 %v5413_v25, %v5413_v25 }
 0x4b1   : > { %v4862_v29 = vadd.f32 %v4713_v22, %v4008_v26 }
 0x4b2   : > { %5688 = vst.msk [vmem:[%s6944_s14 + $0x204] sm:$0xf] %vm5558_vm5, %v5550_v28 }
 0x4b3   : > { %v5003_v31 = vadd.f32 %v8445_v36, %v4862_v29  ;;  %v4715_v32 = vpop.f32.mrf.mxu3 }
 0x4b5   : > { %vm5140_vm12 = vcmp.gt.f32.partialorder %v5003_v31, 0.0  ;;  %v5277_v34 = vmul.f32 0.2, %v5003_v31 }
 0x4b6   : > { %v3861_v35 = vpop.f32.mrf.mxu2  ;;  %v1764_v39 = vpop.f32.mrf.mxu0 }
 0x4b7   : > { %v5414_v37 = vsel %vm5140_vm12, %v5003_v31, %v5277_v34  ;;  %v4009_v38 = vadd.f32 %v3861_v35, %v2261_v50  ;;  %v2265_v41 = vpop.f32.mrf.mxu1  ;;  %v2264_v44 = vadd.f32 %v2263_v30, %v1764_v39  ;;  %v5698_v39 = vld [vmem:[%s6944_s14 + $0x220] sm:$0x1] }
 0x4b8   : > { %v5551_v40 = vpack.c.bf16 %v5414_v37, %v5414_v37 }
 0x4b9   : > { %v4863_v42 = vadd.f32 %v4715_v32, %v4009_v38 }
 0x4ba   : > { %5689 = vst.msk [vmem:[%s6944_s14 + $0x208] sm:$0xf] %vm5558_vm5, %v5551_v40 }
 0x4bb   : > { %v5004_v43 = vadd.f32 %v8445_v36, %v4863_v42  ;;  %v4718_v48 = vpop.f32.mrf.mxu3 }
 0x4bd   : > { %vm5141_vm13 = vcmp.gt.f32.partialorder %v5004_v43, 0.0  ;;  %v5278_v45 = vmul.f32 0.2, %v5004_v43 }
 0x4be   : > { %v3864_v47 = vpop.f32.mrf.mxu2  ;;  %v1766_v49 = vpop.f32.mrf.mxu0 }
 0x4bf   : > { %v5415_v59 = vsel %vm5141_vm13, %v5004_v43, %v5278_v45  ;;  %v4010_v46 = vadd.f32 %v3864_v47, %v2264_v44  ;;  %v2268_v52 = vpop.f32.mrf.mxu1  ;;  %v2266_v56 = vadd.f32 %v2265_v41, %v1766_v49 }
 0x4c0   : > { %v5552_v51 = vpack.c.bf16 %v5415_v59, %v5415_v59 }
 0x4c1   : > { %v4864_v53 = vadd.f32 %v4718_v48, %v4010_v46 }
 0x4c2   : > { %5690 = vst.msk [vmem:[%s6944_s14 + $0x20c] sm:$0xf] %vm5558_vm5, %v5552_v51 }
 0x4c3   : > { %v5005_v54 = vadd.f32 %v8445_v36, %v4864_v53  ;;  %v4720_v4 = vpop.f32.mrf.mxu3 }
 0x4c5   : > { %vm5142_vm2 = vcmp.gt.f32.partialorder %v5005_v54, 0.0  ;;  %v5279_v55 = vmul.f32 0.2, %v5005_v54 }
 0x4c6   : > { %v3866_v57 = vpop.f32.mrf.mxu2  ;;  %v1769_v61 = vpop.f32.mrf.mxu0 }
 0x4c7   : > { %v5416_v58 = vsel %vm5142_vm2, %v5005_v54, %v5279_v55  ;;  %v4011_v60 = vadd.f32 %v3866_v57, %v2266_v56  ;;  %v2270_v0 = vpop.f32.mrf.mxu1  ;;  %v2269_v3 = vadd.f32 %v2268_v52, %v1769_v61 }
 0x4c8   : > { %v5553_v62 = vpack.c.bf16 %v5416_v58, %v5416_v58 }
 0x4c9   : > { %v4865_v2 = vadd.f32 %v4720_v4, %v4011_v60 }
 0x4ca   : > { %5691 = vst.msk [vmem:[%s6944_s14 + $0x210] sm:$0xf] %vm5558_vm5, %v5553_v62 }
 0x4cb   : > { %v5006_v1 = vadd.f32 %v8445_v36, %v4865_v2  ;;  %v4723_v5 = vpop.f32.mrf.mxu3 }
 0x4cd   : > { %vm5143_vm3 = vcmp.gt.f32.partialorder %v5006_v1, 0.0  ;;  %v5280_v6 = vmul.f32 0.2, %v5006_v1 }
 0x4ce   : > { %v3869_v7 = vpop.f32.mrf.mxu2  ;;  %v1771_v33 = vpop.f32.mrf.mxu0 }
 0x4cf   : > { %v5417_v11 = vsel %vm5143_vm3, %v5006_v1, %v5280_v6  ;;  %v4012_v9 = vadd.f32 %v3869_v7, %v2269_v3  ;;  %v2273_v10 = vpop.f32.mrf.mxu1  ;;  %v2271_v15 = vadd.f32 %v2270_v0, %v1771_v33 }
 0x4d0   : > { %v5554_v13 = vpack.c.bf16 %v5417_v11, %v5417_v11 }
 0x4d1   : > { %v4866_v8 = vadd.f32 %v4723_v5, %v4012_v9 }
 0x4d2   : > { %5692 = vst.msk [vmem:[%s6944_s14 + $0x214] sm:$0xf] %vm5558_vm5, %v5554_v13 }
 0x4d3   : > { %v5007_v63 = vadd.f32 %v8445_v36, %v4866_v8  ;;  %v4725_v12 = vpop.f32.mrf.mxu3 }
 0x4d5   : > { %vm5144_vm14 = vcmp.gt.f32.partialorder %v5007_v63, 0.0  ;;  %v5281_v14 = vmul.f32 0.2, %v5007_v63 }
 0x4d6   : > { %v3871_v16 = vpop.f32.mrf.mxu2  ;;  %v1774_v19 = vpop.f32.mrf.mxu0 }
 0x4d7   : > { %v5418_v17 = vsel %vm5144_vm14, %v5007_v63, %v5281_v14  ;;  %v4013_v18 = vadd.f32 %v3871_v16, %v2271_v15  ;;  %v2275_v21 = vpop.f32.mrf.mxu1  ;;  %v2274_v24 = vadd.f32 %v2273_v10, %v1774_v19 }
 0x4d8   : > { %v5555_v20 = vpack.c.bf16 %v5418_v17, %v5418_v17 }
 0x4d9   : > { %v4867_v22 = vadd.f32 %v4725_v12, %v4013_v18 }
 0x4da   : > { %5693 = vst.msk [vmem:[%s6944_s14 + $0x218] sm:$0xf] %vm5558_vm5, %v5555_v20 }
 0x4db   : > { %v5008_v23 = vadd.f32 %v8445_v36, %v4867_v22  ;;  %v4728_v25 = vpop.f32.mrf.mxu3 }
 0x4dd   : > { %vm5145_vm15 = vcmp.gt.f32.partialorder %v5008_v23, 0.0  ;;  %v5282_v26 = vmul.f32 0.2, %v5008_v23 }
 0x4de   : > { %v3874_v27 = vpop.f32.mrf.mxu2  ;;  %v1776_v29 = vpop.f32.mrf.mxu0 }
 0x4df   : > { %v5419_v28 = vsel %vm5145_vm15, %v5008_v23, %v5282_v26  ;;  %v4014_v30 = vadd.f32 %v3874_v27, %v2274_v24 }
 0x4e0   : > { %v5556_v31 = vpack.c.bf16 %v5419_v28, %v5419_v28 }
 0x4e1   : > { %v4868_v32 = vadd.f32 %v4728_v25, %v4014_v30 }
 0x4e2   : > { %5694 = vst.msk [vmem:[%s6944_s14 + $0x21c] sm:$0xf] %vm5558_vm5, %v5556_v31 }
 0x4e3   : > { %v5009_v34 = vadd.f32 %v8445_v36, %v4868_v32  ;;  %v4730_v50 = vpop.f32.mrf.mxu3 }
 0x4e5   : > { %vm5146_vm4 = vcmp.gt.f32.partialorder %v5009_v34, 0.0  ;;  %v5283_v35 = vmul.f32 0.2, %v5009_v34 }
 0x4e6   : > { %v3876_v37 = vpop.f32.mrf.mxu2 }
 0x4e7   : > { %v5420_v38 = vsel %vm5146_vm4, %v5009_v34, %v5283_v35 }
 0x4e8   : > { %v5557_v40 = vpack.c.bf16 %v5420_v38, %v5420_v38 }
 0x4ea   : > { %v5699_v41 = vsel %vm5697_vm6, %v5557_v40, %v5698_v39 }
 0x4eb   : > { %5700 = vst [vmem:[%s6944_s14 + $0x220] sm:$0x1] %v5699_v41 }
 0x4ec PF: > { %s13_s12 = sadd.s32 1, %s6772_s12  }
 0x4ed   : > { %p10_p4 = scmp.ge.s32.totalorder %s13_s12, 4  }
 0x4ef   :  { %12 = sbr.rel (!%p10_p4) target bundleno = 1 (0x1), region = 65 }

// kernel: discriminator_forward.5
= control target key start
LH: loop header
LB: loop body
LE: loop exit
PB: predicated region body
PF: predicated region fallthrough
CT: control target
= control target key end

     0   :  { %s3014_s18 = smov 0   ;;  %s3016_s19 = smov 0   ;;  %s3839_s0 = inlined_call_operand.vmem [shape: bf16[2,307,64], index: 0, kind: input, shape index: {}]   ;;  %s3840_s1 = inlined_call_operand.vmem [shape: bf16[4,64,32], index: 1, kind: input, shape index: {}]   ;;  %s3841_s2 = inlined_call_operand.vmem [shape: f32[1,32], index: 2, kind: input, shape index: {}]   ;;  %s3842_s3 = inlined_call_operand.vmem [shape: f32[1,32], index: 3, kind: input, shape index: {}]   ;;  %s3843_s4 = inlined_call_operand.vmem [shape: f32[289,1], index: 4, kind: input, shape index: {}]   ;;  %s3844_s5 = inlined_call_operand.vmem [shape: bf16[2,289,32], index: 5, kind: output, shape index: {}]  }
   0x1   :  { %s3018_s20 = smov 0   ;;  %s3020_s21 = smov 0  }
   0x2   :  { %s3022_s22 = smov 0  }
   0x3 LB: > { %s24_s23 = sadd.s32 1, %s2972_s20  ;;  %s27_s24 = sadd.s32 1, %s2976_s21  ;;  %s2980_s22 = sphi %s3022_s22, %s15_s22   ;;  %s2976_s21 = sphi %s3020_s21, %s3848_s21   ;;  %s2972_s20 = sphi %s3018_s20, %s3847_s20   ;;  %s2968_s19 = sphi %s3016_s19, %s3846_s19   ;;  %s2964_s18 = sphi %s3014_s18, %s3845_s18  }
   0x4   : > { %p25_p0 = scmp.ge.s32.totalorder %s24_s23, 2  ;;  %p2523_p1 = scmp.ge.s32.totalorder %s2980_s22, 1 }
   0x5   : > { %p201_p2 = scmp.lt.s32.totalorder %s2980_s22, 5 }
   0x6   : > { %s3850_s23 = smov (%p25_p0, %s24_s23), 0  ;;  %s3852_s24 = smov (!%p25_p0, %s27_s24), %s2976_s21 }
   0x7   : > { %p202_p3 = pnand %p2523_p1, %p201_p2  ;;  %p29_p4 = scmp.ge.s32.totalorder %s3852_s24, 2 }
   0x8   : > { %p230_p5 = scmp.lt.s32.totalorder (!%p202_p3), %s2964_s18, 1  ;;  %s235_s25 = smul.u32 (!%p202_p3), %s2964_s18, %s2968_s19 }
   0x9   : > { %s3854_s24 = smov (%p29_p4, %s3852_s24), 0  ;;  %205 = sbr.rel (%p202_p3) target bundleno = 811 (0x32b), region = 40 }
   0xa   : > { %p243_p6 = scmp.eq.s32.totalorder (!%p202_p3), %s2968_s19, 0  ;;  %p244_p7 = scmp.eq.s32.totalorder (!%p202_p3), %s2964_s18, 0 }
   0xb   : > { %p236_p8 = scmp.lt.s32.totalorder (!%p202_p3), %s235_s25, 1 }
   0xc   : > { %p245_p9 = pnand (!%p202_p3), %p244_p7, %p243_p6 }
   0xe   : > { %s3856_s18 = smov (!%p230_p5, %s2964_s18), 1  ;;  %s3858_s25 = smov (!%p236_p8, %s235_s25), 1 }
   0xf   : > { %s2893_s26 = smul.u32 156, %s3856_s18 }
  0x10   : > { %s2894_s30 = smul.u32 148, %s3858_s25 }
  0x11   : > { %s3051_s29 = scalar_lea.vmem %s3839_s0, %s2893_s26  ;;  %248 = sbr.rel (%p245_p9) target bundleno = 25 (0x19), region = 44 }
  0x12   : > { %s3056_s8 = scalar_lea.vmem %s3844_s5, %s2894_s30 }
  0x16   : > { %vm249_vm0 = vcmask 253952   ;;  %v2982_v0 = vmov 0.0  }
  0x17   : > { %250 = vst.msk [vmem:[#allocation2] sm:$0x1] %vm249_vm0, %v2982_v0 }
  0x18   : > { %251 = vst.msk [vmem:[#allocation3] sm:$0x1] %vm249_vm0, %v2982_v0 }
  0x19 PF: > { %v2859_v1 = vld [vmem:[%s3840_s1 + $0x38] sm:$0xff]  ;;  %v2858_v5 = vld [vmem:[%s3840_s1 + $0x30] sm:$0xff]  ;;  %v2857_v9 = vld [vmem:[%s3840_s1 + $0x28] sm:$0xff]  ;;  %vm399_vm1 = vsmask.f32 7424  ;;  %vm1427_vm2 = vcmask 1046528  }
  0x1a   : > { %v2855_v2 = vld [vmem:[%s3840_s1 + $0x18] sm:$0xff]  ;;  %636 = vmatpush.bf16.msra.mxu0 %v2859_v1  ;;  %v2854_v6 = vld [vmem:[%s3840_s1 + $0x10] sm:$0xff]  ;;  %v2853_v10 = vld [vmem:[%s3840_s1 + $0x8] sm:$0xff]  ;;  %vm574_vm3 = vcmask 523264   ;;  %p2830_p10 = scmp.ne.s32.totalorder %s2968_s19, 0 }
  0x1b   : > { %v2880_v3 = vld [vmem:[%s3840_s1 + $0x58] sm:$0xff]  ;;  %801 = vmatpush.bf16.msra.mxu1 %v2855_v2  ;;  %v2879_v7 = vld [vmem:[%s3840_s1 + $0x50] sm:$0xff]  ;;  %v2878_v11 = vld [vmem:[%s3840_s1 + $0x48] sm:$0xff] }
  0x1c   : > { %v2884_v4 = vld [vmem:[%s3840_s1 + $0x78] sm:$0xff]  ;;  %1274 = vmatpush.bf16.msra.mxu2 %v2880_v3  ;;  %v2883_v8 = vld [vmem:[%s3840_s1 + $0x70] sm:$0xff]  ;;  %v2834_v12 = vld [vmem:[%s3051_s29] sm:$0xff] }
  0x1d   : > { %1550 = vmatpush.bf16.msra.mxu3 %v2884_v4  ;;  %v2835_v13 = vld [vmem:[%s3051_s29 + $0x8] sm:$0xff]  ;;  %v2860_v15 = vld [vmem:[%s3051_s29 + $0x10] sm:$0xff]  ;;  %v401_v18 = vshrl.u32 %v2834_v12, 16  ;;  %v403_v19 = vshll.u32 %v2834_v12, 16  ;;  %v2856_v27 = vld [vmem:[%s3840_s1 + $0x20] sm:$0xff] }
  0x1e   : > { %637 = vmatpush.bf16.msra.mxu0 %v2858_v5  ;;  %v2889_v14 = vld [vmem:[%s3051_s29 + $0x8] sm:$0xff]   ;;  %v408_v20 = vshll.u32 %v2835_v13, 16  ;;  %v1047_v24 = vshll.u32 %v2860_v15, 16  ;;  %v2852_v28 = vld [vmem:[%s3840_s1] sm:$0xff]  ;;  %v1429_v36 = vrot.slane %v2860_v15, 1  ;;  %v2836_v41 = vld [vmem:[%s3051_s29 + $0x10] sm:$0xff] }
  0x1f   : > { %802 = vmatpush.bf16.msra.mxu1 %v2854_v6  ;;  %v2890_v16 = vld [vmem:[%s3051_s29 + $0x8] sm:$0xf0]  ;;  %v2891_v21 = vld [vmem:[%s3051_s29 + $0x8] sm:$0xe]  ;;  %v1040_v22 = vshrl.u32 %v2889_v14, 16  ;;  %v1042_v23 = vshll.u32 %v2889_v14, 16 }
  0x20   : > { %1275 = vmatpush.bf16.msra.mxu2 %v2879_v7  ;;  %v2882_v17 = vld [vmem:[%s3840_s1 + $0x68] sm:$0xff]  ;;  %v2892_v25 = vor.u32 %v2891_v21, %v2890_v16  ;;  %v405_v26 = vrot.slane %v403_v19, 1  ;;  %v410_v29 = vrot.slane %v408_v20, 1  ;;  %v2877_v31 = vld [vmem:[%s3840_s1 + $0x40] sm:$0xff]  ;;  %v1049_v34 = vrot.slane %v1047_v24, 1  ;;  %v2861_v42 = vld [vmem:[%s3051_s29 + $0x18] sm:$0xff] }
  0x21   : > { %1551 = vmatpush.bf16.msra.mxu3 %v2883_v8  ;;  %v1044_v30 = vrot.slane %v1042_v23, 1  ;;  %v2881_v32 = vld [vmem:[%s3840_s1 + $0x60] sm:$0xff]  ;;  %v412_v43 = vshrl.u32 %v2835_v13, 16  ;;  %v416_v44 = vshll.u32 %v2836_v41, 16  ;;  %v1051_v45 = vshrl.u32 %v2860_v15, 16  ;;  %v2837_v55 = vld [vmem:[%s3051_s29 + $0x18] sm:$0xff] }
  0x22   : > { %638 = vmatpush.bf16.msra.mxu0 %v2857_v9  ;;  %v406_v33 = vor.u32 %v405_v26, %v401_v18  ;;  %v1428_v35 = vrot.slane %v2892_v25, 1  ;;  %v1055_v46 = vshll.u32 %v2861_v42, 16  ;;  %v1431_v51 = vrot.slane %v2861_v42, 1  ;;  %v2862_v56 = vld [vmem:[%s3051_s29 + $0x20] sm:$0xff]  ;;  %v2863_v6 = vld [vmem:[%s3051_s29 + $0x28] sm:$0xff]  ;;  %v2864_v20 = vld [vmem:[%s3051_s29 + $0x30] sm:$0xff] }
  0x23   : > { %803 = vmatpush.bf16.msra.mxu1 %v2853_v10  ;;  %v1045_v37 = vor.u32 %v1044_v30, %v1040_v22  ;;  %v414_v47 = vor.u32 %v412_v43, %v410_v29  ;;  %v418_v48 = vrot.slane %v416_v44, 1  ;;  %v1053_v49 = vor.u32 %v1051_v45, %v1049_v34  ;;  %v2838_v5 = vld [vmem:[%s3051_s29 + $0x20] sm:$0xff]  ;;  %v2839_v19 = vld [vmem:[%s3051_s29 + $0x28] sm:$0xff] }
  0x24   : > { %1276 = vmatpush.bf16.msra.mxu2 %v2878_v11  ;;  %v411_v38 = vsel %vm399_vm1, %v406_v33, %v410_v29  ;;  %v1430_v40 = vsel %vm1427_vm2, %v1428_v35, %v1429_v36  ;;  %v1057_v50 = vrot.slane %v1055_v46, 1  ;;  %v1432_v54 = vsel %vm1427_vm2, %v1429_v36, %v1431_v51  ;;  %v2840_v33 = vld [vmem:[%s3051_s29 + $0x30] sm:$0xff] }
  0x25   : > { %1552 = vmatpush.bf16.msra.mxu3 %v2882_v17  ;;  %v1050_v39 = vsel %vm399_vm1, %v1045_v37, %v1049_v34  ;;  %v419_v52 = vsel %vm399_vm1, %v414_v47, %v418_v48  ;;  %v420_v57 = vshrl.u32 %v2836_v41, 16  ;;  %v424_v58 = vshll.u32 %v2837_v55, 16  ;;  %v2865_v34 = vld [vmem:[%s3051_s29 + $0x38] sm:$0xff] }
  0x26   : > { %639 = vmatpush.bf16.msra.mxu0 %v2856_v27  ;;  %v1058_v53 = vsel %vm399_vm1, %v1053_v49, %v1057_v50  ;;  %v1059_v59 = vshrl.u32 %v2861_v42, 16  ;;  %v1063_v60 = vshll.u32 %v2862_v56, 16  ;;  %v1433_v1 = vrot.slane %v2862_v56, 1  ;;  %v2841_v47 = vld [vmem:[%s3051_s29 + $0x38] sm:$0xff] }
  0x27   : > { %804 = vmatpush.bf16.msra.mxu1 %v2852_v28  ;;  %v422_v61 = vor.u32 %v420_v57, %v418_v48  ;;  %v426_v62 = vrot.slane %v424_v58, 1  ;;  %v428_v7 = vshrl.u32 %v2837_v55, 16  ;;  %v432_v8 = vshll.u32 %v2838_v5, 16  ;;  %v2866_v48 = vld [vmem:[%s3051_s29 + $0x40] sm:$0xff] }
  0x28   : > { %1277 = vmatpush.bf16.msra.mxu2 %v2877_v31  ;;  %v1061_v63 = vor.u32 %v1059_v59, %v1057_v50  ;;  %v1065_v0 = vrot.slane %v1063_v60, 1  ;;  %v1434_v4 = vsel %vm1427_vm2, %v1431_v51, %v1433_v1  ;;  %v1067_v9 = vshrl.u32 %v2862_v56, 16 }
  0x29   : > { %1553 = vmatpush.bf16.msra.mxu3 %v2881_v32  ;;  %2622 = vmatmul.msk.bf16.vlgmr.msra.gmra.mxu0 %vm574_vm3, %v411_v38  ;;  %v427_v2 = vsel %vm399_vm1, %v422_v61, %v426_v62  ;;  %v1071_v10 = vshll.u32 %v2863_v6, 16  ;;  %v430_v11 = vor.u32 %v428_v7, %v426_v62  ;;  %v1435_v15 = vrot.slane %v2863_v6, 1  ;;  %v2842_v61 = vld [vmem:[%s3051_s29 + $0x40] sm:$0xff]  ;;  %v2867_v62 = vld [vmem:[%s3051_s29 + $0x48] sm:$0xff] }
  0x2a   : > { %2657 = vmatmul.msk.bf16.vlgmr.msra.gmra.mxu1 %vm574_vm3, %v2834_v12  ;;  %v1066_v3 = vsel %vm399_vm1, %v1061_v63, %v1065_v0  ;;  %v434_v12 = vrot.slane %v432_v8, 1  ;;  %v436_v21 = vshrl.u32 %v2838_v5, 16  ;;  %v440_v22 = vshll.u32 %v2839_v19, 16 }
  0x2b   : > { %2768 = vmatmul.msk.bf16.vlgmr.msra.gmra.mxu2 %vm574_vm3, %v1050_v39  ;;  %v1073_v14 = vrot.slane %v1071_v10, 1  ;;  %v1436_v18 = vsel %vm1427_vm2, %v1433_v1, %v1435_v15  ;;  %v1075_v23 = vshrl.u32 %v2863_v6, 16  ;;  %v1079_v24 = vshll.u32 %v2864_v20, 16 }
  0x2c   : > { %2811 = vmatmul.msk.bf16.vlgmr.msra.gmra.mxu3 %vm574_vm3, %v1430_v40  ;;  %v435_v16 = vsel %vm399_vm1, %v430_v11, %v434_v12  ;;  %v438_v25 = vor.u32 %v436_v21, %v434_v12  ;;  %v442_v26 = vrot.slane %v440_v22, 1  ;;  %v1437_v29 = vrot.slane %v2864_v20, 1  ;;  %v2843_v11 = vld [vmem:[%s3051_s29 + $0x48] sm:$0xff]  ;;  %v2868_v12 = vld [vmem:[%s3051_s29 + $0x50] sm:$0xff] }
  0x2d   : > { %v1077_v27 = vor.u32 %v1075_v23, %v1073_v14  ;;  %v1081_v28 = vrot.slane %v1079_v24, 1  ;;  %v444_v35 = vshrl.u32 %v2839_v19, 16  ;;  %v448_v36 = vshll.u32 %v2840_v33, 16 }
  0x2e   : > { %v443_v30 = vsel %vm399_vm1, %v438_v25, %v442_v26  ;;  %v1438_v32 = vsel %vm1427_vm2, %v1435_v15, %v1437_v29  ;;  %v1083_v37 = vshrl.u32 %v2864_v20, 16  ;;  %v1087_v38 = vshll.u32 %v2865_v34, 16 }
  0x2f   : > { %v1082_v31 = vsel %vm399_vm1, %v1077_v27, %v1081_v28  ;;  %v446_v39 = vor.u32 %v444_v35, %v442_v26  ;;  %v450_v40 = vrot.slane %v448_v36, 1  ;;  %v1439_v43 = vrot.slane %v2865_v34, 1 }
  0x30   : > { %v1089_v42 = vrot.slane %v1087_v38, 1  ;;  %v452_v49 = vshrl.u32 %v2840_v33, 16  ;;  %v456_v50 = vshll.u32 %v2841_v47, 16  ;;  %v1091_v51 = vshrl.u32 %v2865_v34, 16 }
  0x31   : > { %v451_v44 = vsel %vm399_vm1, %v446_v39, %v450_v40  ;;  %v1440_v46 = vsel %vm1427_vm2, %v1437_v29, %v1439_v43  ;;  %v1441_v57 = vrot.slane %v2866_v48, 1  ;;  %v460_v63 = vshrl.u32 %v2841_v47, 16  ;;  %v2869_v29 = vld [vmem:[%s3051_s29 + $0x58] sm:$0xff] }
  0x32   : > { %v1099_v1 = vshrl.u32 %v2866_v48, 16  ;;  %v1443_v7 = vrot.slane %v2867_v62, 1  ;;  %v1107_v15 = vshrl.u32 %v2867_v62, 16  ;;  %v1445_v21 = vrot.slane %v2868_v12, 1 }
  0x33   : > { %v1442_v60 = vsel %vm1427_vm2, %v1439_v43, %v1441_v57  ;;  %v476_v35 = vshrl.u32 %v2843_v11, 16  ;;  %v1115_v38 = vshrl.u32 %v2868_v12, 16  ;;  %v1119_v39 = vshll.u32 %v2869_v29, 16 }
  0x34   : > { %v1444_v10 = vsel %vm1427_vm2, %v1441_v57, %v1443_v7  ;;  %v1446_v27 = vsel %vm1427_vm2, %v1443_v7, %v1445_v21  ;;  %v2870_v57 = vld [vmem:[%s3051_s29 + $0x60] sm:$0xff] }
  0x39   : > { %2623 = vmatmul.msk.bf16.gmra.mxu0 %vm574_vm3, %v419_v52  ;;  %v1095_v52 = vshll.u32 %v2866_v48, 16 }
  0x3a   : > { %2658 = vmatmul.msk.bf16.gmra.mxu1 %vm574_vm3, %v2835_v13  ;;  %v1069_v13 = vor.u32 %v1067_v9, %v1065_v0  ;;  %v464_v0 = vshll.u32 %v2842_v61, 16 }
  0x3b   : > { %2769 = vmatmul.msk.bf16.gmra.mxu2 %vm574_vm3, %v1058_v53  ;;  %v454_v53 = vor.u32 %v452_v49, %v450_v40  ;;  %v1097_v56 = vrot.slane %v1095_v52, 1 }
  0x3c   : > { %2812 = vmatmul.msk.bf16.gmra.mxu3 %vm574_vm3, %v1432_v54  ;;  %v1074_v17 = vsel %vm399_vm1, %v1069_v13, %v1073_v14  ;;  %v458_v54 = vrot.slane %v456_v50, 1  ;;  %v468_v13 = vshrl.u32 %v2842_v61, 16  ;;  %v472_v14 = vshll.u32 %v2843_v11, 16 }
  0x3e   : > { %v459_v58 = vsel %vm399_vm1, %v454_v53, %v458_v54 }
  0x49   : > { %2624 = vmatmul.msk.bf16.gmra.mxu0 %vm574_vm3, %v427_v2  ;;  %v1103_v2 = vshll.u32 %v2867_v62, 16 }
  0x4a   : > { %2659 = vmatmul.msk.bf16.gmra.mxu1 %vm574_vm3, %v2836_v41  ;;  %v1085_v41 = vor.u32 %v1083_v37, %v1081_v28  ;;  %v2844_v28 = vld [vmem:[%s3051_s29 + $0x50] sm:$0xff] }
  0x4b   : > { %2770 = vmatmul.msk.bf16.gmra.mxu2 %vm574_vm3, %v1066_v3  ;;  %v462_v3 = vor.u32 %v460_v63, %v458_v54  ;;  %v1105_v6 = vrot.slane %v1103_v2, 1  ;;  %v480_v36 = vshll.u32 %v2844_v28, 16  ;;  %v484_v63 = vshrl.u32 %v2844_v28, 16 }
  0x4c   : > { %2813 = vmatmul.msk.bf16.gmra.mxu3 %vm574_vm3, %v1434_v4  ;;  %v1090_v45 = vsel %vm399_vm1, %v1085_v41, %v1089_v42  ;;  %v466_v4 = vrot.slane %v464_v0, 1  ;;  %v1123_v2 = vshrl.u32 %v2869_v29, 16 }
  0x4e   : > { %v467_v8 = vsel %vm399_vm1, %v462_v3, %v466_v4  ;;  %v1127_v3 = vshll.u32 %v2870_v57, 16 }
  0x59   : > { %2625 = vmatmul.msk.bf16.gmra.mxu0 %vm574_vm3, %v435_v16  ;;  %v1111_v16 = vshll.u32 %v2868_v12, 16 }
  0x5a   : > { %2660 = vmatmul.msk.bf16.gmra.mxu1 %vm574_vm3, %v2837_v55  ;;  %v1093_v55 = vor.u32 %v1091_v51, %v1089_v42  ;;  %v482_v42 = vrot.slane %v480_v36, 1 }
  0x5b   : > { %2771 = vmatmul.msk.bf16.gmra.mxu2 %vm574_vm3, %v1074_v17  ;;  %v470_v17 = vor.u32 %v468_v13, %v466_v4  ;;  %v1113_v20 = vrot.slane %v1111_v16, 1 }
  0x5c   : > { %2814 = vmatmul.msk.bf16.gmra.mxu3 %vm574_vm3, %v1436_v18  ;;  %v1098_v59 = vsel %vm399_vm1, %v1093_v55, %v1097_v56  ;;  %v474_v18 = vrot.slane %v472_v14, 1 }
  0x5d   : > { %v1117_v43 = vor.u32 %v1115_v38, %v1113_v20 }
  0x5e   : > { %v475_v24 = vsel %vm399_vm1, %v470_v17, %v474_v18  ;;  %v478_v41 = vor.u32 %v476_v35, %v474_v18 }
  0x60   : > { %v483_v51 = vsel %vm399_vm1, %v478_v41, %v482_v42 }
  0x69   : > { %2626 = vmatmul.msk.bf16.gmra.mxu0 %vm574_vm3, %v443_v30 }
  0x6a   : > { %2661 = vmatmul.msk.bf16.gmra.mxu1 %vm574_vm3, %v2838_v5  ;;  %v1101_v5 = vor.u32 %v1099_v1, %v1097_v56  ;;  %v2845_v56 = vld [vmem:[%s3051_s29 + $0x58] sm:$0xff] }
  0x6b   : > { %2772 = vmatmul.msk.bf16.gmra.mxu2 %vm574_vm3, %v1082_v31  ;;  %v488_v0 = vshll.u32 %v2845_v56, 16 }
  0x6c   : > { %2815 = vmatmul.msk.bf16.gmra.mxu3 %vm574_vm3, %v1438_v32  ;;  %v1106_v9 = vsel %vm399_vm1, %v1101_v5, %v1105_v6  ;;  %v486_v5 = vor.u32 %v484_v63, %v482_v42 }
  0x79   : > { %2627 = vmatmul.msk.bf16.gmra.mxu0 %vm574_vm3, %v451_v44  ;;  %v1121_v44 = vrot.slane %v1119_v39, 1 }
  0x7a   : > { %2662 = vmatmul.msk.bf16.gmra.mxu1 %vm574_vm3, %v2839_v19  ;;  %v1109_v19 = vor.u32 %v1107_v15, %v1105_v6  ;;  %v490_v6 = vrot.slane %v488_v0, 1 }
  0x7b   : > { %2773 = vmatmul.msk.bf16.gmra.mxu2 %vm574_vm3, %v1090_v45  ;;  %v1447_v45 = vrot.slane %v2869_v29, 1  ;;  %v1122_v53 = vsel %vm399_vm1, %v1117_v43, %v1121_v44  ;;  %v1125_v7 = vor.u32 %v1123_v2, %v1121_v44 }
  0x7c   : > { %2816 = vmatmul.msk.bf16.gmra.mxu3 %vm574_vm3, %v1440_v46  ;;  %v1114_v26 = vsel %vm399_vm1, %v1109_v19, %v1113_v20  ;;  %v491_v15 = vsel %vm399_vm1, %v486_v5, %v490_v6  ;;  %v2846_v20 = vld [vmem:[%s3051_s29 + $0x60] sm:$0xff] }
  0x7d   : > { %v1448_v54 = vsel %vm1427_vm2, %v1445_v21, %v1447_v45  ;;  %v2871_v21 = vld [vmem:[%s3051_s29 + $0x68] sm:$0xff]  ;;  %v496_v29 = vshll.u32 %v2846_v20, 16 }
  0x89   : > { %2628 = vmatmul.msk.bf16.gmra.mxu0 %vm574_vm3, %v459_v58 }
  0x8a   : > { %2663 = vmatmul.msk.bf16.gmra.mxu1 %vm574_vm3, %v2840_v33 }
  0x8b   : > { %2774 = vmatmul.msk.bf16.gmra.mxu2 %vm574_vm3, %v1098_v59 }
  0x8c   : > { %2817 = vmatmul.msk.bf16.gmra.mxu3 %vm574_vm3, %v1442_v60 }
  0x99   : > { %2629 = vmatmul.msk.bf16.gmra.mxu0 %vm574_vm3, %v467_v8  ;;  %v1129_v8 = vrot.slane %v1127_v3, 1 }
  0x9a   : > { %2664 = vmatmul.msk.bf16.gmra.mxu1 %vm574_vm3, %v2841_v47 }
  0x9b   : > { %2775 = vmatmul.msk.bf16.gmra.mxu2 %vm574_vm3, %v1106_v9  ;;  %v1449_v9 = vrot.slane %v2870_v57, 1  ;;  %v1130_v17 = vsel %vm399_vm1, %v1125_v7, %v1129_v8 }
  0x9c   : > { %2818 = vmatmul.msk.bf16.gmra.mxu3 %vm574_vm3, %v1444_v10 }
  0x9d   : > { %v1450_v18 = vsel %vm1427_vm2, %v1447_v45, %v1449_v9 }
  0xa6   : > { %v641_v22 = vpop.f32.mrf.mxu0 }
  0xa7   : > { %v806_v23 = vpop.f32.mrf.mxu1 }
  0xa8   : > { %v807_v25 = vadd.f32 %v806_v23, %v641_v22 }
  0xa9   : > { %2630 = vmatmul.msk.bf16.gmra.mxu0 %vm574_vm3, %v475_v24 }
  0xaa   : > { %2665 = vmatmul.msk.bf16.gmra.mxu1 %vm574_vm3, %v2842_v61 }
  0xab   : > { %2776 = vmatmul.msk.bf16.gmra.mxu2 %vm574_vm3, %v1114_v26 }
  0xac   : > { %2819 = vmatmul.msk.bf16.gmra.mxu3 %vm574_vm3, %v1446_v27  ;;  %v492_v27 = vshrl.u32 %v2845_v56, 16 }
  0xae   : > { %v1279_v30 = vpop.f32.mrf.mxu2  ;;  %v643_v33 = vpop.f32.mrf.mxu0 }
  0xaf   : > { %v1555_v31 = vpop.f32.mrf.mxu3  ;;  %v1373_v32 = vadd.f32 %v1279_v30, %v807_v25  ;;  %v808_v34 = vpop.f32.mrf.mxu1 }
  0xb0   : > { %v809_v37 = vadd.f32 %v808_v34, %v643_v33  ;;  %v494_v34 = vor.u32 %v492_v27, %v490_v6 }
  0xb1   : > { %v3193_v40 = vadd.f32 %v1555_v31, %v1373_v32  ;;  %v1131_v31 = vshrl.u32 %v2870_v57, 16  ;;  %v1135_v32 = vshll.u32 %v2871_v21, 16 }
  0xb3   : > { %v1133_v35 = vor.u32 %v1131_v31, %v1129_v8  ;;  %v1137_v36 = vrot.slane %v1135_v32, 1 }
  0xb6   : > { %v1281_v46 = vpop.f32.mrf.mxu2  ;;  %v646_v49 = vpop.f32.mrf.mxu0 }
  0xb7   : > { %v1557_v47 = vpop.f32.mrf.mxu3  ;;  %v1374_v48 = vadd.f32 %v1281_v46, %v809_v37  ;;  %v811_v50 = vpop.f32.mrf.mxu1  ;;  %v1451_v37 = vrot.slane %v2871_v21, 1  ;;  %v1138_v46 = vsel %vm399_vm1, %v1133_v35, %v1137_v36 }
  0xb8   : > { %v812_v52 = vadd.f32 %v811_v50, %v646_v49  ;;  %v2847_v49 = vld [vmem:[%s3051_s29 + $0x68] sm:$0xff]  ;;  %v2872_v50 = vld [vmem:[%s3051_s29 + $0x70] sm:$0xff] }
  0xb9   : > { %v3198_v55 = vadd.f32 %v1557_v47, %v1374_v48  ;;  %2631 = vmatmul.msk.bf16.gmra.mxu0 %vm574_vm3, %v483_v51  ;;  %v1452_v47 = vsel %vm1427_vm2, %v1449_v9, %v1451_v37  ;;  %v1453_v3 = vrot.slane %v2872_v50, 1  ;;  %v1147_v27 = vshrl.u32 %v2872_v50, 16 }
  0xba   : > { %2666 = vmatmul.msk.bf16.gmra.mxu1 %vm574_vm3, %v2843_v11 }
  0xbb   : > { %2777 = vmatmul.msk.bf16.gmra.mxu2 %vm574_vm3, %v1122_v53 }
  0xbc   : > { %2820 = vmatmul.msk.bf16.gmra.mxu3 %vm574_vm3, %v1448_v54 }
  0xbe   : > { %v1284_v58 = vpop.f32.mrf.mxu2  ;;  %v648_v61 = vpop.f32.mrf.mxu0 }
  0xbf   : > { %v1560_v59 = vpop.f32.mrf.mxu3  ;;  %v1375_v60 = vadd.f32 %v1284_v58, %v812_v52  ;;  %v813_v62 = vpop.f32.mrf.mxu1  ;;  %v500_v58 = vshrl.u32 %v2846_v20, 16 }
  0xc0   : > { %v814_v1 = vadd.f32 %v813_v62, %v648_v61  ;;  %v1139_v61 = vshrl.u32 %v2871_v21, 16  ;;  %v1143_v62 = vshll.u32 %v2872_v50, 16 }
  0xc1   : > { %v3206_v4 = vadd.f32 %v1560_v59, %v1375_v60  ;;  %v504_v59 = vshll.u32 %v2847_v49, 16 }
  0xc2   : > { %v1145_v2 = vrot.slane %v1143_v62, 1 }
  0xc4   : > { %v1149_v32 = vor.u32 %v1147_v27, %v1145_v2 }
  0xc6   : > { %v1286_v10 = vpop.f32.mrf.mxu2  ;;  %v651_v13 = vpop.f32.mrf.mxu0 }
  0xc7   : > { %v1562_v11 = vpop.f32.mrf.mxu3  ;;  %v1376_v12 = vadd.f32 %v1286_v10, %v814_v1  ;;  %v816_v14 = vpop.f32.mrf.mxu1  ;;  %v1141_v1 = vor.u32 %v1139_v61, %v1137_v36 }
  0xc8   : > { %v817_v16 = vadd.f32 %v816_v14, %v651_v13  ;;  %v1454_v13 = vsel %vm1427_vm2, %v1451_v37, %v1453_v3 }
  0xc9   : > { %v3211_v19 = vadd.f32 %v1562_v11, %v1376_v12  ;;  %2632 = vmatmul.msk.bf16.gmra.mxu0 %vm574_vm3, %v491_v15  ;;  %v1146_v12 = vsel %vm399_vm1, %v1141_v1, %v1145_v2  ;;  %v2848_v15 = vld [vmem:[%s3051_s29 + $0x70] sm:$0xff] }
  0xca   : > { %2667 = vmatmul.msk.bf16.gmra.mxu1 %vm574_vm3, %v2844_v28  ;;  %v498_v28 = vrot.slane %v496_v29, 1 }
  0xcb   : > { %2778 = vmatmul.msk.bf16.gmra.mxu2 %vm574_vm3, %v1130_v17 }
  0xcc   : > { %2821 = vmatmul.msk.bf16.gmra.mxu3 %vm574_vm3, %v1450_v18  ;;  %v499_v44 = vsel %vm399_vm1, %v494_v34, %v498_v28  ;;  %v502_v0 = vor.u32 %v500_v58, %v498_v28 }
  0xce   : > { %v1289_v22 = vpop.f32.mrf.mxu2  ;;  %v653_v25 = vpop.f32.mrf.mxu0 }
  0xcf   : > { %v1565_v23 = vpop.f32.mrf.mxu3  ;;  %v1377_v24 = vadd.f32 %v1289_v22, %v817_v16  ;;  %v818_v26 = vpop.f32.mrf.mxu1  ;;  %v2873_v16 = vld [vmem:[%s3051_s29 + $0x78] sm:$0xff] }
  0xd0   : > { %v819_v30 = vadd.f32 %v818_v26, %v653_v25  ;;  %v512_v25 = vshll.u32 %v2848_v15, 16  ;;  %v1151_v29 = vshll.u32 %v2873_v16, 16  ;;  %v1455_v28 = vrot.slane %v2873_v16, 1 }
  0xd1   : > { %v3219_v33 = vadd.f32 %v1565_v23, %v1377_v24  ;;  %v508_v24 = vshrl.u32 %v2847_v49, 16 }
  0xd2   : > { %v1153_v34 = vrot.slane %v1151_v29, 1 }
  0xd6   : > { %v1291_v38 = vpop.f32.mrf.mxu2  ;;  %v656_v42 = vpop.f32.mrf.mxu0 }
  0xd7   : > { %v1567_v39 = vpop.f32.mrf.mxu3  ;;  %v1378_v41 = vadd.f32 %v1291_v38, %v819_v30  ;;  %v821_v43 = vpop.f32.mrf.mxu1 }
  0xd8   : > { %v822_v45 = vadd.f32 %v821_v43, %v656_v42  ;;  %v1154_v43 = vsel %vm399_vm1, %v1149_v32, %v1153_v34 }
  0xd9   : > { %v3224_v48 = vadd.f32 %v1567_v39, %v1378_v41  ;;  %2633 = vmatmul.msk.bf16.gmra.mxu0 %vm574_vm3, %v499_v44  ;;  %v1456_v44 = vsel %vm1427_vm2, %v1453_v3, %v1455_v28 }
  0xda   : > { %2668 = vmatmul.msk.bf16.gmra.mxu1 %vm574_vm3, %v2845_v56  ;;  %v506_v56 = vrot.slane %v504_v59, 1 }
  0xdb   : > { %2779 = vmatmul.msk.bf16.gmra.mxu2 %vm574_vm3, %v1138_v46  ;;  %v2849_v46 = vld [vmem:[%s3051_s29 + $0x78] sm:$0xff] }
  0xdc   : > { %2822 = vmatmul.msk.bf16.gmra.mxu3 %vm574_vm3, %v1452_v47  ;;  %v507_v10 = vsel %vm399_vm1, %v502_v0, %v506_v56  ;;  %v510_v31 = vor.u32 %v508_v24, %v506_v56  ;;  %v2874_v47 = vld [vmem:[%s3051_s29 + $0x80] sm:$0xff]  ;;  %v520_v58 = vshll.u32 %v2849_v46, 16 }
  0xdd   : > { %v1159_v61 = vshll.u32 %v2874_v47, 16  ;;  %v1457_v2 = vrot.slane %v2874_v47, 1  ;;  %v1163_v29 = vshrl.u32 %v2874_v47, 16 }
  0xde   : > { %v1294_v51 = vpop.f32.mrf.mxu2  ;;  %v658_v54 = vpop.f32.mrf.mxu0 }
  0xdf   : > { %v1570_v52 = vpop.f32.mrf.mxu3  ;;  %v1379_v53 = vadd.f32 %v1294_v51, %v822_v45  ;;  %v823_v57 = vpop.f32.mrf.mxu1  ;;  %v1161_v1 = vrot.slane %v1159_v61, 1 }
  0xe0   : > { %v824_v60 = vadd.f32 %v823_v57, %v658_v54  ;;  %v516_v57 = vshrl.u32 %v2848_v15, 16 }
  0xe1   : > { %v3232_v63 = vadd.f32 %v1570_v52, %v1379_v53 }
  0xe6   : > { %v1296_v5 = vpop.f32.mrf.mxu2  ;;  %v661_v8 = vpop.f32.mrf.mxu0 }
  0xe7   : > { %v1572_v6 = vpop.f32.mrf.mxu3  ;;  %v1380_v7 = vadd.f32 %v1296_v5, %v824_v60  ;;  %v826_v9 = vpop.f32.mrf.mxu1  ;;  %v1155_v60 = vshrl.u32 %v2873_v16, 16  ;;  %v3270_v16 = vld [vmem:[%s3051_s29 + $0x80] sm:$0xff] }
  0xe8   : > { %v827_v11 = vadd.f32 %v826_v9, %v661_v8 }
  0xe9   : > { %v3237_v14 = vadd.f32 %v1572_v6, %v1380_v7  ;;  %2634 = vmatmul.msk.bf16.gmra.mxu0 %vm574_vm3, %v507_v10  ;;  %v1157_v56 = vor.u32 %v1155_v60, %v1153_v34  ;;  %v1165_v34 = vor.u32 %v1163_v29, %v1161_v1  ;;  %v532_v60 = vshrl.u32 %v3270_v16, 16 }
  0xea   : > { %2669 = vmatmul.msk.bf16.gmra.mxu1 %vm574_vm3, %v2846_v20  ;;  %v514_v20 = vrot.slane %v512_v25, 1  ;;  %v524_v25 = vshrl.u32 %v2849_v46, 16 }
  0xeb   : > { %2780 = vmatmul.msk.bf16.gmra.mxu2 %vm574_vm3, %v1146_v12  ;;  %v1458_v12 = vsel %vm1427_vm2, %v1455_v28, %v1457_v2 }
  0xec   : > { %2823 = vmatmul.msk.bf16.gmra.mxu3 %vm574_vm3, %v1454_v13  ;;  %v515_v41 = vsel %vm399_vm1, %v510_v31, %v514_v20  ;;  %v518_v0 = vor.u32 %v516_v57, %v514_v20 }
  0xee   : > { %v1299_v17 = vpop.f32.mrf.mxu2  ;;  %v663_v22 = vpop.f32.mrf.mxu0 }
  0xef   : > { %v1575_v18 = vpop.f32.mrf.mxu3  ;;  %v1381_v21 = vadd.f32 %v1299_v17, %v827_v11  ;;  %v828_v23 = vpop.f32.mrf.mxu1  ;;  %v1162_v11 = vsel %vm399_vm1, %v1157_v56, %v1161_v1  ;;  %v2875_v17 = vld [vmem:[%s3051_s29 + $0x88] sm:$0xff] }
  0xf0   : > { %v829_v26 = vadd.f32 %v828_v23, %v663_v22  ;;  %v1167_v31 = vshll.u32 %v2875_v17, 16 }
  0xf1   : > { %v3245_v30 = vadd.f32 %v1575_v18, %v1381_v21 }
  0xf2   : > { %v1169_v28 = vrot.slane %v1167_v31, 1 }
  0xf6   : > { %v1301_v35 = vpop.f32.mrf.mxu2  ;;  %v666_v38 = vpop.f32.mrf.mxu0 }
  0xf7   : > { %v1577_v36 = vpop.f32.mrf.mxu3  ;;  %v1382_v37 = vadd.f32 %v1301_v35, %v829_v26  ;;  %v831_v39 = vpop.f32.mrf.mxu1  ;;  %v528_v26 = vshll.u32 %v3270_v16, 16  ;;  %v1459_v35 = vrot.slane %v2875_v17, 1 }
  0xf8   : > { %v832_v42 = vadd.f32 %v831_v39, %v666_v38 }
  0xf9   : > { %v3250_v45 = vadd.f32 %v1577_v36, %v1382_v37  ;;  %2635 = vmatmul.msk.bf16.gmra.mxu0 %vm574_vm3, %v515_v41  ;;  %v530_v32 = vrot.slane %v528_v26, 1  ;;  %v1460_v47 = vsel %vm1427_vm2, %v1457_v2, %v1459_v35 }
  0xfa   : > { %2670 = vmatmul.msk.bf16.gmra.mxu1 %vm574_vm3, %v2847_v49  ;;  %v522_v49 = vrot.slane %v520_v58, 1 }
  0xfb   : > { %2781 = vmatmul.msk.bf16.gmra.mxu2 %vm574_vm3, %v1154_v43  ;;  %v534_v1 = vor.u32 %v532_v60, %v530_v32 }
  0xfc   : > { %2824 = vmatmul.msk.bf16.gmra.mxu3 %vm574_vm3, %v1456_v44  ;;  %v523_v9 = vsel %vm399_vm1, %v518_v0, %v522_v49  ;;  %v1170_v44 = vsel %vm399_vm1, %v1165_v34, %v1169_v28  ;;  %v1171_v0 = vshrl.u32 %v2875_v17, 16 }
  0xfe   : > { %v1304_v50 = vpop.f32.mrf.mxu2  ;;  %v668_v53 = vpop.f32.mrf.mxu0 }
  0xff   : > { %v1580_v51 = vpop.f32.mrf.mxu3  ;;  %v1383_v52 = vadd.f32 %v1304_v50, %v832_v42  ;;  %v833_v54 = vpop.f32.mrf.mxu1 }
 0x100   : > { %v834_v59 = vadd.f32 %v833_v54, %v668_v53 }
 0x101   : > { %v3258_v62 = vadd.f32 %v1580_v51, %v1383_v52  ;;  %v3286_v51 = vld [vmem:[%s3051_s29 + $0x88] sm:$0xff]  ;;  %v3289_v52 = vld [vmem:[%s3051_s29 + $0x90] sm:$0xff] }
 0x102   : > { %v536_v61 = vshll.u32 %v3286_v51, 16 }
 0x104   : > { %v538_v2 = vrot.slane %v536_v61, 1 }
 0x106   : > { %v1306_v3 = vpop.f32.mrf.mxu2  ;;  %v671_v7 = vpop.f32.mrf.mxu0  ;;  %v539_v17 = vsel %vm399_vm1, %v534_v1, %v538_v2 }
 0x107   : > { %v1582_v5 = vpop.f32.mrf.mxu3  ;;  %v1384_v6 = vadd.f32 %v1306_v3, %v834_v59  ;;  %v836_v8 = vpop.f32.mrf.mxu1  ;;  %v1173_v3 = vor.u32 %v1171_v0, %v1169_v28 }
 0x108   : > { %v837_v10 = vadd.f32 %v836_v8, %v671_v7  ;;  %v288_v7 = vld [vmem:[%s3051_s29 + $0x90] sm:$0x1]  ;;  %v936_v8 = vld [vmem:[%s3051_s29 + $0x98] sm:$0x1] }
 0x109   : > { %v3263_v13 = vadd.f32 %v1582_v5, %v1384_v6  ;;  %2636 = vmatmul.msk.bf16.gmra.mxu0 %vm574_vm3, %v523_v9  ;;  %v1461_v6 = vrot.slane %v3289_v52, 1 }
 0x10a   : > { %2671 = vmatmul.msk.bf16.gmra.mxu1 %vm574_vm3, %v2848_v15  ;;  %v526_v15 = vor.u32 %v524_v25, %v522_v49  ;;  %v1175_v49 = vshll.u32 %v3289_v52, 16  ;;  %v1019_v25 = vunpack.c.l.b16 %v936_v8 }
 0x10b   : > { %2782 = vmatmul.msk.bf16.gmra.mxu2 %vm574_vm3, %v1162_v11 }
 0x10c   : > { %2825 = vmatmul.msk.bf16.gmra.mxu3 %vm574_vm3, %v1458_v12  ;;  %v531_v42 = vsel %vm399_vm1, %v526_v15, %v530_v32  ;;  %v1177_v5 = vrot.slane %v1175_v49, 1  ;;  %v1038_v31 = vpack.c.b16 %v1019_v25, %v1019_v25 }
 0x10e   : > { %v1309_v18 = vpop.f32.mrf.mxu2  ;;  %v673_v23 = vpop.f32.mrf.mxu0 }
 0x10f   : > { %v1585_v21 = vpop.f32.mrf.mxu3  ;;  %v1385_v22 = vadd.f32 %v1309_v18, %v837_v10  ;;  %v838_v24 = vpop.f32.mrf.mxu1 }
 0x110   : > { %v839_v27 = vadd.f32 %v838_v24, %v673_v23  ;;  %v1178_v23 = vsel %vm399_vm1, %v1173_v3, %v1177_v5  ;;  %v1462_v24 = vsel %vm1427_vm2, %v1459_v35, %v1461_v6 }
 0x111   : > { %v3274_v20 = vadd.f32 %v1585_v21, %v1385_v22  ;;  %v379_v21 = vunpack.c.l.b16 %v288_v7 }
 0x113   : > { %v398_v29 = vpack.c.b16 %v379_v21, %v379_v21 }
 0x116   : > { %v1311_v36 = vpop.f32.mrf.mxu2  ;;  %v676_v39 = vpop.f32.mrf.mxu0 }
 0x117   : > { %v1587_v37 = vpop.f32.mrf.mxu3  ;;  %v1386_v38 = vadd.f32 %v1311_v36, %v839_v27  ;;  %v841_v41 = vpop.f32.mrf.mxu1  ;;  %v1411_v27 = vld [vmem:[%s3051_s29 + $0x98] sm:$0x3] }
 0x118   : > { %v842_v43 = vadd.f32 %v841_v41, %v676_v39  ;;  %v1424_v15 = vunpack.c.l.b16 %v1411_v27  ;;  %v1179_v41 = vshrl.u32 %v3289_v52, 16 }
 0x119   : > { %v3279_v50 = vadd.f32 %v1587_v37, %v1386_v38  ;;  %2637 = vmatmul.msk.bf16.gmra.mxu0 %vm574_vm3, %v531_v42  ;;  %v540_v37 = vshrl.u32 %v3286_v51, 16  ;;  %v544_v38 = vshll.u32 %v398_v29, 16  ;;  %v1183_v42 = vshll.u32 %v1038_v31, 16 }
 0x11a   : > { %2672 = vmatmul.msk.bf16.gmra.mxu1 %vm574_vm3, %v2849_v46 }
 0x11b   : > { %2783 = vmatmul.msk.bf16.gmra.mxu2 %vm574_vm3, %v1170_v44  ;;  %v542_v44 = vor.u32 %v540_v37, %v538_v2 }
 0x11c   : > { %2826 = vmatmul.msk.bf16.gmra.mxu3 %vm574_vm3, %v1460_v47  ;;  %v546_v47 = vrot.slane %v544_v38, 1 }
 0x11e   : > { %v1314_v53 = vpop.f32.mrf.mxu2  ;;  %v678_v58 = vpop.f32.mrf.mxu0  ;;  %v547_v0 = vsel %vm399_vm1, %v542_v44, %v546_v47 }
 0x11f   : > { %v1590_v54 = vpop.f32.mrf.mxu3  ;;  %v1387_v57 = vadd.f32 %v1314_v53, %v842_v43  ;;  %v843_v59 = vpop.f32.mrf.mxu1  ;;  %v1181_v53 = vor.u32 %v1179_v41, %v1177_v5 }
 0x120   : > { %v844_v46 = vadd.f32 %v843_v59, %v678_v58 }
 0x121   : > { %v3294_v56 = vadd.f32 %v1590_v54, %v1387_v57  ;;  %v1185_v54 = vrot.slane %v1183_v42, 1 }
 0x123   : > { %v1186_v1 = vsel %vm399_vm1, %v1181_v53, %v1185_v54 }
 0x126   : > { %v1316_v9 = vpop.f32.mrf.mxu2  ;;  %v681_v12 = vpop.f32.mrf.mxu0 }
 0x127   : > { %v1592_v10 = vpop.f32.mrf.mxu3  ;;  %v1388_v11 = vadd.f32 %v1316_v9, %v844_v46  ;;  %v846_v18 = vpop.f32.mrf.mxu1 }
 0x128   : > { %v847_v22 = vadd.f32 %v846_v18, %v681_v12  ;;  %v548_v18 = vshrl.u32 %v398_v29, 16 }
 0x129   : > { %v3302_v26 = vadd.f32 %v1592_v10, %v1388_v11  ;;  %2638 = vmatmul.msk.bf16.gmra.mxu0 %vm574_vm3, %v539_v17 }
 0x12a   : > { %2673 = vmatmul.msk.bf16.gmra.mxu1 %vm574_vm3, %v3270_v16  ;;  %v1426_v16 = vpack.c.b16 %v1424_v15, %v1424_v15 }
 0x12b   : > { %2784 = vmatmul.msk.bf16.gmra.mxu2 %vm574_vm3, %v1178_v23  ;;  %v1187_v23 = vshrl.u32 %v1038_v31, 16 }
 0x12c   : > { %2827 = vmatmul.msk.bf16.gmra.mxu3 %vm574_vm3, %v1462_v24  ;;  %v1463_v57 = vrot.slane %v1426_v16, 1 }
 0x12e   : > { %v1319_v32 = vpop.f32.mrf.mxu2  ;;  %v683_v35 = vpop.f32.mrf.mxu0  ;;  %v1464_v52 = vsel %vm1427_vm2, %v1461_v6, %v1463_v57 }
 0x12f   : > { %v1595_v34 = vpop.f32.mrf.mxu3  ;;  %v1389_v28 = vadd.f32 %v1319_v32, %v847_v22  ;;  %v848_v36 = vpop.f32.mrf.mxu1 }
 0x130   : > { %v849_v39 = vadd.f32 %v848_v36, %v683_v35 }
 0x131   : > { %v3312_v43 = vadd.f32 %v1595_v34, %v1389_v28 }
 0x136   : > { %v1321_v58 = vpop.f32.mrf.mxu2  ;;  %v686_v61 = vpop.f32.mrf.mxu0 }
 0x137   : > { %v1597_v59 = vpop.f32.mrf.mxu3  ;;  %v1390_v60 = vadd.f32 %v1321_v58, %v849_v39  ;;  %v851_v46 = vpop.f32.mrf.mxu1 }
 0x138   : > { %v852_v49 = vadd.f32 %v851_v46, %v686_v61 }
 0x139   : > { %v3317_v3 = vadd.f32 %v1597_v59, %v1390_v60  ;;  %2639 = vmatmul.msk.bf16.gmra.mxu0 %vm574_vm3, %v547_v0 }
 0x13a   : > { %2674 = vmatmul.msk.bf16.gmra.mxu1 %vm574_vm3, %v3286_v51 }
 0x13b   : > { %2785 = vmatmul.msk.bf16.gmra.mxu2 %vm574_vm3, %v1186_v1 }
 0x13c   : > { %2828 = vmatmul.msk.bf16.gmra.mxu3 %vm574_vm3, %v1464_v52 }
 0x13e   : > { %v1324_v2 = vpop.f32.mrf.mxu2  ;;  %v688_v8 = vpop.f32.mrf.mxu0 }
 0x13f   : > { %v1600_v5 = vpop.f32.mrf.mxu3  ;;  %v1391_v7 = vadd.f32 %v1324_v2, %v852_v49  ;;  %v853_v9 = vpop.f32.mrf.mxu1 }
 0x140   : > { %v854_v10 = vadd.f32 %v853_v9, %v688_v8 }
 0x141   : > { %v3324_v11 = vadd.f32 %v1600_v5, %v1391_v7 }
 0x146   : > { %v1326_v6 = vpop.f32.mrf.mxu2  ;;  %v691_v21 = vpop.f32.mrf.mxu0 }
 0x147   : > { %v1602_v12 = vpop.f32.mrf.mxu3  ;;  %v1392_v17 = vadd.f32 %v1326_v6, %v854_v10  ;;  %v856_v22 = vpop.f32.mrf.mxu1 }
 0x148   : > { %v857_v51 = vadd.f32 %v856_v22, %v691_v21 }
 0x149   : > { %v3326_v24 = vadd.f32 %v1602_v12, %v1392_v17  ;;  %2640 = vmatmul.msk.bf16.gmra.mxu0 %vm574_vm3, %v548_v18 }
 0x14a   : > { %2675 = vmatmul.msk.bf16.gmra.mxu1 %vm574_vm3, %v398_v29 }
 0x14b   : > { %2786 = vmatmul.msk.bf16.gmra.mxu2 %vm574_vm3, %v1187_v23 }
 0x14c   : > { %2829 = vmatmul.msk.bf16.gmra.mxu3 %vm574_vm3, %v1463_v57 }
 0x14e   : > { %v1329_v25 = vpop.f32.mrf.mxu2  ;;  %v693_v32 = vpop.f32.mrf.mxu0 }
 0x14f   : > { %v1605_v27 = vpop.f32.mrf.mxu3  ;;  %v1393_v15 = vadd.f32 %v1329_v25, %v857_v51  ;;  %v858_v34 = vpop.f32.mrf.mxu1 }
 0x150   : > { %v859_v28 = vadd.f32 %v858_v34, %v693_v32 }
 0x151   : > { %v3332_v35 = vadd.f32 %v1605_v27, %v1393_v15 }
 0x156   : > { %v1331_v31 = vpop.f32.mrf.mxu2  ;;  %v696_v38 = vpop.f32.mrf.mxu0 }
 0x157   : > { %v1607_v36 = vpop.f32.mrf.mxu3  ;;  %v1394_v37 = vadd.f32 %v1331_v31, %v859_v28  ;;  %v861_v39 = vpop.f32.mrf.mxu1 }
 0x158   : > { %v862_v41 = vadd.f32 %v861_v39, %v696_v38 }
 0x159   : > { %v3334_v42 = vadd.f32 %v1607_v36, %v1394_v37 }
 0x15e   : > { %v1334_v29 = vpop.f32.mrf.mxu2  ;;  %v698_v47 = vpop.f32.mrf.mxu0 }
 0x15f   : > { %v1610_v16 = vpop.f32.mrf.mxu3  ;;  %v1395_v44 = vadd.f32 %v1334_v29, %v862_v41  ;;  %v863_v53 = vpop.f32.mrf.mxu1 }
 0x160   : > { %v864_v54 = vadd.f32 %v863_v53, %v698_v47 }
 0x161   : > { %v3336_v57 = vadd.f32 %v1610_v16, %v1395_v44 }
 0x166   : > { %v1336_v58 = vpop.f32.mrf.mxu2  ;;  %v701_v61 = vpop.f32.mrf.mxu0 }
 0x167   : > { %v1612_v59 = vpop.f32.mrf.mxu3  ;;  %v1396_v60 = vadd.f32 %v1336_v58, %v864_v54  ;;  %v866_v46 = vpop.f32.mrf.mxu1 }
 0x168   : > { %v867_v0 = vadd.f32 %v866_v46, %v701_v61 }
 0x169   : > { %v3338_v49 = vadd.f32 %v1612_v59, %v1396_v60 }
 0x16e   : > { %v1339_v1 = vpop.f32.mrf.mxu2  ;;  %v703_v5 = vpop.f32.mrf.mxu0 }
 0x16f   : > { %v1615_v52 = vpop.f32.mrf.mxu3  ;;  %v1397_v2 = vadd.f32 %v1339_v1, %v867_v0  ;;  %v868_v7 = vpop.f32.mrf.mxu1 }
 0x170   : > { %v869_v8 = vadd.f32 %v868_v7, %v703_v5 }
 0x171   : > { %v3340_v9 = vadd.f32 %v1615_v52, %v1397_v2 }
 0x176   : > { %v1341_v10 = vpop.f32.mrf.mxu2  ;;  %v706_v18 = vpop.f32.mrf.mxu0 }
 0x177   : > { %v1617_v6 = vpop.f32.mrf.mxu3  ;;  %v1398_v12 = vadd.f32 %v1341_v10, %v869_v8  ;;  %v871_v17 = vpop.f32.mrf.mxu1 }
 0x178   : > { %v872_v21 = vadd.f32 %v871_v17, %v706_v18 }
 0x179   : > { %v3342_v22 = vadd.f32 %v1617_v6, %v1398_v12 }
 0x17e   : > { %v1344_v23 = vpop.f32.mrf.mxu2  ;;  %v708_v27 = vpop.f32.mrf.mxu0 }
 0x17f   : > { %v1620_v51 = vpop.f32.mrf.mxu3  ;;  %v1399_v25 = vadd.f32 %v1344_v23, %v872_v21  ;;  %v873_v15 = vpop.f32.mrf.mxu1 }
 0x180   : > { %v874_v32 = vadd.f32 %v873_v15, %v708_v27 }
 0x181   : > { %v3344_v34 = vadd.f32 %v1620_v51, %v1399_v25 }
 0x186   : > { %v1346_v28 = vpop.f32.mrf.mxu2  ;;  %v711_v37 = vpop.f32.mrf.mxu0 }
 0x187   : > { %v1622_v31 = vpop.f32.mrf.mxu3  ;;  %v1400_v36 = vadd.f32 %v1346_v28, %v874_v32  ;;  %v876_v38 = vpop.f32.mrf.mxu1 }
 0x188   : > { %v877_v39 = vadd.f32 %v876_v38, %v711_v37 }
 0x189   : > { %v3346_v41 = vadd.f32 %v1622_v31, %v1400_v36 }
 0x18e   : > { %v1349_v29 = vpop.f32.mrf.mxu2  ;;  %v713_v47 = vpop.f32.mrf.mxu0 }
 0x18f   : > { %v1625_v16 = vpop.f32.mrf.mxu3  ;;  %v1401_v44 = vadd.f32 %v1349_v29, %v877_v39  ;;  %v878_v53 = vpop.f32.mrf.mxu1 }
 0x190   : > { %v879_v54 = vadd.f32 %v878_v53, %v713_v47 }
 0x191   : > { %v3348_v58 = vadd.f32 %v1625_v16, %v1401_v44 }
 0x196   : > { %v1351_v59 = vpop.f32.mrf.mxu2  ;;  %v716_v46 = vpop.f32.mrf.mxu0 }
 0x197   : > { %v1627_v60 = vpop.f32.mrf.mxu3  ;;  %v1402_v61 = vadd.f32 %v1351_v59, %v879_v54  ;;  %v881_v0 = vpop.f32.mrf.mxu1 }
 0x198   : > { %v882_v52 = vadd.f32 %v881_v0, %v716_v46 }
 0x199   : > { %v3350_v1 = vadd.f32 %v1627_v60, %v1402_v61 }
 0x19e   : > { %v1354_v2 = vpop.f32.mrf.mxu2  ;;  %v718_v8 = vpop.f32.mrf.mxu0 }
 0x19f   : > { %v1630_v5 = vpop.f32.mrf.mxu3  ;;  %v1403_v7 = vadd.f32 %v1354_v2, %v882_v52  ;;  %v883_v10 = vpop.f32.mrf.mxu1 }
 0x1a0   : > { %v884_v12 = vadd.f32 %v883_v10, %v718_v8 }
 0x1a1   : > { %v3352_v6 = vadd.f32 %v1630_v5, %v1403_v7 }
 0x1a6   : > { %v1356_v18 = vpop.f32.mrf.mxu2  ;;  %v721_v23 = vpop.f32.mrf.mxu0 }
 0x1a7   : > { %v1632_v17 = vpop.f32.mrf.mxu3  ;;  %v1404_v21 = vadd.f32 %v1356_v18, %v884_v12  ;;  %v886_v51 = vpop.f32.mrf.mxu1 }
 0x1a8   : > { %v887_v27 = vadd.f32 %v886_v51, %v721_v23 }
 0x1a9   : > { %v3354_v25 = vadd.f32 %v1632_v17, %v1404_v21 }
 0x1ae   : > { %v1359_v15 = vpop.f32.mrf.mxu2  ;;  %v723_v31 = vpop.f32.mrf.mxu0 }
 0x1af   : > { %v1635_v32 = vpop.f32.mrf.mxu3  ;;  %v1405_v28 = vadd.f32 %v1359_v15, %v887_v27  ;;  %v888_v36 = vpop.f32.mrf.mxu1 }
 0x1b0   : > { %v889_v38 = vadd.f32 %v888_v36, %v723_v31 }
 0x1b1   : > { %v3356_v37 = vadd.f32 %v1635_v32, %v1405_v28 }
 0x1b6   : > { %v1361_v39 = vpop.f32.mrf.mxu2  ;;  %v726_v44 = vpop.f32.mrf.mxu0 }
 0x1b7   : > { %v1637_v29 = vpop.f32.mrf.mxu3  ;;  %v1406_v16 = vadd.f32 %v1361_v39, %v889_v38  ;;  %v891_v47 = vpop.f32.mrf.mxu1 }
 0x1b8   : > { %v892_v54 = vadd.f32 %v891_v47, %v726_v44 }
 0x1b9   : > { %v3358_v53 = vadd.f32 %v1637_v29, %v1406_v16 }
 0x1be   : > { %v1364_v59 = vpop.f32.mrf.mxu2  ;;  %v728_v46 = vpop.f32.mrf.mxu0 }
 0x1bf   : > { %v1640_v60 = vpop.f32.mrf.mxu3  ;;  %v1407_v61 = vadd.f32 %v1364_v59, %v892_v54  ;;  %v893_v0 = vpop.f32.mrf.mxu1 }
 0x1c0   : > { %v894_v2 = vadd.f32 %v893_v0, %v728_v46 }
 0x1c1   : > { %v3360_v52 = vadd.f32 %v1640_v60, %v1407_v61 }
 0x1c6   : > { %v1366_v5 = vpop.f32.mrf.mxu2  ;;  %v731_v10 = vpop.f32.mrf.mxu0 }
 0x1c7   : > { %v1642_v7 = vpop.f32.mrf.mxu3  ;;  %v1408_v8 = vadd.f32 %v1366_v5, %v894_v2  ;;  %v896_v12 = vpop.f32.mrf.mxu1 }
 0x1c8   : > { %v897_v17 = vadd.f32 %v896_v12, %v731_v10 }
 0x1c9   : > { %v3362_v18 = vadd.f32 %v1642_v7, %v1408_v8 }
 0x1ce   : > { %v1369_v21 = vpop.f32.mrf.mxu2  ;;  %v733_v27 = vpop.f32.mrf.mxu0 }
 0x1cf   : > { %v1645_v23 = vpop.f32.mrf.mxu3  ;;  %v1409_v51 = vadd.f32 %v1369_v21, %v897_v17  ;;  %v898_v15 = vpop.f32.mrf.mxu1 }
 0x1d1   : > { %v3364_v32 = vadd.f32 %v1645_v23, %v1409_v51 }
 0x1d3   : > { %1688 = sbr.rel (%p2830_p10) target bundleno = 708 (0x2c4), region = 48 }
 0x1d6   : > { %v1371_v28 = vpop.f32.mrf.mxu2 }
 0x1d7   : > { %v1647_v31 = vpop.f32.mrf.mxu3 }
 0x1d8   : > { %v1693_v36 = vld [vmem:[%s3843_s4 + $0x20] sm:$0xff]  ;;  %v1691_v38 = vld [vmem:[%s3843_s4 + $0x10] sm:$0xff]  ;;  %v2983_v29 = vmov 0   ;;  %v1694_v16 = vld [vmem:[%s3843_s4 + $0x28] sm:$0xff]  ;;  %vm1949_vm4 = vcmask 261120   ;;  %vm2021_vm5 = vcmask 253952  }
 0x1d9   : > { %v1689_v39 = vld [vmem:[%s3843_s4] sm:$0xff]  ;;  %2939 = vset.pattern.permute.xlu2 %v2983_v29  ;;  %2938 = vset.pattern.permute.xlu1 %v2983_v29  ;;  %v1692_v44 = vld [vmem:[%s3843_s4 + $0x18] sm:$0xff]  ;;  %v1690_v47 = vld [vmem:[%s3843_s4 + $0x8] sm:$0xff] }
 0x1da   : > { %2937 = vset.pattern.permute.xlu0 %v2983_v29  ;;  %1748 = vperm.xlu2 %2939, %v1693_v36   ;;  %v1697_v54 = vld [vmem:[%s3843_s4 + $0x40] sm:$0xff]  ;;  %v1696_v59 = vld [vmem:[%s3843_s4 + $0x38] sm:$0xff]  ;;  %v1695_v60 = vld [vmem:[%s3843_s4 + $0x30] sm:$0xff] }
 0x1db   : > { %1738 = vperm.xlu1 %2938, %v1691_v38   ;;  %1728 = vperm.xlu0 %2937, %v1689_v39   ;;  %v1700_v61 = vld [vmem:[%s3843_s4 + $0x58] sm:$0xff]  ;;  %v1699_v46 = vld [vmem:[%s3843_s4 + $0x50] sm:$0xff]  ;;  %v1698_v0 = vld [vmem:[%s3843_s4 + $0x48] sm:$0xff] }
 0x1dc   : > { %v1703_v2 = vld [vmem:[%s3843_s4 + $0x70] sm:$0xff]  ;;  %v1702_v5 = vld [vmem:[%s3843_s4 + $0x68] sm:$0xff]  ;;  %v1701_v7 = vld [vmem:[%s3843_s4 + $0x60] sm:$0xff] }
 0x1dd   : > { %v1706_v8 = vld [vmem:[%s3843_s4 + $0x88] sm:$0xff]  ;;  %v1705_v10 = vld [vmem:[%s3843_s4 + $0x80] sm:$0xff]  ;;  %v1704_v12 = vld [vmem:[%s3843_s4 + $0x78] sm:$0xff] }
 0x1de   : > { %v1709_v17 = vld [vmem:[%s3843_s4 + $0xa0] sm:$0xff]  ;;  %v1708_v21 = vld [vmem:[%s3843_s4 + $0x98] sm:$0xff]  ;;  %v1707_v23 = vld [vmem:[%s3843_s4 + $0x90] sm:$0xff] }
 0x1df   : > { %v1712_v51 = vld [vmem:[%s3843_s4 + $0xb8] sm:$0xff]  ;;  %v1711_v27 = vld [vmem:[%s3843_s4 + $0xb0] sm:$0xff]  ;;  %v1710_v15 = vld [vmem:[%s3843_s4 + $0xa8] sm:$0xff] }
 0x1e0   : > { %v1715_v28 = vld [vmem:[%s3843_s4 + $0xd0] sm:$0xff]  ;;  %v1714_v31 = vld [vmem:[%s3843_s4 + $0xc8] sm:$0xff]  ;;  %v1713_v36 = vld [vmem:[%s3843_s4 + $0xc0] sm:$0xff] }
 0x1e1   : > { %v1718_v38 = vld [vmem:[%s3843_s4 + $0xe8] sm:$0xff]  ;;  %v1717_v39 = vld [vmem:[%s3843_s4 + $0xe0] sm:$0xff]  ;;  %v1716_v29 = vld [vmem:[%s3843_s4 + $0xd8] sm:$0xff] }
 0x1e2   : > { %1753 = vperm.xlu2 %2939, %v1694_v16   ;;  %v1721_v16 = vld [vmem:[%s3843_s4 + $0x100] sm:$0xff] }
 0x1e3   : > { %1743 = vperm.xlu1 %2938, %v1692_v44   ;;  %1733 = vperm.xlu0 %2937, %v1690_v47   ;;  %v1720_v44 = vld [vmem:[%s3843_s4 + $0xf8] sm:$0xff]  ;;  %v1719_v47 = vld [vmem:[%s3843_s4 + $0xf0] sm:$0xff] }
 0x1ea   : > { %1768 = vperm.xlu2 %2939, %v1697_v54   ;;  %v1724_v54 = vld [vmem:[%s3843_s4 + $0x118] sm:$0xff] }
 0x1eb   : > { %1763 = vperm.xlu1 %2938, %v1696_v59   ;;  %1758 = vperm.xlu0 %2937, %v1695_v60   ;;  %v1723_v59 = vld [vmem:[%s3843_s4 + $0x110] sm:$0xff]  ;;  %v1722_v60 = vld [vmem:[%s3843_s4 + $0x108] sm:$0xff] }
 0x1f2   : > { %1783 = vperm.xlu2 %2939, %v1700_v61  }
 0x1f3   : > { %1778 = vperm.xlu1 %2938, %v1699_v46   ;;  %1773 = vperm.xlu0 %2937, %v1698_v0   ;;  %v1725_v46 = vld [vmem:[%s3843_s4 + $0x120] sm:$0x1] }
 0x1fa   : > { %1798 = vperm.xlu2 %2939, %v1703_v2  }
 0x1fb   : > { %1793 = vperm.xlu1 %2938, %v1702_v5   ;;  %1788 = vperm.xlu0 %2937, %v1701_v7  }
 0x202   : > { %1813 = vperm.xlu2 %2939, %v1706_v8  }
 0x203   : > { %1808 = vperm.xlu1 %2938, %v1705_v10   ;;  %1803 = vperm.xlu0 %2937, %v1704_v12  }
 0x20a   : > { %1828 = vperm.xlu2 %2939, %v1709_v17  }
 0x20b   : > { %1823 = vperm.xlu1 %2938, %v1708_v21   ;;  %1818 = vperm.xlu0 %2937, %v1707_v23  }
 0x212   : > { %1843 = vperm.xlu2 %2939, %v1712_v51  }
 0x213   : > { %1838 = vperm.xlu1 %2938, %v1711_v27   ;;  %1833 = vperm.xlu0 %2937, %v1710_v15  }
 0x21a   : > { %1858 = vperm.xlu2 %2939, %v1715_v28  }
 0x21b   : > { %1853 = vperm.xlu1 %2938, %v1714_v31   ;;  %1848 = vperm.xlu0 %2937, %v1713_v36  }
 0x222   : > { %1873 = vperm.xlu2 %2939, %v1718_v38  }
 0x223   : > { %1868 = vperm.xlu1 %2938, %v1717_v39   ;;  %1863 = vperm.xlu0 %2937, %v1716_v29  }
 0x22a   : > { %1888 = vperm.xlu2 %2939, %v1721_v16  }
 0x22b   : > { %1883 = vperm.xlu1 %2938, %v1720_v44   ;;  %1878 = vperm.xlu0 %2937, %v1719_v47  }
 0x232   : > { %1903 = vperm.xlu2 %2939, %v1724_v54  }
 0x233   : > { %1898 = vperm.xlu1 %2938, %v1723_v59   ;;  %1893 = vperm.xlu0 %2937, %v1722_v60  }
 0x234   : > { %v1749_v61 = vpop.permute.xlu2 %1748 }
 0x235   : > { %v1915_v15 = vmul.f32 %v1749_v61, %v3219_v33 }
 0x237   : > { %v2037_v61 = vmul.f32 %v1915_v15, %v3219_v33 }
 0x23b   : > { %1908 = vperm.xlu0 %2937, %v1725_v46  }
 0x23c   : > { %v1754_v0 = vpop.permute.xlu2 %1753 }
 0x23d   : > { %v1916_v39 = vmul.f32 %v1754_v0, %v3224_v48 }
 0x244   : > { %v1769_v2 = vpop.permute.xlu2 %1768 }
 0x24c   : > { %v1784_v10 = vpop.permute.xlu2 %1783 }
 0x24d   : > { %v1739_v5 = vpop.permute.xlu1 %1738  ;;  %v1729_v7 = vpop.permute.xlu0 %1728 }
 0x24e   : > { %v1911_v8 = vmul.f32 %v1729_v7, %v3193_v40  ;;  %v1913_v12 = vmul.f32 %v1739_v5, %v3206_v4  ;;  %v1957_v7 = vsel %vm1949_vm4, %v1915_v15, 0.0  ;;  %v1959_v15 = vsel %vm1949_vm4, %v1916_v39, 0.0 }
 0x250   : > { %v2033_v23 = vmul.f32 %v1911_v8, %v3193_v40  ;;  %v2035_v28 = vmul.f32 %v1913_v12, %v3206_v4  ;;  %v1950_v31 = vsel %vm1949_vm4, %v1911_v8, 0.0  ;;  %v1953_v16 = vsel %vm1949_vm4, %v1913_v12, 0.0 }
 0x252   : > { %v2070_v44 = vsel %vm1949_vm4, %v2033_v23, 0.0  ;;  %v2073_v46 = vsel %vm1949_vm4, %v2035_v28, 0.0 }
 0x254   : > { %v1799_v23 = vpop.permute.xlu2 %1798 }
 0x255   : > { %v1744_v17 = vpop.permute.xlu1 %1743  ;;  %v1734_v21 = vpop.permute.xlu0 %1733 }
 0x256   : > { %v1914_v51 = vmul.f32 %v1744_v17, %v3211_v19  ;;  %v1912_v27 = vmul.f32 %v1734_v21, %v3198_v55  ;;  %v2038_v21 = vmul.f32 %v1916_v39, %v3224_v48 }
 0x258   : > { %v1951_v36 = vsel %vm1949_vm4, %v1912_v27, 0.0  ;;  %v2034_v38 = vmul.f32 %v1912_v27, %v3198_v55  ;;  %v2036_v47 = vmul.f32 %v1914_v51, %v3211_v19  ;;  %v1955_v5 = vsel %vm1949_vm4, %v1914_v51, 0.0 }
 0x259   : > { %v1952_v29 = vadd.f32 %v1951_v36, %v1950_v31  ;;  %v2077_v51 = vsel %vm1949_vm4, %v2037_v61, 0.0 }
 0x25a   : > { %v2071_v54 = vsel %vm1949_vm4, %v2034_v38, 0.0  ;;  %v2075_v27 = vsel %vm1949_vm4, %v2036_v47, 0.0  ;;  %v1919_v38 = vmul.f32 %v1769_v2, %v3245_v30 }
 0x25b   : > { %v1954_v59 = vadd.f32 %v1953_v16, %v1952_v29  ;;  %v2072_v60 = vadd.f32 %v2071_v54, %v2070_v44 }
 0x25d   : > { %v1956_v0 = vadd.f32 %v1955_v5, %v1954_v59  ;;  %v2074_v8 = vadd.f32 %v2073_v46, %v2072_v60  ;;  %v1764_v17 = vpop.permute.xlu1 %1763  ;;  %v1759_v12 = vpop.permute.xlu0 %1758  ;;  %v2079_v59 = vsel %vm1949_vm4, %v2038_v21, 0.0  ;;  %v2041_v46 = vmul.f32 %v1919_v38, %v3245_v30 }
 0x25e   : > { %v1918_v31 = vmul.f32 %v1764_v17, %v3237_v14  ;;  %v1917_v36 = vmul.f32 %v1759_v12, %v3232_v63  ;;  %v1965_v12 = vsel %vm1949_vm4, %v1919_v38, 0.0 }
 0x25f   : > { %v2076_v28 = vadd.f32 %v2075_v27, %v2074_v8  ;;  %v1958_v29 = vadd.f32 %v1957_v7, %v1956_v0 }
 0x260   : > { %v2039_v16 = vmul.f32 %v1917_v36, %v3232_v63  ;;  %v2040_v47 = vmul.f32 %v1918_v31, %v3237_v14  ;;  %v1961_v60 = vsel %vm1949_vm4, %v1917_v36, 0.0  ;;  %v1963_v7 = vsel %vm1949_vm4, %v1918_v31, 0.0 }
 0x261   : > { %v1960_v44 = vadd.f32 %v1959_v15, %v1958_v29  ;;  %v2078_v54 = vadd.f32 %v2077_v51, %v2076_v28  ;;  %v2085_v28 = vsel %vm1949_vm4, %v2041_v46, 0.0  ;;  %v1922_v31 = vmul.f32 %v1784_v10, %v3263_v13  ;;  %v1814_v15 = vpop.permute.xlu2 %1813 }
 0x262   : > { %v2081_v61 = vsel %vm1949_vm4, %v2039_v16, 0.0  ;;  %v2083_v21 = vsel %vm1949_vm4, %v2040_v47, 0.0 }
 0x263   : > { %v2080_v5 = vadd.f32 %v2079_v59, %v2078_v54  ;;  %v1962_v2 = vadd.f32 %v1961_v60, %v1960_v44  ;;  %v2044_v46 = vmul.f32 %v1922_v31, %v3263_v13 }
 0x265   : > { %v1964_v0 = vadd.f32 %v1963_v7, %v1962_v2  ;;  %v2082_v39 = vadd.f32 %v2081_v61, %v2080_v5  ;;  %v1779_v8 = vpop.permute.xlu1 %1778  ;;  %v1774_v17 = vpop.permute.xlu0 %1773 }
 0x266   : > { %v1921_v27 = vmul.f32 %v1779_v8, %v3258_v62  ;;  %v1920_v36 = vmul.f32 %v1774_v17, %v3250_v45 }
 0x267   : > { %v2084_v29 = vadd.f32 %v2083_v21, %v2082_v39  ;;  %v1966_v51 = vadd.f32 %v1965_v12, %v1964_v0  ;;  %v1971_v39 = vsel %vm1949_vm4, %v1922_v31, 0.0  ;;  %v1925_v12 = vmul.f32 %v1799_v23, %v3294_v56 }
 0x268   : > { %v2043_v16 = vmul.f32 %v1921_v27, %v3258_v62  ;;  %v1967_v44 = vsel %vm1949_vm4, %v1920_v36, 0.0  ;;  %v2042_v54 = vmul.f32 %v1920_v36, %v3250_v45  ;;  %v1969_v47 = vsel %vm1949_vm4, %v1921_v27, 0.0 }
 0x269   : > { %v2086_v38 = vadd.f32 %v2085_v28, %v2084_v29  ;;  %v1968_v59 = vadd.f32 %v1967_v44, %v1966_v51  ;;  %v2091_v27 = vsel %vm1949_vm4, %v2044_v46, 0.0  ;;  %v1829_v44 = vpop.permute.xlu2 %1828  ;;  %v1977_v46 = vsel %vm1949_vm4, %v1925_v12, 0.0 }
 0x26a   : > { %v2087_v60 = vsel %vm1949_vm4, %v2042_v54, 0.0  ;;  %v2089_v7 = vsel %vm1949_vm4, %v2043_v16, 0.0 }
 0x26b   : > { %v1970_v5 = vadd.f32 %v1969_v47, %v1968_v59  ;;  %v2088_v2 = vadd.f32 %v2087_v60, %v2086_v38  ;;  %v2047_v38 = vmul.f32 %v1925_v12, %v3294_v56 }
 0x26d   : > { %v2090_v10 = vadd.f32 %v2089_v7, %v2088_v2  ;;  %v1794_v61 = vpop.permute.xlu1 %1793  ;;  %v1789_v0 = vpop.permute.xlu0 %1788  ;;  %v1972_v21 = vadd.f32 %v1971_v39, %v1970_v5  ;;  %v1928_v39 = vmul.f32 %v1814_v15, %v3317_v3 }
 0x26e   : > { %v1924_v8 = vmul.f32 %v1794_v61, %v3279_v50  ;;  %v1923_v17 = vmul.f32 %v1789_v0, %v3274_v20  ;;  %v2097_v61 = vsel %vm1949_vm4, %v2047_v38, 0.0 }
 0x26f   : > { %v2092_v51 = vadd.f32 %v2091_v27, %v2090_v10 }
 0x270   : > { %v2046_v36 = vmul.f32 %v1924_v8, %v3279_v50  ;;  %v1973_v28 = vsel %vm1949_vm4, %v1923_v17, 0.0  ;;  %v2045_v29 = vmul.f32 %v1923_v17, %v3274_v20  ;;  %v1975_v31 = vsel %vm1949_vm4, %v1924_v8, 0.0 }
 0x271   : > { %v1974_v16 = vadd.f32 %v1973_v28, %v1972_v21 }
 0x272   : > { %v2093_v54 = vsel %vm1949_vm4, %v2045_v29, 0.0  ;;  %v2095_v47 = vsel %vm1949_vm4, %v2046_v36, 0.0 }
 0x273   : > { %v1976_v59 = vadd.f32 %v1975_v31, %v1974_v16  ;;  %v2094_v23 = vadd.f32 %v2093_v54, %v2092_v51  ;;  %v2050_v16 = vmul.f32 %v1928_v39, %v3317_v3  ;;  %v1844_v31 = vpop.permute.xlu2 %1843 }
 0x275   : > { %v2096_v60 = vadd.f32 %v2095_v47, %v2094_v23  ;;  %v1809_v5 = vpop.permute.xlu1 %1808  ;;  %v1804_v2 = vpop.permute.xlu0 %1803  ;;  %v1978_v0 = vadd.f32 %v1977_v46, %v1976_v59  ;;  %v1983_v23 = vsel %vm1949_vm4, %v1928_v39, 0.0  ;;  %v2103_v46 = vsel %vm1949_vm4, %v2050_v16, 0.0 }
 0x276   : > { %v1927_v7 = vmul.f32 %v1809_v5, %v3312_v43  ;;  %v1926_v10 = vmul.f32 %v1804_v2, %v3302_v26  ;;  %v1931_v5 = vmul.f32 %v1829_v44, %v3332_v35 }
 0x277   : > { %v2098_v27 = vadd.f32 %v2097_v61, %v2096_v60 }
 0x278   : > { %v2049_v8 = vmul.f32 %v1927_v7, %v3312_v43  ;;  %v1979_v17 = vsel %vm1949_vm4, %v1926_v10, 0.0  ;;  %v2048_v21 = vmul.f32 %v1926_v10, %v3302_v26  ;;  %v1981_v28 = vsel %vm1949_vm4, %v1927_v7, 0.0 }
 0x279   : > { %v1980_v36 = vadd.f32 %v1979_v17, %v1978_v0 }
 0x27a   : > { %v2099_v12 = vsel %vm1949_vm4, %v2048_v21, 0.0  ;;  %v2101_v54 = vsel %vm1949_vm4, %v2049_v8, 0.0  ;;  %v2053_v21 = vmul.f32 %v1931_v5, %v3332_v35 }
 0x27b   : > { %v1982_v29 = vadd.f32 %v1981_v28, %v1980_v36  ;;  %v2100_v51 = vadd.f32 %v2099_v12, %v2098_v27  ;;  %v1859_v16 = vpop.permute.xlu2 %1858 }
 0x27d   : > { %v2102_v15 = vadd.f32 %v2101_v54, %v2100_v51  ;;  %v1824_v38 = vpop.permute.xlu1 %1823  ;;  %v1819_v59 = vpop.permute.xlu0 %1818  ;;  %v1984_v2 = vadd.f32 %v1983_v23, %v1982_v29  ;;  %v1989_v51 = vsel %vm1949_vm4, %v1931_v5, 0.0  ;;  %v1934_v23 = vmul.f32 %v1844_v31, %v3338_v49 }
 0x27e   : > { %v1930_v47 = vmul.f32 %v1824_v38, %v3326_v24  ;;  %v1929_v60 = vmul.f32 %v1819_v59, %v3324_v11  ;;  %v2109_v38 = vsel %vm1949_vm4, %v2053_v21, 0.0 }
 0x27f   : > { %v2104_v0 = vadd.f32 %v2103_v46, %v2102_v15 }
 0x280   : > { %v2052_v7 = vmul.f32 %v1930_v47, %v3326_v24  ;;  %v1985_v10 = vsel %vm1949_vm4, %v1929_v60, 0.0  ;;  %v2051_v61 = vmul.f32 %v1929_v60, %v3324_v11  ;;  %v1987_v17 = vsel %vm1949_vm4, %v1930_v47, 0.0 }
 0x281   : > { %v1986_v8 = vadd.f32 %v1985_v10, %v1984_v2 }
 0x282   : > { %v2105_v39 = vsel %vm1949_vm4, %v2051_v61, 0.0  ;;  %v2107_v44 = vsel %vm1949_vm4, %v2052_v7, 0.0 }
 0x283   : > { %v1988_v27 = vadd.f32 %v1987_v17, %v1986_v8  ;;  %v2106_v36 = vadd.f32 %v2105_v39, %v2104_v0  ;;  %v2056_v8 = vmul.f32 %v1934_v23, %v3338_v49 }
 0x285   : > { %v2108_v28 = vadd.f32 %v2107_v44, %v2106_v36  ;;  %v1839_v12 = vpop.permute.xlu1 %1838  ;;  %v1834_v29 = vpop.permute.xlu0 %1833  ;;  %v1990_v59 = vadd.f32 %v1989_v51, %v1988_v27  ;;  %v1995_v27 = vsel %vm1949_vm4, %v1934_v23, 0.0 }
 0x286   : > { %v1933_v54 = vmul.f32 %v1839_v12, %v3336_v57  ;;  %v1932_v15 = vmul.f32 %v1834_v29, %v3334_v42  ;;  %v2115_v29 = vsel %vm1949_vm4, %v2056_v8, 0.0  ;;  %v1874_v51 = vpop.permute.xlu2 %1873 }
 0x287   : > { %v2110_v46 = vadd.f32 %v2109_v38, %v2108_v28  ;;  %v1937_v28 = vmul.f32 %v1859_v16, %v3344_v34 }
 0x288   : > { %v2055_v47 = vmul.f32 %v1933_v54, %v3336_v57  ;;  %v1991_v60 = vsel %vm1949_vm4, %v1932_v15, 0.0  ;;  %v2054_v2 = vmul.f32 %v1932_v15, %v3334_v42  ;;  %v1993_v5 = vsel %vm1949_vm4, %v1933_v54, 0.0 }
 0x289   : > { %v1992_v7 = vadd.f32 %v1991_v60, %v1990_v59 }
 0x28a   : > { %v2111_v10 = vsel %vm1949_vm4, %v2054_v2, 0.0  ;;  %v2113_v17 = vsel %vm1949_vm4, %v2055_v47, 0.0  ;;  %v2059_v2 = vmul.f32 %v1937_v28, %v3344_v34 }
 0x28b   : > { %v1994_v61 = vadd.f32 %v1993_v5, %v1992_v7  ;;  %v2112_v0 = vadd.f32 %v2111_v10, %v2110_v46 }
 0x28d   : > { %v2114_v39 = vadd.f32 %v2113_v17, %v2112_v0  ;;  %v1854_v31 = vpop.permute.xlu1 %1853  ;;  %v1849_v21 = vpop.permute.xlu0 %1848  ;;  %v1996_v12 = vadd.f32 %v1995_v27, %v1994_v61  ;;  %v2001_v0 = vsel %vm1949_vm4, %v1937_v28, 0.0 }
 0x28e   : > { %v1936_v36 = vmul.f32 %v1854_v31, %v3342_v22  ;;  %v1935_v44 = vmul.f32 %v1849_v21, %v3340_v9  ;;  %v1940_v21 = vmul.f32 %v1874_v51, %v3350_v1 }
 0x28f   : > { %v2116_v59 = vadd.f32 %v2115_v29, %v2114_v39  ;;  %v2121_v39 = vsel %vm1949_vm4, %v2059_v2, 0.0 }
 0x290   : > { %v2058_v54 = vmul.f32 %v1936_v36, %v3342_v22  ;;  %v1997_v15 = vsel %vm1949_vm4, %v1935_v44, 0.0  ;;  %v2057_v38 = vmul.f32 %v1935_v44, %v3340_v9  ;;  %v1999_v23 = vsel %vm1949_vm4, %v1936_v36, 0.0 }
 0x291   : > { %v1998_v47 = vadd.f32 %v1997_v15, %v1996_v12 }
 0x292   : > { %v2117_v60 = vsel %vm1949_vm4, %v2057_v38, 0.0  ;;  %v2119_v7 = vsel %vm1949_vm4, %v2058_v54, 0.0  ;;  %v1889_v54 = vpop.permute.xlu2 %1888 }
 0x293   : > { %v2000_v46 = vadd.f32 %v1999_v23, %v1998_v47  ;;  %v2118_v16 = vadd.f32 %v2117_v60, %v2116_v59  ;;  %v2062_v47 = vmul.f32 %v1940_v21, %v3350_v1 }
 0x295   : > { %v2120_v5 = vadd.f32 %v2119_v7, %v2118_v16  ;;  %v1869_v10 = vpop.permute.xlu1 %1868  ;;  %v1864_v61 = vpop.permute.xlu0 %1863  ;;  %v2002_v31 = vadd.f32 %v2001_v0, %v2000_v46  ;;  %v2007_v46 = vsel %vm1949_vm4, %v1940_v21, 0.0 }
 0x296   : > { %v1939_v8 = vmul.f32 %v1869_v10, %v3348_v58  ;;  %v1938_v17 = vmul.f32 %v1864_v61, %v3346_v41  ;;  %v2127_v61 = vsel %vm1949_vm4, %v2062_v47, 0.0 }
 0x297   : > { %v2122_v12 = vadd.f32 %v2121_v39, %v2120_v5  ;;  %v1943_v5 = vmul.f32 %v1889_v54, %v3356_v37 }
 0x298   : > { %v2061_v27 = vmul.f32 %v1939_v8, %v3348_v58  ;;  %v2003_v36 = vsel %vm1949_vm4, %v1938_v17, 0.0  ;;  %v2060_v44 = vmul.f32 %v1938_v17, %v3346_v41  ;;  %v2005_v28 = vsel %vm1949_vm4, %v1939_v8, 0.0 }
 0x299   : > { %v2004_v29 = vadd.f32 %v2003_v36, %v2002_v31  ;;  %v2065_v36 = vmul.f32 %v1943_v5, %v3356_v37 }
 0x29a   : > { %v2123_v15 = vsel %vm1949_vm4, %v2060_v44, 0.0  ;;  %v2125_v23 = vsel %vm1949_vm4, %v2061_v27, 0.0 }
 0x29b   : > { %v2006_v38 = vadd.f32 %v2005_v28, %v2004_v29  ;;  %v2124_v59 = vadd.f32 %v2123_v15, %v2122_v12  ;;  %v1904_v29 = vpop.permute.xlu2 %1903 }
 0x29d   : > { %v2126_v51 = vadd.f32 %v2125_v23, %v2124_v59  ;;  %v1884_v60 = vpop.permute.xlu1 %1883  ;;  %v1879_v2 = vpop.permute.xlu0 %1878  ;;  %v2008_v10 = vadd.f32 %v2007_v46, %v2006_v38  ;;  %v2013_v59 = vsel %vm1949_vm4, %v1943_v5, 0.0 }
 0x29e   : > { %v1942_v16 = vmul.f32 %v1884_v60, %v3354_v25  ;;  %v1941_v7 = vmul.f32 %v1879_v2, %v3352_v6  ;;  %v1946_v2 = vmul.f32 %v1904_v29, %v3362_v18 }
 0x29f   : > { %v2128_v39 = vadd.f32 %v2127_v61, %v2126_v51  ;;  %v2133_v51 = vsel %vm1949_vm4, %v2065_v36, 0.0 }
 0x2a0   : > { %v2064_v0 = vmul.f32 %v1942_v16, %v3354_v25  ;;  %v2009_v8 = vsel %vm1949_vm4, %v1941_v7, 0.0  ;;  %v2063_v17 = vmul.f32 %v1941_v7, %v3352_v6  ;;  %v2011_v27 = vsel %vm1949_vm4, %v1942_v16, 0.0 }
 0x2a1   : > { %v2010_v31 = vadd.f32 %v2009_v8, %v2008_v10  ;;  %v2019_v36 = vsel %vm1949_vm4, %v1946_v2, 0.0 }
 0x2a2   : > { %v2129_v21 = vsel %vm1949_vm4, %v2063_v17, 0.0  ;;  %v2131_v54 = vsel %vm1949_vm4, %v2064_v0, 0.0 }
 0x2a3   : > { %v2012_v44 = vadd.f32 %v2011_v27, %v2010_v31  ;;  %v2130_v12 = vadd.f32 %v2129_v21, %v2128_v39  ;;  %v2068_v39 = vmul.f32 %v1946_v2, %v3362_v18 }
 0x2a5   : > { %v2132_v28 = vadd.f32 %v2131_v54, %v2130_v12  ;;  %v1899_v15 = vpop.permute.xlu1 %1898  ;;  %v1894_v38 = vpop.permute.xlu0 %1893  ;;  %v2014_v60 = vadd.f32 %v2013_v59, %v2012_v44  ;;  %v2139_v29 = vsel %vm1949_vm4, %v2068_v39, 0.0 }
 0x2a6   : > { %v1945_v47 = vmul.f32 %v1899_v15, %v3360_v52  ;;  %v1944_v23 = vmul.f32 %v1894_v38, %v3358_v53 }
 0x2a7   : > { %v2134_v10 = vadd.f32 %v2133_v51, %v2132_v28 }
 0x2a8   : > { %v2067_v46 = vmul.f32 %v1945_v47, %v3360_v52  ;;  %v2015_v16 = vsel %vm1949_vm4, %v1944_v23, 0.0  ;;  %v2066_v7 = vmul.f32 %v1944_v23, %v3358_v53  ;;  %v2017_v0 = vsel %vm1949_vm4, %v1945_v47, 0.0 }
 0x2a9   : > { %v2016_v61 = vadd.f32 %v2015_v16, %v2014_v60 }
 0x2aa   : > { %v2135_v5 = vsel %vm1949_vm4, %v2066_v7, 0.0  ;;  %v2137_v31 = vsel %vm1949_vm4, %v2067_v46, 0.0 }
 0x2ab   : > { %v2018_v8 = vadd.f32 %v2017_v0, %v2016_v61  ;;  %v2136_v17 = vadd.f32 %v2135_v5, %v2134_v10  ;;  %v1948_v0 = vld [vmem:[#allocation2] sm:$0x1] }
 0x2ad   : > { %v2138_v27 = vadd.f32 %v2137_v31, %v2136_v17  ;;  %v1909_v21 = vpop.permute.xlu0 %1908  ;;  %v2020_v12 = vadd.f32 %v2019_v36, %v2018_v8  ;;  %v2032_v17 = vld [vmem:[#allocation3] sm:$0x1] }
 0x2ae   : > { %v1947_v44 = vmul.f32 %v1909_v21, %v3364_v32 }
 0x2af   : > { %v2140_v15 = vadd.f32 %v2139_v29, %v2138_v27 }
 0x2b0   : > { %v2022_v54 = vsel %vm2021_vm5, %v1947_v44, 0.0  ;;  %v2069_v28 = vmul.f32 %v1947_v44, %v3364_v32 }
 0x2b1   : > { %v2023_v38 = vadd.f32 %v2022_v54, %v2020_v12 }
 0x2b2   : > { %v2141_v59 = vsel %vm2021_vm5, %v2069_v28, 0.0 }
 0x2b3   : > { %v2024_v47 = vrot.slane %v2023_v38, 4  ;;  %v2142_v23 = vadd.f32 %v2141_v59, %v2140_v15 }
 0x2b5   : > { %v2025_v51 = vadd.f32 %v2024_v47, %v2023_v38  ;;  %v2143_v60 = vrot.slane %v2142_v23, 4 }
 0x2b7   : > { %v2026_v46 = vrot.slane %v2025_v51, 2  ;;  %v2144_v16 = vadd.f32 %v2143_v60, %v2142_v23 }
 0x2b9   : > { %v2027_v2 = vadd.f32 %v2026_v46, %v2025_v51  ;;  %v2145_v7 = vrot.slane %v2144_v16, 2 }
 0x2bb   : > { %v2028_v10 = vrot.slane %v2027_v2, 1  ;;  %v2146_v61 = vadd.f32 %v2145_v7, %v2144_v16 }
 0x2bd   : > { %v2029_v5 = vadd.f32 %v2028_v10, %v2027_v2  ;;  %v2147_v8 = vrot.slane %v2146_v61, 1 }
 0x2bf   : > { %v2030_v39 = vadd.f32 %v2029_v5, %v1948_v0  ;;  %v2148_v31 = vadd.f32 %v2147_v8, %v2146_v61 }
 0x2c1   : > { %2031 = vst.msk [vmem:[#allocation2] sm:$0x1] %vm2021_vm5, %v2030_v39  ;;  %v2149_v27 = vadd.f32 %v2148_v31, %v2032_v17 }
 0x2c3   : > { %2150 = vst.msk [vmem:[#allocation3] sm:$0x1] %vm2021_vm5, %v2149_v27 }
 0x2c4 PF: > { %p2831_p11 = scmp.ne.s32.totalorder %s2968_s19, 1 }
 0x2c6   : > { %2154 = sbr.rel (%p2831_p11) target bundleno = 811 (0x32b), region = 52 }
 0x2cb   : > { %v2155_v21 = vld [vmem:[#allocation2] sm:$0x1]  ;;  %v2157_v36 = vld [vmem:[#allocation3] sm:$0x1]  ;;  %vm2406_vm9 = vcmask 257024  }
 0x2cc   : > { %v2156_v44 = vmul.f32 0.001953125, %v2155_v21  ;;  %v2158_v12 = vmul.f32 0.001953125, %v2157_v36  ;;  %v2162_v60 = vld [vmem:[%s3841_s2] sm:$0x1] }
 0x2cd   : > { %v2175_v7 = vld [vmem:[%s3842_s3] sm:$0x1] }
 0x2ce   : > { %v2159_v29 = vmul.f32 %v2156_v44, %v2156_v44 }
 0x2d0   : > { %v2160_v54 = vsub.f32 %v2158_v12, %v2159_v29 }
 0x2d2   : > { %v2161_v28 = vmax.f32 %v2160_v54, 0.0 }
 0x2d4   : > { %v2163_v15 = vadd.f32 1e-05, %v2161_v28 }
 0x2d6   : > { %2940 = vrsqrt.f32 %v2163_v15  ;;  %vm2170_vm6 = vweird.f32 %v2163_v15 }
 0x2dc   : > { %v2941_v38 = vpop.eup %2940 }
 0x2dd   : > { %v2165_v59 = vmul.f32 %v2941_v38, %v2163_v15  ;;  %vm2171_vm7 = vweird.f32 %v2941_v38 }
 0x2de   : > { %vm2172_vm8 = vmor %vm2170_vm6, %vm2171_vm7 }
 0x2df   : > { %v2166_v47 = vmul.f32 %v2941_v38, %v2165_v59 }
 0x2e1   : > { %v2167_v23 = vmul.f32 0.5, %v2166_v47 }
 0x2e3   : > { %v2168_v51 = vsub.f32 1.5, %v2167_v23 }
 0x2e5   : > { %v2169_v46 = vmul.f32 %v2941_v38, %v2168_v51 }
 0x2e7   : > { %v2173_v16 = vsel %vm2172_vm8, %v2941_v38, %v2169_v46 }
 0x2e8   : > { %v2174_v2 = vmul.f32 %v2173_v16, %v2162_v60 }
 0x2ea   : > { %v2176_v10 = vmul.f32 %v2174_v2, %v2156_v44  ;;  %v3635_v61 = vperm.slane %v2174_v2, 0 }
 0x2ec   : > { %v2177_v0 = vsub.f32 %v2175_v7, %v2176_v10  ;;  %v2181_v5 = vmul.f32 %v3635_v61, %v3193_v40  ;;  %v2182_v8 = vmul.f32 %v3635_v61, %v3198_v55  ;;  %v2183_v17 = vmul.f32 %v3635_v61, %v3206_v4 }
 0x2ed   : > { %v2184_v39 = vmul.f32 %v3635_v61, %v3211_v19  ;;  %v2185_v31 = vmul.f32 %v3635_v61, %v3219_v33  ;;  %v2186_v27 = vmul.f32 %v3635_v61, %v3224_v48  ;;  %v2187_v21 = vmul.f32 %v3635_v61, %v3232_v63 }
 0x2ee   : > { %v3651_v40 = vperm.slane %v2177_v0, 0  ;;  %v2188_v55 = vmul.f32 %v3635_v61, %v3237_v14  ;;  %v2189_v4 = vmul.f32 %v3635_v61, %v3245_v30  ;;  %v2190_v19 = vmul.f32 %v3635_v61, %v3250_v45 }
 0x2ef   : > { %v2191_v33 = vmul.f32 %v3635_v61, %v3258_v62  ;;  %v2192_v48 = vmul.f32 %v3635_v61, %v3263_v13  ;;  %v2193_v63 = vmul.f32 %v3635_v61, %v3274_v20  ;;  %v2194_v36 = vmul.f32 %v3635_v61, %v3279_v50 }
 0x2f0   : > { %v2221_v14 = vadd.f32 %v3651_v40, %v2181_v5  ;;  %v2222_v44 = vadd.f32 %v3651_v40, %v2182_v8  ;;  %v2223_v30 = vadd.f32 %v3651_v40, %v2183_v17  ;;  %v2224_v45 = vadd.f32 %v3651_v40, %v2184_v39 }
 0x2f1   : > { %v2225_v12 = vadd.f32 %v3651_v40, %v2185_v31  ;;  %v2226_v62 = vadd.f32 %v3651_v40, %v2186_v27  ;;  %v2227_v13 = vadd.f32 %v3651_v40, %v2187_v21  ;;  %v2228_v29 = vadd.f32 %v3651_v40, %v2188_v55 }
 0x2f2   : > { %vm2258_vm10 = vcmp.gt.f32.partialorder %v2221_v14, 0.0  ;;  %v2295_v20 = vmul.f32 0.2, %v2221_v14  ;;  %vm2259_vm11 = vcmp.gt.f32.partialorder %v2222_v44, 0.0  ;;  %v2296_v50 = vmul.f32 0.2, %v2222_v44 }
 0x2f3   : > { %vm2260_vm12 = vcmp.gt.f32.partialorder %v2223_v30, 0.0  ;;  %v2297_v54 = vmul.f32 0.2, %v2223_v30  ;;  %vm2261_vm13 = vcmp.gt.f32.partialorder %v2224_v45, 0.0  ;;  %v2298_v28 = vmul.f32 0.2, %v2224_v45 }
 0x2f4   : > { %v2332_v15 = vsel %vm2258_vm10, %v2221_v14, %v2295_v20  ;;  %v2333_v38 = vsel %vm2259_vm11, %v2222_v44, %v2296_v50  ;;  %vm2262_vm14 = vcmp.gt.f32.partialorder %v2225_v12, 0.0  ;;  %v2299_v59 = vmul.f32 0.2, %v2225_v12 }
 0x2f5   : > { %v2369_v47 = vpack.c.bf16 %v2332_v15, %v2332_v15  ;;  %v2370_v23 = vpack.c.bf16 %v2333_v38, %v2333_v38  ;;  %v2334_v51 = vsel %vm2260_vm12, %v2223_v30, %v2297_v54  ;;  %v2335_v60 = vsel %vm2261_vm13, %v2224_v45, %v2298_v28 }
 0x2f6   : > { %v2371_v46 = vpack.c.bf16 %v2334_v51, %v2334_v51  ;;  %v2372_v16 = vpack.c.bf16 %v2335_v60, %v2335_v60  ;;  %v2336_v2 = vsel %vm2262_vm14, %v2225_v12, %v2299_v59  ;;  %vm2263_vm15 = vcmp.gt.f32.partialorder %v2226_v62, 0.0 }
 0x2f7   : > { %2407 = vst.msk [vmem:[%s3056_s8] sm:$0xf] %vm2406_vm9, %v2369_v47  ;;  %v2373_v7 = vpack.c.bf16 %v2336_v2, %v2336_v2  ;;  %v2300_v10 = vmul.f32 0.2, %v2226_v62  ;;  %vm2264_vm0 = vcmp.gt.f32.partialorder %v2227_v13, 0.0  ;;  %vm2265_vm1 = vcmp.gt.f32.partialorder %v2228_v29, 0.0 }
 0x2f8   : > { %2408 = vst.msk [vmem:[%s3056_s8 + $0x4] sm:$0xf] %vm2406_vm9, %v2370_v23  ;;  %v2301_v0 = vmul.f32 0.2, %v2227_v13  ;;  %v2302_v5 = vmul.f32 0.2, %v2228_v29  ;;  %v2229_v8 = vadd.f32 %v3651_v40, %v2189_v4  ;;  %v2230_v17 = vadd.f32 %v3651_v40, %v2190_v19 }
 0x2f9   : > { %2409 = vst.msk [vmem:[%s3056_s8 + $0x8] sm:$0xf] %vm2406_vm9, %v2371_v46  ;;  %v2337_v39 = vsel %vm2263_vm15, %v2226_v62, %v2300_v10  ;;  %v2231_v31 = vadd.f32 %v3651_v40, %v2191_v33  ;;  %v2232_v27 = vadd.f32 %v3651_v40, %v2192_v48  ;;  %v2233_v21 = vadd.f32 %v3651_v40, %v2193_v63 }
 0x2fa   : > { %2410 = vst.msk [vmem:[%s3056_s8 + $0xc] sm:$0xf] %vm2406_vm9, %v2372_v16  ;;  %v2374_v55 = vpack.c.bf16 %v2337_v39, %v2337_v39  ;;  %v2338_v14 = vsel %vm2264_vm0, %v2227_v13, %v2301_v0  ;;  %v2339_v44 = vsel %vm2265_vm1, %v2228_v29, %v2302_v5  ;;  %vm2266_vm2 = vcmp.gt.f32.partialorder %v2229_v8, 0.0 }
 0x2fb   : > { %2411 = vst.msk [vmem:[%s3056_s8 + $0x10] sm:$0xf] %vm2406_vm9, %v2373_v7  ;;  %v2375_v4 = vpack.c.bf16 %v2338_v14, %v2338_v14  ;;  %v2376_v19 = vpack.c.bf16 %v2339_v44, %v2339_v44  ;;  %v2303_v30 = vmul.f32 0.2, %v2229_v8  ;;  %vm2267_vm3 = vcmp.gt.f32.partialorder %v2230_v17, 0.0 }
 0x2fc   : > { %2412 = vst.msk [vmem:[%s3056_s8 + $0x14] sm:$0xf] %vm2406_vm9, %v2374_v55  ;;  %v2304_v33 = vmul.f32 0.2, %v2230_v17  ;;  %vm2268_vm4 = vcmp.gt.f32.partialorder %v2231_v31, 0.0  ;;  %vm2269_vm5 = vcmp.gt.f32.partialorder %v2232_v27, 0.0  ;;  %v2234_v48 = vadd.f32 %v3651_v40, %v2194_v36 }
 0x2fd   : > { %2413 = vst.msk [vmem:[%s3056_s8 + $0x18] sm:$0xf] %vm2406_vm9, %v2375_v4  ;;  %v2340_v63 = vsel %vm2266_vm2, %v2229_v8, %v2303_v30  ;;  %v2305_v45 = vmul.f32 0.2, %v2231_v31  ;;  %v2306_v12 = vmul.f32 0.2, %v2232_v27  ;;  %v2195_v62 = vmul.f32 %v3635_v61, %v3294_v56 }
 0x2fe   : > { %2414 = vst.msk [vmem:[%s3056_s8 + $0x1c] sm:$0xf] %vm2406_vm9, %v2376_v19  ;;  %v2377_v13 = vpack.c.bf16 %v2340_v63, %v2340_v63  ;;  %v2341_v29 = vsel %vm2267_vm3, %v2230_v17, %v2304_v33  ;;  %vm2270_vm6 = vcmp.gt.f32.partialorder %v2233_v21, 0.0  ;;  %v2307_v20 = vmul.f32 0.2, %v2233_v21 }
 0x2ff   : > { %v2378_v50 = vpack.c.bf16 %v2341_v29, %v2341_v29  ;;  %v2342_v54 = vsel %vm2268_vm4, %v2231_v31, %v2305_v45  ;;  %v2343_v28 = vsel %vm2269_vm5, %v2232_v27, %v2306_v12  ;;  %vm2271_vm7 = vcmp.gt.f32.partialorder %v2234_v48, 0.0 }
 0x300   : > { %2415 = vst.msk [vmem:[%s3056_s8 + $0x20] sm:$0xf] %vm2406_vm9, %v2377_v13  ;;  %v2379_v36 = vpack.c.bf16 %v2342_v54, %v2342_v54  ;;  %v2380_v15 = vpack.c.bf16 %v2343_v28, %v2343_v28  ;;  %v2344_v38 = vsel %vm2270_vm6, %v2233_v21, %v2307_v20  ;;  %v2308_v59 = vmul.f32 0.2, %v2234_v48 }
 0x301   : > { %2416 = vst.msk [vmem:[%s3056_s8 + $0x24] sm:$0xf] %vm2406_vm9, %v2378_v50  ;;  %v2381_v56 = vpack.c.bf16 %v2344_v38, %v2344_v38  ;;  %v2235_v47 = vadd.f32 %v3651_v40, %v2195_v62  ;;  %v2196_v23 = vmul.f32 %v3635_v61, %v3302_v26  ;;  %v2197_v51 = vmul.f32 %v3635_v61, %v3312_v43 }
 0x302   : > { %2417 = vst.msk [vmem:[%s3056_s8 + $0x28] sm:$0xf] %vm2406_vm9, %v2379_v36  ;;  %v2345_v60 = vsel %vm2271_vm7, %v2234_v48, %v2308_v59  ;;  %v2198_v46 = vmul.f32 %v3635_v61, %v3317_v3  ;;  %v2199_v16 = vmul.f32 %v3635_v61, %v3324_v11  ;;  %v2200_v2 = vmul.f32 %v3635_v61, %v3326_v24 }
 0x303   : > { %2418 = vst.msk [vmem:[%s3056_s8 + $0x2c] sm:$0xf] %vm2406_vm9, %v2380_v15  ;;  %v2382_v7 = vpack.c.bf16 %v2345_v60, %v2345_v60  ;;  %vm2272_vm8 = vcmp.gt.f32.partialorder %v2235_v47, 0.0  ;;  %v2309_v26 = vmul.f32 0.2, %v2235_v47  ;;  %v2236_v43 = vadd.f32 %v3651_v40, %v2196_v23 }
 0x304   : > { %2419 = vst.msk [vmem:[%s3056_s8 + $0x30] sm:$0xf] %vm2406_vm9, %v2381_v56  ;;  %v2237_v10 = vadd.f32 %v3651_v40, %v2197_v51  ;;  %v2238_v0 = vadd.f32 %v3651_v40, %v2198_v46  ;;  %v2239_v3 = vadd.f32 %v3651_v40, %v2199_v16  ;;  %v2240_v11 = vadd.f32 %v3651_v40, %v2200_v2 }
 0x305   : > { %2420 = vst.msk [vmem:[%s3056_s8 + $0x34] sm:$0xf] %vm2406_vm9, %v2382_v7  ;;  %v2346_v24 = vsel %vm2272_vm8, %v2235_v47, %v2309_v26  ;;  %vm2273_vm10 = vcmp.gt.f32.partialorder %v2236_v43, 0.0  ;;  %v2310_v5 = vmul.f32 0.2, %v2236_v43  ;;  %v2201_v8 = vmul.f32 %v3635_v61, %v3332_v35 }
 0x306   : > { %v2383_v17 = vpack.c.bf16 %v2346_v24, %v2346_v24  ;;  %vm2274_vm11 = vcmp.gt.f32.partialorder %v2237_v10, 0.0  ;;  %v2311_v39 = vmul.f32 0.2, %v2237_v10  ;;  %vm2275_vm12 = vcmp.gt.f32.partialorder %v2238_v0, 0.0 }
 0x307   : > { %v2347_v31 = vsel %vm2273_vm10, %v2236_v43, %v2310_v5  ;;  %v2312_v27 = vmul.f32 0.2, %v2238_v0  ;;  %vm2276_vm13 = vcmp.gt.f32.partialorder %v2239_v3, 0.0  ;;  %v2313_v21 = vmul.f32 0.2, %v2239_v3 }
 0x308   : > { %2421 = vst.msk [vmem:[%s3056_s8 + $0x38] sm:$0xf] %vm2406_vm9, %v2383_v17  ;;  %v2384_v55 = vpack.c.bf16 %v2347_v31, %v2347_v31  ;;  %v2348_v14 = vsel %vm2274_vm11, %v2237_v10, %v2311_v39  ;;  %vm2277_vm14 = vcmp.gt.f32.partialorder %v2240_v11, 0.0  ;;  %v2314_v44 = vmul.f32 0.2, %v2240_v11 }
 0x309   : > { %v2385_v4 = vpack.c.bf16 %v2348_v14, %v2348_v14  ;;  %v2349_v19 = vsel %vm2275_vm12, %v2238_v0, %v2312_v27  ;;  %v2350_v35 = vsel %vm2276_vm13, %v2239_v3, %v2313_v21  ;;  %v2241_v30 = vadd.f32 %v3651_v40, %v2201_v8 }
 0x30a   : > { %2422 = vst.msk [vmem:[%s3056_s8 + $0x3c] sm:$0xf] %vm2406_vm9, %v2384_v55  ;;  %v2386_v33 = vpack.c.bf16 %v2349_v19, %v2349_v19  ;;  %v2387_v48 = vpack.c.bf16 %v2350_v35, %v2350_v35  ;;  %v2351_v63 = vsel %vm2277_vm14, %v2240_v11, %v2314_v44  ;;  %v2202_v45 = vmul.f32 %v3635_v61, %v3334_v42 }
 0x30b   : > { %2423 = vst.msk [vmem:[%s3056_s8 + $0x40] sm:$0xf] %vm2406_vm9, %v2385_v4  ;;  %v2388_v12 = vpack.c.bf16 %v2351_v63, %v2351_v63  ;;  %vm2278_vm15 = vcmp.gt.f32.partialorder %v2241_v30, 0.0  ;;  %v2315_v62 = vmul.f32 0.2, %v2241_v30  ;;  %v2203_v13 = vmul.f32 %v3635_v61, %v3336_v57 }
 0x30c   : > { %2424 = vst.msk [vmem:[%s3056_s8 + $0x44] sm:$0xf] %vm2406_vm9, %v2386_v33  ;;  %v2242_v29 = vadd.f32 %v3651_v40, %v2202_v45  ;;  %v2204_v20 = vmul.f32 %v3635_v61, %v3338_v49  ;;  %v2205_v50 = vmul.f32 %v3635_v61, %v3340_v9  ;;  %v2206_v42 = vmul.f32 %v3635_v61, %v3342_v22 }
 0x30d   : > { %2425 = vst.msk [vmem:[%s3056_s8 + $0x48] sm:$0xf] %vm2406_vm9, %v2387_v48  ;;  %v2352_v54 = vsel %vm2278_vm15, %v2241_v30, %v2315_v62  ;;  %v2243_v28 = vadd.f32 %v3651_v40, %v2203_v13  ;;  %v2207_v57 = vmul.f32 %v3635_v61, %v3344_v34  ;;  %v2208_v36 = vmul.f32 %v3635_v61, %v3346_v41 }
 0x30e   : > { %2426 = vst.msk [vmem:[%s3056_s8 + $0x4c] sm:$0xf] %vm2406_vm9, %v2388_v12  ;;  %v2389_v49 = vpack.c.bf16 %v2352_v54, %v2352_v54  ;;  %vm2279_vm0 = vcmp.gt.f32.partialorder %v2242_v29, 0.0  ;;  %v2316_v9 = vmul.f32 0.2, %v2242_v29  ;;  %v2244_v15 = vadd.f32 %v3651_v40, %v2204_v20 }
 0x30f   : > { %vm2280_vm1 = vcmp.gt.f32.partialorder %v2243_v28, 0.0  ;;  %v2317_v22 = vmul.f32 0.2, %v2243_v28  ;;  %v2245_v38 = vadd.f32 %v3651_v40, %v2205_v50  ;;  %v2246_v59 = vadd.f32 %v3651_v40, %v2206_v42 }
 0x310   : > { %2427 = vst.msk [vmem:[%s3056_s8 + $0x50] sm:$0xf] %vm2406_vm9, %v2389_v49  ;;  %v2353_v34 = vsel %vm2279_vm0, %v2242_v29, %v2316_v9  ;;  %vm2281_vm2 = vcmp.gt.f32.partialorder %v2244_v15, 0.0  ;;  %v2318_v41 = vmul.f32 0.2, %v2244_v15  ;;  %v2247_v56 = vadd.f32 %v3651_v40, %v2207_v57 }
 0x311   : > { %v2390_v47 = vpack.c.bf16 %v2353_v34, %v2353_v34  ;;  %v2354_v23 = vsel %vm2280_vm1, %v2243_v28, %v2317_v22  ;;  %vm2282_vm3 = vcmp.gt.f32.partialorder %v2245_v38, 0.0  ;;  %v2319_v51 = vmul.f32 0.2, %v2245_v38 }
 0x312   : > { %v2391_v60 = vpack.c.bf16 %v2354_v23, %v2354_v23  ;;  %v2355_v46 = vsel %vm2281_vm2, %v2244_v15, %v2318_v41  ;;  %vm2283_vm4 = vcmp.gt.f32.partialorder %v2246_v59, 0.0  ;;  %v2320_v16 = vmul.f32 0.2, %v2246_v59  ;;  %v2446_v41 = vld [vmem:[%s3056_s8 + $0x90] sm:$0x1] }
 0x313   : > { %2428 = vst.msk [vmem:[%s3056_s8 + $0x54] sm:$0xf] %vm2406_vm9, %v2390_v47  ;;  %v2392_v2 = vpack.c.bf16 %v2355_v46, %v2355_v46  ;;  %v2356_v7 = vsel %vm2282_vm3, %v2245_v38, %v2319_v51  ;;  %vm2284_vm5 = vcmp.gt.f32.partialorder %v2247_v56, 0.0  ;;  %v2321_v26 = vmul.f32 0.2, %v2247_v56 }
 0x314   : > { %2429 = vst.msk [vmem:[%s3056_s8 + $0x58] sm:$0xf] %vm2406_vm9, %v2391_v60  ;;  %v2393_v43 = vpack.c.bf16 %v2356_v7, %v2356_v7  ;;  %v2357_v10 = vsel %vm2283_vm4, %v2246_v59, %v2320_v16  ;;  %v2248_v0 = vadd.f32 %v3651_v40, %v2208_v36  ;;  %v2209_v3 = vmul.f32 %v3635_v61, %v3348_v58 }
 0x315   : > { %2430 = vst.msk [vmem:[%s3056_s8 + $0x5c] sm:$0xf] %vm2406_vm9, %v2392_v2  ;;  %v2394_v11 = vpack.c.bf16 %v2357_v10, %v2357_v10  ;;  %v2358_v24 = vsel %vm2284_vm5, %v2247_v56, %v2321_v26  ;;  %v2210_v5 = vmul.f32 %v3635_v61, %v3350_v1  ;;  %v2211_v8 = vmul.f32 %v3635_v61, %v3352_v6 }
 0x316   : > { %2431 = vst.msk [vmem:[%s3056_s8 + $0x60] sm:$0xf] %vm2406_vm9, %v2393_v43  ;;  %v2395_v17 = vpack.c.bf16 %v2358_v24, %v2358_v24  ;;  %vm2285_vm6 = vcmp.gt.f32.partialorder %v2248_v0, 0.0  ;;  %v2322_v39 = vmul.f32 0.2, %v2248_v0  ;;  %v2249_v31 = vadd.f32 %v3651_v40, %v2209_v3 }
 0x317   : > { %2432 = vst.msk [vmem:[%s3056_s8 + $0x64] sm:$0xf] %vm2406_vm9, %v2394_v11  ;;  %v2250_v58 = vadd.f32 %v3651_v40, %v2210_v5  ;;  %v2251_v27 = vadd.f32 %v3651_v40, %v2211_v8  ;;  %v2212_v1 = vmul.f32 %v3635_v61, %v3354_v25  ;;  %v2213_v6 = vmul.f32 %v3635_v61, %v3356_v37 }
 0x318   : > { %2433 = vst.msk [vmem:[%s3056_s8 + $0x68] sm:$0xf] %vm2406_vm9, %v2395_v17  ;;  %v2359_v21 = vsel %vm2285_vm6, %v2248_v0, %v2322_v39  ;;  %vm2286_vm7 = vcmp.gt.f32.partialorder %v2249_v31, 0.0  ;;  %v2323_v55 = vmul.f32 0.2, %v2249_v31  ;;  %v2214_v14 = vmul.f32 %v3635_v61, %v3358_v53 }
 0x319   : > { %v2396_v44 = vpack.c.bf16 %v2359_v21, %v2359_v21  ;;  %vm2287_vm8 = vcmp.gt.f32.partialorder %v2250_v58, 0.0  ;;  %v2324_v4 = vmul.f32 0.2, %v2250_v58  ;;  %vm2288_vm10 = vcmp.gt.f32.partialorder %v2251_v27, 0.0 }
 0x31a   : > { %v2360_v19 = vsel %vm2286_vm7, %v2249_v31, %v2323_v55  ;;  %v2325_v35 = vmul.f32 0.2, %v2251_v27  ;;  %v2252_v25 = vadd.f32 %v3651_v40, %v2212_v1  ;;  %v2253_v37 = vadd.f32 %v3651_v40, %v2213_v6 }
 0x31b   : > { %2434 = vst.msk [vmem:[%s3056_s8 + $0x6c] sm:$0xf] %vm2406_vm9, %v2396_v44  ;;  %v2397_v30 = vpack.c.bf16 %v2360_v19, %v2360_v19  ;;  %v2361_v33 = vsel %vm2287_vm8, %v2250_v58, %v2324_v4  ;;  %v2254_v48 = vadd.f32 %v3651_v40, %v2214_v14  ;;  %v2215_v53 = vmul.f32 %v3635_v61, %v3360_v52 }
 0x31c   : > { %v2398_v63 = vpack.c.bf16 %v2361_v33, %v2361_v33  ;;  %v2362_v45 = vsel %vm2288_vm10, %v2251_v27, %v2325_v35  ;;  %vm2289_vm11 = vcmp.gt.f32.partialorder %v2252_v25, 0.0  ;;  %v2326_v12 = vmul.f32 0.2, %v2252_v25 }
 0x31d   : > { %2435 = vst.msk [vmem:[%s3056_s8 + $0x70] sm:$0xf] %vm2406_vm9, %v2397_v30  ;;  %v2399_v62 = vpack.c.bf16 %v2362_v45, %v2362_v45  ;;  %vm2290_vm12 = vcmp.gt.f32.partialorder %v2253_v37, 0.0  ;;  %v2327_v13 = vmul.f32 0.2, %v2253_v37  ;;  %vm2291_vm13 = vcmp.gt.f32.partialorder %v2254_v48, 0.0 }
 0x31e   : > { %2436 = vst.msk [vmem:[%s3056_s8 + $0x74] sm:$0xf] %vm2406_vm9, %v2398_v63  ;;  %v2363_v29 = vsel %vm2289_vm11, %v2252_v25, %v2326_v12  ;;  %v2328_v20 = vmul.f32 0.2, %v2254_v48  ;;  %v2255_v50 = vadd.f32 %v3651_v40, %v2215_v53  ;;  %v2216_v52 = vmul.f32 %v3635_v61, %v3362_v18 }
 0x31f   : > { %2437 = vst.msk [vmem:[%s3056_s8 + $0x78] sm:$0xf] %vm2406_vm9, %v2399_v62  ;;  %v2400_v42 = vpack.c.bf16 %v2363_v29, %v2363_v29  ;;  %v2364_v54 = vsel %vm2290_vm12, %v2253_v37, %v2327_v13  ;;  %v2217_v28 = vmul.f32 %v3635_v61, %v3364_v32  ;;  %vm2443_vm15 = vcmask 253952  }
 0x320   : > { %v2401_v57 = vpack.c.bf16 %v2364_v54, %v2364_v54  ;;  %v2365_v36 = vsel %vm2291_vm13, %v2254_v48, %v2328_v20  ;;  %vm2292_vm14 = vcmp.gt.f32.partialorder %v2255_v50, 0.0  ;;  %v2329_v49 = vmul.f32 0.2, %v2255_v50 }
 0x321   : > { %2438 = vst.msk [vmem:[%s3056_s8 + $0x7c] sm:$0xf] %vm2406_vm9, %v2400_v42  ;;  %v2402_v9 = vpack.c.bf16 %v2365_v36, %v2365_v36  ;;  %v2256_v15 = vadd.f32 %v3651_v40, %v2216_v52  ;;  %v2257_v18 = vadd.f32 %v3651_v40, %v2217_v28  ;;  %vm2444_vm0 = vsmask.f32 256 }
 0x322   : > { %2439 = vst.msk [vmem:[%s3056_s8 + $0x80] sm:$0xf] %vm2406_vm9, %v2401_v57  ;;  %v2366_v22 = vsel %vm2292_vm14, %v2255_v50, %v2329_v49  ;;  %vm2445_vm3 = vmand %vm2443_vm15, %vm2444_vm0 }
 0x323   : > { %2440 = vst.msk [vmem:[%s3056_s8 + $0x84] sm:$0xf] %vm2406_vm9, %v2402_v9  ;;  %v2403_v32 = vpack.c.bf16 %v2366_v22, %v2366_v22  ;;  %vm2293_vm1 = vcmp.gt.f32.partialorder %v2256_v15, 0.0  ;;  %v2330_v61 = vmul.f32 0.2, %v2256_v15  ;;  %vm2294_vm2 = vcmp.gt.f32.partialorder %v2257_v18, 0.0 }
 0x324   : > { %v2331_v38 = vmul.f32 0.2, %v2257_v18 }
 0x325   : > { %2441 = vst.msk [vmem:[%s3056_s8 + $0x88] sm:$0xf] %vm2406_vm9, %v2403_v32  ;;  %v2367_v59 = vsel %vm2293_vm1, %v2256_v15, %v2330_v61 }
 0x326   : > { %v2404_v34 = vpack.c.bf16 %v2367_v59, %v2367_v59  ;;  %v2368_v40 = vsel %vm2294_vm2, %v2257_v18, %v2331_v38 }
 0x327   : > { %v2405_v56 = vpack.c.bf16 %v2368_v40, %v2368_v40 }
 0x328   : > { %2442 = vst.msk [vmem:[%s3056_s8 + $0x8c] sm:$0xf] %vm2406_vm9, %v2404_v34 }
 0x329   : > { %v2447_v47 = vsel %vm2445_vm3, %v2405_v56, %v2446_v41 }
 0x32a   : > { %2448 = vst [vmem:[%s3056_s8 + $0x90] sm:$0x1] %v2447_v47 }
 0x32b PF: > { %s15_s22 = sadd.s32 1, %s2980_s22   ;;  %s3845_s18 = smov %s2972_s20 }
 0x32c   : > { %p12_p12 = scmp.ge.s32.totalorder %s15_s22, 6   ;;  %s3846_s19 = smov %s2976_s21 }
 0x32d   : > { %s3847_s20 = smov %s3850_s23  ;;  %s3848_s21 = smov %s3854_s24 }
 0x32e   :  { %14 = sbr.rel (!%p12_p12) target bundleno = 3 (0x3), region = 85 }

// kernel: discriminator_forward.6
= control target key start
LH: loop header
LB: loop body
LE: loop exit
PB: predicated region body
PF: predicated region fallthrough
CT: control target
= control target key end

     0   :  { %s1626_s18 = smov 0   ;;  %s1628_s19 = smov 0   ;;  %s1959_s0 = inlined_call_operand.vmem [shape: bf16[2,91,128], index: 0, kind: input, shape index: {}]   ;;  %s1960_s1 = inlined_call_operand.vmem [shape: bf16[4,128,64], index: 1, kind: input, shape index: {}]   ;;  %s1961_s2 = inlined_call_operand.vmem [shape: f32[1,64], index: 2, kind: input, shape index: {}]   ;;  %s1962_s3 = inlined_call_operand.vmem [shape: f32[1,64], index: 3, kind: input, shape index: {}]   ;;  %s1963_s4 = inlined_call_operand.vmem [shape: f32[81,1], index: 4, kind: input, shape index: {}]   ;;  %s1964_s5 = inlined_call_operand.vmem [shape: bf16[2,81,64], index: 5, kind: output, shape index: {}]  }
   0x1   :  { %s1630_s20 = smov 0   ;;  %s1632_s21 = smov 0  }
   0x2   :  { %s1634_s22 = smov 0  }
   0x3 LB: > { %s24_s23 = sadd.s32 1, %s1584_s20  ;;  %s27_s24 = sadd.s32 1, %s1588_s21  ;;  %s1592_s22 = sphi %s1634_s22, %s15_s22   ;;  %s1588_s21 = sphi %s1632_s21, %s1968_s21   ;;  %s1584_s20 = sphi %s1630_s20, %s1967_s20   ;;  %s1580_s19 = sphi %s1628_s19, %s1966_s19   ;;  %s1576_s18 = sphi %s1626_s18, %s1965_s18  }
   0x4   : > { %p25_p0 = scmp.ge.s32.totalorder %s24_s23, 2  ;;  %p1242_p1 = scmp.ge.s32.totalorder %s1592_s22, 1 }
   0x5   : > { %p201_p2 = scmp.lt.s32.totalorder %s1592_s22, 5 }
   0x6   : > { %s1970_s23 = smov (%p25_p0, %s24_s23), 0  ;;  %s1972_s24 = smov (!%p25_p0, %s27_s24), %s1588_s21 }
   0x7   : > { %p202_p3 = pnand %p1242_p1, %p201_p2  ;;  %p29_p4 = scmp.ge.s32.totalorder %s1972_s24, 2 }
   0x8   : > { %p230_p5 = scmp.lt.s32.totalorder (!%p202_p3), %s1576_s18, 1  ;;  %s235_s25 = smul.u32 (!%p202_p3), %s1576_s18, %s1580_s19 }
   0x9   : > { %s1974_s24 = smov (%p29_p4, %s1972_s24), 0  ;;  %205 = sbr.rel (%p202_p3) target bundleno = 509 (0x1fd), region = 40 }
   0xa   : > { %p242_p6 = scmp.eq.s32.totalorder (!%p202_p3), %s1580_s19, 0  ;;  %p243_p7 = scmp.eq.s32.totalorder (!%p202_p3), %s1576_s18, 0 }
   0xb   : > { %p236_p8 = scmp.lt.s32.totalorder (!%p202_p3), %s235_s25, 1 }
   0xc   : > { %p244_p9 = pnand (!%p202_p3), %p243_p7, %p242_p6 }
   0xe   : > { %s1976_s18 = smov (!%p230_p5, %s1576_s18), 1  ;;  %s1978_s25 = smov (!%p236_p8, %s235_s25), 1 }
   0xf   : > { %s1502_s26 = smul.u32 48, %s1976_s18 }
  0x10   : > { %s1503_s30 = smul.u32 44, %s1978_s25 }
  0x11   : > { %s1663_s29 = scalar_lea.vmem %s1959_s0, %s1502_s26  ;;  %247 = sbr.rel (%p244_p9) target bundleno = 25 (0x19), region = 44 }
  0x12   : > { %s1668_s8 = scalar_lea.vmem %s1964_s5, %s1503_s30 }
  0x16   : > { %vm248_vm0 = vcmask 516096   ;;  %v1594_v0 = vmov 0.0  }
  0x17   : > { %249 = vst.msk [vmem:[#allocation2] sm:$0x1] %vm248_vm0, %v1594_v0 }
  0x18   : > { %250 = vst.msk [vmem:[#allocation3] sm:$0x1] %vm248_vm0, %v1594_v0 }
  0x19 PF: > { %v1481_v1 = vld [vmem:[%s1960_s1 + $0x78] sm:$0xff]  ;;  %v1480_v5 = vld [vmem:[%s1960_s1 + $0x70] sm:$0xff]  ;;  %v1479_v9 = vld [vmem:[%s1960_s1 + $0x68] sm:$0xff]  ;;  %vm323_vm1 = vsmask.f32 7424  ;;  %vm784_vm2 = vcmask 1046528  }
  0x1a   : > { %v1473_v2 = vld [vmem:[%s1960_s1 + $0x38] sm:$0xff]  ;;  %424 = vmatpush.bf16.msra.mxu0 %v1481_v1  ;;  %v1472_v6 = vld [vmem:[%s1960_s1 + $0x30] sm:$0xff]  ;;  %v1471_v10 = vld [vmem:[%s1960_s1 + $0x28] sm:$0xff]  ;;  %p1457_p10 = scmp.ne.s32.totalorder %s1580_s19, 0 }
  0x1b   : > { %v1493_v3 = vld [vmem:[%s1960_s1 + $0xb8] sm:$0xff]  ;;  %516 = vmatpush.bf16.msra.mxu1 %v1473_v2  ;;  %v1492_v7 = vld [vmem:[%s1960_s1 + $0xb0] sm:$0xff]  ;;  %v1491_v11 = vld [vmem:[%s1960_s1 + $0xa8] sm:$0xff] }
  0x1c   : > { %v1501_v4 = vld [vmem:[%s1960_s1 + $0xf8] sm:$0xff]  ;;  %710 = vmatpush.bf16.msra.mxu2 %v1493_v3  ;;  %v1500_v8 = vld [vmem:[%s1960_s1 + $0xf0] sm:$0xff]  ;;  %v1499_v12 = vld [vmem:[%s1960_s1 + $0xe8] sm:$0xff] }
  0x1d   : > { %850 = vmatpush.bf16.msra.mxu3 %v1501_v4  ;;  %v1478_v13 = vld [vmem:[%s1960_s1 + $0x60] sm:$0xff]  ;;  %v1551_v18 = vld [vmem:[%s1663_s29 + $0x4] sm:$0xf0]  ;;  %v1477_v19 = vld [vmem:[%s1960_s1 + $0x58] sm:$0xff] }
  0x1e   : > { %425 = vmatpush.bf16.msra.mxu0 %v1480_v5  ;;  %v1470_v14 = vld [vmem:[%s1960_s1 + $0x20] sm:$0xff]  ;;  %v1469_v20 = vld [vmem:[%s1960_s1 + $0x18] sm:$0xff]  ;;  %v1476_v25 = vld [vmem:[%s1960_s1 + $0x50] sm:$0xff] }
  0x1f   : > { %517 = vmatpush.bf16.msra.mxu1 %v1472_v6  ;;  %v1490_v15 = vld [vmem:[%s1960_s1 + $0xa0] sm:$0xff]  ;;  %v1489_v22 = vld [vmem:[%s1960_s1 + $0x98] sm:$0xff]  ;;  %v1468_v26 = vld [vmem:[%s1960_s1 + $0x10] sm:$0xff] }
  0x20   : > { %711 = vmatpush.bf16.msra.mxu2 %v1492_v7  ;;  %v1498_v16 = vld [vmem:[%s1960_s1 + $0xe0] sm:$0xff]  ;;  %v1497_v23 = vld [vmem:[%s1960_s1 + $0xd8] sm:$0xff]  ;;  %v1741_v27 = vld [vmem:[%s1663_s29 + $0x8] sm:$0xff] }
  0x21   : > { %851 = vmatpush.bf16.msra.mxu3 %v1500_v8  ;;  %v554_v17 = vld [vmem:[%s1663_s29 + $0x4] sm:$0xff]   ;;  %v1488_v29 = vld [vmem:[%s1960_s1 + $0x90] sm:$0xff]  ;;  %v332_v37 = vshll.u32 %v1741_v27, 16  ;;  %v336_v59 = vshrl.u32 %v1741_v27, 16  ;;  %v1464_v7 = vld [vmem:[%s1663_s29 + $0x18] sm:$0xff] }
  0x22   : > { %426 = vmatpush.bf16.msra.mxu0 %v1479_v9  ;;  %v1461_v21 = vld [vmem:[%s1663_s29] sm:$0xff]  ;;  %v1496_v30 = vld [vmem:[%s1960_s1 + $0xd0] sm:$0xff]  ;;  %v613_v32 = vshll.u32 %v554_v17, 16  ;;  %v1475_v33 = vld [vmem:[%s1960_s1 + $0x48] sm:$0xff]  ;;  %v611_v40 = vshrl.u32 %v554_v17, 16 }
  0x23   : > { %518 = vmatpush.bf16.msra.mxu1 %v1471_v10  ;;  %v1552_v24 = vld [vmem:[%s1663_s29 + $0x4] sm:$0xe]  ;;  %v327_v28 = vshll.u32 %v1461_v21, 16  ;;  %v1482_v31 = vld [vmem:[%s1663_s29 + $0xc] sm:$0xff]  ;;  %v325_v35 = vshrl.u32 %v1461_v21, 16  ;;  %v334_v47 = vrot.slane %v332_v37, 1 }
  0x24   : > { %712 = vmatpush.bf16.msra.mxu2 %v1491_v11  ;;  %v1467_v34 = vld [vmem:[%s1960_s1 + $0x8] sm:$0xff]  ;;  %v615_v41 = vrot.slane %v613_v32, 1  ;;  %v618_v42 = vshll.u32 %v1482_v31, 16  ;;  %v1553_v43 = vor.u32 %v1552_v24, %v1551_v18  ;;  %v1474_v44 = vld [vmem:[%s1960_s1 + $0x40] sm:$0xff]  ;;  %v786_v53 = vrot.slane %v1482_v31, 1  ;;  %v1463_v57 = vld [vmem:[%s1663_s29 + $0x10] sm:$0xff] }
  0x25   : > { %852 = vmatpush.bf16.msra.mxu3 %v1499_v12  ;;  %v329_v36 = vrot.slane %v327_v28, 1  ;;  %v1487_v38 = vld [vmem:[%s1960_s1 + $0x88] sm:$0xff]  ;;  %v1466_v45 = vld [vmem:[%s1960_s1] sm:$0xff]  ;;  %v1483_v58 = vld [vmem:[%s1663_s29 + $0x14] sm:$0xff]  ;;  %v340_v60 = vshll.u32 %v1463_v57, 16  ;;  %v622_v61 = vshrl.u32 %v1482_v31, 16  ;;  %v338_v63 = vor.u32 %v336_v59, %v334_v47 }
  0x26   : > { %427 = vmatpush.bf16.msra.mxu0 %v1478_v13  ;;  %v1495_v39 = vld [vmem:[%s1960_s1 + $0xc8] sm:$0xff]  ;;  %v1486_v48 = vld [vmem:[%s1960_s1 + $0x80] sm:$0xff]  ;;  %v616_v50 = vor.u32 %v615_v41, %v611_v40  ;;  %v620_v51 = vrot.slane %v618_v42, 1  ;;  %v785_v52 = vrot.slane %v1553_v43, 1  ;;  %v626_v62 = vshll.u32 %v1483_v58, 16 }
  0x27   : > { %519 = vmatpush.bf16.msra.mxu1 %v1470_v14  ;;  %v330_v46 = vor.u32 %v329_v36, %v325_v35  ;;  %v1494_v49 = vld [vmem:[%s1960_s1 + $0xc0] sm:$0xff]  ;;  %v342_v0 = vrot.slane %v340_v60, 1  ;;  %v788_v3 = vrot.slane %v1483_v58, 1  ;;  %v344_v9 = vshrl.u32 %v1463_v57, 16  ;;  %v261_v32 = vld [vmem:[%s1663_s29 + $0x28] sm:$0x1] }
  0x28   : > { %713 = vmatpush.bf16.msra.mxu2 %v1490_v15  ;;  %v621_v55 = vsel %vm323_vm1, %v616_v50, %v620_v51  ;;  %v787_v56 = vsel %vm784_vm2, %v785_v52, %v786_v53  ;;  %v624_v1 = vor.u32 %v622_v61, %v620_v51  ;;  %v628_v2 = vrot.slane %v626_v62, 1  ;;  %v1484_v8 = vld [vmem:[%s1663_s29 + $0x1c] sm:$0xff] }
  0x29   : > { %853 = vmatpush.bf16.msra.mxu3 %v1498_v16  ;;  %v335_v54 = vsel %vm323_vm1, %v330_v46, %v334_v47  ;;  %v343_v4 = vsel %vm323_vm1, %v338_v63, %v342_v0  ;;  %v789_v6 = vsel %vm784_vm2, %v786_v53, %v788_v3  ;;  %v348_v10 = vshll.u32 %v1464_v7, 16 }
  0x2a   : > { %428 = vmatpush.bf16.msra.mxu0 %v1477_v19  ;;  %v629_v5 = vsel %vm323_vm1, %v624_v1, %v628_v2  ;;  %v630_v11 = vshrl.u32 %v1483_v58, 16  ;;  %v634_v12 = vshll.u32 %v1484_v8, 16  ;;  %v346_v13 = vor.u32 %v344_v9, %v342_v0 }
  0x2b   : > { %520 = vmatpush.bf16.msra.mxu1 %v1469_v20  ;;  %v350_v14 = vrot.slane %v348_v10, 1  ;;  %v790_v17 = vrot.slane %v1484_v8, 1  ;;  %v316_v35 = vunpack.c.l.b16 %v261_v32 }
  0x2c   : > { %714 = vmatpush.bf16.msra.mxu2 %v1489_v22  ;;  %v632_v15 = vor.u32 %v630_v11, %v628_v2  ;;  %v636_v16 = vrot.slane %v634_v12, 1  ;;  %v1485_v22 = vld [vmem:[%s1663_s29 + $0x24] sm:$0xff] }
  0x2d   : > { %854 = vmatpush.bf16.msra.mxu3 %v1497_v23  ;;  %v351_v18 = vsel %vm323_vm1, %v346_v13, %v350_v14  ;;  %v791_v20 = vsel %vm784_vm2, %v788_v3, %v790_v17  ;;  %v352_v23 = vshrl.u32 %v1464_v7, 16  ;;  %v792_v31 = vrot.slane %v1485_v22, 1 }
  0x2e   : > { %429 = vmatpush.bf16.msra.mxu0 %v1476_v25  ;;  %v637_v19 = vsel %vm323_vm1, %v632_v15, %v636_v16  ;;  %v638_v25 = vshrl.u32 %v1484_v8, 16  ;;  %v322_v40 = vpack.c.b16 %v316_v35, %v316_v35 }
  0x2f   : > { %521 = vmatpush.bf16.msra.mxu1 %v1468_v26  ;;  %v642_v26 = vshll.u32 %v1485_v22, 16  ;;  %v793_v37 = vsel %vm784_vm2, %v790_v17, %v792_v31 }
  0x30   : > { %715 = vmatpush.bf16.msra.mxu2 %v1488_v29  ;;  %v640_v29 = vor.u32 %v638_v25, %v636_v16 }
  0x31   : > { %855 = vmatpush.bf16.msra.mxu3 %v1496_v30  ;;  %v644_v30 = vrot.slane %v642_v26, 1 }
  0x32   : > { %430 = vmatpush.bf16.msra.mxu0 %v1475_v33  ;;  %v564_v33 = vld [vmem:[%s1663_s29 + $0x2c] sm:$0x1] }
  0x33   : > { %522 = vmatpush.bf16.msra.mxu1 %v1467_v34  ;;  %v645_v36 = vsel %vm323_vm1, %v640_v29, %v644_v30 }
  0x34   : > { %716 = vmatpush.bf16.msra.mxu2 %v1487_v38  ;;  %v603_v38 = vunpack.c.l.b16 %v564_v33 }
  0x35   : > { %856 = vmatpush.bf16.msra.mxu3 %v1495_v39  ;;  %v760_v39 = vld [vmem:[%s1663_s29 + $0x2c] sm:$0x3] }
  0x36   : > { %431 = vmatpush.bf16.msra.mxu0 %v1474_v44  ;;  %v609_v41 = vpack.c.b16 %v603_v38, %v603_v38  ;;  %v781_v42 = vunpack.c.l.b16 %v760_v39  ;;  %v364_v44 = vshll.u32 %v322_v40, 16 }
  0x37   : > { %523 = vmatpush.bf16.msra.mxu1 %v1466_v45  ;;  %v646_v45 = vshrl.u32 %v1485_v22, 16 }
  0x38   : > { %717 = vmatpush.bf16.msra.mxu2 %v1486_v48  ;;  %v650_v46 = vshll.u32 %v609_v41, 16  ;;  %v783_v47 = vpack.c.b16 %v781_v42, %v781_v42 }
  0x39   : > { %857 = vmatpush.bf16.msra.mxu3 %v1494_v49  ;;  %432 = vmatmul.bf16.vlgmr.msra.gmra.mxu0 %v335_v54  ;;  %v366_v49 = vrot.slane %v364_v44, 1  ;;  %v648_v50 = vor.u32 %v646_v45, %v644_v30 }
  0x3a   : > { %524 = vmatmul.bf16.vlgmr.msra.gmra.mxu1 %v1461_v21  ;;  %v1465_v21 = vld [vmem:[%s1663_s29 + $0x20] sm:$0xff]  ;;  %v652_v51 = vrot.slane %v650_v46, 1  ;;  %v794_v52 = vrot.slane %v783_v47, 1 }
  0x3b   : > { %718 = vmatmul.bf16.vlgmr.msra.gmra.mxu2 %v621_v55  ;;  %v356_v24 = vshll.u32 %v1465_v21, 16  ;;  %v360_v43 = vshrl.u32 %v1465_v21, 16 }
  0x3c   : > { %858 = vmatmul.bf16.vlgmr.msra.gmra.mxu3 %v787_v56  ;;  %v653_v54 = vsel %vm323_vm1, %v648_v50, %v652_v51  ;;  %v795_v55 = vsel %vm784_vm2, %v792_v31, %v794_v52  ;;  %v368_v56 = vshrl.u32 %v322_v40, 16 }
  0x3d   : > { %v358_v28 = vrot.slane %v356_v24, 1 }
  0x3f   : > { %v362_v48 = vor.u32 %v360_v43, %v358_v28 }
  0x41   : > { %v367_v53 = vsel %vm323_vm1, %v362_v48, %v366_v49 }
  0x49   : > { %437 = vmatmul.bf16.gmra.mxu0 %v343_v4 }
  0x4a   : > { %529 = vmatmul.bf16.gmra.mxu1 %v1741_v27  ;;  %v354_v27 = vor.u32 %v352_v23, %v350_v14 }
  0x4b   : > { %723 = vmatmul.bf16.gmra.mxu2 %v629_v5 }
  0x4c   : > { %863 = vmatmul.bf16.gmra.mxu3 %v789_v6  ;;  %v359_v34 = vsel %vm323_vm1, %v354_v27, %v358_v28 }
  0x59   : > { %442 = vmatmul.bf16.gmra.mxu0 %v351_v18 }
  0x5a   : > { %534 = vmatmul.bf16.gmra.mxu1 %v1463_v57  ;;  %v654_v57 = vshrl.u32 %v609_v41, 16 }
  0x5b   : > { %728 = vmatmul.bf16.gmra.mxu2 %v637_v19 }
  0x5c   : > { %868 = vmatmul.bf16.gmra.mxu3 %v791_v20 }
  0x69   : > { %447 = vmatmul.bf16.gmra.mxu0 %v359_v34 }
  0x6a   : > { %539 = vmatmul.bf16.gmra.mxu1 %v1464_v7 }
  0x6b   : > { %733 = vmatmul.bf16.gmra.mxu2 %v645_v36 }
  0x6c   : > { %873 = vmatmul.bf16.gmra.mxu3 %v793_v37 }
  0x79   : > { %452 = vmatmul.bf16.gmra.mxu0 %v367_v53 }
  0x7a   : > { %544 = vmatmul.bf16.gmra.mxu1 %v1465_v21 }
  0x7b   : > { %738 = vmatmul.bf16.gmra.mxu2 %v653_v54 }
  0x7c   : > { %878 = vmatmul.bf16.gmra.mxu3 %v795_v55 }
  0x89   : > { %457 = vmatmul.bf16.gmra.mxu0 %v368_v56 }
  0x8a   : > { %549 = vmatmul.bf16.gmra.mxu1 %v322_v40 }
  0x8b   : > { %743 = vmatmul.bf16.gmra.mxu2 %v654_v57 }
  0x8c   : > { %883 = vmatmul.bf16.gmra.mxu3 %v794_v52 }
  0xb6   : > { %v433_v58 = vpop.f32.mrf.mxu0 }
  0xb7   : > { %v525_v59 = vpop.f32.mrf.mxu1 }
  0xb8   : > { %v526_v60 = vadd.f32 %v525_v59, %v433_v58 }
  0xbe   : > { %v719_v61 = vpop.f32.mrf.mxu2  ;;  %v435_v0 = vpop.f32.mrf.mxu0 }
  0xbf   : > { %v859_v62 = vpop.f32.mrf.mxu3  ;;  %v748_v63 = vadd.f32 %v719_v61, %v526_v60  ;;  %v527_v1 = vpop.f32.mrf.mxu1 }
  0xc0   : > { %v528_v2 = vadd.f32 %v527_v1, %v435_v0 }
  0xc1   : > { %v1801_v3 = vadd.f32 %v859_v62, %v748_v63 }
  0xc6   : > { %v721_v4 = vpop.f32.mrf.mxu2  ;;  %v438_v7 = vpop.f32.mrf.mxu0 }
  0xc7   : > { %v861_v5 = vpop.f32.mrf.mxu3  ;;  %v749_v6 = vadd.f32 %v721_v4, %v528_v2  ;;  %v530_v8 = vpop.f32.mrf.mxu1 }
  0xc8   : > { %v531_v9 = vadd.f32 %v530_v8, %v438_v7 }
  0xc9   : > { %v1803_v10 = vadd.f32 %v861_v5, %v749_v6 }
  0xce   : > { %v724_v11 = vpop.f32.mrf.mxu2  ;;  %v440_v14 = vpop.f32.mrf.mxu0 }
  0xcf   : > { %v864_v12 = vpop.f32.mrf.mxu3  ;;  %v750_v13 = vadd.f32 %v724_v11, %v531_v9  ;;  %v532_v15 = vpop.f32.mrf.mxu1 }
  0xd0   : > { %v533_v16 = vadd.f32 %v532_v15, %v440_v14 }
  0xd1   : > { %v1805_v17 = vadd.f32 %v864_v12, %v750_v13 }
  0xd6   : > { %v726_v18 = vpop.f32.mrf.mxu2  ;;  %v443_v21 = vpop.f32.mrf.mxu0 }
  0xd7   : > { %v866_v19 = vpop.f32.mrf.mxu3  ;;  %v751_v20 = vadd.f32 %v726_v18, %v533_v16  ;;  %v535_v22 = vpop.f32.mrf.mxu1 }
  0xd8   : > { %v536_v24 = vadd.f32 %v535_v22, %v443_v21 }
  0xd9   : > { %v1807_v23 = vadd.f32 %v866_v19, %v751_v20 }
  0xde   : > { %v729_v25 = vpop.f32.mrf.mxu2  ;;  %v445_v28 = vpop.f32.mrf.mxu0 }
  0xdf   : > { %v869_v26 = vpop.f32.mrf.mxu3  ;;  %v752_v27 = vadd.f32 %v729_v25, %v536_v24  ;;  %v537_v29 = vpop.f32.mrf.mxu1 }
  0xe0   : > { %v538_v31 = vadd.f32 %v537_v29, %v445_v28 }
  0xe1   : > { %v1809_v30 = vadd.f32 %v869_v26, %v752_v27 }
  0xe6   : > { %v731_v32 = vpop.f32.mrf.mxu2  ;;  %v448_v35 = vpop.f32.mrf.mxu0 }
  0xe7   : > { %v871_v33 = vpop.f32.mrf.mxu3  ;;  %v753_v34 = vadd.f32 %v731_v32, %v538_v31  ;;  %v540_v36 = vpop.f32.mrf.mxu1 }
  0xe8   : > { %v541_v38 = vadd.f32 %v540_v36, %v448_v35 }
  0xe9   : > { %v1811_v37 = vadd.f32 %v871_v33, %v753_v34 }
  0xee   : > { %v734_v39 = vpop.f32.mrf.mxu2  ;;  %v450_v42 = vpop.f32.mrf.mxu0 }
  0xef   : > { %v874_v40 = vpop.f32.mrf.mxu3  ;;  %v754_v41 = vadd.f32 %v734_v39, %v541_v38  ;;  %v542_v43 = vpop.f32.mrf.mxu1 }
  0xf0   : > { %v543_v45 = vadd.f32 %v542_v43, %v450_v42 }
  0xf1   : > { %v1813_v44 = vadd.f32 %v874_v40, %v754_v41 }
  0xf6   : > { %v736_v46 = vpop.f32.mrf.mxu2  ;;  %v453_v49 = vpop.f32.mrf.mxu0 }
  0xf7   : > { %v876_v47 = vpop.f32.mrf.mxu3  ;;  %v755_v48 = vadd.f32 %v736_v46, %v543_v45  ;;  %v545_v50 = vpop.f32.mrf.mxu1 }
  0xf8   : > { %v546_v52 = vadd.f32 %v545_v50, %v453_v49 }
  0xf9   : > { %v1815_v51 = vadd.f32 %v876_v47, %v755_v48 }
  0xfe   : > { %v739_v53 = vpop.f32.mrf.mxu2  ;;  %v455_v56 = vpop.f32.mrf.mxu0 }
  0xff   : > { %v879_v54 = vpop.f32.mrf.mxu3  ;;  %v756_v55 = vadd.f32 %v739_v53, %v546_v52  ;;  %v547_v57 = vpop.f32.mrf.mxu1 }
 0x100   : > { %v548_v59 = vadd.f32 %v547_v57, %v455_v56 }
 0x101   : > { %v1817_v58 = vadd.f32 %v879_v54, %v756_v55 }
 0x106   : > { %v741_v60 = vpop.f32.mrf.mxu2  ;;  %v458_v63 = vpop.f32.mrf.mxu0 }
 0x107   : > { %v881_v61 = vpop.f32.mrf.mxu3  ;;  %v757_v62 = vadd.f32 %v741_v60, %v548_v59  ;;  %v550_v0 = vpop.f32.mrf.mxu1 }
 0x108   : > { %v551_v2 = vadd.f32 %v550_v0, %v458_v63 }
 0x109   : > { %v1819_v1 = vadd.f32 %v881_v61, %v757_v62 }
 0x10e   : > { %v744_v4 = vpop.f32.mrf.mxu2  ;;  %v460_v7 = vpop.f32.mrf.mxu0 }
 0x10f   : > { %v884_v5 = vpop.f32.mrf.mxu3  ;;  %v758_v6 = vadd.f32 %v744_v4, %v551_v2  ;;  %v552_v8 = vpop.f32.mrf.mxu1 }
 0x111   : > { %v1821_v9 = vadd.f32 %v884_v5, %v758_v6 }
 0x113   : > { %901 = sbr.rel (%p1457_p10) target bundleno = 445 (0x1bd), region = 48 }
 0x116   : > { %v746_v11 = vpop.f32.mrf.mxu2 }
 0x117   : > { %v886_v12 = vpop.f32.mrf.mxu3 }
 0x118   : > { %v904_v13 = vld [vmem:[%s1963_s4 + $0x10] sm:$0xff]  ;;  %v902_v14 = vld [vmem:[%s1963_s4] sm:$0xff]  ;;  %v1595_v15 = vmov 0   ;;  %v905_v18 = vld [vmem:[%s1963_s4 + $0x18] sm:$0xff]  ;;  %vm980_vm3 = vcmask 523264   ;;  %vm1000_vm4 = vcmask 516096  }
 0x119   : > { %1547 = vset.pattern.permute.xlu1 %v1595_v15  ;;  %1546 = vset.pattern.permute.xlu0 %v1595_v15  ;;  %v906_v16 = vld [vmem:[%s1963_s4 + $0x20] sm:$0xff]  ;;  %v903_v19 = vld [vmem:[%s1963_s4 + $0x8] sm:$0xff]  ;;  %v909_v21 = vld [vmem:[%s1963_s4 + $0x38] sm:$0xff] }
 0x11a   : > { %925 = vperm.xlu1 %1547, %v904_v13   ;;  %915 = vperm.xlu0 %1546, %v902_v14   ;;  %v907_v20 = vld [vmem:[%s1963_s4 + $0x28] sm:$0xff]  ;;  %v908_v22 = vld [vmem:[%s1963_s4 + $0x30] sm:$0xff]  ;;  %v910_v24 = vld [vmem:[%s1963_s4 + $0x40] sm:$0xff] }
 0x11b   : > { %1548 = vset.pattern.permute.xlu2 %v1595_v15  ;;  %v912_v25 = vld [vmem:[%s1963_s4 + $0x50] sm:$0x1]  ;;  %v911_v26 = vld [vmem:[%s1963_s4 + $0x48] sm:$0xff] }
 0x11c   : > { %935 = vperm.xlu2 %1548, %v906_v16  }
 0x122   : > { %930 = vperm.xlu1 %1547, %v905_v18   ;;  %920 = vperm.xlu0 %1546, %v903_v19  }
 0x124   : > { %940 = vperm.xlu2 %1548, %v907_v20  }
 0x12a   : > { %950 = vperm.xlu1 %1547, %v909_v21   ;;  %945 = vperm.xlu0 %1546, %v908_v22  }
 0x12c   : > { %955 = vperm.xlu2 %1548, %v910_v24  }
 0x132   : > { %965 = vperm.xlu1 %1547, %v912_v25   ;;  %960 = vperm.xlu0 %1546, %v911_v26  }
 0x176   : > { %v936_v27 = vpop.permute.xlu2 %935 }
 0x177   : > { %v972_v40 = vmul.f32 %v936_v27, %v1809_v30 }
 0x179   : > { %v1016_v55 = vmul.f32 %v972_v40, %v1809_v30  ;;  %v988_v60 = vsel %vm980_vm3, %v972_v40, 0.0 }
 0x17b   : > { %v1030_v11 = vsel %vm980_vm3, %v1016_v55, 0.0 }
 0x17e   : > { %v941_v31 = vpop.permute.xlu2 %940 }
 0x17f   : > { %v973_v46 = vmul.f32 %v941_v31, %v1811_v37 }
 0x181   : > { %v1017_v2 = vmul.f32 %v973_v46, %v1811_v37  ;;  %v990_v12 = vsel %vm980_vm3, %v973_v46, 0.0 }
 0x183   : > { %v1032_v18 = vsel %vm980_vm3, %v1017_v2, 0.0 }
 0x186   : > { %v956_v57 = vpop.permute.xlu2 %955 }
 0x187   : > { %v976_v13 = vmul.f32 %v956_v57, %v1817_v58 }
 0x189   : > { %v1020_v24 = vmul.f32 %v976_v13, %v1817_v58 }
 0x18c   : > { %v926_v28 = vpop.permute.xlu1 %925  ;;  %v916_v29 = vpop.permute.xlu0 %915 }
 0x18d   : > { %v968_v32 = vmul.f32 %v916_v29, %v1801_v3  ;;  %v970_v33 = vmul.f32 %v926_v28, %v1805_v17 }
 0x18f   : > { %v1012_v36 = vmul.f32 %v968_v32, %v1801_v3  ;;  %v1014_v41 = vmul.f32 %v970_v33, %v1805_v17  ;;  %v981_v42 = vsel %vm980_vm3, %v968_v32, 0.0  ;;  %v984_v48 = vsel %vm980_vm3, %v970_v33, 0.0 }
 0x190   : > { %v996_v32 = vsel %vm980_vm3, %v976_v13, 0.0 }
 0x191   : > { %v1023_v49 = vsel %vm980_vm3, %v1012_v36, 0.0  ;;  %v1026_v56 = vsel %vm980_vm3, %v1014_v41, 0.0 }
 0x194   : > { %v931_v34 = vpop.permute.xlu1 %930  ;;  %v921_v35 = vpop.permute.xlu0 %920 }
 0x195   : > { %v971_v38 = vmul.f32 %v931_v34, %v1807_v23  ;;  %v969_v39 = vmul.f32 %v921_v35, %v1803_v10 }
 0x197   : > { %v982_v43 = vsel %vm980_vm3, %v969_v39, 0.0  ;;  %v1013_v45 = vmul.f32 %v969_v39, %v1803_v10  ;;  %v1015_v50 = vmul.f32 %v971_v38, %v1807_v23  ;;  %v986_v59 = vsel %vm980_vm3, %v971_v38, 0.0 }
 0x198   : > { %v983_v47 = vadd.f32 %v982_v43, %v981_v42  ;;  %v1038_v39 = vsel %vm980_vm3, %v1020_v24, 0.0 }
 0x199   : > { %v1024_v52 = vsel %vm980_vm3, %v1013_v45, 0.0  ;;  %v1028_v4 = vsel %vm980_vm3, %v1015_v50, 0.0 }
 0x19a   : > { %v985_v53 = vadd.f32 %v984_v48, %v983_v47  ;;  %v1025_v54 = vadd.f32 %v1024_v52, %v1023_v49 }
 0x19c   : > { %v987_v61 = vadd.f32 %v986_v59, %v985_v53  ;;  %v1027_v62 = vadd.f32 %v1026_v56, %v1025_v54  ;;  %v951_v63 = vpop.permute.xlu1 %950  ;;  %v946_v0 = vpop.permute.xlu0 %945 }
 0x19d   : > { %v975_v5 = vmul.f32 %v951_v63, %v1815_v51  ;;  %v974_v6 = vmul.f32 %v946_v0, %v1813_v44  ;;  %v979_v63 = vld [vmem:[#allocation2] sm:$0x1] }
 0x19e   : > { %v1029_v7 = vadd.f32 %v1028_v4, %v1027_v62  ;;  %v989_v8 = vadd.f32 %v988_v60, %v987_v61  ;;  %v1011_v4 = vld [vmem:[#allocation3] sm:$0x1] }
 0x19f   : > { %v1018_v14 = vmul.f32 %v974_v6, %v1813_v44  ;;  %v1019_v19 = vmul.f32 %v975_v5, %v1815_v51  ;;  %v992_v20 = vsel %vm980_vm3, %v974_v6, 0.0  ;;  %v994_v25 = vsel %vm980_vm3, %v975_v5, 0.0 }
 0x1a0   : > { %v991_v15 = vadd.f32 %v990_v12, %v989_v8  ;;  %v1031_v16 = vadd.f32 %v1030_v11, %v1029_v7 }
 0x1a1   : > { %v1034_v26 = vsel %vm980_vm3, %v1018_v14, 0.0  ;;  %v1036_v33 = vsel %vm980_vm3, %v1019_v19, 0.0 }
 0x1a2   : > { %v1033_v21 = vadd.f32 %v1032_v18, %v1031_v16  ;;  %v993_v22 = vadd.f32 %v992_v20, %v991_v15 }
 0x1a4   : > { %v995_v27 = vadd.f32 %v994_v25, %v993_v22  ;;  %v1035_v28 = vadd.f32 %v1034_v26, %v1033_v21  ;;  %v966_v29 = vpop.permute.xlu1 %965  ;;  %v961_v31 = vpop.permute.xlu0 %960 }
 0x1a5   : > { %v978_v34 = vmul.f32 %v966_v29, %v1821_v9  ;;  %v977_v35 = vmul.f32 %v961_v31, %v1819_v1 }
 0x1a6   : > { %v1037_v36 = vadd.f32 %v1036_v33, %v1035_v28  ;;  %v997_v38 = vadd.f32 %v996_v32, %v995_v27 }
 0x1a7   : > { %v1022_v40 = vmul.f32 %v978_v34, %v1821_v9  ;;  %v998_v41 = vsel %vm980_vm3, %v977_v35, 0.0  ;;  %v1021_v42 = vmul.f32 %v977_v35, %v1819_v1  ;;  %v1001_v46 = vsel %vm1000_vm4, %v978_v34, 0.0 }
 0x1a8   : > { %v1039_v43 = vadd.f32 %v1038_v39, %v1037_v36  ;;  %v999_v45 = vadd.f32 %v998_v41, %v997_v38 }
 0x1a9   : > { %v1040_v47 = vsel %vm980_vm3, %v1021_v42, 0.0  ;;  %v1042_v50 = vsel %vm1000_vm4, %v1022_v40, 0.0 }
 0x1aa   : > { %v1002_v48 = vadd.f32 %v1001_v46, %v999_v45  ;;  %v1041_v49 = vadd.f32 %v1040_v47, %v1039_v43 }
 0x1ac   : > { %v1003_v52 = vrot.slane %v1002_v48, 4  ;;  %v1043_v53 = vadd.f32 %v1042_v50, %v1041_v49 }
 0x1ae   : > { %v1004_v54 = vadd.f32 %v1003_v52, %v1002_v48  ;;  %v1044_v55 = vrot.slane %v1043_v53, 4 }
 0x1b0   : > { %v1005_v56 = vrot.slane %v1004_v54, 2  ;;  %v1045_v57 = vadd.f32 %v1044_v55, %v1043_v53 }
 0x1b2   : > { %v1006_v59 = vadd.f32 %v1005_v56, %v1004_v54  ;;  %v1046_v60 = vrot.slane %v1045_v57, 2 }
 0x1b4   : > { %v1007_v61 = vrot.slane %v1006_v59, 1  ;;  %v1047_v62 = vadd.f32 %v1046_v60, %v1045_v57 }
 0x1b6   : > { %v1008_v0 = vadd.f32 %v1007_v61, %v1006_v59  ;;  %v1048_v2 = vrot.slane %v1047_v62, 1 }
 0x1b8   : > { %v1009_v5 = vadd.f32 %v1008_v0, %v979_v63  ;;  %v1049_v6 = vadd.f32 %v1048_v2, %v1047_v62 }
 0x1ba   : > { %1010 = vst.msk [vmem:[#allocation2] sm:$0x1] %vm1000_vm4, %v1009_v5  ;;  %v1050_v7 = vadd.f32 %v1049_v6, %v1011_v4 }
 0x1bc   : > { %1051 = vst.msk [vmem:[#allocation3] sm:$0x1] %vm1000_vm4, %v1050_v7 }
 0x1bd PF: > { %p1458_p11 = scmp.ne.s32.totalorder %s1580_s19, 1 }
 0x1bf   : > { %1055 = sbr.rel (%p1458_p11) target bundleno = 509 (0x1fd), region = 52 }
 0x1c4   : > { %v1056_v8 = vld [vmem:[#allocation2] sm:$0x1]  ;;  %v1058_v11 = vld [vmem:[#allocation3] sm:$0x1]  ;;  %vm1151_vm8 = vcmask 519168  }
 0x1c5   : > { %v1057_v12 = vmul.f32 0.0078125, %v1056_v8  ;;  %v1059_v13 = vmul.f32 0.0078125, %v1058_v11  ;;  %v1063_v25 = vld [vmem:[%s1961_s2] sm:$0x1]  ;;  %vm1163_vm1 = vsmask.f32 256 }
 0x1c6   : > { %v1076_v29 = vld [vmem:[%s1962_s3] sm:$0x1] }
 0x1c7   : > { %v1060_v14 = vmul.f32 %v1057_v12, %v1057_v12 }
 0x1c9   : > { %v1061_v15 = vsub.f32 %v1059_v13, %v1060_v14 }
 0x1cb   : > { %v1062_v16 = vmax.f32 %v1061_v15, 0.0 }
 0x1cd   : > { %v1064_v18 = vadd.f32 1e-05, %v1062_v16 }
 0x1cf   : > { %1549 = vrsqrt.f32 %v1064_v18  ;;  %vm1071_vm5 = vweird.f32 %v1064_v18 }
 0x1d5   : > { %v1550_v19 = vpop.eup %1549 }
 0x1d6   : > { %v1066_v20 = vmul.f32 %v1550_v19, %v1064_v18  ;;  %vm1072_vm6 = vweird.f32 %v1550_v19 }
 0x1d7   : > { %vm1073_vm7 = vmor %vm1071_vm5, %vm1072_vm6  ;;  %vm1162_vm5 = vcmask 516096  }
 0x1d8   : > { %v1067_v21 = vmul.f32 %v1550_v19, %v1066_v20  ;;  %vm1164_vm6 = vmand %vm1162_vm5, %vm1163_vm1 }
 0x1da   : > { %v1068_v22 = vmul.f32 0.5, %v1067_v21 }
 0x1dc   : > { %v1069_v24 = vsub.f32 1.5, %v1068_v22 }
 0x1de   : > { %v1070_v26 = vmul.f32 %v1550_v19, %v1069_v24  ;;  %v1165_v24 = vld [vmem:[%s1668_s8 + $0x28] sm:$0x1] }
 0x1e0   : > { %v1074_v27 = vsel %vm1073_vm7, %v1550_v19, %v1070_v26 }
 0x1e1   : > { %v1075_v28 = vmul.f32 %v1074_v27, %v1063_v25 }
 0x1e3   : > { %v1077_v31 = vmul.f32 %v1075_v28, %v1057_v12  ;;  %v1080_v32 = vperm.slane %v1075_v28, 0 }
 0x1e5   : > { %v1078_v33 = vsub.f32 %v1076_v29, %v1077_v31  ;;  %v1082_v34 = vmul.f32 %v1080_v32, %v1801_v3  ;;  %v1083_v35 = vmul.f32 %v1080_v32, %v1803_v10  ;;  %v1084_v36 = vmul.f32 %v1080_v32, %v1805_v17 }
 0x1e6   : > { %v1085_v38 = vmul.f32 %v1080_v32, %v1807_v23  ;;  %v1086_v39 = vmul.f32 %v1080_v32, %v1809_v30  ;;  %v1087_v40 = vmul.f32 %v1080_v32, %v1811_v37  ;;  %v1088_v41 = vmul.f32 %v1080_v32, %v1813_v44 }
 0x1e7   : > { %v1094_v42 = vperm.slane %v1078_v33, 0  ;;  %v1089_v43 = vmul.f32 %v1080_v32, %v1815_v51  ;;  %v1090_v45 = vmul.f32 %v1080_v32, %v1817_v58  ;;  %v1091_v3 = vmul.f32 %v1080_v32, %v1819_v1 }
 0x1e8   : > { %v1092_v10 = vmul.f32 %v1080_v32, %v1821_v9 }
 0x1e9   : > { %v1096_v46 = vadd.f32 %v1094_v42, %v1082_v34  ;;  %v1097_v17 = vadd.f32 %v1094_v42, %v1083_v35  ;;  %v1098_v47 = vadd.f32 %v1094_v42, %v1084_v36  ;;  %v1099_v23 = vadd.f32 %v1094_v42, %v1085_v38 }
 0x1ea   : > { %v1100_v48 = vadd.f32 %v1094_v42, %v1086_v39  ;;  %v1101_v30 = vadd.f32 %v1094_v42, %v1087_v40  ;;  %v1102_v49 = vadd.f32 %v1094_v42, %v1088_v41  ;;  %v1103_v37 = vadd.f32 %v1094_v42, %v1089_v43 }
 0x1eb   : > { %vm1107_vm9 = vcmp.gt.f32.partialorder %v1096_v46, 0.0  ;;  %v1118_v44 = vmul.f32 0.2, %v1096_v46  ;;  %vm1108_vm10 = vcmp.gt.f32.partialorder %v1097_v17, 0.0  ;;  %v1119_v50 = vmul.f32 0.2, %v1097_v17 }
 0x1ec   : > { %vm1109_vm11 = vcmp.gt.f32.partialorder %v1098_v47, 0.0  ;;  %v1120_v51 = vmul.f32 0.2, %v1098_v47  ;;  %vm1110_vm12 = vcmp.gt.f32.partialorder %v1099_v23, 0.0  ;;  %v1121_v58 = vmul.f32 0.2, %v1099_v23 }
 0x1ed   : > { %v1129_v1 = vsel %vm1107_vm9, %v1096_v46, %v1118_v44  ;;  %v1130_v52 = vsel %vm1108_vm10, %v1097_v17, %v1119_v50  ;;  %vm1111_vm13 = vcmp.gt.f32.partialorder %v1100_v48, 0.0  ;;  %v1122_v9 = vmul.f32 0.2, %v1100_v48 }
 0x1ee   : > { %v1140_v53 = vpack.c.bf16 %v1129_v1, %v1129_v1  ;;  %v1141_v54 = vpack.c.bf16 %v1130_v52, %v1130_v52  ;;  %v1131_v55 = vsel %vm1109_vm11, %v1098_v47, %v1120_v51  ;;  %v1132_v56 = vsel %vm1110_vm12, %v1099_v23, %v1121_v58 }
 0x1ef   : > { %v1142_v57 = vpack.c.bf16 %v1131_v55, %v1131_v55  ;;  %v1143_v59 = vpack.c.bf16 %v1132_v56, %v1132_v56  ;;  %v1133_v60 = vsel %vm1111_vm13, %v1100_v48, %v1122_v9  ;;  %vm1112_vm14 = vcmp.gt.f32.partialorder %v1101_v30, 0.0 }
 0x1f0   : > { %1152 = vst.msk [vmem:[%s1668_s8] sm:$0xf] %vm1151_vm8, %v1140_v53  ;;  %v1144_v61 = vpack.c.bf16 %v1133_v60, %v1133_v60  ;;  %v1123_v62 = vmul.f32 0.2, %v1101_v30  ;;  %vm1113_vm15 = vcmp.gt.f32.partialorder %v1102_v49, 0.0  ;;  %vm1114_vm0 = vcmp.gt.f32.partialorder %v1103_v37, 0.0 }
 0x1f1   : > { %1153 = vst.msk [vmem:[%s1668_s8 + $0x4] sm:$0xf] %vm1151_vm8, %v1141_v54  ;;  %v1124_v63 = vmul.f32 0.2, %v1102_v49  ;;  %v1125_v0 = vmul.f32 0.2, %v1103_v37  ;;  %v1104_v2 = vadd.f32 %v1094_v42, %v1090_v45  ;;  %v1105_v4 = vadd.f32 %v1094_v42, %v1091_v3 }
 0x1f2   : > { %1154 = vst.msk [vmem:[%s1668_s8 + $0x8] sm:$0xf] %vm1151_vm8, %v1142_v57  ;;  %v1134_v5 = vsel %vm1112_vm14, %v1101_v30, %v1123_v62  ;;  %v1106_v6 = vadd.f32 %v1094_v42, %v1092_v10 }
 0x1f3   : > { %1155 = vst.msk [vmem:[%s1668_s8 + $0xc] sm:$0xf] %vm1151_vm8, %v1143_v59  ;;  %v1145_v7 = vpack.c.bf16 %v1134_v5, %v1134_v5  ;;  %v1135_v8 = vsel %vm1113_vm15, %v1102_v49, %v1124_v63  ;;  %v1136_v11 = vsel %vm1114_vm0, %v1103_v37, %v1125_v0  ;;  %vm1115_vm2 = vcmp.gt.f32.partialorder %v1104_v2, 0.0 }
 0x1f4   : > { %1156 = vst.msk [vmem:[%s1668_s8 + $0x10] sm:$0xf] %vm1151_vm8, %v1144_v61  ;;  %v1146_v12 = vpack.c.bf16 %v1135_v8, %v1135_v8  ;;  %v1147_v13 = vpack.c.bf16 %v1136_v11, %v1136_v11  ;;  %v1126_v14 = vmul.f32 0.2, %v1104_v2  ;;  %vm1116_vm3 = vcmp.gt.f32.partialorder %v1105_v4, 0.0 }
 0x1f5   : > { %1157 = vst.msk [vmem:[%s1668_s8 + $0x14] sm:$0xf] %vm1151_vm8, %v1145_v7  ;;  %v1127_v15 = vmul.f32 0.2, %v1105_v4  ;;  %vm1117_vm4 = vcmp.gt.f32.partialorder %v1106_v6, 0.0 }
 0x1f6   : > { %1158 = vst.msk [vmem:[%s1668_s8 + $0x18] sm:$0xf] %vm1151_vm8, %v1146_v12  ;;  %v1137_v16 = vsel %vm1115_vm2, %v1104_v2, %v1126_v14  ;;  %v1128_v18 = vmul.f32 0.2, %v1106_v6 }
 0x1f7   : > { %1159 = vst.msk [vmem:[%s1668_s8 + $0x1c] sm:$0xf] %vm1151_vm8, %v1147_v13  ;;  %v1148_v19 = vpack.c.bf16 %v1137_v16, %v1137_v16  ;;  %v1138_v20 = vsel %vm1116_vm3, %v1105_v4, %v1127_v15 }
 0x1f8   : > { %v1149_v21 = vpack.c.bf16 %v1138_v20, %v1138_v20  ;;  %v1139_v22 = vsel %vm1117_vm4, %v1106_v6, %v1128_v18 }
 0x1f9   : > { %1160 = vst.msk [vmem:[%s1668_s8 + $0x20] sm:$0xf] %vm1151_vm8, %v1148_v19  ;;  %v1150_v25 = vpack.c.bf16 %v1139_v22, %v1139_v22 }
 0x1fa   : > { %1161 = vst.msk [vmem:[%s1668_s8 + $0x24] sm:$0xf] %vm1151_vm8, %v1149_v21 }
 0x1fb   : > { %v1166_v26 = vsel %vm1164_vm6, %v1150_v25, %v1165_v24 }
 0x1fc   : > { %1167 = vst [vmem:[%s1668_s8 + $0x28] sm:$0x1] %v1166_v26 }
 0x1fd PF: > { %s15_s22 = sadd.s32 1, %s1592_s22   ;;  %s1965_s18 = smov %s1584_s20 }
 0x1fe   : > { %p12_p12 = scmp.ge.s32.totalorder %s15_s22, 6   ;;  %s1966_s19 = smov %s1588_s21 }
 0x1ff   : > { %s1967_s20 = smov %s1970_s23  ;;  %s1968_s21 = smov %s1974_s24 }
 0x200   :  { %14 = sbr.rel (!%p12_p12) target bundleno = 3 (0x3), region = 85 }

// kernel: discriminator_forward.7
= control target key start
LH: loop header
LB: loop body
LE: loop exit
PB: predicated region body
PF: predicated region fallthrough
CT: control target
= control target key end

     0   :  { %s1796_s18 = smov 0   ;;  %s1798_s19 = smov 0   ;;  %s2129_s0 = inlined_call_operand.vmem [shape: bf16[2,31,256], index: 0, kind: input, shape index: {}]   ;;  %s2130_s1 = inlined_call_operand.vmem [shape: bf16[4,256,128], index: 1, kind: input, shape index: {}]   ;;  %s2131_s2 = inlined_call_operand.vmem [shape: f32[1,128], index: 2, kind: input, shape index: {}]   ;;  %s2132_s3 = inlined_call_operand.vmem [shape: f32[1,128], index: 3, kind: input, shape index: {}]   ;;  %s2133_s4 = inlined_call_operand.vmem [shape: f32[25,1], index: 4, kind: input, shape index: {}]   ;;  %s2134_s5 = inlined_call_operand.vmem [shape: f32[2,25,128], index: 5, kind: output, shape index: {}]  }
   0x1   :  { %s1800_s20 = smov 0   ;;  %s1802_s21 = smov 0  }
   0x2   :  { %s1804_s22 = smov 0  }
   0x3 LB: > { %s24_s23 = sadd.s32 1, %s1754_s20  ;;  %s27_s24 = sadd.s32 1, %s1758_s21  ;;  %s1762_s22 = sphi %s1804_s22, %s15_s22   ;;  %s1758_s21 = sphi %s1802_s21, %s2138_s21   ;;  %s1754_s20 = sphi %s1800_s20, %s2137_s20   ;;  %s1750_s19 = sphi %s1798_s19, %s2136_s19   ;;  %s1746_s18 = sphi %s1796_s18, %s2135_s18  }
   0x4   : > { %p25_p0 = scmp.ge.s32.totalorder %s24_s23, 2  ;;  %p1251_p1 = scmp.ge.s32.totalorder %s1762_s22, 1 }
   0x5   : > { %p201_p2 = scmp.lt.s32.totalorder %s1762_s22, 5 }
   0x6   : > { %s2140_s23 = smov (%p25_p0, %s24_s23), 0  ;;  %s2142_s24 = smov (!%p25_p0, %s27_s24), %s1758_s21 }
   0x7   : > { %p202_p3 = pnand %p1251_p1, %p201_p2  ;;  %p29_p4 = scmp.ge.s32.totalorder %s2142_s24, 2 }
   0x8   : > { %p230_p5 = scmp.lt.s32.totalorder (!%p202_p3), %s1746_s18, 1  ;;  %s235_s25 = smul.u32 (!%p202_p3), %s1746_s18, %s1750_s19 }
   0x9   : > { %s2144_s24 = smov (%p29_p4, %s2142_s24), 0  ;;  %205 = sbr.rel (%p202_p3) target bundleno = 454 (0x1c6), region = 40 }
   0xa   : > { %p242_p6 = scmp.eq.s32.totalorder (!%p202_p3), %s1750_s19, 0  ;;  %p243_p7 = scmp.eq.s32.totalorder (!%p202_p3), %s1746_s18, 0 }
   0xb   : > { %p236_p8 = scmp.lt.s32.totalorder (!%p202_p3), %s235_s25, 1 }
   0xc   : > { %p244_p9 = pnand (!%p202_p3), %p243_p7, %p242_p6 }
   0xe   : > { %s2146_s18 = smov (!%p230_p5, %s1746_s18), 1  ;;  %s2148_s25 = smov (!%p236_p8, %s235_s25), 1 }
   0xf   : > { %s1612_s26 = sshll.u32 %s2146_s18, 5  ;;  %s1613_s30 = sshll.u32 %s2148_s25, 5 }
  0x10   : > { %s1833_s29 = scalar_lea.vmem %s2129_s0, %s1612_s26  ;;  %s1838_s8 = scalar_lea.vmem %s2134_s5, %s1613_s30 }
  0x11   : > { %247 = sbr.rel (%p244_p9) target bundleno = 25 (0x19), region = 44 }
  0x16   : > { %v1764_v0 = vmov 0.0  }
  0x17   : > { %248 = vst [vmem:[#allocation2] sm:$0x1] %v1764_v0 }
  0x18   : > { %249 = vst [vmem:[#allocation3] sm:$0x1] %v1764_v0 }
  0x19 PF: > { %v1637_v1 = vld [vmem:[%s2130_s1 + $0xb8] sm:$0xff]  ;;  %v1636_v5 = vld [vmem:[%s2130_s1 + $0xb0] sm:$0xff]  ;;  %v1635_v9 = vld [vmem:[%s2130_s1 + $0xa8] sm:$0xff]  ;;  %vm335_vm0 = vsmask.f32 7424  ;;  %vm909_vm2 = vcmask 1044480  }
  0x1a   : > { %v1645_v2 = vld [vmem:[%s2130_s1 + $0xf8] sm:$0xff]  ;;  %466 = vmatpush.bf16.msra.mxu0 %v1637_v1  ;;  %v1644_v6 = vld [vmem:[%s2130_s1 + $0xf0] sm:$0xff]  ;;  %v1643_v10 = vld [vmem:[%s2130_s1 + $0xe8] sm:$0xff]  ;;  %vm687_vm1 = vsmask.f32 5376  ;;  %p1608_p10 = scmp.ne.s32.totalorder %s1750_s19, 0 }
  0x1b   : > { %v1621_v3 = vld [vmem:[%s2130_s1 + $0x38] sm:$0xff]  ;;  %485 = vmatpush.bf16.msra.mxu1 %v1645_v2  ;;  %v1620_v7 = vld [vmem:[%s2130_s1 + $0x30] sm:$0xff]  ;;  %v1619_v11 = vld [vmem:[%s2130_s1 + $0x28] sm:$0xff] }
  0x1c   : > { %v1629_v4 = vld [vmem:[%s2130_s1 + $0x78] sm:$0xff]  ;;  %604 = vmatpush.bf16.msra.mxu2 %v1621_v3  ;;  %v1628_v8 = vld [vmem:[%s2130_s1 + $0x70] sm:$0xff]  ;;  %v1627_v12 = vld [vmem:[%s2130_s1 + $0x68] sm:$0xff] }
  0x1d   : > { %623 = vmatpush.bf16.msra.mxu3 %v1629_v4  ;;  %v1634_v13 = vld [vmem:[%s2130_s1 + $0xa0] sm:$0xff]  ;;  %v251_v18 = vld [vmem:[%s1833_s29 + $0x8] sm:$0xff]  ;;  %v252_v19 = vld [vmem:[%s1833_s29 + $0x10] sm:$0xff] }
  0x1e   : > { %467 = vmatpush.bf16.msra.mxu0 %v1636_v5  ;;  %v1642_v14 = vld [vmem:[%s2130_s1 + $0xe0] sm:$0xff]  ;;  %v253_v20 = vld [vmem:[%s1833_s29 + $0x18] sm:$0x11]  ;;  %v1892_v23 = vunpack.c.l.b16 %v251_v18  ;;  %v1894_v24 = vunpack.c.h.b16 %v251_v18  ;;  %v1896_v25 = vunpack.c.l.b16 %v252_v19  ;;  %v1905_v30 = vunpack.c.h.b16 %v252_v19  ;;  %v1632_v36 = vld [vmem:[%s2130_s1 + $0x90] sm:$0xff] }
  0x1f   : > { %486 = vmatpush.bf16.msra.mxu1 %v1644_v6  ;;  %v1618_v15 = vld [vmem:[%s2130_s1 + $0x20] sm:$0xff]  ;;  %v329_v26 = vunpack.c.l.b16 %v253_v20  ;;  %v1633_v27 = vld [vmem:[%s2130_s1 + $0x98] sm:$0xff]  ;;  %v330_v31 = vunpack.c.h.b16 %v253_v20  ;;  %v1640_v37 = vld [vmem:[%s2130_s1 + $0xd0] sm:$0xff] }
  0x20   : > { %605 = vmatpush.bf16.msra.mxu2 %v1620_v7  ;;  %v1626_v16 = vld [vmem:[%s2130_s1 + $0x60] sm:$0xff]  ;;  %v1641_v28 = vld [vmem:[%s2130_s1 + $0xd8] sm:$0xff]  ;;  %v1616_v41 = vld [vmem:[%s2130_s1 + $0x10] sm:$0xff] }
  0x21   : > { %624 = vmatpush.bf16.msra.mxu3 %v1628_v8  ;;  %v250_v17 = vld [vmem:[%s1833_s29] sm:$0xff]  ;;  %v1617_v33 = vld [vmem:[%s2130_s1 + $0x18] sm:$0xff]  ;;  %v1915_v35 = vpack.c.b16 %v329_v26, %v1896_v25  ;;  %v1924_v39 = vpack.c.b16 %v330_v31, %v1905_v30  ;;  %v1624_v42 = vld [vmem:[%s2130_s1 + $0x50] sm:$0xff] }
  0x22   : > { %468 = vmatpush.bf16.msra.mxu0 %v1635_v9  ;;  %v323_v21 = vunpack.c.l.b16 %v250_v17  ;;  %v324_v22 = vunpack.c.h.b16 %v250_v17  ;;  %v1625_v34 = vld [vmem:[%s2130_s1 + $0x58] sm:$0xff]  ;;  %v1631_v45 = vld [vmem:[%s2130_s1 + $0x88] sm:$0xff]  ;;  %v1630_v53 = vld [vmem:[%s2130_s1 + $0x80] sm:$0xff] }
  0x23   : > { %487 = vmatpush.bf16.msra.mxu1 %v1643_v10  ;;  %v344_v44 = vshll.u32 %v1915_v35, 16  ;;  %v1639_v46 = vld [vmem:[%s2130_s1 + $0xc8] sm:$0xff]  ;;  %v356_v50 = vshll.u32 %v1924_v39, 16  ;;  %v1638_v54 = vld [vmem:[%s2130_s1 + $0xc0] sm:$0xff]  ;;  %v1669_v61 = vld [vmem:[%s2130_s1 + $0x1b8] sm:$0xff] }
  0x24   : > { %606 = vmatpush.bf16.msra.mxu2 %v1619_v11  ;;  %v331_v29 = vpack.c.b16 %v1892_v23, %v323_v21  ;;  %v332_v32 = vpack.c.b16 %v1894_v24, %v324_v22  ;;  %v1615_v51 = vld [vmem:[%s2130_s1 + $0x8] sm:$0xff]  ;;  %v1614_v59 = vld [vmem:[%s2130_s1] sm:$0xff]  ;;  %v1677_v62 = vld [vmem:[%s2130_s1 + $0x1f8] sm:$0xff] }
  0x25   : > { %625 = vmatpush.bf16.msra.mxu3 %v1627_v12  ;;  %v1623_v52 = vld [vmem:[%s2130_s1 + $0x48] sm:$0xff]  ;;  %v346_v56 = vrot.slane %v344_v44, 1  ;;  %v358_v58 = vrot.slane %v356_v50, 1  ;;  %v1622_v60 = vld [vmem:[%s2130_s1 + $0x40] sm:$0xff]  ;;  %v1653_v1 = vld [vmem:[%s2130_s1 + $0x138] sm:$0xff] }
  0x26   : > { %469 = vmatpush.bf16.msra.mxu0 %v1634_v13  ;;  %v339_v38 = vshll.u32 %v331_v29, 16  ;;  %v351_v40 = vshll.u32 %v332_v32, 16  ;;  %v337_v43 = vshrl.u32 %v331_v29, 16  ;;  %v349_v48 = vshrl.u32 %v332_v32, 16  ;;  %v1661_v2 = vld [vmem:[%s2130_s1 + $0x178] sm:$0xff]  ;;  %v1668_v3 = vld [vmem:[%s2130_s1 + $0x1b0] sm:$0xff] }
  0x27   : > { %488 = vmatpush.bf16.msra.mxu1 %v1642_v14  ;;  %v1676_v4 = vld [vmem:[%s2130_s1 + $0x1f0] sm:$0xff]  ;;  %v1667_v7 = vld [vmem:[%s2130_s1 + $0x1a8] sm:$0xff]  ;;  %v642_v9 = vld [vmem:[%s1833_s29] sm:$0xcc] }
  0x28   : > { %607 = vmatpush.bf16.msra.mxu2 %v1618_v15  ;;  %v341_v47 = vrot.slane %v339_v38, 1  ;;  %v353_v49 = vrot.slane %v351_v40, 1  ;;  %v1652_v5 = vld [vmem:[%s2130_s1 + $0x130] sm:$0xff]  ;;  %v1675_v8 = vld [vmem:[%s2130_s1 + $0x1e8] sm:$0xff]  ;;  %v643_v12 = vld [vmem:[%s1833_s29 + $0x18] sm:$0x77]  ;;  %v679_v17 = vunpack.c.l.b16 %v642_v9  ;;  %v680_v19 = vunpack.c.h.b16 %v642_v9 }
  0x29   : > { %626 = vmatpush.bf16.msra.mxu3 %v1626_v16  ;;  %v1660_v6 = vld [vmem:[%s2130_s1 + $0x170] sm:$0xff]  ;;  %v1651_v10 = vld [vmem:[%s2130_s1 + $0x128] sm:$0xff]  ;;  %v1666_v13 = vld [vmem:[%s2130_s1 + $0x1a0] sm:$0xff]  ;;  %v360_v15 = vshrl.u32 %v1915_v35, 16  ;;  %v363_v16 = vshrl.u32 %v1924_v39, 16  ;;  %v681_v18 = vunpack.c.l.b16 %v643_v12  ;;  %v682_v22 = vunpack.c.h.b16 %v643_v12 }
  0x2a   : > { %470 = vmatpush.bf16.msra.mxu0 %v1633_v27  ;;  %v342_v55 = vor.u32 %v341_v47, %v337_v43  ;;  %v354_v57 = vor.u32 %v353_v49, %v349_v48  ;;  %v1659_v11 = vld [vmem:[%s2130_s1 + $0x168] sm:$0xff]  ;;  %v1674_v14 = vld [vmem:[%s2130_s1 + $0x1e0] sm:$0xff]  ;;  %v1665_v26 = vld [vmem:[%s2130_s1 + $0x198] sm:$0xff]  ;;  %v683_v31 = vpack.c.b16 %v1892_v23, %v679_v17 }
  0x2b   : > { %489 = vmatpush.bf16.msra.mxu1 %v1641_v28  ;;  %v1650_v20 = vld [vmem:[%s2130_s1 + $0x120] sm:$0xff]  ;;  %v1673_v27 = vld [vmem:[%s2130_s1 + $0x1d8] sm:$0xff]  ;;  %v362_v28 = vor.u32 %v360_v15, %v346_v56  ;;  %v1664_v38 = vld [vmem:[%s2130_s1 + $0x190] sm:$0xff] }
  0x2c   : > { %608 = vmatpush.bf16.msra.mxu2 %v1617_v33  ;;  %v347_v63 = vsel %vm335_vm0, %v342_v55, %v346_v56  ;;  %v359_v0 = vsel %vm335_vm0, %v354_v57, %v358_v58  ;;  %v1658_v21 = vld [vmem:[%s2130_s1 + $0x160] sm:$0xff]  ;;  %v684_v33 = vpack.c.b16 %v1894_v24, %v680_v19  ;;  %v1672_v40 = vld [vmem:[%s2130_s1 + $0x1d0] sm:$0xff]  ;;  %v865_v43 = vld [vmem:[%s1833_s29 + $0x18] sm:$0xff]  ;;  %v692_v44 = vshll.u32 %v683_v31, 16 }
  0x2d   : > { %627 = vmatpush.bf16.msra.mxu3 %v1625_v34  ;;  %v1649_v34 = vld [vmem:[%s2130_s1 + $0x118] sm:$0xff]  ;;  %v1648_v48 = vld [vmem:[%s2130_s1 + $0x110] sm:$0xff]  ;;  %v904_v56 = vunpack.c.h.b16 %v865_v43 }
  0x2e   : > { %471 = vmatpush.bf16.msra.mxu0 %v1632_v36  ;;  %v1657_v36 = vld [vmem:[%s2130_s1 + $0x158] sm:$0xff]  ;;  %v706_v47 = vshrl.u32 %v684_v33, 16  ;;  %v1656_v49 = vld [vmem:[%s2130_s1 + $0x150] sm:$0xff]  ;;  %v709_v50 = vshll.u32 %v684_v33, 16 }
  0x2f   : > { %490 = vmatpush.bf16.msra.mxu1 %v1640_v37  ;;  %v686_v37 = vpack.c.b16 %v682_v22, %v1905_v30 }
  0x30   : > { %609 = vmatpush.bf16.msra.mxu2 %v1616_v41  ;;  %v864_v41 = vld [vmem:[%s1833_s29] sm:$0x88] }
  0x31   : > { %628 = vmatpush.bf16.msra.mxu3 %v1624_v42  ;;  %v689_v42 = vshrl.u32 %v683_v31, 16  ;;  %v902_v55 = vunpack.c.h.b16 %v864_v41 }
  0x32   : > { %472 = vmatpush.bf16.msra.mxu0 %v1631_v45 }
  0x33   : > { %491 = vmatpush.bf16.msra.mxu1 %v1639_v46  ;;  %v691_v57 = vrot.slane %v689_v42, 2 }
  0x34   : > { %610 = vmatpush.bf16.msra.mxu2 %v1615_v51  ;;  %v714_v51 = vshrl.u32 %v686_v37, 16 }
  0x35   : > { %629 = vmatpush.bf16.msra.mxu3 %v1623_v52  ;;  %v717_v52 = vshll.u32 %v686_v37, 16 }
  0x36   : > { %473 = vmatpush.bf16.msra.mxu0 %v1630_v53  ;;  %v1671_v53 = vld [vmem:[%s2130_s1 + $0x1c8] sm:$0xff] }
  0x37   : > { %492 = vmatpush.bf16.msra.mxu1 %v1638_v54  ;;  %v903_v54 = vunpack.c.l.b16 %v865_v43 }
  0x38   : > { %611 = vmatpush.bf16.msra.mxu2 %v1614_v59 }
  0x39   : > { %630 = vmatpush.bf16.msra.mxu3 %v1622_v60  ;;  %474 = vmatmul.bf16.vlgmr.msra.gmra.mxu0 %v347_v63  ;;  %v1655_v63 = vld [vmem:[%s2130_s1 + $0x148] sm:$0xff] }
  0x3a   : > { %493 = vmatmul.bf16.vlgmr.msra.gmra.mxu1 %v359_v0  ;;  %822 = vmatpush.bf16.msrb.mxu0 %v1653_v1  ;;  %v711_v0 = vrot.slane %v709_v50, 3  ;;  %v716_v1 = vrot.slane %v714_v51, 2 }
  0x3b   : > { %612 = vmatmul.bf16.vlgmr.msra.gmra.mxu2 %v331_v29  ;;  %841 = vmatpush.bf16.msrb.mxu1 %v1661_v2  ;;  %v365_v29 = vor.u32 %v363_v16, %v358_v58  ;;  %v694_v58 = vrot.slane %v692_v44, 3  ;;  %v719_v2 = vrot.slane %v717_v52, 3 }
  0x3c   : > { %1016 = vmatpush.bf16.msrb.mxu2 %v1669_v61  ;;  %631 = vmatmul.bf16.vlgmr.msra.gmra.mxu3 %v332_v32  ;;  %v685_v32 = vpack.c.b16 %v681_v18, %v1896_v25  ;;  %v708_v61 = vrot.slane %v706_v47, 2 }
  0x3d   : > { %1035 = vmatpush.bf16.msrb.mxu3 %v1677_v62  ;;  %v1647_v62 = vld [vmem:[%s2130_s1 + $0x108] sm:$0xff]  ;;  %v695_v9 = vor.u32 %v694_v58, %v691_v57 }
  0x3e   : > { %823 = vmatpush.bf16.msrb.mxu0 %v1652_v5  ;;  %v697_v45 = vshrl.u32 %v685_v32, 16  ;;  %v700_v46 = vshll.u32 %v685_v32, 16  ;;  %v1670_v5 = vld [vmem:[%s2130_s1 + $0x1c0] sm:$0xff]  ;;  %v712_v12 = vor.u32 %v711_v0, %v708_v61 }
  0x3f   : > { %842 = vmatpush.bf16.msrb.mxu1 %v1660_v6  ;;  %v907_v6 = vpack.c.b16 %v903_v54, %v1896_v25 }
  0x40   : > { %1017 = vmatpush.bf16.msrb.mxu2 %v1668_v3  ;;  %v699_v59 = vrot.slane %v697_v45, 2  ;;  %v702_v60 = vrot.slane %v700_v46, 3 }
  0x41   : > { %1036 = vmatpush.bf16.msrb.mxu3 %v1676_v4  ;;  %v1662_v4 = vld [vmem:[%s2130_s1 + $0x180] sm:$0xff]  ;;  %v911_v25 = vrot.slane %v907_v6, 3 }
  0x42   : > { %824 = vmatpush.bf16.msrb.mxu0 %v1651_v10  ;;  %v1654_v10 = vld [vmem:[%s2130_s1 + $0x140] sm:$0xff] }
  0x43   : > { %843 = vmatpush.bf16.msrb.mxu1 %v1659_v11  ;;  %v703_v11 = vor.u32 %v702_v60, %v699_v59 }
  0x44   : > { %1018 = vmatpush.bf16.msrb.mxu2 %v1667_v7  ;;  %v906_v7 = vpack.c.b16 %v1894_v24, %v902_v55 }
  0x45   : > { %1037 = vmatpush.bf16.msrb.mxu3 %v1675_v8  ;;  %v908_v8 = vpack.c.b16 %v904_v56, %v1905_v30  ;;  %v704_v15 = vsel %vm687_vm1, %v695_v9, %v703_v11 }
  0x46   : > { %825 = vmatpush.bf16.msrb.mxu0 %v1650_v20  ;;  %v913_v30 = vrot.slane %v906_v7, 3 }
  0x47   : > { %844 = vmatpush.bf16.msrb.mxu1 %v1658_v21 }
  0x48   : > { %1019 = vmatpush.bf16.msrb.mxu2 %v1666_v13  ;;  %v720_v13 = vor.u32 %v719_v2, %v716_v1 }
  0x49   : > { %1038 = vmatpush.bf16.msrb.mxu3 %v1674_v14  ;;  %479 = vmatmul.bf16.gmra.mxu0 %v362_v28  ;;  %v914_v14 = vrot.slane %v908_v8, 3 }
  0x4a   : > { %498 = vmatmul.bf16.gmra.mxu1 %v365_v29  ;;  %826 = vmatpush.bf16.msrb.mxu0 %v1649_v34  ;;  %v721_v16 = vsel %vm687_vm1, %v712_v12, %v720_v13 }
  0x4b   : > { %617 = vmatmul.bf16.gmra.mxu2 %v1915_v35  ;;  %845 = vmatpush.bf16.msrb.mxu1 %v1657_v36  ;;  %v901_v35 = vunpack.c.l.b16 %v864_v41  ;;  %v915_v18 = vsel %vm909_vm2, %v913_v30, %v914_v14 }
  0x4c   : > { %1020 = vmatpush.bf16.msrb.mxu2 %v1665_v26  ;;  %636 = vmatmul.bf16.gmra.mxu3 %v1924_v39  ;;  %v1663_v39 = vld [vmem:[%s2130_s1 + $0x188] sm:$0xff] }
  0x4d   : > { %1039 = vmatpush.bf16.msrb.mxu3 %v1673_v27  ;;  %v905_v3 = vpack.c.b16 %v1892_v23, %v901_v35  ;;  %v1646_v23 = vld [vmem:[%s2130_s1 + $0x100] sm:$0xff] }
  0x4e   : > { %827 = vmatpush.bf16.msrb.mxu0 %v1648_v48 }
  0x4f   : > { %846 = vmatpush.bf16.msrb.mxu1 %v1656_v49  ;;  %v910_v24 = vrot.slane %v905_v3, 3 }
  0x50   : > { %1021 = vmatpush.bf16.msrb.mxu2 %v1664_v38 }
  0x51   : > { %1040 = vmatpush.bf16.msrb.mxu3 %v1672_v40  ;;  %v912_v17 = vsel %vm909_vm2, %v910_v24, %v911_v25 }
  0x52   : > { %828 = vmatpush.bf16.msrb.mxu0 %v1647_v62 }
  0x53   : > { %847 = vmatpush.bf16.msrb.mxu1 %v1655_v63 }
  0x54   : > { %1022 = vmatpush.bf16.msrb.mxu2 %v1663_v39 }
  0x55   : > { %1041 = vmatpush.bf16.msrb.mxu3 %v1671_v53 }
  0x56   : > { %829 = vmatpush.bf16.msrb.mxu0 %v1646_v23 }
  0x57   : > { %848 = vmatpush.bf16.msrb.mxu1 %v1654_v10 }
  0x58   : > { %1023 = vmatpush.bf16.msrb.mxu2 %v1662_v4 }
  0x59   : > { %1042 = vmatpush.bf16.msrb.mxu3 %v1670_v5  ;;  %830 = vmatmul.bf16.vlgmr.msrb.gmra.mxu0 %v704_v15 }
  0x5a   : > { %849 = vmatmul.bf16.vlgmr.msrb.gmra.mxu1 %v721_v16 }
  0x5b   : > { %1024 = vmatmul.bf16.vlgmr.msrb.gmra.mxu2 %v912_v17 }
  0x5c   : > { %1043 = vmatmul.bf16.vlgmr.msrb.gmra.mxu3 %v915_v18 }
  0x69   : > { %835 = vmatmul.bf16.gmra.mxu0 %v703_v11 }
  0x6a   : > { %854 = vmatmul.bf16.gmra.mxu1 %v720_v13 }
  0x6b   : > { %1029 = vmatmul.bf16.gmra.mxu2 %v911_v25 }
  0x6c   : > { %1048 = vmatmul.bf16.gmra.mxu3 %v914_v14 }
  0xb6   : > { %v475_v19 = vpop.f32.mrf.mxu0 }
  0xb7   : > { %v494_v20 = vpop.f32.mrf.mxu1 }
  0xb8   : > { %v495_v38 = vadd.f32 %v494_v20, %v475_v19 }
  0xbe   : > { %v613_v21 = vpop.f32.mrf.mxu2  ;;  %v477_v26 = vpop.f32.mrf.mxu0 }
  0xbf   : > { %v632_v22 = vpop.f32.mrf.mxu3  ;;  %v496_v27 = vpop.f32.mrf.mxu1  ;;  %v614_v44 = vadd.f32 %v613_v21, %v495_v38 }
  0xc0   : > { %v497_v49 = vadd.f32 %v496_v27, %v477_v26 }
  0xc1   : > { %v633_v46 = vadd.f32 %v632_v22, %v614_v44 }
  0xc6   : > { %v615_v28 = vpop.f32.mrf.mxu2  ;;  %v480_v31 = vpop.f32.mrf.mxu0 }
  0xc7   : > { %v634_v29 = vpop.f32.mrf.mxu3  ;;  %v499_v32 = vpop.f32.mrf.mxu1  ;;  %v616_v39 = vadd.f32 %v615_v28, %v497_v49 }
  0xc8   : > { %v500_v56 = vadd.f32 %v499_v32, %v480_v31 }
  0xc9   : > { %v635_v55 = vadd.f32 %v634_v29, %v616_v39 }
  0xce   : > { %v618_v33 = vpop.f32.mrf.mxu2  ;;  %v482_v36 = vpop.f32.mrf.mxu0 }
  0xcf   : > { %v637_v34 = vpop.f32.mrf.mxu3  ;;  %v501_v37 = vpop.f32.mrf.mxu1  ;;  %v619_v63 = vadd.f32 %v618_v33, %v500_v56 }
  0xd0   : > { %v502_v5 = vadd.f32 %v501_v37, %v482_v36 }
  0xd1   : > { %v638_v2 = vadd.f32 %v637_v34, %v619_v63 }
  0xd6   : > { %v620_v40 = vpop.f32.mrf.mxu2  ;;  %v831_v42 = vpop.f32.mrf.mxu0 }
  0xd7   : > { %v639_v41 = vpop.f32.mrf.mxu3  ;;  %v850_v43 = vpop.f32.mrf.mxu1  ;;  %v621_v23 = vadd.f32 %v620_v40, %v502_v5 }
  0xd8   : > { %v851_v45 = vadd.f32 %v850_v43, %v831_v42 }
  0xd9   : > { %v640_v12 = vadd.f32 %v639_v41, %v621_v23 }
  0xda   : > { %v860_v50 = vadd.f32 %v851_v45, %v633_v46 }
  0xde   : > { %v1025_v47 = vpop.f32.mrf.mxu2  ;;  %v833_v52 = vpop.f32.mrf.mxu0 }
  0xdf   : > { %v1044_v48 = vpop.f32.mrf.mxu3  ;;  %v852_v35 = vpop.f32.mrf.mxu1 }
  0xe0   : > { %v1045_v51 = vadd.f32 %v1044_v48, %v1025_v47  ;;  %v853_v54 = vadd.f32 %v852_v35, %v833_v52 }
  0xe2   : > { %v2070_v53 = vadd.f32 %v1045_v51, %v860_v50  ;;  %v861_v59 = vadd.f32 %v853_v54, %v635_v55 }
  0xe6   : > { %v1027_v57 = vpop.f32.mrf.mxu2  ;;  %v836_v61 = vpop.f32.mrf.mxu0 }
  0xe7   : > { %v1046_v58 = vpop.f32.mrf.mxu3  ;;  %v855_v62 = vpop.f32.mrf.mxu1 }
  0xe8   : > { %v1047_v60 = vadd.f32 %v1046_v58, %v1027_v57  ;;  %v856_v1 = vadd.f32 %v855_v62, %v836_v61 }
  0xea   : > { %v2072_v0 = vadd.f32 %v1047_v60, %v861_v59  ;;  %v862_v6 = vadd.f32 %v856_v1, %v638_v2 }
  0xee   : > { %v1030_v3 = vpop.f32.mrf.mxu2  ;;  %v838_v8 = vpop.f32.mrf.mxu0 }
  0xef   : > { %v1049_v4 = vpop.f32.mrf.mxu3  ;;  %v857_v9 = vpop.f32.mrf.mxu1 }
  0xf0   : > { %v1050_v7 = vadd.f32 %v1049_v4, %v1030_v3  ;;  %v858_v11 = vadd.f32 %v857_v9, %v838_v8 }
  0xf2   : > { %v2074_v10 = vadd.f32 %v1050_v7, %v862_v6  ;;  %v863_v25 = vadd.f32 %v858_v11, %v640_v12 }
  0xf6   : > { %v1032_v13 = vpop.f32.mrf.mxu2  ;;  %1060 = sbr.rel (%p1608_p10) target bundleno = 401 (0x191), region = 48 }
  0xf7   : > { %v1051_v24 = vpop.f32.mrf.mxu3 }
  0xf8   : > { %v1052_v30 = vadd.f32 %v1051_v24, %v1032_v13 }
  0xfa   : > { %v2076_v14 = vadd.f32 %v1052_v30, %v863_v25 }
  0xfb   : > { %v1063_v15 = vld [vmem:[%s2133_s4 + $0x10] sm:$0xff]  ;;  %v1061_v16 = vld [vmem:[%s2133_s4] sm:$0xff]  ;;  %v1765_v17 = vmov 0   ;;  %v1064_v18 = vld [vmem:[%s2133_s4 + $0x18] sm:$0x1]  ;;  %vm1092_vm3 = vcmask 1040384  }
  0xfc   : > { %1721 = vset.pattern.permute.xlu1 %v1765_v17  ;;  %1720 = vset.pattern.permute.xlu0 %v1765_v17  ;;  %v1062_v19 = vld [vmem:[%s2133_s4 + $0x8] sm:$0xff]  ;;  %v1089_v54 = vld [vmem:[#allocation2] sm:$0x1]  ;;  %v1103_v57 = vld [vmem:[#allocation3] sm:$0x1] }
  0xfd   : > { %1077 = vperm.xlu1 %1721, %v1063_v15   ;;  %1067 = vperm.xlu0 %1720, %v1061_v16  }
 0x105   : > { %1082 = vperm.xlu1 %1721, %v1064_v18   ;;  %1072 = vperm.xlu0 %1720, %v1062_v19  }
 0x16f   : > { %v1078_v20 = vpop.permute.xlu1 %1077  ;;  %v1068_v21 = vpop.permute.xlu0 %1067 }
 0x170   : > { %v1085_v22 = vmul.f32 %v1068_v21, %v2070_v53  ;;  %v1087_v28 = vmul.f32 %v1078_v20, %v2074_v10 }
 0x172   : > { %v1104_v32 = vmul.f32 %v1085_v22, %v2070_v53  ;;  %v1106_v37 = vmul.f32 %v1087_v28, %v2074_v10 }
 0x177   : > { %v1083_v26 = vpop.permute.xlu1 %1082  ;;  %v1073_v27 = vpop.permute.xlu0 %1072 }
 0x178   : > { %v1088_v29 = vmul.f32 %v1083_v26, %v2076_v14  ;;  %v1086_v31 = vmul.f32 %v1073_v27, %v2072_v0 }
 0x17a   : > { %v1090_v33 = vadd.f32 %v1086_v31, %v1085_v22  ;;  %v1105_v34 = vmul.f32 %v1086_v31, %v2072_v0  ;;  %v1107_v36 = vmul.f32 %v1088_v29, %v2076_v14  ;;  %v1093_v41 = vsel %vm1092_vm3, %v1088_v29, 0.0 }
 0x17c   : > { %v1091_v38 = vadd.f32 %v1090_v33, %v1087_v28  ;;  %v1108_v40 = vadd.f32 %v1105_v34, %v1104_v32  ;;  %v1110_v44 = vsel %vm1092_vm3, %v1107_v36, 0.0 }
 0x17e   : > { %v1094_v42 = vadd.f32 %v1093_v41, %v1091_v38  ;;  %v1109_v43 = vadd.f32 %v1108_v40, %v1106_v37 }
 0x180   : > { %v1095_v45 = vrot.slane %v1094_v42, 4  ;;  %v1111_v46 = vadd.f32 %v1110_v44, %v1109_v43 }
 0x182   : > { %v1096_v47 = vadd.f32 %v1095_v45, %v1094_v42  ;;  %v1112_v48 = vrot.slane %v1111_v46, 4 }
 0x184   : > { %v1097_v49 = vrot.slane %v1096_v47, 2  ;;  %v1113_v50 = vadd.f32 %v1112_v48, %v1111_v46 }
 0x186   : > { %v1098_v51 = vadd.f32 %v1097_v49, %v1096_v47  ;;  %v1114_v52 = vrot.slane %v1113_v50, 2 }
 0x188   : > { %v1099_v35 = vrot.slane %v1098_v51, 1  ;;  %v1115_v39 = vadd.f32 %v1114_v52, %v1113_v50 }
 0x18a   : > { %v1100_v55 = vadd.f32 %v1099_v35, %v1098_v51  ;;  %v1116_v56 = vrot.slane %v1115_v39, 1 }
 0x18c   : > { %v1101_v58 = vadd.f32 %v1100_v55, %v1089_v54  ;;  %v1117_v59 = vadd.f32 %v1116_v56, %v1115_v39 }
 0x18e   : > { %1102 = vst [vmem:[#allocation2] sm:$0x1] %v1101_v58  ;;  %v1118_v60 = vadd.f32 %v1117_v59, %v1103_v57 }
 0x190   : > { %1119 = vst [vmem:[#allocation3] sm:$0x1] %v1118_v60 }
 0x191 PF: > { %p1609_p11 = scmp.ne.s32.totalorder %s1750_s19, 1 }
 0x193   : > { %1123 = sbr.rel (%p1609_p11) target bundleno = 454 (0x1c6), region = 52 }
 0x198   : > { %v1124_v61 = vld [vmem:[#allocation2] sm:$0x1]  ;;  %v1126_v62 = vld [vmem:[#allocation3] sm:$0x1] }
 0x199   : > { %v1125_v63 = vmul.f32 0.03125, %v1124_v61  ;;  %v1127_v1 = vmul.f32 0.03125, %v1126_v62  ;;  %v1131_v11 = vld [vmem:[%s2131_s2] sm:$0x1] }
 0x19a   : > { %v1144_v25 = vld [vmem:[%s2132_s3] sm:$0x1] }
 0x19b   : > { %v1128_v2 = vmul.f32 %v1125_v63, %v1125_v63 }
 0x19d   : > { %v1129_v3 = vsub.f32 %v1127_v1, %v1128_v2 }
 0x19f   : > { %v1130_v4 = vmax.f32 %v1129_v3, 0.0 }
 0x1a1   : > { %v1132_v5 = vadd.f32 1e-05, %v1130_v4 }
 0x1a3   : > { %1722 = vrsqrt.f32 %v1132_v5  ;;  %vm1139_vm4 = vweird.f32 %v1132_v5 }
 0x1a9   : > { %v1723_v6 = vpop.eup %1722 }
 0x1aa   : > { %v1134_v7 = vmul.f32 %v1723_v6, %v1132_v5  ;;  %vm1140_vm5 = vweird.f32 %v1723_v6 }
 0x1ab   : > { %vm1141_vm6 = vmor %vm1139_vm4, %vm1140_vm5 }
 0x1ac   : > { %v1135_v8 = vmul.f32 %v1723_v6, %v1134_v7 }
 0x1ae   : > { %v1136_v9 = vmul.f32 0.5, %v1135_v8 }
 0x1b0   : > { %v1137_v23 = vsub.f32 1.5, %v1136_v9 }
 0x1b2   : > { %v1138_v12 = vmul.f32 %v1723_v6, %v1137_v23 }
 0x1b4   : > { %v1142_v13 = vsel %vm1141_vm6, %v1723_v6, %v1138_v12 }
 0x1b5   : > { %v1143_v24 = vmul.f32 %v1142_v13, %v1131_v11 }
 0x1b7   : > { %v1145_v30 = vmul.f32 %v1143_v24, %v1125_v63  ;;  %v1148_v15 = vperm.slane %v1143_v24, 0 }
 0x1b9   : > { %v1146_v16 = vsub.f32 %v1144_v25, %v1145_v30  ;;  %v1150_v17 = vmul.f32 %v1148_v15, %v2070_v53  ;;  %v1151_v18 = vmul.f32 %v1148_v15, %v2072_v0  ;;  %v1152_v19 = vmul.f32 %v1148_v15, %v2074_v10 }
 0x1ba   : > { %v1153_v20 = vmul.f32 %v1148_v15, %v2076_v14 }
 0x1bb   : > { %v1155_v21 = vperm.slane %v1146_v16, 0 }
 0x1bd   : > { %v1157_v22 = vadd.f32 %v1155_v21, %v1150_v17  ;;  %v1158_v26 = vadd.f32 %v1155_v21, %v1151_v18  ;;  %v1159_v27 = vadd.f32 %v1155_v21, %v1152_v19  ;;  %v1160_v28 = vadd.f32 %v1155_v21, %v1153_v20 }
 0x1bf   : > { %vm1161_vm7 = vcmp.gt.f32.partialorder %v1157_v22, 0.0  ;;  %v1165_v29 = vmul.f32 0.2, %v1157_v22  ;;  %vm1162_vm8 = vcmp.gt.f32.partialorder %v1158_v26, 0.0  ;;  %v1166_v31 = vmul.f32 0.2, %v1158_v26 }
 0x1c0   : > { %vm1163_vm9 = vcmp.gt.f32.partialorder %v1159_v27, 0.0  ;;  %v1167_v53 = vmul.f32 0.2, %v1159_v27  ;;  %vm1164_vm10 = vcmp.gt.f32.partialorder %v1160_v28, 0.0  ;;  %v1168_v0 = vmul.f32 0.2, %v1160_v28 }
 0x1c1   : > { %v1169_v10 = vsel %vm1161_vm7, %v1157_v22, %v1165_v29  ;;  %v1170_v32 = vsel %vm1162_vm8, %v1158_v26, %v1166_v31 }
 0x1c2   : > { %1173 = vst [vmem:[%s1838_s8] sm:$0xff] %v1169_v10  ;;  %v1171_v14 = vsel %vm1163_vm9, %v1159_v27, %v1167_v53  ;;  %v1172_v33 = vsel %vm1164_vm10, %v1160_v28, %v1168_v0 }
 0x1c3   : > { %1174 = vst [vmem:[%s1838_s8 + $0x8] sm:$0xff] %v1170_v32 }
 0x1c4   : > { %1175 = vst [vmem:[%s1838_s8 + $0x10] sm:$0xff] %v1171_v14 }
 0x1c5   : > { %1176 = vst [vmem:[%s1838_s8 + $0x18] sm:$0x1] %v1172_v33 }
 0x1c6 PF: > { %s15_s22 = sadd.s32 1, %s1762_s22   ;;  %s2135_s18 = smov %s1754_s20 }
 0x1c7   : > { %p12_p12 = scmp.ge.s32.totalorder %s15_s22, 6   ;;  %s2136_s19 = smov %s1758_s21 }
 0x1c8   : > { %s2137_s20 = smov %s2140_s23  ;;  %s2138_s21 = smov %s2144_s24 }
 0x1c9   :  { %14 = sbr.rel (!%p12_p12) target bundleno = 3 (0x3), region = 85 }

</bundles_post_ra>
